<compile_context>
chip_gen: v7x
topology: tpu7x:2x2x1
jax: 0.10.0
libtpu: 0.0.40
codegen_flags: <defaults>
</compile_context>

<pallas_src>
import math
from functools import partial

import numpy as np
import jax
import jax.numpy as jnp
from jax import lax
from jax.experimental import pallas as pl
from jax.experimental.pallas import tpu as pltpu


def _gelu_tanh(x):
    # TODO(synk): PyTorch nn.GELU() default is the exact erf form; tanh approximation is used for
    # robust Mosaic lowering (~1e-3 relative difference).
    c = 0.7978845608028654  # sqrt(2/pi)
    return 0.5 * x * (1.0 + jnp.tanh(c * (x + 0.044715 * x * x * x)))


def _resident_spec(arr):
    """Whole-array block with a constant index_map (stays VMEM-resident across all grid steps)."""
    zeros = (0,) * arr.ndim
    return pl.BlockSpec(arr.shape, lambda *_: zeros)


# ----------------------------- row-tiled linear (+GELU) kernel (patchifier) -----------------------------

def _linear_kernel(x_ref, w_ref, b_ref, o_ref, *, act):
    x = x_ref[...].astype(jnp.bfloat16)
    y = jnp.dot(x, w_ref[...], preferred_element_type=jnp.float32) + b_ref[...]
    if act == "gelu":
        y = _gelu_tanh(y)
    o_ref[...] = y


def linear(x, w, b, act=None, tile_m=1024):
    """x: [M, K] f32, w: [K, N] bf16 (resident), b: [1, N] f32  ->  [M, N] f32, row-tiled over M."""
    M, K = x.shape
    N = w.shape[1]
    tm = min(tile_m, M)
    return pl.pallas_call(
        partial(_linear_kernel, act=act),
        out_shape=jax.ShapeDtypeStruct((M, N), jnp.float32),
        grid=(pl.cdiv(M, tm),),
        in_specs=[pl.BlockSpec((tm, K), lambda i: (i, 0)),
                  _resident_spec(w),
                  _resident_spec(b)],
        out_specs=pl.BlockSpec((tm, N), lambda i: (i, 0)),
        compiler_params=pltpu.CompilerParams(dimension_semantics=("parallel",)),
    )(x, w, b)


# ----------------------------- fused full-encoder kernel (all ViT layers) -----------------------------

def _encoder_kernel(mask_ref, tok_ref, pos_ref, x_ref,
                    g1_ref, b1_ref, wqkv_ref, bqkv_ref, wproj_ref, bproj_ref,
                    g2_ref, b2_ref, wfc1_ref, bfc1_ref, wfc2_ref, bfc2_ref,
                    ng_ref, nb_ref, wout_ref, bout_ref,
                    o_ref, acc_ref, *, num_heads, scale, eps, final_eps):
    layer = pl.program_id(1)
    depth = pl.num_programs(1)

    @pl.when(layer == 0)
    def _():
        # fused bool-mask token replacement + positional-encoding add
        m = mask_ref[0] > 0.5                                   # [N, 1] bool
        acc_ref[...] = jnp.where(m, tok_ref[...], x_ref[0]) + pos_ref[...]

    x = acc_ref[...]                                            # [N, D] f32, carried across depth
    N, D = x.shape
    H = num_heads
    Dh = D // H

    def ln(h, g, bb, e):
        mu = jnp.mean(h, axis=-1, keepdims=True)
        var = jnp.mean(jnp.square(h - mu), axis=-1, keepdims=True)
        return (h - mu) * lax.rsqrt(var + e) * g + bb

    # --- multi-head self attention (pre-norm) ---
    h = ln(x, g1_ref[0], b1_ref[0], eps)
    qkv = jnp.dot(h.astype(jnp.bfloat16), wqkv_ref[0],
                  preferred_element_type=jnp.float32) + bqkv_ref[0]          # [N, 3D]
    # TODO(synk): per-head dots are unrolled here; with a 128-aligned head_dim this could become a
    # single head-batched dot_general on [H, N, Dh] operands.
    heads = []
    for hh in range(H):
        lo = hh * Dh
        qh = qkv[:, lo:lo + Dh].astype(jnp.bfloat16)
        kh = qkv[:, D + lo:D + lo + Dh].astype(jnp.bfloat16)
        vh = qkv[:, 2 * D + lo:2 * D + lo + Dh].astype(jnp.bfloat16)
        s = jnp.einsum("nd,md->nm", qh, kh,
                       preferred_element_type=jnp.float32) * scale          # [N, N]
        s = s - jnp.max(s, axis=-1, keepdims=True)
        p = jnp.exp(s)
        p = p * pl.reciprocal(jnp.sum(p, axis=-1, keepdims=True), approx=True)
        heads.append(jnp.dot(p.astype(jnp.bfloat16), vh,
                             preferred_element_type=jnp.float32))            # [N, Dh]
    attn = jnp.concatenate(heads, axis=-1)                                   # [N, D]
    # single K=D output projection (instead of H small K=Dh matmuls)
    y = jnp.dot(attn.astype(jnp.bfloat16), wproj_ref[0],
                preferred_element_type=jnp.float32) + bproj_ref[0]
    x = x + y                                                   # residual (drop_path = 0)

    # --- MLP (pre-norm) ---
    h2 = ln(x, g2_ref[0], b2_ref[0], eps)
    mlp = jnp.dot(h2.astype(jnp.bfloat16), wfc1_ref[0],
                  preferred_element_type=jnp.float32) + bfc1_ref[0]
    mlp = _gelu_tanh(mlp)
    mlp = jnp.dot(mlp.astype(jnp.bfloat16), wfc2_ref[0],
                  preferred_element_type=jnp.float32) + bfc2_ref[0]
    x = x + mlp
    acc_ref[...] = x                                            # carry to next depth step

    @pl.when(layer == depth - 1)
    def _():
        # fused final LayerNorm(eps=1e-6) + out_proj epilogue (saves an extra HBM round trip)
        xn = ln(x, ng_ref[...], nb_ref[...], final_eps)
        o_ref[0] = jnp.dot(xn.astype(jnp.bfloat16), wout_ref[...],
                           preferred_element_type=jnp.float32) + bout_ref[...]


def encoder_stack(x, mask, params, *, num_heads, scale, eps=1e-6, final_eps=1e-6):
    """x: [B, N, D] f32; mask: [B, N, 1] f32 -> [B, N, out_dim] f32 (single fused pallas_call)."""
    # TODO(synk): VisionTransformerLayer source not given; its LayerNorm eps assumed 1e-6
    # (I-JEPA convention).  The spec's final norm uses eps=1e-6 explicitly.
    B, N, D = x.shape
    lp = params["layers"]                                       # dict of depth-stacked arrays
    hp = params["head"]
    out_dim = hp["w_out"].shape[1]
    depth = lp["w_qkv"].shape[0]

    def batch_spec(arr):
        return pl.BlockSpec((1,) + arr.shape[1:],
                            lambda b, l: (b,) + (0,) * (arr.ndim - 1))

    def layer_spec(arr):
        # per-layer weight block, indexed by the (innermost) depth grid axis -> pipelined prefetch
        return pl.BlockSpec((1,) + arr.shape[1:],
                            lambda b, l: (l,) + (0,) * (arr.ndim - 1))

    layer_keys = ("ln1_g", "ln1_b", "w_qkv", "b_qkv", "w_proj", "b_proj",
                  "ln2_g", "ln2_b", "w_fc1", "b_fc1", "w_fc2", "b_fc2")
    head_keys = ("norm_g", "norm_b", "w_out", "b_out")

    inputs = [mask, params["mask_token"], params["pos"], x]
    in_specs = [batch_spec(mask), _resident_spec(params["mask_token"]),
                _resident_spec(params["pos"]), batch_spec(x)]
    inputs += [lp[k] for k in layer_keys]
    in_specs += [layer_spec(lp[k]) for k in layer_keys]
    inputs += [hp[k] for k in head_keys]
    in_specs += [_resident_spec(hp[k]) for k in head_keys]

    return pl.pallas_call(
        partial(_encoder_kernel, num_heads=num_heads, scale=scale, eps=eps, final_eps=final_eps),
        out_shape=jax.ShapeDtypeStruct((B, N, out_dim), jnp.float32),
        grid=(B, depth),
        in_specs=in_specs,
        out_specs=pl.BlockSpec((1, N, out_dim), lambda b, l: (b, 0, 0)),
        scratch_shapes=[pltpu.VMEM((N, D), jnp.float32)],
        compiler_params=pltpu.CompilerParams(dimension_semantics=("parallel", "arbitrary")),
    )(*inputs)


# ----------------------------- parameters / glue (plain JAX) -----------------------------

CONV_SPEC = [(10, 5), (3, 2), (3, 2), (3, 2), (3, 2), (2, 2), (2, 2)]   # window 400, hop 320


def get_1d_positional_embeddings(embed_dim, sequence_length):
    pos = np.arange(sequence_length, dtype=np.float64)
    omega = np.arange(embed_dim // 2, dtype=np.float64) / (embed_dim / 2.0)
    omega = 1.0 / (10000.0 ** omega)
    out = np.einsum("m,d->md", pos, omega)
    return np.concatenate([np.sin(out), np.cos(out)], axis=1)               # [L, D]


def trunc_normal(key, shape, std):
    return (std * jax.random.truncated_normal(key, -2.0, 2.0, shape)).astype(jnp.float32)


def init_params(key, *, in_channels, embed_dim, out_dim, depth, num_heads,
                mlp_ratio, n_patches, init_std):
    params = {}

    # --- AudioPatchifier: Conv1d stack, weights flattened channel-last to [k*C_in, C_out] bf16 ---
    patch = []
    c_in = in_channels
    for (k, s) in CONV_SPEC:
        key, kw = jax.random.split(key)
        w = trunc_normal(kw, (k * c_in, embed_dim), init_std).astype(jnp.bfloat16)
        b = jnp.zeros((1, embed_dim), jnp.float32)
        patch.append((w, b))
        c_in = embed_dim
    params["patchifier"] = patch

    key, km = jax.random.split(key)
    params["mask_token"] = trunc_normal(km, (1, embed_dim), init_std)
    params["pos"] = jnp.asarray(get_1d_positional_embeddings(embed_dim, n_patches), jnp.float32)

    hidden = int(embed_dim * mlp_ratio)
    stacked = {k: [] for k in ("ln1_g", "ln1_b", "w_qkv", "b_qkv", "w_proj", "b_proj",
                               "ln2_g", "ln2_b", "w_fc1", "b_fc1", "w_fc2", "b_fc2")}
    for layer_id in range(1, depth + 1):                                    # fix_init_weight rescale
        key, k1, k2, k3, k4 = jax.random.split(key, 5)
        stacked["ln1_g"].append(jnp.ones((1, embed_dim), jnp.float32))
        stacked["ln1_b"].append(jnp.zeros((1, embed_dim), jnp.float32))
        stacked["w_qkv"].append(
            trunc_normal(k1, (3 * embed_dim, embed_dim), init_std).T.astype(jnp.bfloat16))
        stacked["b_qkv"].append(jnp.zeros((1, 3 * embed_dim), jnp.float32))
        stacked["w_proj"].append(
            (trunc_normal(k2, (embed_dim, embed_dim), init_std).T
             / math.sqrt(2.0 * layer_id)).astype(jnp.bfloat16))
        stacked["b_proj"].append(jnp.zeros((1, embed_dim), jnp.float32))
        stacked["ln2_g"].append(jnp.ones((1, embed_dim), jnp.float32))
        stacked["ln2_b"].append(jnp.zeros((1, embed_dim), jnp.float32))
        stacked["w_fc1"].append(
            trunc_normal(k3, (hidden, embed_dim), init_std).T.astype(jnp.bfloat16))
        stacked["b_fc1"].append(jnp.zeros((1, hidden), jnp.float32))
        stacked["w_fc2"].append(
            (trunc_normal(k4, (embed_dim, hidden), init_std).T
             / math.sqrt(2.0 * layer_id)).astype(jnp.bfloat16))
        stacked["b_fc2"].append(jnp.zeros((1, embed_dim), jnp.float32))
    params["layers"] = {k: jnp.stack(v, axis=0) for k, v in stacked.items()}   # leading depth axis

    key, ko = jax.random.split(key)
    params["head"] = {
        "norm_g": jnp.ones((1, embed_dim), jnp.float32),
        "norm_b": jnp.zeros((1, embed_dim), jnp.float32),
        "w_out": trunc_normal(ko, (out_dim, embed_dim), init_std).T.astype(jnp.bfloat16),
        "b_out": jnp.zeros((1, out_dim), jnp.float32),
    }
    return params


def forward(params, audios, masks_for_context_encoder=None, *, num_heads, qk_scale=None):
    """audios: [B, C_in, input_sample_size] -> [B, n_patches, out_dim]."""
    # --- patch_embed: Conv1d stack (strided-slice im2col + row-tiled Pallas matmul+GELU) ---
    # TODO(synk): the im2col materializes a ~k/s x activation copy per layer; a fully in-kernel
    # k-tap strided accumulation would keep HBM traffic at 1x input + 1x output.
    x = jnp.transpose(audios, (0, 2, 1))                        # single transpose: [B, L, C_in]
    for (w, b), (k, s) in zip(params["patchifier"], CONV_SPEC):
        B, L, C = x.shape
        L_out = (L - k) // s + 1
        # k strided slices instead of a gather; columns laid out tap-major / channel-minor.
        taps = [lax.slice(x, (0, t, 0), (B, t + (L_out - 1) * s + 1, C), (1, s, 1))
                for t in range(k)]
        cols = jnp.concatenate(taps, axis=-1).reshape(B * L_out, k * C)
        x = linear(cols, w, b, act="gelu").reshape(B, L_out, -1)   # stays [B, L, C]; no transposes
    B, N, D = x.shape
    assert N == params["pos"].shape[0]

    # --- bool-mask replacement + positional encodings: fused into the encoder kernel (step 0) ---
    if masks_for_context_encoder is None:
        mask = jnp.zeros((B, N, 1), jnp.float32)
    else:
        assert masks_for_context_encoder.shape == (B, N)
        mask = masks_for_context_encoder.astype(jnp.float32).reshape(B, N, 1)

    head_dim = D // num_heads
    scale = qk_scale if qk_scale is not None else head_dim ** -0.5
    return encoder_stack(x, mask, params, num_heads=num_heads, scale=scale)   # [B, N, out_dim]


if __name__ == "__main__":
    # small config consistent with the module (patchifier geometry: window 400, hop 320)
    in_channels = 1
    embed_dim = 64
    out_dim = 48
    depth = 2
    num_heads = 4
    mlp_ratio = 4.0
    init_std = 0.02
    patch_sample_size, stride = 400, 320
    n_patches = 8
    input_sample_size = n_patches * stride + (patch_sample_size - stride)   # 2640
    batch = 2

    key = jax.random.PRNGKey(0)
    kp, ka, km = jax.random.split(key, 3)
    params = init_params(kp, in_channels=in_channels, embed_dim=embed_dim, out_dim=out_dim,
                         depth=depth, num_heads=num_heads, mlp_ratio=mlp_ratio,
                         n_patches=n_patches, init_std=init_std)

    audios = jax.random.normal(ka, (batch, in_channels, input_sample_size), jnp.float32)
    masks = jax.random.bernoulli(km, 0.3, (batch, n_patches))

    fwd = jax.jit(partial(forward, num_heads=num_heads))
    out = jax.block_until_ready(fwd(params, audios, masks))
    assert out.shape == (batch, n_patches, out_dim), out.shape
    assert bool(jnp.all(jnp.isfinite(out)))
    print("KERNEL_OK")
</pallas_src>

<mosaic_0001>
module attributes {stable_mosaic.version = 11 : i64} {
  func.func @_linear_kernel(%arg0: i32, %arg1: memref<1024x10xf32, #tpu.memory_space<vmem>>, %arg2: memref<10x64xbf16, #tpu.memory_space<vmem>>, %arg3: memref<1x64xf32, #tpu.memory_space<vmem>>, %arg4: memref<1024x64xf32, #tpu.memory_space<vmem>>) attributes {dimension_semantics = [#tpu.dimension_semantics<parallel>], iteration_bounds = array<i64: 2>, scalar_prefetch = 0 : i64, scratch_operands = 0 : i64, tpu.core_type = #tpu.core_type<tc>, window_params = [{transform_indices = @transform_0, window_bounds = array<i64: 1024, 10>}, {pipeline_mode = #tpu.pipeline_mode<synchronous>, transform_indices = @transform_1, window_bounds = array<i64: 10, 64>}, {pipeline_mode = #tpu.pipeline_mode<synchronous>, transform_indices = @transform_2, window_bounds = array<i64: 1, 64>}, {transform_indices = @transform_3, window_bounds = array<i64: 1024, 64>}]} {
    %c0 = arith.constant 0 : index
    %c0_0 = arith.constant 0 : index
    %0 = vector.load %arg1[%c0, %c0_0] : memref<1024x10xf32, #tpu.memory_space<vmem>>, vector<1024x10xf32>
    %1 = arith.truncf %0 : vector<1024x10xf32> to vector<1024x10xbf16>
    %c0_1 = arith.constant 0 : index
    %c0_2 = arith.constant 0 : index
    %2 = vector.load %arg2[%c0_1, %c0_2] : memref<10x64xbf16, #tpu.memory_space<vmem>>, vector<10x64xbf16>
    %cst = arith.constant dense<0.000000e+00> : vector<1024x64xf32>
    %3 = tpu.matmul %1, %2, %cst {dimension_numbers = #tpu.dot_dimension_numbers<[1], [0], [0], [1], [0, 0, 1, 1], [], []>} : vector<1024x10xbf16>, vector<10x64xbf16>, vector<1024x64xf32> -> vector<1024x64xf32>
    %c0_3 = arith.constant 0 : index
    %c0_4 = arith.constant 0 : index
    %4 = vector.load %arg3[%c0_3, %c0_4] : memref<1x64xf32, #tpu.memory_space<vmem>>, vector<1x64xf32>
    %5 = vector.broadcast %4 : vector<1x64xf32> to vector<1024x64xf32>
    %6 = arith.addf %3, %5 : vector<1024x64xf32>
    %cst_5 = arith.constant 5.000000e-01 : f32
    %7 = vector.broadcast %cst_5 : f32 to vector<1024x64xf32>
    %8 = arith.mulf %7, %6 : vector<1024x64xf32>
    %cst_6 = arith.constant 4.471500e-02 : f32
    %9 = vector.broadcast %cst_6 : f32 to vector<1024x64xf32>
    %10 = arith.mulf %9, %6 : vector<1024x64xf32>
    %11 = arith.mulf %10, %6 : vector<1024x64xf32>
    %12 = arith.mulf %11, %6 : vector<1024x64xf32>
    %13 = arith.addf %6, %12 : vector<1024x64xf32>
    %cst_7 = arith.constant 0.797884583 : f32
    %14 = vector.broadcast %cst_7 : f32 to vector<1024x64xf32>
    %15 = arith.mulf %14, %13 : vector<1024x64xf32>
    %16 = math.tanh %15 : vector<1024x64xf32>
    %cst_8 = arith.constant 1.000000e+00 : f32
    %17 = vector.broadcast %cst_8 : f32 to vector<1024x64xf32>
    %18 = arith.addf %17, %16 : vector<1024x64xf32>
    %19 = arith.mulf %8, %18 : vector<1024x64xf32>
    %c0_9 = arith.constant 0 : index
    %c0_10 = arith.constant 0 : index
    %20 = vector.load %arg4[%c0_9, %c0_10] : memref<1024x64xf32, #tpu.memory_space<vmem>>, vector<1024x64xf32>
    tpu.vector_store %arg4[%c0_9, %c0_10], %19 {strides = array<i32>} : memref<1024x64xf32, #tpu.memory_space<vmem>>, vector<1024x64xf32>,
    return
  }
  func.func @transform_0(%arg0: i32) -> (i32, i32) {
    %c0_i32 = arith.constant 0 : i32
    %c0_i32_0 = arith.constant 0 : i32
    return %arg0, %c0_i32 : i32, i32
  }
  func.func @transform_1(%arg0: i32) -> (i32, i32) {
    %c0_i32 = arith.constant 0 : i32
    %c0_i32_0 = arith.constant 0 : i32
    %c0_i32_1 = arith.constant 0 : i32
    return %c0_i32, %c0_i32_0 : i32, i32
  }
  func.func @transform_2(%arg0: i32) -> (i32, i32) {
    %c0_i32 = arith.constant 0 : i32
    %c0_i32_0 = arith.constant 0 : i32
    %c0_i32_1 = arith.constant 0 : i32
    return %c0_i32, %c0_i32_0 : i32, i32
  }
  func.func @transform_3(%arg0: i32) -> (i32, i32) {
    %c0_i32 = arith.constant 0 : i32
    %c0_i32_0 = arith.constant 0 : i32
    return %arg0, %c0_i32 : i32, i32
  }
}

module attributes {stable_mosaic.version = 11 : i64} {
  func.func @_linear_kernel(%arg0: i32, %arg1: memref<526x192xf32, #tpu.memory_space<vmem>>, %arg2: memref<192x64xbf16, #tpu.memory_space<vmem>>, %arg3: memref<1x64xf32, #tpu.memory_space<vmem>>, %arg4: memref<526x64xf32, #tpu.memory_space<vmem>>) attributes {dimension_semantics = [#tpu.dimension_semantics<parallel>], iteration_bounds = array<i64: 1>, scalar_prefetch = 0 : i64, scratch_operands = 0 : i64, tpu.core_type = #tpu.core_type<tc>, window_params = [{transform_indices = @transform_0, window_bounds = array<i64: 526, 192>}, {pipeline_mode = #tpu.pipeline_mode<synchronous>, transform_indices = @transform_1, window_bounds = array<i64: 192, 64>}, {pipeline_mode = #tpu.pipeline_mode<synchronous>, transform_indices = @transform_2, window_bounds = array<i64: 1, 64>}, {transform_indices = @transform_3, window_bounds = array<i64: 526, 64>}]} {
    %c0 = arith.constant 0 : index
    %c0_0 = arith.constant 0 : index
    %0 = vector.load %arg1[%c0, %c0_0] : memref<526x192xf32, #tpu.memory_space<vmem>>, vector<526x192xf32>
    %1 = arith.truncf %0 : vector<526x192xf32> to vector<526x192xbf16>
    %c0_1 = arith.constant 0 : index
    %c0_2 = arith.constant 0 : index
    %2 = vector.load %arg2[%c0_1, %c0_2] : memref<192x64xbf16, #tpu.memory_space<vmem>>, vector<192x64xbf16>
    %cst = arith.constant dense<0.000000e+00> : vector<526x64xf32>
    %3 = tpu.matmul %1, %2, %cst {dimension_numbers = #tpu.dot_dimension_numbers<[1], [0], [0], [1], [0, 0, 1, 1], [], []>} : vector<526x192xbf16>, vector<192x64xbf16>, vector<526x64xf32> -> vector<526x64xf32>
    %c0_3 = arith.constant 0 : index
    %c0_4 = arith.constant 0 : index
    %4 = vector.load %arg3[%c0_3, %c0_4] : memref<1x64xf32, #tpu.memory_space<vmem>>, vector<1x64xf32>
    %5 = vector.broadcast %4 : vector<1x64xf32> to vector<526x64xf32>
    %6 = arith.addf %3, %5 : vector<526x64xf32>
    %cst_5 = arith.constant 5.000000e-01 : f32
    %7 = vector.broadcast %cst_5 : f32 to vector<526x64xf32>
    %8 = arith.mulf %7, %6 : vector<526x64xf32>
    %cst_6 = arith.constant 4.471500e-02 : f32
    %9 = vector.broadcast %cst_6 : f32 to vector<526x64xf32>
    %10 = arith.mulf %9, %6 : vector<526x64xf32>
    %11 = arith.mulf %10, %6 : vector<526x64xf32>
    %12 = arith.mulf %11, %6 : vector<526x64xf32>
    %13 = arith.addf %6, %12 : vector<526x64xf32>
    %cst_7 = arith.constant 0.797884583 : f32
    %14 = vector.broadcast %cst_7 : f32 to vector<526x64xf32>
    %15 = arith.mulf %14, %13 : vector<526x64xf32>
    %16 = math.tanh %15 : vector<526x64xf32>
    %cst_8 = arith.constant 1.000000e+00 : f32
    %17 = vector.broadcast %cst_8 : f32 to vector<526x64xf32>
    %18 = arith.addf %17, %16 : vector<526x64xf32>
    %19 = arith.mulf %8, %18 : vector<526x64xf32>
    %c0_9 = arith.constant 0 : index
    %c0_10 = arith.constant 0 : index
    %20 = vector.load %arg4[%c0_9, %c0_10] : memref<526x64xf32, #tpu.memory_space<vmem>>, vector<526x64xf32>
    tpu.vector_store %arg4[%c0_9, %c0_10], %19 {strides = array<i32>} : memref<526x64xf32, #tpu.memory_space<vmem>>, vector<526x64xf32>,
    return
  }
  func.func @transform_0(%arg0: i32) -> (i32, i32) {
    %c0_i32 = arith.constant 0 : i32
    %c0_i32_0 = arith.constant 0 : i32
    return %arg0, %c0_i32 : i32, i32
  }
  func.func @transform_1(%arg0: i32) -> (i32, i32) {
    %c0_i32 = arith.constant 0 : i32
    %c0_i32_0 = arith.constant 0 : i32
    %c0_i32_1 = arith.constant 0 : i32
    return %c0_i32, %c0_i32_0 : i32, i32
  }
  func.func @transform_2(%arg0: i32) -> (i32, i32) {
    %c0_i32 = arith.constant 0 : i32
    %c0_i32_0 = arith.constant 0 : i32
    %c0_i32_1 = arith.constant 0 : i32
    return %c0_i32, %c0_i32_0 : i32, i32
  }
  func.func @transform_3(%arg0: i32) -> (i32, i32) {
    %c0_i32 = arith.constant 0 : i32
    %c0_i32_0 = arith.constant 0 : i32
    return %arg0, %c0_i32 : i32, i32
  }
}

module attributes {stable_mosaic.version = 11 : i64} {
  func.func @_linear_kernel(%arg0: i32, %arg1: memref<262x192xf32, #tpu.memory_space<vmem>>, %arg2: memref<192x64xbf16, #tpu.memory_space<vmem>>, %arg3: memref<1x64xf32, #tpu.memory_space<vmem>>, %arg4: memref<262x64xf32, #tpu.memory_space<vmem>>) attributes {dimension_semantics = [#tpu.dimension_semantics<parallel>], iteration_bounds = array<i64: 1>, scalar_prefetch = 0 : i64, scratch_operands = 0 : i64, tpu.core_type = #tpu.core_type<tc>, window_params = [{transform_indices = @transform_0, window_bounds = array<i64: 262, 192>}, {pipeline_mode = #tpu.pipeline_mode<synchronous>, transform_indices = @transform_1, window_bounds = array<i64: 192, 64>}, {pipeline_mode = #tpu.pipeline_mode<synchronous>, transform_indices = @transform_2, window_bounds = array<i64: 1, 64>}, {transform_indices = @transform_3, window_bounds = array<i64: 262, 64>}]} {
    %c0 = arith.constant 0 : index
    %c0_0 = arith.constant 0 : index
    %0 = vector.load %arg1[%c0, %c0_0] : memref<262x192xf32, #tpu.memory_space<vmem>>, vector<262x192xf32>
    %1 = arith.truncf %0 : vector<262x192xf32> to vector<262x192xbf16>
    %c0_1 = arith.constant 0 : index
    %c0_2 = arith.constant 0 : index
    %2 = vector.load %arg2[%c0_1, %c0_2] : memref<192x64xbf16, #tpu.memory_space<vmem>>, vector<192x64xbf16>
    %cst = arith.constant dense<0.000000e+00> : vector<262x64xf32>
    %3 = tpu.matmul %1, %2, %cst {dimension_numbers = #tpu.dot_dimension_numbers<[1], [0], [0], [1], [0, 0, 1, 1], [], []>} : vector<262x192xbf16>, vector<192x64xbf16>, vector<262x64xf32> -> vector<262x64xf32>
    %c0_3 = arith.constant 0 : index
    %c0_4 = arith.constant 0 : index
    %4 = vector.load %arg3[%c0_3, %c0_4] : memref<1x64xf32, #tpu.memory_space<vmem>>, vector<1x64xf32>
    %5 = vector.broadcast %4 : vector<1x64xf32> to vector<262x64xf32>
    %6 = arith.addf %3, %5 : vector<262x64xf32>
    %cst_5 = arith.constant 5.000000e-01 : f32
    %7 = vector.broadcast %cst_5 : f32 to vector<262x64xf32>
    %8 = arith.mulf %7, %6 : vector<262x64xf32>
    %cst_6 = arith.constant 4.471500e-02 : f32
    %9 = vector.broadcast %cst_6 : f32 to vector<262x64xf32>
    %10 = arith.mulf %9, %6 : vector<262x64xf32>
    %11 = arith.mulf %10, %6 : vector<262x64xf32>
    %12 = arith.mulf %11, %6 : vector<262x64xf32>
    %13 = arith.addf %6, %12 : vector<262x64xf32>
    %cst_7 = arith.constant 0.797884583 : f32
    %14 = vector.broadcast %cst_7 : f32 to vector<262x64xf32>
    %15 = arith.mulf %14, %13 : vector<262x64xf32>
    %16 = math.tanh %15 : vector<262x64xf32>
    %cst_8 = arith.constant 1.000000e+00 : f32
    %17 = vector.broadcast %cst_8 : f32 to vector<262x64xf32>
    %18 = arith.addf %17, %16 : vector<262x64xf32>
    %19 = arith.mulf %8, %18 : vector<262x64xf32>
    %c0_9 = arith.constant 0 : index
    %c0_10 = arith.constant 0 : index
    %20 = vector.load %arg4[%c0_9, %c0_10] : memref<262x64xf32, #tpu.memory_space<vmem>>, vector<262x64xf32>
    tpu.vector_store %arg4[%c0_9, %c0_10], %19 {strides = array<i32>} : memref<262x64xf32, #tpu.memory_space<vmem>>, vector<262x64xf32>,
    return
  }
  func.func @transform_0(%arg0: i32) -> (i32, i32) {
    %c0_i32 = arith.constant 0 : i32
    %c0_i32_0 = arith.constant 0 : i32
    return %arg0, %c0_i32 : i32, i32
  }
  func.func @transform_1(%arg0: i32) -> (i32, i32) {
    %c0_i32 = arith.constant 0 : i32
    %c0_i32_0 = arith.constant 0 : i32
    %c0_i32_1 = arith.constant 0 : i32
    return %c0_i32, %c0_i32_0 : i32, i32
  }
  func.func @transform_2(%arg0: i32) -> (i32, i32) {
    %c0_i32 = arith.constant 0 : i32
    %c0_i32_0 = arith.constant 0 : i32
    %c0_i32_1 = arith.constant 0 : i32
    return %c0_i32, %c0_i32_0 : i32, i32
  }
  func.func @transform_3(%arg0: i32) -> (i32, i32) {
    %c0_i32 = arith.constant 0 : i32
    %c0_i32_0 = arith.constant 0 : i32
    return %arg0, %c0_i32 : i32, i32
  }
}

module attributes {stable_mosaic.version = 11 : i64} {
  func.func @_linear_kernel(%arg0: i32, %arg1: memref<130x192xf32, #tpu.memory_space<vmem>>, %arg2: memref<192x64xbf16, #tpu.memory_space<vmem>>, %arg3: memref<1x64xf32, #tpu.memory_space<vmem>>, %arg4: memref<130x64xf32, #tpu.memory_space<vmem>>) attributes {dimension_semantics = [#tpu.dimension_semantics<parallel>], iteration_bounds = array<i64: 1>, scalar_prefetch = 0 : i64, scratch_operands = 0 : i64, tpu.core_type = #tpu.core_type<tc>, window_params = [{transform_indices = @transform_0, window_bounds = array<i64: 130, 192>}, {pipeline_mode = #tpu.pipeline_mode<synchronous>, transform_indices = @transform_1, window_bounds = array<i64: 192, 64>}, {pipeline_mode = #tpu.pipeline_mode<synchronous>, transform_indices = @transform_2, window_bounds = array<i64: 1, 64>}, {transform_indices = @transform_3, window_bounds = array<i64: 130, 64>}]} {
    %c0 = arith.constant 0 : index
    %c0_0 = arith.constant 0 : index
    %0 = vector.load %arg1[%c0, %c0_0] : memref<130x192xf32, #tpu.memory_space<vmem>>, vector<130x192xf32>
    %1 = arith.truncf %0 : vector<130x192xf32> to vector<130x192xbf16>
    %c0_1 = arith.constant 0 : index
    %c0_2 = arith.constant 0 : index
    %2 = vector.load %arg2[%c0_1, %c0_2] : memref<192x64xbf16, #tpu.memory_space<vmem>>, vector<192x64xbf16>
    %cst = arith.constant dense<0.000000e+00> : vector<130x64xf32>
    %3 = tpu.matmul %1, %2, %cst {dimension_numbers = #tpu.dot_dimension_numbers<[1], [0], [0], [1], [0, 0, 1, 1], [], []>} : vector<130x192xbf16>, vector<192x64xbf16>, vector<130x64xf32> -> vector<130x64xf32>
    %c0_3 = arith.constant 0 : index
    %c0_4 = arith.constant 0 : index
    %4 = vector.load %arg3[%c0_3, %c0_4] : memref<1x64xf32, #tpu.memory_space<vmem>>, vector<1x64xf32>
    %5 = vector.broadcast %4 : vector<1x64xf32> to vector<130x64xf32>
    %6 = arith.addf %3, %5 : vector<130x64xf32>
    %cst_5 = arith.constant 5.000000e-01 : f32
    %7 = vector.broadcast %cst_5 : f32 to vector<130x64xf32>
    %8 = arith.mulf %7, %6 : vector<130x64xf32>
    %cst_6 = arith.constant 4.471500e-02 : f32
    %9 = vector.broadcast %cst_6 : f32 to vector<130x64xf32>
    %10 = arith.mulf %9, %6 : vector<130x64xf32>
    %11 = arith.mulf %10, %6 : vector<130x64xf32>
    %12 = arith.mulf %11, %6 : vector<130x64xf32>
    %13 = arith.addf %6, %12 : vector<130x64xf32>
    %cst_7 = arith.constant 0.797884583 : f32
    %14 = vector.broadcast %cst_7 : f32 to vector<130x64xf32>
    %15 = arith.mulf %14, %13 : vector<130x64xf32>
    %16 = math.tanh %15 : vector<130x64xf32>
    %cst_8 = arith.constant 1.000000e+00 : f32
    %17 = vector.broadcast %cst_8 : f32 to vector<130x64xf32>
    %18 = arith.addf %17, %16 : vector<130x64xf32>
    %19 = arith.mulf %8, %18 : vector<130x64xf32>
    %c0_9 = arith.constant 0 : index
    %c0_10 = arith.constant 0 : index
    %20 = vector.load %arg4[%c0_9, %c0_10] : memref<130x64xf32, #tpu.memory_space<vmem>>, vector<130x64xf32>
    tpu.vector_store %arg4[%c0_9, %c0_10], %19 {strides = array<i32>} : memref<130x64xf32, #tpu.memory_space<vmem>>, vector<130x64xf32>,
    return
  }
  func.func @transform_0(%arg0: i32) -> (i32, i32) {
    %c0_i32 = arith.constant 0 : i32
    %c0_i32_0 = arith.constant 0 : i32
    return %arg0, %c0_i32 : i32, i32
  }
  func.func @transform_1(%arg0: i32) -> (i32, i32) {
    %c0_i32 = arith.constant 0 : i32
    %c0_i32_0 = arith.constant 0 : i32
    %c0_i32_1 = arith.constant 0 : i32
    return %c0_i32, %c0_i32_0 : i32, i32
  }
  func.func @transform_2(%arg0: i32) -> (i32, i32) {
    %c0_i32 = arith.constant 0 : i32
    %c0_i32_0 = arith.constant 0 : i32
    %c0_i32_1 = arith.constant 0 : i32
    return %c0_i32, %c0_i32_0 : i32, i32
  }
  func.func @transform_3(%arg0: i32) -> (i32, i32) {
    %c0_i32 = arith.constant 0 : i32
    %c0_i32_0 = arith.constant 0 : i32
    return %arg0, %c0_i32 : i32, i32
  }
}

module attributes {stable_mosaic.version = 11 : i64} {
  func.func @_linear_kernel(%arg0: i32, %arg1: memref<64x192xf32, #tpu.memory_space<vmem>>, %arg2: memref<192x64xbf16, #tpu.memory_space<vmem>>, %arg3: memref<1x64xf32, #tpu.memory_space<vmem>>, %arg4: memref<64x64xf32, #tpu.memory_space<vmem>>) attributes {dimension_semantics = [#tpu.dimension_semantics<parallel>], iteration_bounds = array<i64: 1>, scalar_prefetch = 0 : i64, scratch_operands = 0 : i64, tpu.core_type = #tpu.core_type<tc>, window_params = [{transform_indices = @transform_0, window_bounds = array<i64: 64, 192>}, {pipeline_mode = #tpu.pipeline_mode<synchronous>, transform_indices = @transform_1, window_bounds = array<i64: 192, 64>}, {pipeline_mode = #tpu.pipeline_mode<synchronous>, transform_indices = @transform_2, window_bounds = array<i64: 1, 64>}, {transform_indices = @transform_3, window_bounds = array<i64: 64, 64>}]} {
    %c0 = arith.constant 0 : index
    %c0_0 = arith.constant 0 : index
    %0 = vector.load %arg1[%c0, %c0_0] : memref<64x192xf32, #tpu.memory_space<vmem>>, vector<64x192xf32>
    %1 = arith.truncf %0 : vector<64x192xf32> to vector<64x192xbf16>
    %c0_1 = arith.constant 0 : index
    %c0_2 = arith.constant 0 : index
    %2 = vector.load %arg2[%c0_1, %c0_2] : memref<192x64xbf16, #tpu.memory_space<vmem>>, vector<192x64xbf16>
    %cst = arith.constant dense<0.000000e+00> : vector<64x64xf32>
    %3 = tpu.matmul %1, %2, %cst {dimension_numbers = #tpu.dot_dimension_numbers<[1], [0], [0], [1], [0, 0, 1, 1], [], []>} : vector<64x192xbf16>, vector<192x64xbf16>, vector<64x64xf32> -> vector<64x64xf32>
    %c0_3 = arith.constant 0 : index
    %c0_4 = arith.constant 0 : index
    %4 = vector.load %arg3[%c0_3, %c0_4] : memref<1x64xf32, #tpu.memory_space<vmem>>, vector<1x64xf32>
    %5 = vector.broadcast %4 : vector<1x64xf32> to vector<64x64xf32>
    %6 = arith.addf %3, %5 : vector<64x64xf32>
    %cst_5 = arith.constant 5.000000e-01 : f32
    %7 = vector.broadcast %cst_5 : f32 to vector<64x64xf32>
    %8 = arith.mulf %7, %6 : vector<64x64xf32>
    %cst_6 = arith.constant 4.471500e-02 : f32
    %9 = vector.broadcast %cst_6 : f32 to vector<64x64xf32>
    %10 = arith.mulf %9, %6 : vector<64x64xf32>
    %11 = arith.mulf %10, %6 : vector<64x64xf32>
    %12 = arith.mulf %11, %6 : vector<64x64xf32>
    %13 = arith.addf %6, %12 : vector<64x64xf32>
    %cst_7 = arith.constant 0.797884583 : f32
    %14 = vector.broadcast %cst_7 : f32 to vector<64x64xf32>
    %15 = arith.mulf %14, %13 : vector<64x64xf32>
    %16 = math.tanh %15 : vector<64x64xf32>
    %cst_8 = arith.constant 1.000000e+00 : f32
    %17 = vector.broadcast %cst_8 : f32 to vector<64x64xf32>
    %18 = arith.addf %17, %16 : vector<64x64xf32>
    %19 = arith.mulf %8, %18 : vector<64x64xf32>
    %c0_9 = arith.constant 0 : index
    %c0_10 = arith.constant 0 : index
    %20 = vector.load %arg4[%c0_9, %c0_10] : memref<64x64xf32, #tpu.memory_space<vmem>>, vector<64x64xf32>
    tpu.vector_store %arg4[%c0_9, %c0_10], %19 {strides = array<i32>} : memref<64x64xf32, #tpu.memory_space<vmem>>, vector<64x64xf32>,
    return
  }
  func.func @transform_0(%arg0: i32) -> (i32, i32) {
    %c0_i32 = arith.constant 0 : i32
    %c0_i32_0 = arith.constant 0 : i32
    return %arg0, %c0_i32 : i32, i32
  }
  func.func @transform_1(%arg0: i32) -> (i32, i32) {
    %c0_i32 = arith.constant 0 : i32
    %c0_i32_0 = arith.constant 0 : i32
    %c0_i32_1 = arith.constant 0 : i32
    return %c0_i32, %c0_i32_0 : i32, i32
  }
  func.func @transform_2(%arg0: i32) -> (i32, i32) {
    %c0_i32 = arith.constant 0 : i32
    %c0_i32_0 = arith.constant 0 : i32
    %c0_i32_1 = arith.constant 0 : i32
    return %c0_i32, %c0_i32_0 : i32, i32
  }
  func.func @transform_3(%arg0: i32) -> (i32, i32) {
    %c0_i32 = arith.constant 0 : i32
    %c0_i32_0 = arith.constant 0 : i32
    return %arg0, %c0_i32 : i32, i32
  }
}

module attributes {stable_mosaic.version = 11 : i64} {
  func.func @_linear_kernel(%arg0: i32, %arg1: memref<32x128xf32, #tpu.memory_space<vmem>>, %arg2: memref<128x64xbf16, #tpu.memory_space<vmem>>, %arg3: memref<1x64xf32, #tpu.memory_space<vmem>>, %arg4: memref<32x64xf32, #tpu.memory_space<vmem>>) attributes {dimension_semantics = [#tpu.dimension_semantics<parallel>], iteration_bounds = array<i64: 1>, scalar_prefetch = 0 : i64, scratch_operands = 0 : i64, tpu.core_type = #tpu.core_type<tc>, window_params = [{transform_indices = @transform_0, window_bounds = array<i64: 32, 128>}, {pipeline_mode = #tpu.pipeline_mode<synchronous>, transform_indices = @transform_1, window_bounds = array<i64: 128, 64>}, {pipeline_mode = #tpu.pipeline_mode<synchronous>, transform_indices = @transform_2, window_bounds = array<i64: 1, 64>}, {transform_indices = @transform_3, window_bounds = array<i64: 32, 64>}]} {
    %c0 = arith.constant 0 : index
    %c0_0 = arith.constant 0 : index
    %0 = vector.load %arg1[%c0, %c0_0] : memref<32x128xf32, #tpu.memory_space<vmem>>, vector<32x128xf32>
    %1 = arith.truncf %0 : vector<32x128xf32> to vector<32x128xbf16>
    %c0_1 = arith.constant 0 : index
    %c0_2 = arith.constant 0 : index
    %2 = vector.load %arg2[%c0_1, %c0_2] : memref<128x64xbf16, #tpu.memory_space<vmem>>, vector<128x64xbf16>
    %cst = arith.constant dense<0.000000e+00> : vector<32x64xf32>
    %3 = tpu.matmul %1, %2, %cst {dimension_numbers = #tpu.dot_dimension_numbers<[1], [0], [0], [1], [0, 0, 1, 1], [], []>} : vector<32x128xbf16>, vector<128x64xbf16>, vector<32x64xf32> -> vector<32x64xf32>
    %c0_3 = arith.constant 0 : index
    %c0_4 = arith.constant 0 : index
    %4 = vector.load %arg3[%c0_3, %c0_4] : memref<1x64xf32, #tpu.memory_space<vmem>>, vector<1x64xf32>
    %5 = vector.broadcast %4 : vector<1x64xf32> to vector<32x64xf32>
    %6 = arith.addf %3, %5 : vector<32x64xf32>
    %cst_5 = arith.constant 5.000000e-01 : f32
    %7 = vector.broadcast %cst_5 : f32 to vector<32x64xf32>
    %8 = arith.mulf %7, %6 : vector<32x64xf32>
    %cst_6 = arith.constant 4.471500e-02 : f32
    %9 = vector.broadcast %cst_6 : f32 to vector<32x64xf32>
    %10 = arith.mulf %9, %6 : vector<32x64xf32>
    %11 = arith.mulf %10, %6 : vector<32x64xf32>
    %12 = arith.mulf %11, %6 : vector<32x64xf32>
    %13 = arith.addf %6, %12 : vector<32x64xf32>
    %cst_7 = arith.constant 0.797884583 : f32
    %14 = vector.broadcast %cst_7 : f32 to vector<32x64xf32>
    %15 = arith.mulf %14, %13 : vector<32x64xf32>
    %16 = math.tanh %15 : vector<32x64xf32>
    %cst_8 = arith.constant 1.000000e+00 : f32
    %17 = vector.broadcast %cst_8 : f32 to vector<32x64xf32>
    %18 = arith.addf %17, %16 : vector<32x64xf32>
    %19 = arith.mulf %8, %18 : vector<32x64xf32>
    %c0_9 = arith.constant 0 : index
    %c0_10 = arith.constant 0 : index
    %20 = vector.load %arg4[%c0_9, %c0_10] : memref<32x64xf32, #tpu.memory_space<vmem>>, vector<32x64xf32>
    tpu.vector_store %arg4[%c0_9, %c0_10], %19 {strides = array<i32>} : memref<32x64xf32, #tpu.memory_space<vmem>>, vector<32x64xf32>,
    return
  }
  func.func @transform_0(%arg0: i32) -> (i32, i32) {
    %c0_i32 = arith.constant 0 : i32
    %c0_i32_0 = arith.constant 0 : i32
    return %arg0, %c0_i32 : i32, i32
  }
  func.func @transform_1(%arg0: i32) -> (i32, i32) {
    %c0_i32 = arith.constant 0 : i32
    %c0_i32_0 = arith.constant 0 : i32
    %c0_i32_1 = arith.constant 0 : i32
    return %c0_i32, %c0_i32_0 : i32, i32
  }
  func.func @transform_2(%arg0: i32) -> (i32, i32) {
    %c0_i32 = arith.constant 0 : i32
    %c0_i32_0 = arith.constant 0 : i32
    %c0_i32_1 = arith.constant 0 : i32
    return %c0_i32, %c0_i32_0 : i32, i32
  }
  func.func @transform_3(%arg0: i32) -> (i32, i32) {
    %c0_i32 = arith.constant 0 : i32
    %c0_i32_0 = arith.constant 0 : i32
    return %arg0, %c0_i32 : i32, i32
  }
}

module attributes {stable_mosaic.version = 11 : i64} {
  func.func @_linear_kernel(%arg0: i32, %arg1: memref<16x128xf32, #tpu.memory_space<vmem>>, %arg2: memref<128x64xbf16, #tpu.memory_space<vmem>>, %arg3: memref<1x64xf32, #tpu.memory_space<vmem>>, %arg4: memref<16x64xf32, #tpu.memory_space<vmem>>) attributes {dimension_semantics = [#tpu.dimension_semantics<parallel>], iteration_bounds = array<i64: 1>, scalar_prefetch = 0 : i64, scratch_operands = 0 : i64, tpu.core_type = #tpu.core_type<tc>, window_params = [{transform_indices = @transform_0, window_bounds = array<i64: 16, 128>}, {pipeline_mode = #tpu.pipeline_mode<synchronous>, transform_indices = @transform_1, window_bounds = array<i64: 128, 64>}, {pipeline_mode = #tpu.pipeline_mode<synchronous>, transform_indices = @transform_2, window_bounds = array<i64: 1, 64>}, {transform_indices = @transform_3, window_bounds = array<i64: 16, 64>}]} {
    %c0 = arith.constant 0 : index
    %c0_0 = arith.constant 0 : index
    %0 = vector.load %arg1[%c0, %c0_0] : memref<16x128xf32, #tpu.memory_space<vmem>>, vector<16x128xf32>
    %1 = arith.truncf %0 : vector<16x128xf32> to vector<16x128xbf16>
    %c0_1 = arith.constant 0 : index
    %c0_2 = arith.constant 0 : index
    %2 = vector.load %arg2[%c0_1, %c0_2] : memref<128x64xbf16, #tpu.memory_space<vmem>>, vector<128x64xbf16>
    %cst = arith.constant dense<0.000000e+00> : vector<16x64xf32>
    %3 = tpu.matmul %1, %2, %cst {dimension_numbers = #tpu.dot_dimension_numbers<[1], [0], [0], [1], [0, 0, 1, 1], [], []>} : vector<16x128xbf16>, vector<128x64xbf16>, vector<16x64xf32> -> vector<16x64xf32>
    %c0_3 = arith.constant 0 : index
    %c0_4 = arith.constant 0 : index
    %4 = vector.load %arg3[%c0_3, %c0_4] : memref<1x64xf32, #tpu.memory_space<vmem>>, vector<1x64xf32>
    %5 = vector.broadcast %4 : vector<1x64xf32> to vector<16x64xf32>
    %6 = arith.addf %3, %5 : vector<16x64xf32>
    %cst_5 = arith.constant 5.000000e-01 : f32
    %7 = vector.broadcast %cst_5 : f32 to vector<16x64xf32>
    %8 = arith.mulf %7, %6 : vector<16x64xf32>
    %cst_6 = arith.constant 4.471500e-02 : f32
    %9 = vector.broadcast %cst_6 : f32 to vector<16x64xf32>
    %10 = arith.mulf %9, %6 : vector<16x64xf32>
    %11 = arith.mulf %10, %6 : vector<16x64xf32>
    %12 = arith.mulf %11, %6 : vector<16x64xf32>
    %13 = arith.addf %6, %12 : vector<16x64xf32>
    %cst_7 = arith.constant 0.797884583 : f32
    %14 = vector.broadcast %cst_7 : f32 to vector<16x64xf32>
    %15 = arith.mulf %14, %13 : vector<16x64xf32>
    %16 = math.tanh %15 : vector<16x64xf32>
    %cst_8 = arith.constant 1.000000e+00 : f32
    %17 = vector.broadcast %cst_8 : f32 to vector<16x64xf32>
    %18 = arith.addf %17, %16 : vector<16x64xf32>
    %19 = arith.mulf %8, %18 : vector<16x64xf32>
    %c0_9 = arith.constant 0 : index
    %c0_10 = arith.constant 0 : index
    %20 = vector.load %arg4[%c0_9, %c0_10] : memref<16x64xf32, #tpu.memory_space<vmem>>, vector<16x64xf32>
    tpu.vector_store %arg4[%c0_9, %c0_10], %19 {strides = array<i32>} : memref<16x64xf32, #tpu.memory_space<vmem>>, vector<16x64xf32>,
    return
  }
  func.func @transform_0(%arg0: i32) -> (i32, i32) {
    %c0_i32 = arith.constant 0 : i32
    %c0_i32_0 = arith.constant 0 : i32
    return %arg0, %c0_i32 : i32, i32
  }
  func.func @transform_1(%arg0: i32) -> (i32, i32) {
    %c0_i32 = arith.constant 0 : i32
    %c0_i32_0 = arith.constant 0 : i32
    %c0_i32_1 = arith.constant 0 : i32
    return %c0_i32, %c0_i32_0 : i32, i32
  }
  func.func @transform_2(%arg0: i32) -> (i32, i32) {
    %c0_i32 = arith.constant 0 : i32
    %c0_i32_0 = arith.constant 0 : i32
    %c0_i32_1 = arith.constant 0 : i32
    return %c0_i32, %c0_i32_0 : i32, i32
  }
  func.func @transform_3(%arg0: i32) -> (i32, i32) {
    %c0_i32 = arith.constant 0 : i32
    %c0_i32_0 = arith.constant 0 : i32
    return %arg0, %c0_i32 : i32, i32
  }
}

module attributes {stable_mosaic.version = 11 : i64} {
  func.func @_encoder_kernel(%arg0: i32, %arg1: i32, %arg2: memref<1x8x1xf32, #tpu.memory_space<vmem>>, %arg3: memref<1x64xf32, #tpu.memory_space<vmem>>, %arg4: memref<8x64xf32, #tpu.memory_space<vmem>>, %arg5: memref<1x8x64xf32, #tpu.memory_space<vmem>>, %arg6: memref<1x1x64xf32, #tpu.memory_space<vmem>>, %arg7: memref<1x1x64xf32, #tpu.memory_space<vmem>>, %arg8: memref<1x64x192xbf16, #tpu.memory_space<vmem>>, %arg9: memref<1x1x192xf32, #tpu.memory_space<vmem>>, %arg10: memref<1x64x64xbf16, #tpu.memory_space<vmem>>, %arg11: memref<1x1x64xf32, #tpu.memory_space<vmem>>, %arg12: memref<1x1x64xf32, #tpu.memory_space<vmem>>, %arg13: memref<1x1x64xf32, #tpu.memory_space<vmem>>, %arg14: memref<1x64x256xbf16, #tpu.memory_space<vmem>>, %arg15: memref<1x1x256xf32, #tpu.memory_space<vmem>>, %arg16: memref<1x256x64xbf16, #tpu.memory_space<vmem>>, %arg17: memref<1x1x64xf32, #tpu.memory_space<vmem>>, %arg18: memref<1x64xf32, #tpu.memory_space<vmem>>, %arg19: memref<1x64xf32, #tpu.memory_space<vmem>>, %arg20: memref<64x48xbf16, #tpu.memory_space<vmem>>, %arg21: memref<1x48xf32, #tpu.memory_space<vmem>>, %arg22: memref<1x8x48xf32, #tpu.memory_space<vmem>>, %arg23: memref<8x64xf32, #tpu.memory_space<vmem>>) attributes {dimension_semantics = [#tpu.dimension_semantics<parallel>, #tpu.dimension_semantics<arbitrary>], iteration_bounds = array<i64: 2, 2>, scalar_prefetch = 0 : i64, scratch_operands = 1 : i64, tpu.core_type = #tpu.core_type<tc>, window_params = [{transform_indices = @transform_0, window_bounds = array<i64: 1, 8, 1>}, {pipeline_mode = #tpu.pipeline_mode<synchronous>, transform_indices = @transform_1, window_bounds = array<i64: 1, 64>}, {pipeline_mode = #tpu.pipeline_mode<synchronous>, transform_indices = @transform_2, window_bounds = array<i64: 8, 64>}, {transform_indices = @transform_3, window_bounds = array<i64: 1, 8, 64>}, {transform_indices = @transform_4, window_bounds = array<i64: 1, 1, 64>}, {transform_indices = @transform_5, window_bounds = array<i64: 1, 1, 64>}, {transform_indices = @transform_6, window_bounds = array<i64: 1, 64, 192>}, {transform_indices = @transform_7, window_bounds = array<i64: 1, 1, 192>}, {transform_indices = @transform_8, window_bounds = array<i64: 1, 64, 64>}, {transform_indices = @transform_9, window_bounds = array<i64: 1, 1, 64>}, {transform_indices = @transform_10, window_bounds = array<i64: 1, 1, 64>}, {transform_indices = @transform_11, window_bounds = array<i64: 1, 1, 64>}, {transform_indices = @transform_12, window_bounds = array<i64: 1, 64, 256>}, {transform_indices = @transform_13, window_bounds = array<i64: 1, 1, 256>}, {transform_indices = @transform_14, window_bounds = array<i64: 1, 256, 64>}, {transform_indices = @transform_15, window_bounds = array<i64: 1, 1, 64>}, {pipeline_mode = #tpu.pipeline_mode<synchronous>, transform_indices = @transform_16, window_bounds = array<i64: 1, 64>}, {pipeline_mode = #tpu.pipeline_mode<synchronous>, transform_indices = @transform_17, window_bounds = array<i64: 1, 64>}, {pipeline_mode = #tpu.pipeline_mode<synchronous>, transform_indices = @transform_18, window_bounds = array<i64: 64, 48>}, {pipeline_mode = #tpu.pipeline_mode<synchronous>, transform_indices = @transform_19, window_bounds = array<i64: 1, 48>}, {transform_indices = @transform_20, window_bounds = array<i64: 1, 8, 48>}]} {
    %c0_i32 = arith.constant 0 : i32
    %0 = arith.cmpi eq, %arg1, %c0_i32 : i32
    %1 = arith.extui %0 : i1 to i32
    %c0_i32_0 = arith.constant 0 : i32
    %2 = arith.cmpi ne, %1, %c0_i32_0 : i32
    scf.if %2 {
      %c0_78 = arith.constant 0 : index
      %c0_79 = arith.constant 0 : index
      %c0_80 = arith.constant 0 : index
      %192 = vector.load %arg2[%c0_78, %c0_79, %c0_80] : memref<1x8x1xf32, #tpu.memory_space<vmem>>, vector<1x8x1xf32>
      %193 = vector.shape_cast %192 : vector<1x8x1xf32> to vector<8x1xf32>
      %cst_81 = arith.constant 5.000000e-01 : f32
      %194 = vector.broadcast %cst_81 : f32 to vector<8x1xf32>
      %195 = arith.cmpf ogt, %193, %194 : vector<8x1xf32>
      %c0_82 = arith.constant 0 : index
      %c0_83 = arith.constant 0 : index
      %196 = vector.load %arg3[%c0_82, %c0_83] : memref<1x64xf32, #tpu.memory_space<vmem>>, vector<1x64xf32>
      %c0_84 = arith.constant 0 : index
      %c0_85 = arith.constant 0 : index
      %c0_86 = arith.constant 0 : index
      %197 = vector.load %arg5[%c0_84, %c0_85, %c0_86] : memref<1x8x64xf32, #tpu.memory_space<vmem>>, vector<1x8x64xf32>
      %198 = vector.shape_cast %197 : vector<1x8x64xf32> to vector<8x64xf32>
      %199 = vector.shape_cast %195 : vector<8x1xi1> to vector<8x1xi1>
      %200 = vector.broadcast %199 : vector<8x1xi1> to vector<8x64xi1>
      %201 = vector.shape_cast %196 : vector<1x64xf32> to vector<1x64xf32>
      %202 = vector.broadcast %201 : vector<1x64xf32> to vector<8x64xf32>
      %203 = arith.select %200, %202, %198 : vector<8x64xi1>, vector<8x64xf32>
      %c0_87 = arith.constant 0 : index
      %c0_88 = arith.constant 0 : index
      %204 = vector.load %arg4[%c0_87, %c0_88] : memref<8x64xf32, #tpu.memory_space<vmem>>, vector<8x64xf32>
      %205 = arith.addf %203, %204 : vector<8x64xf32>
      %c0_89 = arith.constant 0 : index
      %c0_90 = arith.constant 0 : index
      %206 = vector.load %arg23[%c0_89, %c0_90] : memref<8x64xf32, #tpu.memory_space<vmem>>, vector<8x64xf32>
      tpu.vector_store %arg23[%c0_89, %c0_90], %205 {strides = array<i32>} : memref<8x64xf32, #tpu.memory_space<vmem>>, vector<8x64xf32>,
    } else {
    }
    %c0 = arith.constant 0 : index
    %c0_1 = arith.constant 0 : index
    %3 = vector.load %arg23[%c0, %c0_1] : memref<8x64xf32, #tpu.memory_space<vmem>>, vector<8x64xf32>
    %c0_2 = arith.constant 0 : index
    %c0_3 = arith.constant 0 : index
    %c0_4 = arith.constant 0 : index
    %4 = vector.load %arg6[%c0_2, %c0_3, %c0_4] : memref<1x1x64xf32, #tpu.memory_space<vmem>>, vector<1x1x64xf32>
    %5 = vector.shape_cast %4 : vector<1x1x64xf32> to vector<1x64xf32>
    %c0_5 = arith.constant 0 : index
    %c0_6 = arith.constant 0 : index
    %c0_7 = arith.constant 0 : index
    %6 = vector.load %arg7[%c0_5, %c0_6, %c0_7] : memref<1x1x64xf32, #tpu.memory_space<vmem>>, vector<1x1x64xf32>
    %7 = vector.shape_cast %6 : vector<1x1x64xf32> to vector<1x64xf32>
    %cst = arith.constant dense<0.000000e+00> : vector<8xf32>
    %8 = vector.multi_reduction <add>, %3, %cst [1] : vector<8x64xf32> to vector<8xf32>
    %9 = vector.shape_cast %8 : vector<8xf32> to vector<8x1xf32>
    %cst_8 = arith.constant 6.400000e+01 : f32
    %10 = vector.broadcast %cst_8 : f32 to vector<8x1xf32>
    %11 = arith.divf %9, %10 : vector<8x1xf32>
    %12 = vector.broadcast %11 : vector<8x1xf32> to vector<8x64xf32>
    %13 = arith.subf %3, %12 : vector<8x64xf32>
    %14 = arith.mulf %13, %13 : vector<8x64xf32>
    %cst_9 = arith.constant dense<0.000000e+00> : vector<8xf32>
    %15 = vector.multi_reduction <add>, %14, %cst_9 [1] : vector<8x64xf32> to vector<8xf32>
    %16 = vector.shape_cast %15 : vector<8xf32> to vector<8x1xf32>
    %cst_10 = arith.constant 6.400000e+01 : f32
    %17 = vector.broadcast %cst_10 : f32 to vector<8x1xf32>
    %18 = arith.divf %16, %17 : vector<8x1xf32>
    %19 = vector.broadcast %11 : vector<8x1xf32> to vector<8x64xf32>
    %20 = arith.subf %3, %19 : vector<8x64xf32>
    %cst_11 = arith.constant 9.99999997E-7 : f32
    %21 = vector.broadcast %cst_11 : f32 to vector<8x1xf32>
    %22 = arith.addf %18, %21 : vector<8x1xf32>
    %23 = math.rsqrt %22 : vector<8x1xf32>
    %24 = vector.broadcast %23 : vector<8x1xf32> to vector<8x64xf32>
    %25 = arith.mulf %20, %24 : vector<8x64xf32>
    %26 = vector.broadcast %5 : vector<1x64xf32> to vector<8x64xf32>
    %27 = arith.mulf %25, %26 : vector<8x64xf32>
    %28 = vector.broadcast %7 : vector<1x64xf32> to vector<8x64xf32>
    %29 = arith.addf %27, %28 : vector<8x64xf32>
    %30 = arith.truncf %29 : vector<8x64xf32> to vector<8x64xbf16>
    %c0_12 = arith.constant 0 : index
    %c0_13 = arith.constant 0 : index
    %c0_14 = arith.constant 0 : index
    %31 = vector.load %arg8[%c0_12, %c0_13, %c0_14] : memref<1x64x192xbf16, #tpu.memory_space<vmem>>, vector<1x64x192xbf16>
    %32 = vector.shape_cast %31 : vector<1x64x192xbf16> to vector<64x192xbf16>
    %cst_15 = arith.constant dense<0.000000e+00> : vector<8x192xf32>
    %33 = tpu.matmul %30, %32, %cst_15 {dimension_numbers = #tpu.dot_dimension_numbers<[1], [0], [0], [1], [0, 0, 1, 1], [], []>} : vector<8x64xbf16>, vector<64x192xbf16>, vector<8x192xf32> -> vector<8x192xf32>
    %c0_16 = arith.constant 0 : index
    %c0_17 = arith.constant 0 : index
    %c0_18 = arith.constant 0 : index
    %34 = vector.load %arg9[%c0_16, %c0_17, %c0_18] : memref<1x1x192xf32, #tpu.memory_space<vmem>>, vector<1x1x192xf32>
    %35 = vector.shape_cast %34 : vector<1x1x192xf32> to vector<1x192xf32>
    %36 = vector.broadcast %35 : vector<1x192xf32> to vector<8x192xf32>
    %37 = arith.addf %33, %36 : vector<8x192xf32>
    %38 = vector.extract_strided_slice %37 {offsets = [0, 0], sizes = [8, 16], strides = [1, 1]} : vector<8x192xf32> to vector<8x16xf32>
    %39 = arith.truncf %38 : vector<8x16xf32> to vector<8x16xbf16>
    %40 = vector.extract_strided_slice %37 {offsets = [0, 64], sizes = [8, 16], strides = [1, 1]} : vector<8x192xf32> to vector<8x16xf32>
    %41 = arith.truncf %40 : vector<8x16xf32> to vector<8x16xbf16>
    %42 = vector.extract_strided_slice %37 {offsets = [0, 128], sizes = [8, 16], strides = [1, 1]} : vector<8x192xf32> to vector<8x16xf32>
    %43 = arith.truncf %42 : vector<8x16xf32> to vector<8x16xbf16>
    "tpu.trace_start"() <{level = 10 : i32, message = "nd,md->nm"}> : () -> ()
    %cst_19 = arith.constant dense<0.000000e+00> : vector<8x8xf32>
    %44 = tpu.matmul %39, %41, %cst_19 {dimension_numbers = #tpu.dot_dimension_numbers<[1], [1], [0], [0], [0, 0, 1, 0], [], []>} : vector<8x16xbf16>, vector<8x16xbf16>, vector<8x8xf32> -> vector<8x8xf32>
    "tpu.trace_stop"() : () -> ()
    %cst_20 = arith.constant 2.500000e-01 : f32
    %45 = vector.broadcast %cst_20 : f32 to vector<8x8xf32>
    %46 = arith.mulf %44, %45 : vector<8x8xf32>
    %cst_21 = arith.constant dense<0xFF800000> : vector<8xf32>
    %47 = vector.multi_reduction <maximumf>, %46, %cst_21 [1] : vector<8x8xf32> to vector<8xf32>
    %48 = vector.shape_cast %47 : vector<8xf32> to vector<8x1xf32>
    %49 = vector.broadcast %48 : vector<8x1xf32> to vector<8x8xf32>
    %50 = arith.subf %46, %49 : vector<8x8xf32>
    %51 = math.exp %50 : vector<8x8xf32>
    %cst_22 = arith.constant dense<0.000000e+00> : vector<8xf32>
    %52 = vector.multi_reduction <add>, %51, %cst_22 [1] : vector<8x8xf32> to vector<8xf32>
    %53 = vector.shape_cast %52 : vector<8xf32> to vector<8x1xf32>
    %54 = tpu.reciprocal %53 {approx = true} : vector<8x1xf32> -> vector<8x1xf32>
    %55 = vector.broadcast %54 : vector<8x1xf32> to vector<8x8xf32>
    %56 = arith.mulf %51, %55 : vector<8x8xf32>
    %57 = arith.truncf %56 : vector<8x8xf32> to vector<8x8xbf16>
    %cst_23 = arith.constant dense<0.000000e+00> : vector<8x16xf32>
    %58 = tpu.matmul %57, %43, %cst_23 {dimension_numbers = #tpu.dot_dimension_numbers<[1], [0], [0], [1], [0, 0, 1, 1], [], []>} : vector<8x8xbf16>, vector<8x16xbf16>, vector<8x16xf32> -> vector<8x16xf32>
    %59 = vector.extract_strided_slice %37 {offsets = [0, 16], sizes = [8, 16], strides = [1, 1]} : vector<8x192xf32> to vector<8x16xf32>
    %60 = arith.truncf %59 : vector<8x16xf32> to vector<8x16xbf16>
    %61 = vector.extract_strided_slice %37 {offsets = [0, 80], sizes = [8, 16], strides = [1, 1]} : vector<8x192xf32> to vector<8x16xf32>
    %62 = arith.truncf %61 : vector<8x16xf32> to vector<8x16xbf16>
    %63 = vector.extract_strided_slice %37 {offsets = [0, 144], sizes = [8, 16], strides = [1, 1]} : vector<8x192xf32> to vector<8x16xf32>
    %64 = arith.truncf %63 : vector<8x16xf32> to vector<8x16xbf16>
    "tpu.trace_start"() <{level = 10 : i32, message = "nd,md->nm"}> : () -> ()
    %cst_24 = arith.constant dense<0.000000e+00> : vector<8x8xf32>
    %65 = tpu.matmul %60, %62, %cst_24 {dimension_numbers = #tpu.dot_dimension_numbers<[1], [1], [0], [0], [0, 0, 1, 0], [], []>} : vector<8x16xbf16>, vector<8x16xbf16>, vector<8x8xf32> -> vector<8x8xf32>
    "tpu.trace_stop"() : () -> ()
    %cst_25 = arith.constant 2.500000e-01 : f32
    %66 = vector.broadcast %cst_25 : f32 to vector<8x8xf32>
    %67 = arith.mulf %65, %66 : vector<8x8xf32>
    %cst_26 = arith.constant dense<0xFF800000> : vector<8xf32>
    %68 = vector.multi_reduction <maximumf>, %67, %cst_26 [1] : vector<8x8xf32> to vector<8xf32>
    %69 = vector.shape_cast %68 : vector<8xf32> to vector<8x1xf32>
    %70 = vector.broadcast %69 : vector<8x1xf32> to vector<8x8xf32>
    %71 = arith.subf %67, %70 : vector<8x8xf32>
    %72 = math.exp %71 : vector<8x8xf32>
    %cst_27 = arith.constant dense<0.000000e+00> : vector<8xf32>
    %73 = vector.multi_reduction <add>, %72, %cst_27 [1] : vector<8x8xf32> to vector<8xf32>
    %74 = vector.shape_cast %73 : vector<8xf32> to vector<8x1xf32>
    %75 = tpu.reciprocal %74 {approx = true} : vector<8x1xf32> -> vector<8x1xf32>
    %76 = vector.broadcast %75 : vector<8x1xf32> to vector<8x8xf32>
    %77 = arith.mulf %72, %76 : vector<8x8xf32>
    %78 = arith.truncf %77 : vector<8x8xf32> to vector<8x8xbf16>
    %cst_28 = arith.constant dense<0.000000e+00> : vector<8x16xf32>
    %79 = tpu.matmul %78, %64, %cst_28 {dimension_numbers = #tpu.dot_dimension_numbers<[1], [0], [0], [1], [0, 0, 1, 1], [], []>} : vector<8x8xbf16>, vector<8x16xbf16>, vector<8x16xf32> -> vector<8x16xf32>
    %80 = vector.extract_strided_slice %37 {offsets = [0, 32], sizes = [8, 16], strides = [1, 1]} : vector<8x192xf32> to vector<8x16xf32>
    %81 = arith.truncf %80 : vector<8x16xf32> to vector<8x16xbf16>
    %82 = vector.extract_strided_slice %37 {offsets = [0, 96], sizes = [8, 16], strides = [1, 1]} : vector<8x192xf32> to vector<8x16xf32>
    %83 = arith.truncf %82 : vector<8x16xf32> to vector<8x16xbf16>
    %84 = vector.extract_strided_slice %37 {offsets = [0, 160], sizes = [8, 16], strides = [1, 1]} : vector<8x192xf32> to vector<8x16xf32>
    %85 = arith.truncf %84 : vector<8x16xf32> to vector<8x16xbf16>
    "tpu.trace_start"() <{level = 10 : i32, message = "nd,md->nm"}> : () -> ()
    %cst_29 = arith.constant dense<0.000000e+00> : vector<8x8xf32>
    %86 = tpu.matmul %81, %83, %cst_29 {dimension_numbers = #tpu.dot_dimension_numbers<[1], [1], [0], [0], [0, 0, 1, 0], [], []>} : vector<8x16xbf16>, vector<8x16xbf16>, vector<8x8xf32> -> vector<8x8xf32>
    "tpu.trace_stop"() : () -> ()
    %cst_30 = arith.constant 2.500000e-01 : f32
    %87 = vector.broadcast %cst_30 : f32 to vector<8x8xf32>
    %88 = arith.mulf %86, %87 : vector<8x8xf32>
    %cst_31 = arith.constant dense<0xFF800000> : vector<8xf32>
    %89 = vector.multi_reduction <maximumf>, %88, %cst_31 [1] : vector<8x8xf32> to vector<8xf32>
    %90 = vector.shape_cast %89 : vector<8xf32> to vector<8x1xf32>
    %91 = vector.broadcast %90 : vector<8x1xf32> to vector<8x8xf32>
    %92 = arith.subf %88, %91 : vector<8x8xf32>
    %93 = math.exp %92 : vector<8x8xf32>
    %cst_32 = arith.constant dense<0.000000e+00> : vector<8xf32>
    %94 = vector.multi_reduction <add>, %93, %cst_32 [1] : vector<8x8xf32> to vector<8xf32>
    %95 = vector.shape_cast %94 : vector<8xf32> to vector<8x1xf32>
    %96 = tpu.reciprocal %95 {approx = true} : vector<8x1xf32> -> vector<8x1xf32>
    %97 = vector.broadcast %96 : vector<8x1xf32> to vector<8x8xf32>
    %98 = arith.mulf %93, %97 : vector<8x8xf32>
    %99 = arith.truncf %98 : vector<8x8xf32> to vector<8x8xbf16>
    %cst_33 = arith.constant dense<0.000000e+00> : vector<8x16xf32>
    %100 = tpu.matmul %99, %85, %cst_33 {dimension_numbers = #tpu.dot_dimension_numbers<[1], [0], [0], [1], [0, 0, 1, 1], [], []>} : vector<8x8xbf16>, vector<8x16xbf16>, vector<8x16xf32> -> vector<8x16xf32>
    %101 = vector.extract_strided_slice %37 {offsets = [0, 48], sizes = [8, 16], strides = [1, 1]} : vector<8x192xf32> to vector<8x16xf32>
    %102 = arith.truncf %101 : vector<8x16xf32> to vector<8x16xbf16>
    %103 = vector.extract_strided_slice %37 {offsets = [0, 112], sizes = [8, 16], strides = [1, 1]} : vector<8x192xf32> to vector<8x16xf32>
    %104 = arith.truncf %103 : vector<8x16xf32> to vector<8x16xbf16>
    %105 = vector.extract_strided_slice %37 {offsets = [0, 176], sizes = [8, 16], strides = [1, 1]} : vector<8x192xf32> to vector<8x16xf32>
    %106 = arith.truncf %105 : vector<8x16xf32> to vector<8x16xbf16>
    "tpu.trace_start"() <{level = 10 : i32, message = "nd,md->nm"}> : () -> ()
    %cst_34 = arith.constant dense<0.000000e+00> : vector<8x8xf32>
    %107 = tpu.matmul %102, %104, %cst_34 {dimension_numbers = #tpu.dot_dimension_numbers<[1], [1], [0], [0], [0, 0, 1, 0], [], []>} : vector<8x16xbf16>, vector<8x16xbf16>, vector<8x8xf32> -> vector<8x8xf32>
    "tpu.trace_stop"() : () -> ()
    %cst_35 = arith.constant 2.500000e-01 : f32
    %108 = vector.broadcast %cst_35 : f32 to vector<8x8xf32>
    %109 = arith.mulf %107, %108 : vector<8x8xf32>
    %cst_36 = arith.constant dense<0xFF800000> : vector<8xf32>
    %110 = vector.multi_reduction <maximumf>, %109, %cst_36 [1] : vector<8x8xf32> to vector<8xf32>
    %111 = vector.shape_cast %110 : vector<8xf32> to vector<8x1xf32>
    %112 = vector.broadcast %111 : vector<8x1xf32> to vector<8x8xf32>
    %113 = arith.subf %109, %112 : vector<8x8xf32>
    %114 = math.exp %113 : vector<8x8xf32>
    %cst_37 = arith.constant dense<0.000000e+00> : vector<8xf32>
    %115 = vector.multi_reduction <add>, %114, %cst_37 [1] : vector<8x8xf32> to vector<8xf32>
    %116 = vector.shape_cast %115 : vector<8xf32> to vector<8x1xf32>
    %117 = tpu.reciprocal %116 {approx = true} : vector<8x1xf32> -> vector<8x1xf32>
    %118 = vector.broadcast %117 : vector<8x1xf32> to vector<8x8xf32>
    %119 = arith.mulf %114, %118 : vector<8x8xf32>
    %120 = arith.truncf %119 : vector<8x8xf32> to vector<8x8xbf16>
    %cst_38 = arith.constant dense<0.000000e+00> : vector<8x16xf32>
    %121 = tpu.matmul %120, %106, %cst_38 {dimension_numbers = #tpu.dot_dimension_numbers<[1], [0], [0], [1], [0, 0, 1, 1], [], []>} : vector<8x8xbf16>, vector<8x16xbf16>, vector<8x16xf32> -> vector<8x16xf32>
    %122 = tpu.concatenate %58, %79, %100, %121 in 1 : vector<8x16xf32>, vector<8x16xf32>, vector<8x16xf32>, vector<8x16xf32> -> vector<8x64xf32>
    %123 = arith.truncf %122 : vector<8x64xf32> to vector<8x64xbf16>
    %c0_39 = arith.constant 0 : index
    %c0_40 = arith.constant 0 : index
    %c0_41 = arith.constant 0 : index
    %124 = vector.load %arg10[%c0_39, %c0_40, %c0_41] : memref<1x64x64xbf16, #tpu.memory_space<vmem>>, vector<1x64x64xbf16>
    %125 = vector.shape_cast %124 : vector<1x64x64xbf16> to vector<64x64xbf16>
    %cst_42 = arith.constant dense<0.000000e+00> : vector<8x64xf32>
    %126 = tpu.matmul %123, %125, %cst_42 {dimension_numbers = #tpu.dot_dimension_numbers<[1], [0], [0], [1], [0, 0, 1, 1], [], []>} : vector<8x64xbf16>, vector<64x64xbf16>, vector<8x64xf32> -> vector<8x64xf32>
    %c0_43 = arith.constant 0 : index
    %c0_44 = arith.constant 0 : index
    %c0_45 = arith.constant 0 : index
    %127 = vector.load %arg11[%c0_43, %c0_44, %c0_45] : memref<1x1x64xf32, #tpu.memory_space<vmem>>, vector<1x1x64xf32>
    %128 = vector.shape_cast %127 : vector<1x1x64xf32> to vector<1x64xf32>
    %129 = vector.broadcast %128 : vector<1x64xf32> to vector<8x64xf32>
    %130 = arith.addf %126, %129 : vector<8x64xf32>
    %131 = arith.addf %3, %130 : vector<8x64xf32>
    %c0_46 = arith.constant 0 : index
    %c0_47 = arith.constant 0 : index
    %c0_48 = arith.constant 0 : index
    %132 = vector.load %arg12[%c0_46, %c0_47, %c0_48] : memref<1x1x64xf32, #tpu.memory_space<vmem>>, vector<1x1x64xf32>
    %133 = vector.shape_cast %132 : vector<1x1x64xf32> to vector<1x64xf32>
    %c0_49 = arith.constant 0 : index
    %c0_50 = arith.constant 0 : index
    %c0_51 = arith.constant 0 : index
    %134 = vector.load %arg13[%c0_49, %c0_50, %c0_51] : memref<1x1x64xf32, #tpu.memory_space<vmem>>, vector<1x1x64xf32>
    %135 = vector.shape_cast %134 : vector<1x1x64xf32> to vector<1x64xf32>
    %cst_52 = arith.constant dense<0.000000e+00> : vector<8xf32>
    %136 = vector.multi_reduction <add>, %131, %cst_52 [1] : vector<8x64xf32> to vector<8xf32>
    %137 = vector.shape_cast %136 : vector<8xf32> to vector<8x1xf32>
    %cst_53 = arith.constant 6.400000e+01 : f32
    %138 = vector.broadcast %cst_53 : f32 to vector<8x1xf32>
    %139 = arith.divf %137, %138 : vector<8x1xf32>
    %140 = vector.broadcast %139 : vector<8x1xf32> to vector<8x64xf32>
    %141 = arith.subf %131, %140 : vector<8x64xf32>
    %142 = arith.mulf %141, %141 : vector<8x64xf32>
    %cst_54 = arith.constant dense<0.000000e+00> : vector<8xf32>
    %143 = vector.multi_reduction <add>, %142, %cst_54 [1] : vector<8x64xf32> to vector<8xf32>
    %144 = vector.shape_cast %143 : vector<8xf32> to vector<8x1xf32>
    %cst_55 = arith.constant 6.400000e+01 : f32
    %145 = vector.broadcast %cst_55 : f32 to vector<8x1xf32>
    %146 = arith.divf %144, %145 : vector<8x1xf32>
    %147 = vector.broadcast %139 : vector<8x1xf32> to vector<8x64xf32>
    %148 = arith.subf %131, %147 : vector<8x64xf32>
    %cst_56 = arith.constant 9.99999997E-7 : f32
    %149 = vector.broadcast %cst_56 : f32 to vector<8x1xf32>
    %150 = arith.addf %146, %149 : vector<8x1xf32>
    %151 = math.rsqrt %150 : vector<8x1xf32>
    %152 = vector.broadcast %151 : vector<8x1xf32> to vector<8x64xf32>
    %153 = arith.mulf %148, %152 : vector<8x64xf32>
    %154 = vector.broadcast %133 : vector<1x64xf32> to vector<8x64xf32>
    %155 = arith.mulf %153, %154 : vector<8x64xf32>
    %156 = vector.broadcast %135 : vector<1x64xf32> to vector<8x64xf32>
    %157 = arith.addf %155, %156 : vector<8x64xf32>
    %158 = arith.truncf %157 : vector<8x64xf32> to vector<8x64xbf16>
    %c0_57 = arith.constant 0 : index
    %c0_58 = arith.constant 0 : index
    %c0_59 = arith.constant 0 : index
    %159 = vector.load %arg14[%c0_57, %c0_58, %c0_59] : memref<1x64x256xbf16, #tpu.memory_space<vmem>>, vector<1x64x256xbf16>
    %160 = vector.shape_cast %159 : vector<1x64x256xbf16> to vector<64x256xbf16>
    %cst_60 = arith.constant dense<0.000000e+00> : vector<8x256xf32>
    %161 = tpu.matmul %158, %160, %cst_60 {dimension_numbers = #tpu.dot_dimension_numbers<[1], [0], [0], [1], [0, 0, 1, 1], [], []>} : vector<8x64xbf16>, vector<64x256xbf16>, vector<8x256xf32> -> vector<8x256xf32>
    %c0_61 = arith.constant 0 : index
    %c0_62 = arith.constant 0 : index
    %c0_63 = arith.constant 0 : index
    %162 = vector.load %arg15[%c0_61, %c0_62, %c0_63] : memref<1x1x256xf32, #tpu.memory_space<vmem>>, vector<1x1x256xf32>
    %163 = vector.shape_cast %162 : vector<1x1x256xf32> to vector<1x256xf32>
    %164 = vector.broadcast %163 : vector<1x256xf32> to vector<8x256xf32>
    %165 = arith.addf %161, %164 : vector<8x256xf32>
    %cst_64 = arith.constant 5.000000e-01 : f32
    %166 = vector.broadcast %cst_64 : f32 to vector<8x256xf32>
    %167 = arith.mulf %166, %165 : vector<8x256xf32>
    %cst_65 = arith.constant 4.471500e-02 : f32
    %168 = vector.broadcast %cst_65 : f32 to vector<8x256xf32>
    %169 = arith.mulf %168, %165 : vector<8x256xf32>
    %170 = arith.mulf %169, %165 : vector<8x256xf32>
    %171 = arith.mulf %170, %165 : vector<8x256xf32>
    %172 = arith.addf %165, %171 : vector<8x256xf32>
    %cst_66 = arith.constant 0.797884583 : f32
    %173 = vector.broadcast %cst_66 : f32 to vector<8x256xf32>
    %174 = arith.mulf %173, %172 : vector<8x256xf32>
    %175 = math.tanh %174 : vector<8x256xf32>
    %cst_67 = arith.constant 1.000000e+00 : f32
    %176 = vector.broadcast %cst_67 : f32 to vector<8x256xf32>
    %177 = arith.addf %176, %175 : vector<8x256xf32>
    %178 = arith.mulf %167, %177 : vector<8x256xf32>
    %179 = arith.truncf %178 : vector<8x256xf32> to vector<8x256xbf16>
    %c0_68 = arith.constant 0 : index
    %c0_69 = arith.constant 0 : index
    %c0_70 = arith.constant 0 : index
    %180 = vector.load %arg16[%c0_68, %c0_69, %c0_70] : memref<1x256x64xbf16, #tpu.memory_space<vmem>>, vector<1x256x64xbf16>
    %181 = vector.shape_cast %180 : vector<1x256x64xbf16> to vector<256x64xbf16>
    %cst_71 = arith.constant dense<0.000000e+00> : vector<8x64xf32>
    %182 = tpu.matmul %179, %181, %cst_71 {dimension_numbers = #tpu.dot_dimension_numbers<[1], [0], [0], [1], [0, 0, 1, 1], [], []>} : vector<8x256xbf16>, vector<256x64xbf16>, vector<8x64xf32> -> vector<8x64xf32>
    %c0_72 = arith.constant 0 : index
    %c0_73 = arith.constant 0 : index
    %c0_74 = arith.constant 0 : index
    %183 = vector.load %arg17[%c0_72, %c0_73, %c0_74] : memref<1x1x64xf32, #tpu.memory_space<vmem>>, vector<1x1x64xf32>
    %184 = vector.shape_cast %183 : vector<1x1x64xf32> to vector<1x64xf32>
    %185 = vector.broadcast %184 : vector<1x64xf32> to vector<8x64xf32>
    %186 = arith.addf %182, %185 : vector<8x64xf32>
    %187 = arith.addf %131, %186 : vector<8x64xf32>
    %c0_75 = arith.constant 0 : index
    %c0_76 = arith.constant 0 : index
    %188 = vector.load %arg23[%c0_75, %c0_76] : memref<8x64xf32, #tpu.memory_space<vmem>>, vector<8x64xf32>
    tpu.vector_store %arg23[%c0_75, %c0_76], %187 {strides = array<i32>} : memref<8x64xf32, #tpu.memory_space<vmem>>, vector<8x64xf32>,
    %c1_i32 = arith.constant 1 : i32
    %189 = arith.cmpi eq, %arg1, %c1_i32 : i32
    %190 = arith.extui %189 : i1 to i32
    %c0_i32_77 = arith.constant 0 : i32
    %191 = arith.cmpi ne, %190, %c0_i32_77 : i32
    scf.if %191 {
      %c0_78 = arith.constant 0 : index
      %c0_79 = arith.constant 0 : index
      %192 = vector.load %arg18[%c0_78, %c0_79] : memref<1x64xf32, #tpu.memory_space<vmem>>, vector<1x64xf32>
      %c0_80 = arith.constant 0 : index
      %c0_81 = arith.constant 0 : index
      %193 = vector.load %arg19[%c0_80, %c0_81] : memref<1x64xf32, #tpu.memory_space<vmem>>, vector<1x64xf32>
      %cst_82 = arith.constant dense<0.000000e+00> : vector<8xf32>
      %194 = vector.multi_reduction <add>, %187, %cst_82 [1] : vector<8x64xf32> to vector<8xf32>
      %195 = vector.shape_cast %194 : vector<8xf32> to vector<8x1xf32>
      %cst_83 = arith.constant 6.400000e+01 : f32
      %196 = vector.broadcast %cst_83 : f32 to vector<8x1xf32>
      %197 = arith.divf %195, %196 : vector<8x1xf32>
      %198 = vector.broadcast %197 : vector<8x1xf32> to vector<8x64xf32>
      %199 = arith.subf %187, %198 : vector<8x64xf32>
      %200 = arith.mulf %199, %199 : vector<8x64xf32>
      %cst_84 = arith.constant dense<0.000000e+00> : vector<8xf32>
      %201 = vector.multi_reduction <add>, %200, %cst_84 [1] : vector<8x64xf32> to vector<8xf32>
      %202 = vector.shape_cast %201 : vector<8xf32> to vector<8x1xf32>
      %cst_85 = arith.constant 6.400000e+01 : f32
      %203 = vector.broadcast %cst_85 : f32 to vector<8x1xf32>
      %204 = arith.divf %202, %203 : vector<8x1xf32>
      %205 = vector.broadcast %197 : vector<8x1xf32> to vector<8x64xf32>
      %206 = arith.subf %187, %205 : vector<8x64xf32>
      %cst_86 = arith.constant 9.99999997E-7 : f32
      %207 = vector.broadcast %cst_86 : f32 to vector<8x1xf32>
      %208 = arith.addf %204, %207 : vector<8x1xf32>
      %209 = math.rsqrt %208 : vector<8x1xf32>
      %210 = vector.broadcast %209 : vector<8x1xf32> to vector<8x64xf32>
      %211 = arith.mulf %206, %210 : vector<8x64xf32>
      %212 = vector.broadcast %192 : vector<1x64xf32> to vector<8x64xf32>
      %213 = arith.mulf %211, %212 : vector<8x64xf32>
      %214 = vector.broadcast %193 : vector<1x64xf32> to vector<8x64xf32>
      %215 = arith.addf %213, %214 : vector<8x64xf32>
      %216 = arith.truncf %215 : vector<8x64xf32> to vector<8x64xbf16>
      %c0_87 = arith.constant 0 : index
      %c0_88 = arith.constant 0 : index
      %217 = vector.load %arg20[%c0_87, %c0_88] : memref<64x48xbf16, #tpu.memory_space<vmem>>, vector<64x48xbf16>
      %cst_89 = arith.constant dense<0.000000e+00> : vector<8x48xf32>
      %218 = tpu.matmul %216, %217, %cst_89 {dimension_numbers = #tpu.dot_dimension_numbers<[1], [0], [0], [1], [0, 0, 1, 1], [], []>} : vector<8x64xbf16>, vector<64x48xbf16>, vector<8x48xf32> -> vector<8x48xf32>
      %c0_90 = arith.constant 0 : index
      %c0_91 = arith.constant 0 : index
      %219 = vector.load %arg21[%c0_90, %c0_91] : memref<1x48xf32, #tpu.memory_space<vmem>>, vector<1x48xf32>
      %220 = vector.broadcast %219 : vector<1x48xf32> to vector<8x48xf32>
      %221 = arith.addf %218, %220 : vector<8x48xf32>
      %c0_92 = arith.constant 0 : index
      %c0_93 = arith.constant 0 : index
      %c0_94 = arith.constant 0 : index
      %222 = vector.load %arg22[%c0_92, %c0_93, %c0_94] : memref<1x8x48xf32, #tpu.memory_space<vmem>>, vector<1x8x48xf32>
      %223 = vector.shape_cast %222 : vector<1x8x48xf32> to vector<8x48xf32>
      %224 = vector.shape_cast %221 : vector<8x48xf32> to vector<1x8x48xf32>
      tpu.vector_store %arg22[%c0_92, %c0_93, %c0_94], %224 {strides = array<i32>} : memref<1x8x48xf32, #tpu.memory_space<vmem>>, vector<1x8x48xf32>,
    } else {
    }
    return
  }
  func.func @transform_0(%arg0: i32, %arg1: i32) -> (i32, i32, i32) {
    %c0_i32 = arith.constant 0 : i32
    %c0_i32_0 = arith.constant 0 : i32
    %c0_i32_1 = arith.constant 0 : i32
    return %arg0, %c0_i32, %c0_i32_0 : i32, i32, i32
  }
  func.func @transform_1(%arg0: i32, %arg1: i32) -> (i32, i32) {
    %c0_i32 = arith.constant 0 : i32
    %c0_i32_0 = arith.constant 0 : i32
    %c0_i32_1 = arith.constant 0 : i32
    return %c0_i32, %c0_i32_0 : i32, i32
  }
  func.func @transform_2(%arg0: i32, %arg1: i32) -> (i32, i32) {
    %c0_i32 = arith.constant 0 : i32
    %c0_i32_0 = arith.constant 0 : i32
    %c0_i32_1 = arith.constant 0 : i32
    return %c0_i32, %c0_i32_0 : i32, i32
  }
  func.func @transform_3(%arg0: i32, %arg1: i32) -> (i32, i32, i32) {
    %c0_i32 = arith.constant 0 : i32
    %c0_i32_0 = arith.constant 0 : i32
    %c0_i32_1 = arith.constant 0 : i32
    return %arg0, %c0_i32, %c0_i32_0 : i32, i32, i32
  }
  func.func @transform_4(%arg0: i32, %arg1: i32) -> (i32, i32, i32) {
    %c0_i32 = arith.constant 0 : i32
    %c0_i32_0 = arith.constant 0 : i32
    %c0_i32_1 = arith.constant 0 : i32
    return %arg1, %c0_i32, %c0_i32_0 : i32, i32, i32
  }
  func.func @transform_5(%arg0: i32, %arg1: i32) -> (i32, i32, i32) {
    %c0_i32 = arith.constant 0 : i32
    %c0_i32_0 = arith.constant 0 : i32
    %c0_i32_1 = arith.constant 0 : i32
    return %arg1, %c0_i32, %c0_i32_0 : i32, i32, i32
  }
  func.func @transform_6(%arg0: i32, %arg1: i32) -> (i32, i32, i32) {
    %c0_i32 = arith.constant 0 : i32
    %c0_i32_0 = arith.constant 0 : i32
    %c0_i32_1 = arith.constant 0 : i32
    return %arg1, %c0_i32, %c0_i32_0 : i32, i32, i32
  }
  func.func @transform_7(%arg0: i32, %arg1: i32) -> (i32, i32, i32) {
    %c0_i32 = arith.constant 0 : i32
    %c0_i32_0 = arith.constant 0 : i32
    %c0_i32_1 = arith.constant 0 : i32
    return %arg1, %c0_i32, %c0_i32_0 : i32, i32, i32
  }
  func.func @transform_8(%arg0: i32, %arg1: i32) -> (i32, i32, i32) {
    %c0_i32 = arith.constant 0 : i32
    %c0_i32_0 = arith.constant 0 : i32
    %c0_i32_1 = arith.constant 0 : i32
    return %arg1, %c0_i32, %c0_i32_0 : i32, i32, i32
  }
  func.func @transform_9(%arg0: i32, %arg1: i32) -> (i32, i32, i32) {
    %c0_i32 = arith.constant 0 : i32
    %c0_i32_0 = arith.constant 0 : i32
    %c0_i32_1 = arith.constant 0 : i32
    return %arg1, %c0_i32, %c0_i32_0 : i32, i32, i32
  }
  func.func @transform_10(%arg0: i32, %arg1: i32) -> (i32, i32, i32) {
    %c0_i32 = arith.constant 0 : i32
    %c0_i32_0 = arith.constant 0 : i32
    %c0_i32_1 = arith.constant 0 : i32
    return %arg1, %c0_i32, %c0_i32_0 : i32, i32, i32
  }
  func.func @transform_11(%arg0: i32, %arg1: i32) -> (i32, i32, i32) {
    %c0_i32 = arith.constant 0 : i32
    %c0_i32_0 = arith.constant 0 : i32
    %c0_i32_1 = arith.constant 0 : i32
    return %arg1, %c0_i32, %c0_i32_0 : i32, i32, i32
  }
  func.func @transform_12(%arg0: i32, %arg1: i32) -> (i32, i32, i32) {
    %c0_i32 = arith.constant 0 : i32
    %c0_i32_0 = arith.constant 0 : i32
    %c0_i32_1 = arith.constant 0 : i32
    return %arg1, %c0_i32, %c0_i32_0 : i32, i32, i32
  }
  func.func @transform_13(%arg0: i32, %arg1: i32) -> (i32, i32, i32) {
    %c0_i32 = arith.constant 0 : i32
    %c0_i32_0 = arith.constant 0 : i32
    %c0_i32_1 = arith.constant 0 : i32
    return %arg1, %c0_i32, %c0_i32_0 : i32, i32, i32
  }
  func.func @transform_14(%arg0: i32, %arg1: i32) -> (i32, i32, i32) {
    %c0_i32 = arith.constant 0 : i32
    %c0_i32_0 = arith.constant 0 : i32
    %c0_i32_1 = arith.constant 0 : i32
    return %arg1, %c0_i32, %c0_i32_0 : i32, i32, i32
  }
  func.func @transform_15(%arg0: i32, %arg1: i32) -> (i32, i32, i32) {
    %c0_i32 = arith.constant 0 : i32
    %c0_i32_0 = arith.constant 0 : i32
    %c0_i32_1 = arith.constant 0 : i32
    return %arg1, %c0_i32, %c0_i32_0 : i32, i32, i32
  }
  func.func @transform_16(%arg0: i32, %arg1: i32) -> (i32, i32) {
    %c0_i32 = arith.constant 0 : i32
    %c0_i32_0 = arith.constant 0 : i32
    %c0_i32_1 = arith.constant 0 : i32
    return %c0_i32, %c0_i32_0 : i32, i32
  }
  func.func @transform_17(%arg0: i32, %arg1: i32) -> (i32, i32) {
    %c0_i32 = arith.constant 0 : i32
    %c0_i32_0 = arith.constant 0 : i32
    %c0_i32_1 = arith.constant 0 : i32
    return %c0_i32, %c0_i32_0 : i32, i32
  }
  func.func @transform_18(%arg0: i32, %arg1: i32) -> (i32, i32) {
    %c0_i32 = arith.constant 0 : i32
    %c0_i32_0 = arith.constant 0 : i32
    %c0_i32_1 = arith.constant 0 : i32
    return %c0_i32, %c0_i32_0 : i32, i32
  }
  func.func @transform_19(%arg0: i32, %arg1: i32) -> (i32, i32) {
    %c0_i32 = arith.constant 0 : i32
    %c0_i32_0 = arith.constant 0 : i32
    %c0_i32_1 = arith.constant 0 : i32
    return %c0_i32, %c0_i32_0 : i32, i32
  }
  func.func @transform_20(%arg0: i32, %arg1: i32) -> (i32, i32, i32) {
    %c0_i32 = arith.constant 0 : i32
    %c0_i32_0 = arith.constant 0 : i32
    %c0_i32_1 = arith.constant 0 : i32
    return %arg0, %c0_i32, %c0_i32_0 : i32, i32, i32
  }
}

</mosaic_0001>

<bundles_post_ra>
// kernel: forward.8
= control target key start
LH: loop header
LB: loop body
LE: loop exit
PB: predicated region body
PF: predicated region fallthrough
CT: control target
= control target key end

     0   :  { %s3637_s12 = smov 0   ;;  %s3639_s13 = smov 0   ;;  %s5717_s0 = inlined_call_operand.vmem [shape: f32[1054,10], index: 0, kind: input, shape index: {}]   ;;  %s5718_s1 = inlined_call_operand.vmem [shape: bf16[10,64], index: 1, kind: input, shape index: {}]   ;;  %s5719_s2 = inlined_call_operand.vmem [shape: f32[1,64], index: 2, kind: input, shape index: {}]   ;;  %s5720_s3 = inlined_call_operand.vmem [shape: f32[1054,64], index: 3, kind: output, shape index: {}]  }
   0x1   :  { %s3641_s14 = smov 0  }
   0x2 LB: > { %s3650_s15 = sadd.s32 4294967295, %s3583_s14   ;;  %s3652_s16 = sadd.s32 1, %s3583_s14   ;;  %s3583_s14 = sphi %s3641_s14, %s5783_s14   ;;  %s3579_s13 = sphi %s3639_s13, %s5782_s13   ;;  %s3575_s12 = sphi %s3637_s12, %s5781_s12  }
   0x3   : > { %s85_s17 = ssub.s32 %s3583_s14, %s3652_s16  ;;  %s88_s18 = sadd.s32 1, %s3579_s13 }
   0x4   : > { %p86_p0 = scmp.eq.s32.totalorder %s85_s17, 0  ;;  %p98_p1 = scmp.ne.s32.totalorder %s3579_s13, %s3575_s12 }
   0x5   : > { %p99_p2 = scmp.eq.s32.totalorder %s3650_s15, 1  ;;  %p2892_p3 = scmp.ge.s32.totalorder %s3583_s14, 1 }
   0x6   : > { %s3660_s19 = scalar_select %p86_p0, %s3579_s13, %s88_s18  }
   0x7   : > { %p3662_p4 = por %p99_p2, %p98_p1  ;;  %p146_p5 = scmp.lt.s32.totalorder %s3583_s14, 3 }
   0x9   : > { %p147_p6 = pnand %p2892_p3, %p146_p5 }
   0xb   : > { %150 = sbr.rel (%p147_p6) target bundleno = 649 (0x289), region = 32 }
  0x12   : > { %v3269_v0 = vld [vmem:[%s5718_s1] sm:$0x1f]   ;;  %vm592_vm0 = vcmask 1044480   ;;  %s3670_s23 = sshll.u32 %s3650_s15, 7  ;;  %vm399_vm1 = vcmask 80896   ;;  %vm2293_vm2 = vcmask 523264  }
  0x13   : > { %3179 = vmatprep.subr.msk.bf16.mxu0 %vm592_vm0, %v3269_v0  ;;  %3180 = vmatprep.subr.msk.bf16.mxu1 %vm592_vm0, %v3269_v0  ;;  %v594_v1 = vsel %vm592_vm0, %v3269_v0, 0  ;;  %p178_p7 = scmp.lt.s32.totalorder %s3670_s23, 131  ;;  %s170_s4 = sand.u32 1, %s3575_s12  }
  0x14   : > { %3048 = vmatpush3.bf16.msra.mxu0 %v594_v1  ;;  %3178 = vmatpush3.bf16.msra.mxu1 %v594_v1  ;;  %s3974_s5 = sshll.u32 %s170_s4, 10  ;;  %s2430_s14 = ssub.s32 (%p3662_p4), 132, %s3670_s23 }
  0x15   : > { %s179_s24 = scalar_select %p178_p7, %s3670_s23, 131 }
  0x16   : > { %s4012_s6 = scalar_lea.vmem [#allocation2], %s3974_s5   ;;  %s2979_s17 = sshll.u32 (%p3662_p4), %s3650_s15, 10 }
  0x17   : > { %s2895_s25 = sshll.u32 %s179_s24, 3  ;;  %p2431_p8 = scmp.lt.s32.totalorder (%p3662_p4), %s2430_s14, 128 }
  0x18   : > { %s3677_s28 = scalar_lea.vmem %s5717_s0, %s2895_s25  ;;  %s5518_s22 = scalar_lea.vmem (%p3662_p4), %s5720_s3, %s2979_s17  }
  0x19   : > { %v193_v2 = vld [vmem:[%s3677_s28] sm:$0xff]  ;;  %v194_v3 = vld [vmem:[%s3677_s28 + $0x8] sm:$0xff]  ;;  %v195_v7 = vld [vmem:[%s3677_s28 + $0x10] sm:$0xff] }
  0x1a   : > { %v257_v4 = vld [vmem:[%s3677_s28 + $0x200] sm:$0xff]  ;;  %v321_v5 = vpack.c.bf16 %v194_v3, %v193_v2  ;;  %v258_v6 = vld [vmem:[%s3677_s28 + $0x208] sm:$0xff]  ;;  %v196_v8 = vld [vmem:[%s3677_s28 + $0x18] sm:$0xff] }
  0x1b   : > { %v353_v9 = vpack.c.bf16 %v258_v6, %v257_v4  ;;  %v322_v10 = vpack.c.bf16 %v196_v8, %v195_v7  ;;  %v259_v11 = vld [vmem:[%s3677_s28 + $0x210] sm:$0xff]  ;;  %v260_v12 = vld [vmem:[%s3677_s28 + $0x218] sm:$0xff]  ;;  %v197_v13 = vld [vmem:[%s3677_s28 + $0x20] sm:$0xff] }
  0x1c   : > { %3049 = vmatprep.mubr.msk.bf16.mxu0 %vm399_vm1, %v321_v5  ;;  %v354_v14 = vpack.c.bf16 %v260_v12, %v259_v11  ;;  %v198_v15 = vld [vmem:[%s3677_s28 + $0x28] sm:$0xff]  ;;  %v261_v16 = vld [vmem:[%s3677_s28 + $0x220] sm:$0xff]  ;;  %v199_v20 = vld [vmem:[%s3677_s28 + $0x30] sm:$0xff] }
  0x1d   : > { %v262_v17 = vld [vmem:[%s3677_s28 + $0x228] sm:$0xff]  ;;  %3113 = vmatprep.mubr.msk.bf16.mxu1 %vm399_vm1, %v353_v9  ;;  %3050 = vmatmul.mubr.msk.bf16.vlgmr.msra.gmra.mrb[0].mxu0 %vm399_vm1, %v322_v10  ;;  %v323_v18 = vpack.c.bf16 %v198_v15, %v197_v13  ;;  %v200_v21 = vld [vmem:[%s3677_s28 + $0x38] sm:$0xff]  ;;  %v263_v22 = vld [vmem:[%s3677_s28 + $0x230] sm:$0xff] }
  0x1e   : > { %v355_v19 = vpack.c.bf16 %v262_v17, %v261_v16  ;;  %3114 = vmatmul.mubr.msk.bf16.vlgmr.msra.gmra.mrb[0].mxu1 %vm399_vm1, %v354_v14  ;;  %v264_v23 = vld [vmem:[%s3677_s28 + $0x238] sm:$0xff]  ;;  %v201_v24 = vld [vmem:[%s3677_s28 + $0x40] sm:$0xff]  ;;  %v202_v25 = vld [vmem:[%s3677_s28 + $0x48] sm:$0xff]  ;;  %v324_v28 = vpack.c.bf16 %v200_v21, %v199_v20 }
  0x1f   : > { %3053 = vmatprep.mubr.msk.bf16.mxu0 %vm399_vm1, %v323_v18  ;;  %v265_v26 = vld [vmem:[%s3677_s28 + $0x240] sm:$0xff]  ;;  %v266_v27 = vld [vmem:[%s3677_s28 + $0x248] sm:$0xff]  ;;  %v356_v29 = vpack.c.bf16 %v264_v23, %v263_v22  ;;  %v325_v30 = vpack.c.bf16 %v202_v25, %v201_v24  ;;  %v203_v32 = vld [vmem:[%s3677_s28 + $0x50] sm:$0xff] }
  0x20   : > { %3117 = vmatprep.mubr.msk.bf16.mxu1 %vm399_vm1, %v355_v19  ;;  %v357_v31 = vpack.c.bf16 %v266_v27, %v265_v26  ;;  %v204_v33 = vld [vmem:[%s3677_s28 + $0x58] sm:$0xff]  ;;  %v267_v34 = vld [vmem:[%s3677_s28 + $0x250] sm:$0xff]  ;;  %v205_v36 = vld [vmem:[%s3677_s28 + $0x60] sm:$0xff] }
  0x21   : > { %v268_v35 = vld [vmem:[%s3677_s28 + $0x258] sm:$0xff]  ;;  %v206_v37 = vld [vmem:[%s3677_s28 + $0x68] sm:$0xff]  ;;  %v269_v38 = vld [vmem:[%s3677_s28 + $0x260] sm:$0xff]  ;;  %v326_v40 = vpack.c.bf16 %v204_v33, %v203_v32 }
  0x22   : > { %v270_v39 = vld [vmem:[%s3677_s28 + $0x268] sm:$0xff]  ;;  %v358_v41 = vpack.c.bf16 %v268_v35, %v267_v34  ;;  %v327_v42 = vpack.c.bf16 %v206_v37, %v205_v36  ;;  %v207_v44 = vld [vmem:[%s3677_s28 + $0x70] sm:$0xff]  ;;  %v208_v45 = vld [vmem:[%s3677_s28 + $0x78] sm:$0xff] }
  0x23   : > { %v359_v43 = vpack.c.bf16 %v270_v39, %v269_v38  ;;  %v271_v46 = vld [vmem:[%s3677_s28 + $0x270] sm:$0xff]  ;;  %v272_v47 = vld [vmem:[%s3677_s28 + $0x278] sm:$0xff]  ;;  %v209_v48 = vld [vmem:[%s3677_s28 + $0x80] sm:$0xff]  ;;  %v328_v52 = vpack.c.bf16 %v208_v45, %v207_v44 }
  0x24   : > { %v210_v49 = vld [vmem:[%s3677_s28 + $0x88] sm:$0xff]  ;;  %v273_v50 = vld [vmem:[%s3677_s28 + $0x280] sm:$0xff]  ;;  %v360_v53 = vpack.c.bf16 %v272_v47, %v271_v46  ;;  %v211_v56 = vld [vmem:[%s3677_s28 + $0x90] sm:$0xff] }
  0x25   : > { %3054 = vmatmul.mubr.msk.bf16.gmra.mrb[4].mxu0 %vm399_vm1, %v324_v28  ;;  %v274_v51 = vld [vmem:[%s3677_s28 + $0x288] sm:$0xff]  ;;  %v329_v54 = vpack.c.bf16 %v210_v49, %v209_v48  ;;  %v212_v57 = vld [vmem:[%s3677_s28 + $0x98] sm:$0xff]  ;;  %v275_v58 = vld [vmem:[%s3677_s28 + $0x290] sm:$0xff] }
  0x26   : > { %3118 = vmatmul.mubr.msk.bf16.gmra.mrb[4].mxu1 %vm399_vm1, %v356_v29  ;;  %3057 = vmatprep.mubr.msk.bf16.mxu0 %vm399_vm1, %v325_v30  ;;  %v361_v55 = vpack.c.bf16 %v274_v51, %v273_v50  ;;  %v276_v59 = vld [vmem:[%s3677_s28 + $0x298] sm:$0xff]  ;;  %v213_v60 = vld [vmem:[%s3677_s28 + $0xa0] sm:$0xff]  ;;  %v214_v61 = vld [vmem:[%s3677_s28 + $0xa8] sm:$0xff]  ;;  %v330_v0 = vpack.c.bf16 %v212_v57, %v211_v56 }
  0x27   : > { %3121 = vmatprep.mubr.msk.bf16.mxu1 %vm399_vm1, %v357_v31  ;;  %v277_v62 = vld [vmem:[%s3677_s28 + $0x2a0] sm:$0xff]  ;;  %v278_v63 = vld [vmem:[%s3677_s28 + $0x2a8] sm:$0xff]  ;;  %v362_v1 = vpack.c.bf16 %v276_v59, %v275_v58  ;;  %v331_v2 = vpack.c.bf16 %v214_v61, %v213_v60  ;;  %v215_v4 = vld [vmem:[%s3677_s28 + $0xb0] sm:$0xff] }
  0x28   : > { %v363_v3 = vpack.c.bf16 %v278_v63, %v277_v62  ;;  %v216_v5 = vld [vmem:[%s3677_s28 + $0xb8] sm:$0xff]  ;;  %v279_v6 = vld [vmem:[%s3677_s28 + $0x2b0] sm:$0xff]  ;;  %v217_v8 = vld [vmem:[%s3677_s28 + $0xc0] sm:$0xff] }
  0x29   : > { %v280_v7 = vld [vmem:[%s3677_s28 + $0x2b8] sm:$0xff]  ;;  %v218_v9 = vld [vmem:[%s3677_s28 + $0xc8] sm:$0xff]  ;;  %v281_v10 = vld [vmem:[%s3677_s28 + $0x2c0] sm:$0xff]  ;;  %v332_v12 = vpack.c.bf16 %v216_v5, %v215_v4 }
  0x2a   : > { %v282_v11 = vld [vmem:[%s3677_s28 + $0x2c8] sm:$0xff]  ;;  %v364_v13 = vpack.c.bf16 %v280_v7, %v279_v6  ;;  %v333_v14 = vpack.c.bf16 %v218_v9, %v217_v8  ;;  %v219_v16 = vld [vmem:[%s3677_s28 + $0xd0] sm:$0xff]  ;;  %v220_v17 = vld [vmem:[%s3677_s28 + $0xd8] sm:$0xff] }
  0x2b   : > { %v365_v15 = vpack.c.bf16 %v282_v11, %v281_v10  ;;  %v283_v18 = vld [vmem:[%s3677_s28 + $0x2d0] sm:$0xff]  ;;  %v284_v19 = vld [vmem:[%s3677_s28 + $0x2d8] sm:$0xff]  ;;  %v221_v20 = vld [vmem:[%s3677_s28 + $0xe0] sm:$0xff]  ;;  %v334_v24 = vpack.c.bf16 %v220_v17, %v219_v16 }
  0x2c   : > { %v222_v21 = vld [vmem:[%s3677_s28 + $0xe8] sm:$0xff]  ;;  %v285_v22 = vld [vmem:[%s3677_s28 + $0x2e0] sm:$0xff]  ;;  %v366_v25 = vpack.c.bf16 %v284_v19, %v283_v18  ;;  %v223_v28 = vld [vmem:[%s3677_s28 + $0xf0] sm:$0xff] }
  0x2d   : > { %3058 = vmatmul.mubr.msk.bf16.gmra.mrb[8].mxu0 %vm399_vm1, %v326_v40  ;;  %v286_v23 = vld [vmem:[%s3677_s28 + $0x2e8] sm:$0xff]  ;;  %v335_v26 = vpack.c.bf16 %v222_v21, %v221_v20  ;;  %v224_v29 = vld [vmem:[%s3677_s28 + $0xf8] sm:$0xff]  ;;  %v287_v30 = vld [vmem:[%s3677_s28 + $0x2f0] sm:$0xff] }
  0x2e   : > { %3122 = vmatmul.mubr.msk.bf16.gmra.mrb[8].mxu1 %vm399_vm1, %v358_v41  ;;  %3061 = vmatprep.mubr.msk.bf16.mxu0 %vm399_vm1, %v327_v42  ;;  %v367_v27 = vpack.c.bf16 %v286_v23, %v285_v22  ;;  %v288_v31 = vld [vmem:[%s3677_s28 + $0x2f8] sm:$0xff]  ;;  %v225_v32 = vld [vmem:[%s3677_s28 + $0x100] sm:$0xff]  ;;  %v226_v33 = vld [vmem:[%s3677_s28 + $0x108] sm:$0xff]  ;;  %v336_v36 = vpack.c.bf16 %v224_v29, %v223_v28 }
  0x2f   : > { %3125 = vmatprep.mubr.msk.bf16.mxu1 %vm399_vm1, %v359_v43  ;;  %v289_v34 = vld [vmem:[%s3677_s28 + $0x300] sm:$0xff]  ;;  %v290_v35 = vld [vmem:[%s3677_s28 + $0x308] sm:$0xff]  ;;  %v368_v37 = vpack.c.bf16 %v288_v31, %v287_v30  ;;  %v337_v38 = vpack.c.bf16 %v226_v33, %v225_v32  ;;  %v227_v40 = vld [vmem:[%s3677_s28 + $0x110] sm:$0xff] }
  0x30   : > { %v369_v39 = vpack.c.bf16 %v290_v35, %v289_v34  ;;  %v228_v41 = vld [vmem:[%s3677_s28 + $0x118] sm:$0xff]  ;;  %v291_v42 = vld [vmem:[%s3677_s28 + $0x310] sm:$0xff]  ;;  %v229_v44 = vld [vmem:[%s3677_s28 + $0x120] sm:$0xff] }
  0x31   : > { %v292_v43 = vld [vmem:[%s3677_s28 + $0x318] sm:$0xff]  ;;  %v230_v45 = vld [vmem:[%s3677_s28 + $0x128] sm:$0xff]  ;;  %v293_v46 = vld [vmem:[%s3677_s28 + $0x320] sm:$0xff]  ;;  %v338_v48 = vpack.c.bf16 %v228_v41, %v227_v40 }
  0x32   : > { %v294_v47 = vld [vmem:[%s3677_s28 + $0x328] sm:$0xff]  ;;  %v370_v49 = vpack.c.bf16 %v292_v43, %v291_v42  ;;  %v339_v50 = vpack.c.bf16 %v230_v45, %v229_v44  ;;  %v233_v56 = vld [vmem:[%s3677_s28 + $0x140] sm:$0xff] }
  0x33   : > { %v371_v51 = vpack.c.bf16 %v294_v47, %v293_v46  ;;  %v234_v57 = vld [vmem:[%s3677_s28 + $0x148] sm:$0xff]  ;;  %v297_v58 = vld [vmem:[%s3677_s28 + $0x340] sm:$0xff] }
  0x34   : > { %v298_v59 = vld [vmem:[%s3677_s28 + $0x348] sm:$0xff]  ;;  %v341_v62 = vpack.c.bf16 %v234_v57, %v233_v56  ;;  %v237_v4 = vld [vmem:[%s3677_s28 + $0x160] sm:$0xff] }
  0x35   : > { %3062 = vmatmul.mubr.msk.bf16.gmra.mrb[12].mxu0 %vm399_vm1, %v328_v52  ;;  %v231_v52 = vld [vmem:[%s3677_s28 + $0x130] sm:$0xff]  ;;  %v373_v63 = vpack.c.bf16 %v298_v59, %v297_v58  ;;  %v238_v5 = vld [vmem:[%s3677_s28 + $0x168] sm:$0xff]  ;;  %v301_v6 = vld [vmem:[%s3677_s28 + $0x360] sm:$0xff] }
  0x36   : > { %3126 = vmatmul.mubr.msk.bf16.gmra.mrb[12].mxu1 %vm399_vm1, %v360_v53  ;;  %3065 = vmatprep.mubr.msk.bf16.mxu0 %vm399_vm1, %v329_v54  ;;  %v232_v53 = vld [vmem:[%s3677_s28 + $0x138] sm:$0xff]  ;;  %v295_v54 = vld [vmem:[%s3677_s28 + $0x330] sm:$0xff]  ;;  %v302_v7 = vld [vmem:[%s3677_s28 + $0x368] sm:$0xff]  ;;  %v343_v10 = vpack.c.bf16 %v238_v5, %v237_v4 }
  0x37   : > { %3129 = vmatprep.mubr.msk.bf16.mxu1 %vm399_vm1, %v361_v55  ;;  %v296_v55 = vld [vmem:[%s3677_s28 + $0x338] sm:$0xff]  ;;  %v340_v60 = vpack.c.bf16 %v232_v53, %v231_v52  ;;  %v375_v11 = vpack.c.bf16 %v302_v7, %v301_v6  ;;  %v241_v16 = vld [vmem:[%s3677_s28 + $0x180] sm:$0xff]  ;;  %v242_v17 = vld [vmem:[%s3677_s28 + $0x188] sm:$0xff] }
  0x38   : > { %v372_v61 = vpack.c.bf16 %v296_v55, %v295_v54  ;;  %v305_v18 = vld [vmem:[%s3677_s28 + $0x380] sm:$0xff]  ;;  %v306_v19 = vld [vmem:[%s3677_s28 + $0x388] sm:$0xff]  ;;  %v345_v22 = vpack.c.bf16 %v242_v17, %v241_v16 }
  0x39   : > { %v377_v23 = vpack.c.bf16 %v306_v19, %v305_v18  ;;  %v245_v28 = vld [vmem:[%s3677_s28 + $0x1a0] sm:$0xff]  ;;  %v246_v29 = vld [vmem:[%s3677_s28 + $0x1a8] sm:$0xff] }
  0x3a   : > { %v309_v30 = vld [vmem:[%s3677_s28 + $0x3a0] sm:$0xff]  ;;  %v310_v31 = vld [vmem:[%s3677_s28 + $0x3a8] sm:$0xff]  ;;  %v347_v34 = vpack.c.bf16 %v246_v29, %v245_v28 }
  0x3b   : > { %v379_v35 = vpack.c.bf16 %v310_v31, %v309_v30  ;;  %v249_v40 = vld [vmem:[%s3677_s28 + $0x1c0] sm:$0xff]  ;;  %v250_v41 = vld [vmem:[%s3677_s28 + $0x1c8] sm:$0xff] }
  0x3c   : > { %v313_v42 = vld [vmem:[%s3677_s28 + $0x3c0] sm:$0xff]  ;;  %v314_v43 = vld [vmem:[%s3677_s28 + $0x3c8] sm:$0xff]  ;;  %v349_v46 = vpack.c.bf16 %v250_v41, %v249_v40 }
  0x3d   : > { %3066 = vmatmul.mubr.msk.bf16.gmra.mrb[16].mxu0 %vm399_vm1, %v330_v0  ;;  %v235_v0 = vld [vmem:[%s3677_s28 + $0x150] sm:$0xff]  ;;  %v381_v47 = vpack.c.bf16 %v314_v43, %v313_v42  ;;  %v253_v52 = vld [vmem:[%s3677_s28 + $0x1e0] sm:$0xff]  ;;  %v254_v53 = vld [vmem:[%s3677_s28 + $0x1e8] sm:$0xff] }
  0x3e   : > { %3130 = vmatmul.mubr.msk.bf16.gmra.mrb[16].mxu1 %vm399_vm1, %v362_v1  ;;  %3069 = vmatprep.mubr.msk.bf16.mxu0 %vm399_vm1, %v331_v2  ;;  %v236_v1 = vld [vmem:[%s3677_s28 + $0x158] sm:$0xff]  ;;  %v299_v2 = vld [vmem:[%s3677_s28 + $0x350] sm:$0xff]  ;;  %v317_v54 = vld [vmem:[%s3677_s28 + $0x3e0] sm:$0xff]  ;;  %v351_v58 = vpack.c.bf16 %v254_v53, %v253_v52 }
  0x3f   : > { %3133 = vmatprep.mubr.msk.bf16.mxu1 %vm399_vm1, %v363_v3  ;;  %v300_v3 = vld [vmem:[%s3677_s28 + $0x358] sm:$0xff]  ;;  %v342_v8 = vpack.c.bf16 %v236_v1, %v235_v0  ;;  %v318_v55 = vld [vmem:[%s3677_s28 + $0x3e8] sm:$0xff] }
  0x40   : > { %v374_v9 = vpack.c.bf16 %v300_v3, %v299_v2  ;;  %v383_v59 = vpack.c.bf16 %v318_v55, %v317_v54  ;;  %v3874_v2 = vld [vmem:[%s5719_s2] ss:$0 sm:$0xff] }
  0x45   : > { %3070 = vmatmul.mubr.msk.bf16.gmra.mrb[20].mxu0 %vm399_vm1, %v332_v12  ;;  %v239_v12 = vld [vmem:[%s3677_s28 + $0x170] sm:$0xff] }
  0x46   : > { %3134 = vmatmul.mubr.msk.bf16.gmra.mrb[20].mxu1 %vm399_vm1, %v364_v13  ;;  %3073 = vmatprep.mubr.msk.bf16.mxu0 %vm399_vm1, %v333_v14  ;;  %v240_v13 = vld [vmem:[%s3677_s28 + $0x178] sm:$0xff]  ;;  %v303_v14 = vld [vmem:[%s3677_s28 + $0x370] sm:$0xff] }
  0x47   : > { %3137 = vmatprep.mubr.msk.bf16.mxu1 %vm399_vm1, %v365_v15  ;;  %v304_v15 = vld [vmem:[%s3677_s28 + $0x378] sm:$0xff]  ;;  %v344_v20 = vpack.c.bf16 %v240_v13, %v239_v12 }
  0x48   : > { %v376_v21 = vpack.c.bf16 %v304_v15, %v303_v14 }
  0x4d   : > { %3074 = vmatmul.mubr.msk.bf16.gmra.mrb[24].mxu0 %vm399_vm1, %v334_v24  ;;  %v243_v24 = vld [vmem:[%s3677_s28 + $0x190] sm:$0xff] }
  0x4e   : > { %3138 = vmatmul.mubr.msk.bf16.gmra.mrb[24].mxu1 %vm399_vm1, %v366_v25  ;;  %3077 = vmatprep.mubr.msk.bf16.mxu0 %vm399_vm1, %v335_v26  ;;  %v244_v25 = vld [vmem:[%s3677_s28 + $0x198] sm:$0xff]  ;;  %v307_v26 = vld [vmem:[%s3677_s28 + $0x390] sm:$0xff] }
  0x4f   : > { %3141 = vmatprep.mubr.msk.bf16.mxu1 %vm399_vm1, %v367_v27  ;;  %v308_v27 = vld [vmem:[%s3677_s28 + $0x398] sm:$0xff]  ;;  %v346_v32 = vpack.c.bf16 %v244_v25, %v243_v24 }
  0x50   : > { %v378_v33 = vpack.c.bf16 %v308_v27, %v307_v26 }
  0x55   : > { %3078 = vmatmul.mubr.msk.bf16.gmra.mrb[28].mxu0 %vm399_vm1, %v336_v36  ;;  %v247_v36 = vld [vmem:[%s3677_s28 + $0x1b0] sm:$0xff] }
  0x56   : > { %3142 = vmatmul.mubr.msk.bf16.gmra.mrb[28].mxu1 %vm399_vm1, %v368_v37  ;;  %3081 = vmatprep.mubr.msk.bf16.mxu0 %vm399_vm1, %v337_v38  ;;  %v248_v37 = vld [vmem:[%s3677_s28 + $0x1b8] sm:$0xff]  ;;  %v311_v38 = vld [vmem:[%s3677_s28 + $0x3b0] sm:$0xff] }
  0x57   : > { %3145 = vmatprep.mubr.msk.bf16.mxu1 %vm399_vm1, %v369_v39  ;;  %v312_v39 = vld [vmem:[%s3677_s28 + $0x3b8] sm:$0xff]  ;;  %v348_v44 = vpack.c.bf16 %v248_v37, %v247_v36 }
  0x58   : > { %v380_v45 = vpack.c.bf16 %v312_v39, %v311_v38 }
  0x5d   : > { %3082 = vmatmul.mubr.msk.bf16.gmra.mrb[32].mxu0 %vm399_vm1, %v338_v48  ;;  %v251_v48 = vld [vmem:[%s3677_s28 + $0x1d0] sm:$0xff] }
  0x5e   : > { %3146 = vmatmul.mubr.msk.bf16.gmra.mrb[32].mxu1 %vm399_vm1, %v370_v49  ;;  %3085 = vmatprep.mubr.msk.bf16.mxu0 %vm399_vm1, %v339_v50  ;;  %v252_v49 = vld [vmem:[%s3677_s28 + $0x1d8] sm:$0xff]  ;;  %v315_v50 = vld [vmem:[%s3677_s28 + $0x3d0] sm:$0xff] }
  0x5f   : > { %3149 = vmatprep.mubr.msk.bf16.mxu1 %vm399_vm1, %v371_v51  ;;  %v316_v51 = vld [vmem:[%s3677_s28 + $0x3d8] sm:$0xff]  ;;  %v350_v56 = vpack.c.bf16 %v252_v49, %v251_v48 }
  0x60   : > { %v382_v57 = vpack.c.bf16 %v316_v51, %v315_v50 }
  0x65   : > { %3086 = vmatmul.mubr.msk.bf16.gmra.mrb[36].mxu0 %vm399_vm1, %v340_v60  ;;  %v255_v60 = vld [vmem:[%s3677_s28 + $0x1f0] sm:$0xff] }
  0x66   : > { %3150 = vmatmul.mubr.msk.bf16.gmra.mrb[36].mxu1 %vm399_vm1, %v372_v61  ;;  %3089 = vmatprep.mubr.msk.bf16.mxu0 %vm399_vm1, %v341_v62  ;;  %v256_v61 = vld [vmem:[%s3677_s28 + $0x1f8] sm:$0xff]  ;;  %v319_v62 = vld [vmem:[%s3677_s28 + $0x3f0] sm:$0xff] }
  0x67   : > { %3153 = vmatprep.mubr.msk.bf16.mxu1 %vm399_vm1, %v373_v63  ;;  %v320_v63 = vld [vmem:[%s3677_s28 + $0x3f8] sm:$0xff]  ;;  %v352_v0 = vpack.c.bf16 %v256_v61, %v255_v60 }
  0x68   : > { %v384_v1 = vpack.c.bf16 %v320_v63, %v319_v62 }
  0x6d   : > { %3090 = vmatmul.mubr.msk.bf16.gmra.mrb[40].mxu0 %vm399_vm1, %v342_v8 }
  0x6e   : > { %3154 = vmatmul.mubr.msk.bf16.gmra.mrb[40].mxu1 %vm399_vm1, %v374_v9  ;;  %3093 = vmatprep.mubr.msk.bf16.mxu0 %vm399_vm1, %v343_v10 }
  0x6f   : > { %3157 = vmatprep.mubr.msk.bf16.mxu1 %vm399_vm1, %v375_v11 }
  0x75   : > { %3094 = vmatmul.mubr.msk.bf16.gmra.mrb[44].mxu0 %vm399_vm1, %v344_v20 }
  0x76   : > { %3158 = vmatmul.mubr.msk.bf16.gmra.mrb[44].mxu1 %vm399_vm1, %v376_v21  ;;  %3097 = vmatprep.mubr.msk.bf16.mxu0 %vm399_vm1, %v345_v22 }
  0x77   : > { %3161 = vmatprep.mubr.msk.bf16.mxu1 %vm399_vm1, %v377_v23 }
  0x7d   : > { %3098 = vmatmul.mubr.msk.bf16.gmra.mrb[48].mxu0 %vm399_vm1, %v346_v32 }
  0x7e   : > { %3162 = vmatmul.mubr.msk.bf16.gmra.mrb[48].mxu1 %vm399_vm1, %v378_v33  ;;  %3101 = vmatprep.mubr.msk.bf16.mxu0 %vm399_vm1, %v347_v34 }
  0x7f   : > { %3165 = vmatprep.mubr.msk.bf16.mxu1 %vm399_vm1, %v379_v35 }
  0x85   : > { %3102 = vmatmul.mubr.msk.bf16.gmra.mrb[52].mxu0 %vm399_vm1, %v348_v44 }
  0x86   : > { %3166 = vmatmul.mubr.msk.bf16.gmra.mrb[52].mxu1 %vm399_vm1, %v380_v45  ;;  %3105 = vmatprep.mubr.msk.bf16.mxu0 %vm399_vm1, %v349_v46 }
  0x87   : > { %3169 = vmatprep.mubr.msk.bf16.mxu1 %vm399_vm1, %v381_v47 }
  0x8d   : > { %3106 = vmatmul.mubr.msk.bf16.gmra.mrb[56].mxu0 %vm399_vm1, %v350_v56 }
  0x8e   : > { %3170 = vmatmul.mubr.msk.bf16.gmra.mrb[56].mxu1 %vm399_vm1, %v382_v57  ;;  %3109 = vmatprep.mubr.msk.bf16.mxu0 %vm399_vm1, %v351_v58 }
  0x8f   : > { %3173 = vmatprep.mubr.msk.bf16.mxu1 %vm399_vm1, %v383_v59 }
  0x95   : > { %3110 = vmatmul.mubr.msk.bf16.gmra.mrb[60].mxu0 %vm399_vm1, %v352_v0 }
  0x96   : > { %3174 = vmatmul.mubr.msk.bf16.gmra.mrb[60].mxu1 %vm399_vm1, %v384_v1 }
  0xf0   : > { %v3051_v3 = vpop.f32.mrb[0].mxu0 }
  0xf1   : > { %v639_v4 = vadd.f32 %v3051_v3, %v3874_v2  ;;  %v3115_v5 = vpop.f32.mrb[0].mxu1  ;;  %v630_v6 = vpop.f32.mrb[1].mxu0 }
  0xf2   : > { %v895_v7 = vadd.f32 %v3115_v5, %v3874_v2  ;;  %v3879_v8 = vadd.f32 %v3874_v2, %v630_v6  ;;  %v886_v9 = vpop.f32.mrb[1].mxu1  ;;  %v3052_v10 = vpop.f32.mrb[2].mxu0 }
  0xf3   : > { %v1271_v11 = vmul.f32 0.044715, %v639_v4  ;;  %v3882_v12 = vadd.f32 %v3874_v2, %v886_v9  ;;  %v3885_v13 = vadd.f32 %v3052_v10, %v3874_v2  ;;  %v3116_v14 = vpop.f32.mrb[2].mxu1  ;;  %v633_v15 = vpop.f32.mrb[3].mxu0  ;;  %v3908_v44 = vmul.f32 0.5, %v639_v4 }
  0xf4   : > { %v1335_v16 = vmul.f32 0.044715, %v895_v7  ;;  %v1269_v17 = vmul.f32 0.044715, %v3879_v8  ;;  %v889_v20 = vpop.f32.mrb[3].mxu1  ;;  %v3892_v24 = vadd.f32 %v3116_v14, %v3874_v2  ;;  %v3896_v27 = vadd.f32 %v3874_v2, %v633_v15 }
  0xf5   : > { %v1399_v18 = vmul.f32 %v1271_v11, %v639_v4  ;;  %v1333_v19 = vmul.f32 0.044715, %v3882_v12  ;;  %v1272_v23 = vmul.f32 0.044715, %v3885_v13  ;;  %v3903_v35 = vadd.f32 %v3874_v2, %v889_v20 }
  0xf6   : > { %v1463_v21 = vmul.f32 %v1335_v16, %v895_v7  ;;  %v1397_v22 = vmul.f32 %v1269_v17, %v3879_v8  ;;  %v1336_v34 = vmul.f32 0.044715, %v3892_v24  ;;  %v1270_v41 = vmul.f32 0.044715, %v3896_v27 }
  0xf7   : > { %v1527_v25 = vmul.f32 %v1399_v18, %v639_v4  ;;  %v1461_v26 = vmul.f32 %v1333_v19, %v3882_v12  ;;  %v1400_v30 = vmul.f32 %v1272_v23, %v3885_v13  ;;  %v1334_v57 = vmul.f32 0.044715, %v3903_v35 }
  0xf8   : > { %v1591_v28 = vmul.f32 %v1463_v21, %v895_v7  ;;  %v1525_v29 = vmul.f32 %v1397_v22, %v3879_v8  ;;  %v3055_v31 = vpop.f32.mrb[4].mxu0  ;;  %v1464_v47 = vmul.f32 %v1336_v34, %v3892_v24  ;;  %v1398_v53 = vmul.f32 %v1270_v41, %v3896_v27 }
  0xf9   : > { %v1655_v32 = vadd.f32 %v1527_v25, %v639_v4  ;;  %v1589_v33 = vmul.f32 %v1461_v26, %v3882_v12  ;;  %v3119_v36 = vpop.f32.mrb[4].mxu1  ;;  %v646_v37 = vpop.f32.mrb[5].mxu0  ;;  %v1528_v40 = vmul.f32 %v1400_v30, %v3885_v13  ;;  %v3922_v60 = vadd.f32 %v3055_v31, %v3874_v2 }
  0xfa   : > { %v1719_v38 = vadd.f32 %v1591_v28, %v895_v7  ;;  %v1653_v39 = vadd.f32 %v1525_v29, %v3879_v8  ;;  %v902_v42 = vpop.f32.mrb[5].mxu1  ;;  %v3056_v43 = vpop.f32.mrb[6].mxu0  ;;  %v1592_v56 = vmul.f32 %v1464_v47, %v3892_v24  ;;  %v1526_v59 = vmul.f32 %v1398_v53, %v3896_v27 }
  0xfb   : > { %v1783_v45 = vmul.f32 0.7978846, %v1655_v32  ;;  %v1717_v46 = vadd.f32 %v1589_v33, %v3882_v12  ;;  %v3120_v48 = vpop.f32.mrb[6].mxu1  ;;  %v3912_v49 = vpop.f32.mrb[7].mxu0  ;;  %v1656_v52 = vadd.f32 %v1528_v40, %v3885_v13  ;;  %v1462_v62 = vmul.f32 %v1334_v57, %v3903_v35 }
  0xfc   : > { %v1847_v50 = vmul.f32 0.7978846, %v1719_v38  ;;  %v1781_v51 = vmul.f32 0.7978846, %v1653_v39  ;;  %v3916_v54 = vpop.f32.mrb[7].mxu1  ;;  %v1720_v61 = vadd.f32 %v1592_v56, %v3892_v24  ;;  %v3927_v63 = vadd.f32 %v3119_v36, %v3874_v2 }
  0xfd   : > { %3270 = vtanh.f32 %v1783_v45  ;;  %v1845_v55 = vmul.f32 0.7978846, %v1717_v46  ;;  %v1784_v58 = vmul.f32 0.7978846, %v1656_v52  ;;  %v3929_v0 = vmul.f32 0.5, %v895_v7 }
  0xfe   : > { %3272 = vtanh.f32 %v1847_v50  ;;  %v1654_v1 = vadd.f32 %v1526_v59, %v3896_v27  ;;  %v1275_v3 = vmul.f32 0.044715, %v3922_v60  ;;  %v3936_v5 = vmul.f32 0.5, %v3879_v8 }
  0xff   : > { %3274 = vtanh.f32 %v1781_v51  ;;  %v1848_v6 = vmul.f32 0.7978846, %v1720_v61  ;;  %v1590_v9 = vmul.f32 %v1462_v62, %v3903_v35  ;;  %v1339_v15 = vmul.f32 0.044715, %v3927_v63 }
 0x100   : > { %3276 = vtanh.f32 %v1845_v55  ;;  %v3933_v4 = vpop.f32.mrb[8].mxu0  ;;  %v1782_v11 = vmul.f32 0.7978846, %v1654_v1  ;;  %v1403_v14 = vmul.f32 %v1275_v3, %v3922_v60  ;;  %v3946_v16 = vadd.f32 %v3874_v2, %v646_v37 }
 0x101   : > { %3278 = vtanh.f32 %v1784_v58  ;;  %v3939_v10 = vpop.f32.mrb[8].mxu1  ;;  %v3941_v7 = vpop.f32.mrb[9].mxu0  ;;  %v1718_v18 = vadd.f32 %v1590_v9, %v3903_v35  ;;  %v3955_v19 = vadd.f32 %v3874_v2, %v902_v42  ;;  %v3958_v20 = vadd.f32 %v3056_v43, %v3874_v2 }
 0x102   : > { %v3948_v17 = vpop.f32.mrb[9].mxu1  ;;  %v3950_v8 = vpop.f32.mrb[10].mxu0  ;;  %3280 = vtanh.f32 %v1848_v6  ;;  %v1205_v23 = vmul.f32 0.5, %v3882_v12  ;;  %v1531_v25 = vmul.f32 %v1403_v14, %v3922_v60  ;;  %v1467_v26 = vmul.f32 %v1339_v15, %v3927_v63 }
 0x103   : > { %v3960_v21 = vpop.f32.mrb[10].mxu1  ;;  %v3962_v22 = vpop.f32.mrb[11].mxu0  ;;  %3282 = vtanh.f32 %v1782_v11  ;;  %v1144_v29 = vmul.f32 0.5, %v3885_v13  ;;  %v3971_v30 = vmul.f32 0.5, %v3892_v24  ;;  %v1846_v31 = vmul.f32 0.7978846, %v1718_v18 }
 0x104   : > { %v3967_v28 = vpop.f32.mrb[11].mxu1  ;;  %v1273_v32 = vmul.f32 0.044715, %v3946_v16  ;;  %v1659_v33 = vadd.f32 %v1531_v25, %v3922_v60  ;;  %v1595_v12 = vmul.f32 %v1467_v26, %v3927_v63  ;;  %v1337_v34 = vmul.f32 0.044715, %v3955_v19 }
 0x105   : > { %v1276_v36 = vmul.f32 0.044715, %v3958_v20  ;;  %v1142_v38 = vmul.f32 0.5, %v3896_v27  ;;  %3284 = vtanh.f32 %v1846_v31  ;;  %v3983_v24 = vadd.f32 %v3120_v48, %v3874_v2 }
 0x106   : > { %v1401_v13 = vmul.f32 %v1273_v32, %v3946_v16  ;;  %v1787_v41 = vmul.f32 0.7978846, %v1659_v33  ;;  %v1723_v42 = vadd.f32 %v1595_v12, %v3927_v63  ;;  %v1465_v43 = vmul.f32 %v1337_v34, %v3955_v19 }
 0x107   : > { %v3271_v37 = vpop.eup %3270  ;;  %v1404_v27 = vmul.f32 %v1276_v36, %v3958_v20  ;;  %v3993_v51 = vadd.f32 %v3874_v2, %v3912_v49  ;;  %v1340_v31 = vmul.f32 0.044715, %v3983_v24  ;;  %v1206_v12 = vmul.f32 0.5, %v3903_v35 }
 0x108   : > { %v3273_v39 = vpop.eup %3272  ;;  %v2039_v40 = vadd.f32 1.0, %v3271_v37  ;;  %v3987_v45 = vpop.f32.mrb[12].mxu0  ;;  %v1529_v50 = vmul.f32 %v1401_v13, %v3946_v16  ;;  %3286 = vtanh.f32 %v1787_v41  ;;  %v1851_v57 = vmul.f32 0.7978846, %v1723_v42 }
 0x109   : > { %v3275_v46 = vpop.eup %3274  ;;  %v2103_v47 = vadd.f32 1.0, %v3273_v39  ;;  %v3995_v48 = vpop.f32.mrb[12].mxu1  ;;  %v1593_v3 = vmul.f32 %v1465_v43, %v3955_v19  ;;  %v1468_v37 = vmul.f32 %v1340_v31, %v3983_v24  ;;  %v4037_v35 = vadd.f32 %v3874_v2, %v3916_v54 }
 0x10a   : > { %v3997_v52 = vpop.f32.mrb[13].mxu0  ;;  %v3277_v53 = vpop.eup %3276  ;;  %v2167_v55 = vmul.f32 %v2039_v40, %v3908_v44  ;;  %v2037_v56 = vadd.f32 1.0, %v3275_v46  ;;  %v1657_v1 = vadd.f32 %v1529_v50, %v3946_v16  ;;  %3288 = vtanh.f32 %v1851_v57 }
 0x10b   : > { %v4000_v58 = vpop.f32.mrb[13].mxu1  ;;  %v4002_v59 = vpop.f32.mrb[14].mxu0  ;;  %v2231_v62 = vmul.f32 %v2103_v47, %v3929_v0  ;;  %v2101_v49 = vadd.f32 1.0, %v3277_v53  ;;  %v1532_v0 = vmul.f32 %v1404_v27, %v3958_v20  ;;  %v1721_v26 = vadd.f32 %v1593_v3, %v3955_v19 }
 0x10c   : > { %v3279_v61 = vpop.eup %3278  ;;  %v4007_v6 = vpop.f32.mrb[14].mxu1  ;;  %2296 = vst.msk [vmem:[%s4012_s6 + $0x10] sm:$0xff] %vm2293_vm2, %v2167_v55  ;;  %v2165_v44 = vmul.f32 %v2037_v56, %v3936_v5  ;;  %v1785_v25 = vmul.f32 0.7978846, %v1657_v1  ;;  %v1596_v43 = vmul.f32 %v1468_v37, %v3983_v24  ;;  %v4044_v46 = vadd.f32 %v3933_v4, %v3874_v2 }
 0x10d   : > { %v4009_v9 = vpop.f32.mrb[15].mxu0  ;;  %v2040_v11 = vadd.f32 1.0, %v3279_v61  ;;  %v4018_v14 = vpop.f32.mrb[15].mxu1  ;;  %2360 = vst.msk [vmem:[%s4012_s6 + $0x210] sm:$0xff] %vm2293_vm2, %v2231_v62  ;;  %v2229_v18 = vmul.f32 %v2101_v49, %v1205_v23  ;;  %v1660_v34 = vadd.f32 %v1532_v0, %v3958_v20  ;;  %v1849_v23 = vmul.f32 0.7978846, %v1721_v26 }
 0x10e   : > { %v3281_v15 = vpop.eup %3280  ;;  %2294 = vst.msk [vmem:[%s4012_s6] sm:$0xff] %vm2293_vm2, %v2165_v44  ;;  %3290 = vtanh.f32 %v1785_v25  ;;  %v1147_v50 = vmul.f32 0.5, %v3922_v60  ;;  %v1211_v4 = vmul.f32 0.5, %v3927_v63  ;;  %v1724_v55 = vadd.f32 %v1596_v43, %v3983_v24 }
 0x10f   : > { %v3283_v32 = vpop.eup %3282  ;;  %v2168_v5 = vmul.f32 %v2040_v11, %v1144_v29  ;;  %v2104_v33 = vadd.f32 1.0, %v3281_v15  ;;  %2358 = vst.msk [vmem:[%s4012_s6 + $0x200] sm:$0xff] %vm2293_vm2, %v2229_v18  ;;  %v1788_v39 = vmul.f32 0.7978846, %v1660_v34  ;;  %v1274_v29 = vmul.f32 0.044715, %v3993_v51 }
 0x110   : > { %v2038_v36 = vadd.f32 1.0, %v3283_v32  ;;  %v4039_v40 = vpop.f32.mrb[16].mxu0  ;;  %v3285_v41 = vpop.eup %3284  ;;  %3292 = vtanh.f32 %v1849_v23  ;;  %v1338_v56 = vmul.f32 0.044715, %v4037_v35  ;;  %v1279_v57 = vmul.f32 0.044715, %v4044_v46 }
 0x111   : > { %2297 = vst.msk [vmem:[%s4012_s6 + $0x18] sm:$0xff] %vm2293_vm2, %v2168_v5  ;;  %v2232_v13 = vmul.f32 %v2104_v33, %v3971_v30  ;;  %v4046_v30 = vpop.f32.mrb[16].mxu1  ;;  %v4048_v47 = vpop.f32.mrb[17].mxu0  ;;  %v2102_v54 = vadd.f32 1.0, %v3285_v41  ;;  %3294 = vtanh.f32 %v1788_v39  ;;  %v1402_v27 = vmul.f32 %v1274_v29, %v3993_v51 }
 0x112   : > { %v2166_v42 = vmul.f32 %v2038_v36, %v1142_v38  ;;  %v4054_v38 = vpop.f32.mrb[17].mxu1  ;;  %v4056_v53 = vpop.f32.mrb[18].mxu0  ;;  %v4069_v1 = vadd.f32 %v3939_v10, %v3874_v2  ;;  %v4073_v63 = vadd.f32 %v3874_v2, %v3941_v7  ;;  %v1852_v0 = vmul.f32 0.7978846, %v1724_v55 }
 0x113   : > { %2361 = vst.msk [vmem:[%s4012_s6 + $0x218] sm:$0xff] %vm2293_vm2, %v2232_v13  ;;  %v4064_v61 = vpop.f32.mrb[18].mxu1  ;;  %v3287_v60 = vpop.eup %3286  ;;  %v2230_v62 = vmul.f32 %v2102_v54, %v1206_v12  ;;  %v1530_v49 = vmul.f32 %v1402_v27, %v3993_v51  ;;  %v1466_v15 = vmul.f32 %v1338_v56, %v4037_v35  ;;  %v1407_v18 = vmul.f32 %v1279_v57, %v4044_v46 }
 0x114   : > { %2295 = vst.msk [vmem:[%s4012_s6 + $0x8] sm:$0xff] %vm2293_vm2, %v2166_v42  ;;  %v4075_v3 = vpop.f32.mrb[19].mxu0  ;;  %v4077_v44 = vpop.f32.mrb[19].mxu1  ;;  %v2043_v11 = vadd.f32 1.0, %v3287_v60  ;;  %v1145_v10 = vmul.f32 0.5, %v3946_v16  ;;  %v1209_v26 = vmul.f32 0.5, %v3955_v19  ;;  %3296 = vtanh.f32 %v1852_v0 }
 0x115   : > { %v3289_v25 = vpop.eup %3288  ;;  %2359 = vst.msk [vmem:[%s4012_s6 + $0x208] sm:$0xff] %vm2293_vm2, %v2230_v62  ;;  %v1658_v7 = vadd.f32 %v1530_v49, %v3993_v51  ;;  %v1343_v31 = vmul.f32 0.044715, %v4069_v1  ;;  %v1594_v33 = vmul.f32 %v1466_v15, %v4037_v35  ;;  %v1535_v34 = vmul.f32 %v1407_v18, %v4044_v46 }
 0x116   : > { %v2171_v32 = vmul.f32 %v2043_v11, %v1147_v50  ;;  %v2107_v5 = vadd.f32 1.0, %v3289_v25  ;;  %v1277_v23 = vmul.f32 0.044715, %v4073_v63  ;;  %v1148_v13 = vmul.f32 0.5, %v3958_v20 }
 0x117   : > { %v1786_v12 = vmul.f32 0.7978846, %v1658_v7  ;;  %v1471_v36 = vmul.f32 %v1343_v31, %v4069_v1  ;;  %v1722_v39 = vadd.f32 %v1594_v33, %v4037_v35  ;;  %v4099_v29 = vadd.f32 %v3874_v2, %v3948_v17 }
 0x118   : > { %v4091_v37 = vpop.f32.mrb[20].mxu0  ;;  %v3291_v16 = vpop.eup %3290  ;;  %2300 = vst.msk [vmem:[%s4012_s6 + $0x30] sm:$0xff] %vm2293_vm2, %v2171_v32  ;;  %v2235_v19 = vmul.f32 %v2107_v5, %v1211_v4  ;;  %v1663_v54 = vadd.f32 %v1535_v34, %v4044_v46  ;;  %v1405_v17 = vmul.f32 %v1277_v23, %v4073_v63  ;;  %v4117_v57 = vadd.f32 %v3950_v8, %v3874_v2 }
 0x119   : > { %v4101_v41 = vpop.f32.mrb[20].mxu1  ;;  %v4103_v42 = vpop.f32.mrb[21].mxu0  ;;  %v2041_v43 = vadd.f32 1.0, %v3291_v16  ;;  %3298 = vtanh.f32 %v1786_v12  ;;  %v1599_v50 = vmul.f32 %v1471_v36, %v4069_v1  ;;  %v1850_v55 = vmul.f32 0.7978846, %v1722_v39 }
 0x11a   : > { %v4107_v27 = vpop.f32.mrb[21].mxu1  ;;  %v4109_v4 = vpop.f32.mrb[22].mxu0  ;;  %2364 = vst.msk [vmem:[%s4012_s6 + $0x230] sm:$0xff] %vm2293_vm2, %v2235_v19  ;;  %v1341_v56 = vmul.f32 0.044715, %v4099_v29  ;;  %v1533_v31 = vmul.f32 %v1405_v17, %v4073_v63  ;;  %v4138_v23 = vadd.f32 %v3960_v21, %v3874_v2 }
 0x11b   : > { %v3293_v20 = vpop.eup %3292  ;;  %v4119_v60 = vpop.f32.mrb[22].mxu1  ;;  %v2169_v49 = vmul.f32 %v2041_v43, %v1145_v10  ;;  %v1791_v0 = vmul.f32 0.7978846, %v1663_v54  ;;  %v1727_v15 = vadd.f32 %v1599_v50, %v4069_v1  ;;  %3300 = vtanh.f32 %v1850_v55 }
 0x11c   : > { %v3295_v62 = vpop.eup %3294  ;;  %v2105_v11 = vadd.f32 1.0, %v3293_v20  ;;  %v4122_v18 = vpop.f32.mrb[23].mxu0  ;;  %v1469_v8 = vmul.f32 %v1341_v56, %v4099_v29  ;;  %v1212_v10 = vmul.f32 0.5, %v3983_v24  ;;  %v1661_v12 = vadd.f32 %v1533_v31, %v4073_v63 }
 0x11d   : > { %v4124_v25 = vpop.f32.mrb[23].mxu1  ;;  %v2044_v7 = vadd.f32 1.0, %v3295_v62  ;;  %2298 = vst.msk [vmem:[%s4012_s6 + $0x20] sm:$0xff] %vm2293_vm2, %v2169_v49  ;;  %3302 = vtanh.f32 %v1791_v0  ;;  %v1855_v5 = vmul.f32 0.7978846, %v1727_v15  ;;  %v4146_v24 = vadd.f32 %v3874_v2, %v3967_v28 }
 0x11e   : > { %v2233_v32 = vmul.f32 %v2105_v11, %v1209_v26  ;;  %v1597_v34 = vmul.f32 %v1469_v8, %v4099_v29  ;;  %v1280_v36 = vmul.f32 0.044715, %v4117_v57  ;;  %v4142_v26 = vadd.f32 %v3874_v2, %v3962_v22  ;;  %v3297_v19 = vpop.eup %3296 }
 0x11f   : > { %v2172_v33 = vmul.f32 %v2044_v7, %v1148_v13  ;;  %3304 = vtanh.f32 %v1855_v5  ;;  %v1146_v13 = vmul.f32 0.5, %v3993_v51  ;;  %v1789_v39 = vmul.f32 0.7978846, %v1661_v12 }
 0x120   : > { %2362 = vst.msk [vmem:[%s4012_s6 + $0x220] sm:$0xff] %vm2293_vm2, %v2233_v32  ;;  %v4148_v16 = vpop.f32.mrb[24].mxu0  ;;  %v1725_v43 = vadd.f32 %v1597_v34, %v4099_v29  ;;  %v1408_v21 = vmul.f32 %v1280_v36, %v4117_v57  ;;  %v2108_v50 = vadd.f32 1.0, %v3297_v19  ;;  %v1210_v28 = vmul.f32 0.5, %v4037_v35 }
 0x121   : > { %2301 = vst.msk [vmem:[%s4012_s6 + $0x38] sm:$0xff] %vm2293_vm2, %v2172_v33  ;;  %v4155_v54 = vpop.f32.mrb[24].mxu1  ;;  %v4157_v22 = vpop.f32.mrb[25].mxu0  ;;  %v1344_v20 = vmul.f32 0.044715, %v4138_v23  ;;  %v4163_v55 = vadd.f32 %v3987_v45, %v3874_v2  ;;  %3306 = vtanh.f32 %v1789_v39  ;;  %v1151_v15 = vmul.f32 0.5, %v4044_v46 }
 0x122   : > { %v4165_v17 = vpop.f32.mrb[25].mxu1  ;;  %v1853_v51 = vmul.f32 0.7978846, %v1725_v43  ;;  %v1536_v56 = vmul.f32 %v1408_v21, %v4117_v57  ;;  %v1278_v62 = vmul.f32 0.044715, %v4142_v26  ;;  %v4169_v49 = vpop.f32.mrb[26].mxu0  ;;  %v2236_v0 = vmul.f32 %v2108_v50, %v1212_v10 }
 0x123   : > { %v4171_v11 = vpop.f32.mrb[26].mxu1  ;;  %v3299_v35 = vpop.eup %3298  ;;  %v1472_v45 = vmul.f32 %v1344_v20, %v4138_v23  ;;  %v1342_v7 = vmul.f32 0.044715, %v4146_v24  ;;  %v1215_v10 = vmul.f32 0.5, %v4069_v1  ;;  %v1283_v34 = vmul.f32 0.044715, %v4163_v55 }
 0x124   : > { %v4176_v31 = vpop.f32.mrb[27].mxu0  ;;  %v4178_v8 = vpop.f32.mrb[27].mxu1  ;;  %v2042_v32 = vadd.f32 1.0, %v3299_v35  ;;  %3308 = vtanh.f32 %v1853_v51  ;;  %v1664_v5 = vadd.f32 %v1536_v56, %v4117_v57  ;;  %v1406_v33 = vmul.f32 %v1278_v62, %v4142_v26  ;;  %2365 = vst.msk [vmem:[%s4012_s6 + $0x238] sm:$0xff] %vm2293_vm2, %v2236_v0 }
 0x125   : > { %v1600_v46 = vmul.f32 %v1472_v45, %v4138_v23  ;;  %v1470_v12 = vmul.f32 %v1342_v7, %v4146_v24  ;;  %v3301_v36 = vpop.eup %3300  ;;  %v4191_v21 = vadd.f32 %v3995_v48, %v3874_v2  ;;  %v1411_v56 = vmul.f32 %v1283_v34, %v4163_v55 }
 0x126   : > { %v2170_v19 = vmul.f32 %v2042_v32, %v1146_v13  ;;  %v1792_v39 = vmul.f32 0.7978846, %v1664_v5  ;;  %v1534_v43 = vmul.f32 %v1406_v33, %v4142_v26  ;;  %v2106_v20 = vadd.f32 1.0, %v3301_v36 }
 0x127   : > { %v3303_v50 = vpop.eup %3302  ;;  %v1728_v51 = vadd.f32 %v1600_v46, %v4138_v23  ;;  %v1598_v1 = vmul.f32 %v1470_v12, %v4146_v24  ;;  %v1149_v35 = vmul.f32 0.5, %v4073_v63  ;;  %v1539_v46 = vmul.f32 %v1411_v56, %v4163_v55 }
 0x128   : > { %v4196_v62 = vpop.f32.mrb[28].mxu0  ;;  %2299 = vst.msk [vmem:[%s4012_s6 + $0x28] sm:$0xff] %vm2293_vm2, %v2170_v19  ;;  %v2047_v13 = vadd.f32 1.0, %v3303_v50  ;;  %3310 = vtanh.f32 %v1792_v39  ;;  %v1662_v48 = vadd.f32 %v1534_v43, %v4142_v26  ;;  %v2234_v32 = vmul.f32 %v2106_v20, %v1210_v28 }
 0x129   : > { %v4202_v0 = vpop.f32.mrb[28].mxu1  ;;  %v4204_v45 = vpop.f32.mrb[29].mxu0  ;;  %v1856_v5 = vmul.f32 0.7978846, %v1728_v51  ;;  %v1726_v33 = vadd.f32 %v1598_v1, %v4146_v24  ;;  %v1347_v39 = vmul.f32 0.044715, %v4191_v21  ;;  %v1667_v50 = vadd.f32 %v1539_v46, %v4163_v55 }
 0x12a   : > { %v3305_v7 = vpop.eup %3304  ;;  %v4208_v12 = vpop.f32.mrb[29].mxu1  ;;  %v2175_v63 = vmul.f32 %v2047_v13, %v1151_v15  ;;  %v1790_v19 = vmul.f32 0.7978846, %v1662_v48  ;;  %2363 = vst.msk [vmem:[%s4012_s6 + $0x228] sm:$0xff] %vm2293_vm2, %v2234_v32  ;;  %v4220_v20 = vadd.f32 %v3874_v2, %v3997_v52  ;;  %v4231_v48 = vadd.f32 %v3874_v2, %v4000_v58 }
 0x12b   : > { %v4210_v34 = vpop.f32.mrb[30].mxu0  ;;  %v2111_v36 = vadd.f32 1.0, %v3305_v7  ;;  %v4213_v43 = vpop.f32.mrb[30].mxu1  ;;  %3312 = vtanh.f32 %v1856_v5  ;;  %v1854_v28 = vmul.f32 0.7978846, %v1726_v33  ;;  %v1475_v13 = vmul.f32 %v1347_v39, %v4191_v21 }
 0x12c   : > { %v4222_v51 = vpop.f32.mrb[31].mxu0  ;;  %v4224_v15 = vpop.f32.mrb[31].mxu1  ;;  %2304 = vst.msk [vmem:[%s4012_s6 + $0x50] sm:$0xff] %vm2293_vm2, %v2175_v63  ;;  %3314 = vtanh.f32 %v1790_v19  ;;  %v1213_v32 = vmul.f32 0.5, %v4099_v29  ;;  %v1795_v52 = vmul.f32 0.7978846, %v1667_v50  ;;  %v4242_v29 = vadd.f32 %v4002_v59, %v3874_v2 }
 0x12d   : > { %v3307_v1 = vpop.eup %3306  ;;  %v2239_v56 = vmul.f32 %v2111_v36, %v1215_v10  ;;  %3316 = vtanh.f32 %v1854_v28  ;;  %v1152_v33 = vmul.f32 0.5, %v4117_v57  ;;  %v1603_v10 = vmul.f32 %v1475_v13, %v4191_v21 }
 0x12e   : > { %v2045_v7 = vadd.f32 1.0, %v3307_v1  ;;  %v3309_v5 = vpop.eup %3308  ;;  %v1281_v46 = vmul.f32 0.044715, %v4220_v20  ;;  %v1345_v63 = vmul.f32 0.044715, %v4231_v48  ;;  %3318 = vtanh.f32 %v1795_v52 }
 0x12f   : > { %2368 = vst.msk [vmem:[%s4012_s6 + $0x250] sm:$0xff] %vm2293_vm2, %v2239_v56  ;;  %v2109_v58 = vadd.f32 1.0, %v3309_v5  ;;  %v1731_v39 = vadd.f32 %v1603_v10, %v4191_v21  ;;  %v4251_v50 = vadd.f32 %v4007_v6, %v3874_v2  ;;  %v1216_v56 = vmul.f32 0.5, %v4138_v23 }
 0x130   : > { %v2173_v36 = vmul.f32 %v2045_v7, %v1149_v35  ;;  %v4244_v19 = vpop.f32.mrb[32].mxu0  ;;  %v1409_v28 = vmul.f32 %v1281_v46, %v4220_v20  ;;  %v1473_v57 = vmul.f32 %v1345_v63, %v4231_v48  ;;  %v1284_v13 = vmul.f32 0.044715, %v4242_v29 }
 0x131   : > { %5722 = vst [vmem:[#allocation3_spill] sm:$0xff] %v4244_v19  ;;  %v4253_v1 = vpop.f32.mrb[32].mxu1  ;;  %v4255_v35 = vpop.f32.mrb[33].mxu0  ;;  %v2237_v59 = vmul.f32 %v2109_v58, %v1213_v32  ;;  %v4263_v7 = vadd.f32 %v3874_v2, %v4009_v9  ;;  %v1150_v10 = vmul.f32 0.5, %v4142_v26  ;;  %v1859_v46 = vmul.f32 0.7978846, %v1731_v39 }
 0x132   : > { %5723 = vst [vmem:[#allocation4_spill] sm:$0xff] %v4253_v1  ;;  %5724 = vst [vmem:[#allocation5_spill] sm:$0xff] %v4255_v35  ;;  %v4265_v52 = vpop.f32.mrb[33].mxu1  ;;  %v4267_v6 = vpop.f32.mrb[34].mxu0  ;;  %v1537_v63 = vmul.f32 %v1409_v28, %v4220_v20  ;;  %v1601_v32 = vmul.f32 %v1473_v57, %v4231_v48  ;;  %v1214_v58 = vmul.f32 0.5, %v4146_v24 }
 0x133   : > { %2302 = vst.msk [vmem:[%s4012_s6 + $0x40] sm:$0xff] %vm2293_vm2, %v2173_v36  ;;  %5725 = vst [vmem:[#allocation6_spill] sm:$0xff] %v4265_v52  ;;  %v3311_v5 = vpop.eup %3310  ;;  %v4272_v36 = vpop.f32.mrb[34].mxu1  ;;  %v1412_v52 = vmul.f32 %v1284_v13, %v4242_v29  ;;  %3320 = vtanh.f32 %v1859_v46  ;;  %v1282_v28 = vmul.f32 0.044715, %v4263_v7  ;;  %v4290_v13 = vadd.f32 %v3874_v2, %v4018_v14 }
 0x134   : > { %5726 = vst [vmem:[#allocation7_spill] sm:$0xff] %v4267_v6  ;;  %5727 = vst [vmem:[#allocation8_spill] sm:$0xff] %v4272_v36  ;;  %v4274_v23 = vpop.f32.mrb[35].mxu0  ;;  %v2048_v9 = vadd.f32 1.0, %v3311_v5  ;;  %v1348_v6 = vmul.f32 0.044715, %v4251_v50  ;;  %v1665_v26 = vadd.f32 %v1537_v63, %v4220_v20  ;;  %v1729_v39 = vadd.f32 %v1601_v32, %v4231_v48 }
 0x135   : > { %5728 = vst [vmem:[#allocation9_spill] sm:$0xff] %v4274_v23  ;;  %2366 = vst.msk [vmem:[%s4012_s6 + $0x240] sm:$0xff] %vm2293_vm2, %v2237_v59  ;;  %v4281_v35 = vpop.f32.mrb[35].mxu1  ;;  %v3313_v57 = vpop.eup %3312  ;;  %v1540_v59 = vmul.f32 %v1412_v52, %v4242_v29  ;;  %v1410_v63 = vmul.f32 %v1282_v28, %v4263_v7 }
 0x136   : > { %5729 = vst [vmem:[#allocation10_spill] sm:$0xff] %v4281_v35  ;;  %v2176_v23 = vmul.f32 %v2048_v9, %v1152_v33  ;;  %v1476_v24 = vmul.f32 %v1348_v6, %v4251_v50  ;;  %v3315_v5 = vpop.eup %3314  ;;  %v2112_v35 = vadd.f32 1.0, %v3313_v57  ;;  %v1793_v36 = vmul.f32 0.7978846, %v1665_v26 }
 0x137   : > { %v1857_v46 = vmul.f32 0.7978846, %v1729_v39  ;;  %v3317_v1 = vpop.eup %3316  ;;  %v2046_v32 = vadd.f32 1.0, %v3315_v5  ;;  %v1155_v33 = vmul.f32 0.5, %v4163_v55  ;;  %v1668_v52 = vadd.f32 %v1540_v59, %v4242_v29 }
 0x138   : > { %2305 = vst.msk [vmem:[%s4012_s6 + $0x58] sm:$0xff] %vm2293_vm2, %v2176_v23  ;;  %v1604_v6 = vmul.f32 %v1476_v24, %v4251_v50  ;;  %v4298_v9 = vpop.f32.mrb[36].mxu0  ;;  %v2240_v14 = vmul.f32 %v2112_v35, %v1216_v56  ;;  %v2110_v19 = vadd.f32 1.0, %v3317_v1  ;;  %3322 = vtanh.f32 %v1793_v36  ;;  %v3319_v23 = vpop.eup %3318 }
 0x139   : > { %v1538_v26 = vmul.f32 %v1410_v63, %v4263_v7  ;;  %v4301_v39 = vpop.f32.mrb[36].mxu1  ;;  %v4303_v28 = vpop.f32.mrb[37].mxu0  ;;  %v2174_v57 = vmul.f32 %v2046_v32, %v1150_v10  ;;  %3324 = vtanh.f32 %v1857_v46  ;;  %v1796_v55 = vmul.f32 0.7978846, %v1668_v52 }
 0x13a   : > { %v1732_v59 = vadd.f32 %v1604_v6, %v4251_v50  ;;  %v4306_v24 = vpop.f32.mrb[37].mxu1  ;;  %v4308_v5 = vpop.f32.mrb[38].mxu0  ;;  %2369 = vst.msk [vmem:[%s4012_s6 + $0x258] sm:$0xff] %vm2293_vm2, %v2240_v14  ;;  %v2238_v1 = vmul.f32 %v2110_v19, %v1214_v58  ;;  %v2051_v35 = vadd.f32 1.0, %v3319_v23  ;;  %v1346_v36 = vmul.f32 0.044715, %v4290_v13 }
 0x13b   : > { %5730 = vst [vmem:[#allocation11_spill] sm:$0xff] %v4308_v5  ;;  %v1666_v56 = vadd.f32 %v1538_v26, %v4263_v7  ;;  %v4314_v63 = vpop.f32.mrb[38].mxu1  ;;  %v4316_v10 = vpop.f32.mrb[39].mxu0  ;;  %2303 = vst.msk [vmem:[%s4012_s6 + $0x48] sm:$0xff] %vm2293_vm2, %v2174_v57  ;;  %3326 = vtanh.f32 %v1796_v55  ;;  %v4322_v32 = vadd.f32 %v4039_v40, %v3874_v2  ;;  %v4326_v19 = vadd.f32 %v4046_v30, %v3874_v2 }
 0x13c   : > { %5731 = vst [vmem:[#allocation12_spill] sm:$0xff] %v4314_v63  ;;  %5732 = vst [vmem:[#allocation13_spill] sm:$0xff] %v4316_v10  ;;  %v1860_v46 = vmul.f32 0.7978846, %v1732_v59  ;;  %v4328_v58 = vpop.f32.mrb[39].mxu1  ;;  %v2179_v52 = vmul.f32 %v2051_v35, %v1155_v33  ;;  %v1474_v14 = vmul.f32 %v1346_v36, %v4290_v13  ;;  %v4335_v26 = vadd.f32 %v3874_v2, %v4048_v47 }
 0x13d   : > { %5733 = vst [vmem:[#allocation14_spill] sm:$0xff] %v4328_v58  ;;  %2367 = vst.msk [vmem:[%s4012_s6 + $0x248] sm:$0xff] %vm2293_vm2, %v2238_v1  ;;  %v1794_v6 = vmul.f32 0.7978846, %v1666_v56  ;;  %v1219_v23 = vmul.f32 0.5, %v4191_v21  ;;  %v1153_v40 = vmul.f32 0.5, %v4220_v20  ;;  %v3321_v57 = vpop.eup %3320  ;;  %v4349_v20 = vadd.f32 %v3874_v2, %v4054_v38 }
 0x13e   : > { %3328 = vtanh.f32 %v1860_v46  ;;  %v1287_v30 = vmul.f32 0.044715, %v4322_v32  ;;  %2308 = vst.msk [vmem:[%s4012_s6 + $0x70] sm:$0xff] %vm2293_vm2, %v2179_v52  ;;  %v1217_v55 = vmul.f32 0.5, %v4231_v48  ;;  %v1602_v33 = vmul.f32 %v1474_v14, %v4290_v13 }
 0x13f   : > { %3330 = vtanh.f32 %v1794_v6  ;;  %v1351_v59 = vmul.f32 0.044715, %v4326_v19  ;;  %v2115_v1 = vadd.f32 1.0, %v3321_v57  ;;  %v1285_v21 = vmul.f32 0.044715, %v4335_v26 }
 0x140   : > { %v1415_v47 = vmul.f32 %v1287_v30, %v4322_v32  ;;  %v4351_v35 = vpop.f32.mrb[40].mxu0  ;;  %v1156_v56 = vmul.f32 0.5, %v4242_v29  ;;  %v1730_v48 = vadd.f32 %v1602_v33, %v4290_v13  ;;  %v4358_v46 = vadd.f32 %v4056_v53, %v3874_v2 }
 0x141   : > { %5734 = vst [vmem:[#allocation15_spill] sm:$0xff] %v4351_v35  ;;  %v1479_v36 = vmul.f32 %v1351_v59, %v4326_v19  ;;  %v4360_v52 = vpop.f32.mrb[40].mxu1  ;;  %v4362_v6 = vpop.f32.mrb[41].mxu0  ;;  %v2243_v14 = vmul.f32 %v2115_v1, %v1219_v23  ;;  %v1220_v38 = vmul.f32 0.5, %v4251_v50  ;;  %v1413_v29 = vmul.f32 %v1285_v21, %v4335_v26 }
 0x142   : > { %5735 = vst [vmem:[#allocation16_spill] sm:$0xff] %v4360_v52  ;;  %5736 = vst [vmem:[#allocation17_spill] sm:$0xff] %v4362_v6  ;;  %v1543_v30 = vmul.f32 %v1415_v47, %v4322_v32  ;;  %v4367_v57 = vpop.f32.mrb[41].mxu1  ;;  %v4369_v33 = vpop.f32.mrb[42].mxu0  ;;  %v1858_v35 = vmul.f32 0.7978846, %v1730_v48  ;;  %v4375_v6 = vadd.f32 %v4064_v61, %v3874_v2 }
 0x143   : > { %5737 = vst [vmem:[#allocation18_spill] sm:$0xff] %v4367_v57  ;;  %5738 = vst [vmem:[#allocation19_spill] sm:$0xff] %v4369_v33  ;;  %v3323_v59 = vpop.eup %3322  ;;  %v1607_v53 = vmul.f32 %v1479_v36, %v4326_v19  ;;  %v1349_v58 = vmul.f32 0.044715, %v4349_v20  ;;  %v4377_v23 = vpop.f32.mrb[42].mxu1  ;;  %v1541_v21 = vmul.f32 %v1413_v29, %v4335_v26 }
 0x144   : > { %5739 = vst [vmem:[#allocation20_spill] sm:$0xff] %v4377_v23  ;;  %v3325_v50 = vpop.eup %3324  ;;  %2372 = vst.msk [vmem:[%s4012_s6 + $0x270] sm:$0xff] %vm2293_vm2, %v2243_v14  ;;  %v2049_v1 = vadd.f32 1.0, %v3323_v59  ;;  %v1671_v47 = vadd.f32 %v1543_v30, %v4322_v32  ;;  %v1288_v48 = vmul.f32 0.044715, %v4358_v46  ;;  %v4384_v33 = vpop.f32.mrb[43].mxu0  ;;  %3332 = vtanh.f32 %v1858_v35 }
 0x145   : > { %5740 = vst [vmem:[#allocation21_spill] sm:$0xff] %v4384_v33  ;;  %v4386_v36 = vpop.f32.mrb[43].mxu1  ;;  %v2113_v57 = vadd.f32 1.0, %v3325_v50  ;;  %v1735_v61 = vadd.f32 %v1607_v53, %v4326_v19  ;;  %v1477_v23 = vmul.f32 %v1349_v58, %v4349_v20  ;;  %v3327_v52 = vpop.eup %3326  ;;  %v1669_v30 = vadd.f32 %v1541_v21, %v4335_v26 }
 0x146   : > { %5741 = vst [vmem:[#allocation22_spill] sm:$0xff] %v4386_v36  ;;  %v2177_v14 = vmul.f32 %v2049_v1, %v1153_v40  ;;  %v1799_v59 = vmul.f32 0.7978846, %v1671_v47  ;;  %v1416_v29 = vmul.f32 %v1288_v48, %v4358_v46  ;;  %v2052_v63 = vadd.f32 1.0, %v3327_v52 }
 0x147   : > { %v2241_v10 = vmul.f32 %v2113_v57, %v1217_v55  ;;  %v1863_v33 = vmul.f32 0.7978846, %v1735_v61  ;;  %v1605_v5 = vmul.f32 %v1477_v23, %v4349_v20  ;;  %v1154_v35 = vmul.f32 0.5, %v4263_v7 }
 0x148   : > { %v3329_v36 = vpop.eup %3328  ;;  %2306 = vst.msk [vmem:[%s4012_s6 + $0x60] sm:$0xff] %vm2293_vm2, %v2177_v14  ;;  %3334 = vtanh.f32 %v1799_v59  ;;  %v1797_v58 = vmul.f32 0.7978846, %v1669_v30  ;;  %v1544_v40 = vmul.f32 %v1416_v29, %v4358_v46  ;;  %v4397_v53 = vpop.f32.mrb[44].mxu0  ;;  %v2180_v55 = vmul.f32 %v2052_v63, %v1156_v56  ;;  %v4424_v14 = vld [vmem:[%s5719_s2] ss:$0 sm:$0xff] }
 0x149   : > { %v3331_v50 = vpop.eup %3330  ;;  %2370 = vst.msk [vmem:[%s4012_s6 + $0x260] sm:$0xff] %vm2293_vm2, %v2241_v10  ;;  %v2116_v52 = vadd.f32 1.0, %v3329_v36  ;;  %3336 = vtanh.f32 %v1863_v33  ;;  %v1733_v57 = vadd.f32 %v1605_v5, %v4349_v20  ;;  %v4402_v23 = vpop.f32.mrb[44].mxu1  ;;  %v1352_v21 = vmul.f32 0.044715, %v4375_v6 }
 0x14a   : > { %v4404_v1 = vpop.f32.mrb[45].mxu0  ;;  %v2050_v7 = vadd.f32 1.0, %v3331_v50  ;;  %3338 = vtanh.f32 %v1797_v58  ;;  %v1672_v47 = vadd.f32 %v1544_v40, %v4358_v46  ;;  %v4408_v48 = vpop.f32.mrb[45].mxu1  ;;  %2309 = vst.msk [vmem:[%s4012_s6 + $0x78] sm:$0xff] %vm2293_vm2, %v2180_v55  ;;  %v4414_v5 = vadd.f32 %v3874_v2, %v4075_v3 }
 0x14b   : > { %v2244_v63 = vmul.f32 %v2116_v52, %v1220_v38  ;;  %v1861_v10 = vmul.f32 0.7978846, %v1733_v57  ;;  %v4418_v56 = vadd.f32 %v3874_v2, %v4077_v44  ;;  %v1480_v61 = vmul.f32 %v1352_v21, %v4375_v6  ;;  %v4430_v59 = vpop.f32.mrb[46].mxu0  ;;  %v4455_v57 = vpop.f32.mrb[46].mxu1 }
 0x14c   : > { %v2178_v33 = vmul.f32 %v2050_v7, %v1154_v35  ;;  %v1800_v36 = vmul.f32 0.7978846, %v1672_v47  ;;  %v4428_v38 = vadd.f32 %v4424_v14, %v4091_v37  ;;  %v1218_v2 = vmul.f32 0.5, %v4290_v13 }
 0x14d   : > { %2373 = vst.msk [vmem:[%s4012_s6 + $0x278] sm:$0xff] %vm2293_vm2, %v2244_v63  ;;  %v1159_v3 = vmul.f32 0.5, %v4322_v32  ;;  %3340 = vtanh.f32 %v1861_v10  ;;  %v1286_v44 = vmul.f32 0.044715, %v4414_v5  ;;  %v1223_v30 = vmul.f32 0.5, %v4326_v19 }
 0x14e   : > { %2307 = vst.msk [vmem:[%s4012_s6 + $0x68] sm:$0xff] %vm2293_vm2, %v2178_v33  ;;  %3342 = vtanh.f32 %v1800_v36  ;;  %v1608_v29 = vmul.f32 %v1480_v61, %v4375_v6  ;;  %v1350_v37 = vmul.f32 0.044715, %v4418_v56  ;;  %v3333_v35 = vpop.eup %3332  ;;  %v1157_v58 = vmul.f32 0.5, %v4335_v26 }
 0x14f   : > { %v1414_v40 = vmul.f32 %v1286_v44, %v4414_v5  ;;  %v1291_v13 = vmul.f32 0.044715, %v4428_v38  ;;  %v4447_v32 = vadd.f32 %v4424_v14, %v4101_v41  ;;  %v2114_v50 = vadd.f32 1.0, %v3333_v35 }
 0x150   : > { %v1736_v55 = vadd.f32 %v1608_v29, %v4375_v6  ;;  %v1478_v19 = vmul.f32 %v1350_v37, %v4418_v56  ;;  %v4453_v52 = vadd.f32 %v4424_v14, %v4103_v42  ;;  %v1221_v26 = vmul.f32 0.5, %v4349_v20  ;;  %v4469_v37 = vpop.f32.mrb[47].mxu0 }
 0x151   : > { %v1542_v7 = vmul.f32 %v1414_v40, %v4414_v5  ;;  %v1419_v47 = vmul.f32 %v1291_v13, %v4428_v38  ;;  %v1355_v41 = vmul.f32 0.044715, %v4447_v32  ;;  %v2242_v63 = vmul.f32 %v2114_v50, %v1218_v2 }
 0x152   : > { %v3335_v21 = vpop.eup %3334  ;;  %v1864_v10 = vmul.f32 0.7978846, %v1736_v55  ;;  %v1606_v33 = vmul.f32 %v1478_v19, %v4418_v56  ;;  %v4464_v42 = vadd.f32 %v4424_v14, %v4107_v27  ;;  %v1289_v27 = vmul.f32 0.044715, %v4453_v52 }
 0x153   : > { %v3337_v36 = vpop.eup %3336  ;;  %v2055_v61 = vadd.f32 1.0, %v3335_v21  ;;  %v1670_v20 = vadd.f32 %v1542_v7, %v4414_v5  ;;  %v1547_v44 = vmul.f32 %v1419_v47, %v4428_v38  ;;  %v1483_v29 = vmul.f32 %v1355_v41, %v4447_v32  ;;  %2371 = vst.msk [vmem:[%s4012_s6 + $0x268] sm:$0xff] %vm2293_vm2, %v2242_v63  ;;  %v4476_v7 = vpop.f32.mrb[47].mxu1 }
 0x154   : > { %v3339_v35 = vpop.eup %3338  ;;  %v2119_v2 = vadd.f32 1.0, %v3337_v36  ;;  %3344 = vtanh.f32 %v1864_v10  ;;  %v1734_v40 = vadd.f32 %v1606_v33, %v4418_v56  ;;  %v1417_v63 = vmul.f32 %v1289_v27, %v4453_v52 }
 0x155   : > { %v2183_v13 = vmul.f32 %v2055_v61, %v1159_v3  ;;  %v2053_v50 = vadd.f32 1.0, %v3339_v35  ;;  %v1798_v55 = vmul.f32 0.7978846, %v1670_v20  ;;  %v1675_v19 = vadd.f32 %v1547_v44, %v4428_v38 }
 0x156   : > { %v2247_v47 = vmul.f32 %v2119_v2, %v1223_v30  ;;  %v1862_v41 = vmul.f32 0.7978846, %v1734_v40  ;;  %v1611_v21 = vmul.f32 %v1483_v29, %v4447_v32  ;;  %v1160_v3 = vmul.f32 0.5, %v4358_v46 }
 0x157   : > { %v3341_v10 = vpop.eup %3340  ;;  %2312 = vst.msk [vmem:[%s4012_s6 + $0x90] sm:$0xff] %vm2293_vm2, %v2183_v13  ;;  %v2181_v33 = vmul.f32 %v2053_v50, %v1157_v58  ;;  %3346 = vtanh.f32 %v1798_v55  ;;  %v1803_v36 = vmul.f32 0.7978846, %v1675_v19  ;;  %v1545_v44 = vmul.f32 %v1417_v63, %v4453_v52 }
 0x158   : > { %v3343_v61 = vpop.eup %3342  ;;  %2376 = vst.msk [vmem:[%s4012_s6 + $0x290] sm:$0xff] %vm2293_vm2, %v2247_v47  ;;  %v2117_v20 = vadd.f32 1.0, %v3341_v10  ;;  %3348 = vtanh.f32 %v1862_v41  ;;  %v1739_v30 = vadd.f32 %v1611_v21, %v4447_v32  ;;  %v1353_v58 = vmul.f32 0.044715, %v4464_v42  ;;  %v4506_v41 = vpop.f32.mrb[48].mxu0 }
 0x159   : > { %2310 = vst.msk [vmem:[%s4012_s6 + $0x80] sm:$0xff] %vm2293_vm2, %v2181_v33  ;;  %v2056_v29 = vadd.f32 1.0, %v3343_v61  ;;  %3350 = vtanh.f32 %v1803_v36  ;;  %v4492_v46 = vadd.f32 %v4424_v14, %v4109_v4  ;;  %v1673_v40 = vadd.f32 %v1545_v44, %v4453_v52  ;;  %v4522_v10 = vpop.f32.mrb[49].mxu0 }
 0x15a   : > { %v2245_v35 = vmul.f32 %v2117_v20, %v1221_v26  ;;  %v1867_v2 = vmul.f32 0.7978846, %v1739_v30  ;;  %v4497_v27 = vadd.f32 %v4424_v14, %v4119_v60  ;;  %v1224_v50 = vmul.f32 0.5, %v4375_v6 }
 0x15b   : > { %v2184_v13 = vmul.f32 %v2056_v29, %v1160_v3  ;;  %v1481_v55 = vmul.f32 %v1353_v58, %v4464_v42  ;;  %v1292_v19 = vmul.f32 0.044715, %v4492_v46  ;;  %v1158_v4 = vmul.f32 0.5, %v4414_v5  ;;  %v4520_v5 = vpop.f32.mrb[48].mxu1 }
 0x15c   : > { %2374 = vst.msk [vmem:[%s4012_s6 + $0x280] sm:$0xff] %vm2293_vm2, %v2245_v35  ;;  %3352 = vtanh.f32 %v1867_v2  ;;  %v1801_v26 = vmul.f32 0.7978846, %v1673_v40  ;;  %v1356_v47 = vmul.f32 0.044715, %v4497_v27  ;;  %v4514_v21 = vadd.f32 %v4424_v14, %v4122_v18 }
 0x15d   : > { %2313 = vst.msk [vmem:[%s4012_s6 + $0x98] sm:$0xff] %vm2293_vm2, %v2184_v13  ;;  %v1609_v60 = vmul.f32 %v1481_v55, %v4464_v42  ;;  %v1420_v6 = vmul.f32 %v1292_v19, %v4492_v46  ;;  %v4518_v63 = vadd.f32 %v4424_v14, %v4124_v25  ;;  %v1222_v3 = vmul.f32 0.5, %v4418_v56  ;;  %v4533_v44 = vpop.f32.mrb[49].mxu1 }
 0x15e   : > { %v3345_v33 = vpop.eup %3344  ;;  %v1163_v36 = vmul.f32 0.5, %v4428_v38  ;;  %3354 = vtanh.f32 %v1801_v26  ;;  %v1484_v61 = vmul.f32 %v1356_v47, %v4497_v27  ;;  %v4531_v25 = vadd.f32 %v4424_v14, %v4148_v16 }
 0x15f   : > { %v2120_v20 = vadd.f32 1.0, %v3345_v33  ;;  %v1737_v18 = vadd.f32 %v1609_v60, %v4464_v42  ;;  %v1548_v30 = vmul.f32 %v1420_v6, %v4492_v46  ;;  %v1227_v29 = vmul.f32 0.5, %v4447_v32  ;;  %v4547_v60 = vpop.f32.mrb[50].mxu0 }
 0x160   : > { %v1612_v56 = vmul.f32 %v1484_v61, %v4497_v27  ;;  %v1290_v38 = vmul.f32 0.044715, %v4514_v21  ;;  %v1354_v58 = vmul.f32 0.044715, %v4518_v63  ;;  %v4542_v16 = vadd.f32 %v4424_v14, %v4155_v54 }
 0x161   : > { %v3347_v35 = vpop.eup %3346  ;;  %v2248_v2 = vmul.f32 %v2120_v20, %v1224_v50  ;;  %v1865_v40 = vmul.f32 0.7978846, %v1737_v18  ;;  %v1676_v13 = vadd.f32 %v1548_v30, %v4492_v46  ;;  %v1295_v54 = vmul.f32 0.044715, %v4531_v25 }
 0x162   : > { %v3349_v55 = vpop.eup %3348  ;;  %v2054_v19 = vadd.f32 1.0, %v3347_v35  ;;  %v1740_v32 = vadd.f32 %v1612_v56, %v4497_v27  ;;  %v1418_v26 = vmul.f32 %v1290_v38, %v4514_v21  ;;  %v1482_v47 = vmul.f32 %v1354_v58, %v4518_v63  ;;  %v4553_v56 = vpop.f32.mrb[50].mxu1 }
 0x163   : > { %v3351_v6 = vpop.eup %3350  ;;  %2377 = vst.msk [vmem:[%s4012_s6 + $0x298] sm:$0xff] %vm2293_vm2, %v2248_v2  ;;  %v2118_v50 = vadd.f32 1.0, %v3349_v55  ;;  %3356 = vtanh.f32 %v1865_v40  ;;  %v1804_v33 = vmul.f32 0.7978846, %v1676_v13  ;;  %v1423_v35 = vmul.f32 %v1295_v54, %v4531_v25 }
 0x164   : > { %v2182_v61 = vmul.f32 %v2054_v19, %v1158_v4  ;;  %v2059_v20 = vadd.f32 1.0, %v3351_v6  ;;  %v1868_v18 = vmul.f32 0.7978846, %v1740_v32  ;;  %v1546_v30 = vmul.f32 %v1418_v26, %v4514_v21  ;;  %v4566_v26 = vpop.f32.mrb[51].mxu0 }
 0x165   : > { %v2246_v38 = vmul.f32 %v2118_v50, %v1222_v3  ;;  %3358 = vtanh.f32 %v1804_v33  ;;  %v1610_v58 = vmul.f32 %v1482_v47, %v4518_v63  ;;  %v1161_v13 = vmul.f32 0.5, %v4453_v52  ;;  %v4568_v47 = vpop.f32.mrb[51].mxu1 }
 0x166   : > { %v3353_v2 = vpop.eup %3352  ;;  %2311 = vst.msk [vmem:[%s4012_s6 + $0x88] sm:$0xff] %vm2293_vm2, %v2182_v61  ;;  %v2187_v40 = vmul.f32 %v2059_v20, %v1163_v36  ;;  %3360 = vtanh.f32 %v1868_v18  ;;  %v1674_v4 = vadd.f32 %v1546_v30, %v4514_v21  ;;  %v1551_v19 = vmul.f32 %v1423_v35, %v4531_v25 }
 0x167   : > { %2375 = vst.msk [vmem:[%s4012_s6 + $0x288] sm:$0xff] %vm2293_vm2, %v2246_v38  ;;  %v2123_v55 = vadd.f32 1.0, %v3353_v2  ;;  %v1738_v3 = vadd.f32 %v1610_v58, %v4518_v63  ;;  %v1359_v32 = vmul.f32 0.044715, %v4542_v16  ;;  %v4574_v6 = vadd.f32 %v4424_v14, %v4157_v22 }
 0x168   : > { %v3355_v36 = vpop.eup %3354  ;;  %2316 = vst.msk [vmem:[%s4012_s6 + $0xb0] sm:$0xff] %vm2293_vm2, %v2187_v40  ;;  %v1802_v52 = vmul.f32 0.7978846, %v1674_v4  ;;  %v4578_v50 = vadd.f32 %v4424_v14, %v4165_v17  ;;  %v4582_v33 = vadd.f32 %v4424_v14, %v4169_v49  ;;  %v1679_v18 = vadd.f32 %v1551_v19, %v4531_v25 }
 0x169   : > { %v2251_v54 = vmul.f32 %v2123_v55, %v1227_v29  ;;  %v2057_v61 = vadd.f32 1.0, %v3355_v36  ;;  %v1866_v20 = vmul.f32 0.7978846, %v1738_v3  ;;  %v1225_v30 = vmul.f32 0.5, %v4464_v42  ;;  %v4611_v36 = vpop.f32.mrb[52].mxu1 }
 0x16a   : > { %3362 = vtanh.f32 %v1802_v52  ;;  %v1487_v22 = vmul.f32 %v1359_v32, %v4542_v16  ;;  %v1293_v38 = vmul.f32 0.044715, %v4574_v6  ;;  %v1164_v58 = vmul.f32 0.5, %v4492_v46  ;;  %v4609_v32 = vpop.f32.mrb[52].mxu0 }
 0x16b   : > { %2380 = vst.msk [vmem:[%s4012_s6 + $0x2b0] sm:$0xff] %vm2293_vm2, %v2251_v54  ;;  %v2185_v17 = vmul.f32 %v2057_v61, %v1161_v13  ;;  %3364 = vtanh.f32 %v1866_v20  ;;  %v1807_v49 = vmul.f32 0.7978846, %v1679_v18  ;;  %v1228_v29 = vmul.f32 0.5, %v4497_v27 }
 0x16c   : > { %v1615_v35 = vmul.f32 %v1487_v22, %v4542_v16  ;;  %v1421_v2 = vmul.f32 %v1293_v38, %v4574_v6  ;;  %v1357_v42 = vmul.f32 0.044715, %v4578_v50  ;;  %v1296_v4 = vmul.f32 0.044715, %v4582_v33 }
 0x16d   : > { %v3357_v40 = vpop.eup %3356  ;;  %2314 = vst.msk [vmem:[%s4012_s6 + $0xa0] sm:$0xff] %vm2293_vm2, %v2185_v17  ;;  %3366 = vtanh.f32 %v1807_v49  ;;  %v4600_v13 = vadd.f32 %v4424_v14, %v4171_v11  ;;  %v4604_v46 = vadd.f32 %v4424_v14, %v4176_v31  ;;  %v1162_v11 = vmul.f32 0.5, %v4514_v21 }
 0x16e   : > { %v2121_v27 = vadd.f32 1.0, %v3357_v40  ;;  %v1743_v55 = vadd.f32 %v1615_v35, %v4542_v16  ;;  %v1549_v3 = vmul.f32 %v1421_v2, %v4574_v6  ;;  %v1485_v19 = vmul.f32 %v1357_v42, %v4578_v50  ;;  %v4621_v42 = vpop.f32.mrb[53].mxu0 }
 0x16f   : > { %v3359_v52 = vpop.eup %3358  ;;  %v1226_v54 = vmul.f32 0.5, %v4518_v63  ;;  %v1424_v31 = vmul.f32 %v1296_v4, %v4582_v33  ;;  %v1360_v61 = vmul.f32 0.044715, %v4600_v13  ;;  %v1294_v40 = vmul.f32 0.044715, %v4604_v46 }
 0x170   : > { %v3361_v20 = vpop.eup %3360  ;;  %v2249_v18 = vmul.f32 %v2121_v27, %v1225_v30  ;;  %v2060_v22 = vadd.f32 1.0, %v3359_v52  ;;  %v1871_v38 = vmul.f32 0.7978846, %v1743_v55  ;;  %v1677_v17 = vadd.f32 %v1549_v3, %v4574_v6 }
 0x171   : > { %v2124_v49 = vadd.f32 1.0, %v3361_v20  ;;  %v1613_v35 = vmul.f32 %v1485_v19, %v4578_v50  ;;  %v1552_v2 = vmul.f32 %v1424_v31, %v4582_v33  ;;  %v1488_v21 = vmul.f32 %v1360_v61, %v4600_v13  ;;  %v4629_v19 = vpop.f32.mrb[53].mxu1 }
 0x172   : > { %2378 = vst.msk [vmem:[%s4012_s6 + $0x2a0] sm:$0xff] %vm2293_vm2, %v2249_v18  ;;  %v2188_v63 = vmul.f32 %v2060_v22, %v1164_v58  ;;  %3368 = vtanh.f32 %v1871_v38  ;;  %v1805_v30 = vmul.f32 0.7978846, %v1677_v17  ;;  %v1422_v58 = vmul.f32 %v1294_v40, %v4604_v46 }
 0x173   : > { %v2252_v4 = vmul.f32 %v2124_v49, %v1228_v29  ;;  %v1741_v27 = vadd.f32 %v1613_v35, %v4578_v50  ;;  %v1680_v55 = vadd.f32 %v1552_v2, %v4582_v33  ;;  %v1616_v3 = vmul.f32 %v1488_v21, %v4600_v13  ;;  %v4648_v2 = vpop.f32.mrb[54].mxu0 }
 0x174   : > { %v3363_v52 = vpop.eup %3362  ;;  %2317 = vst.msk [vmem:[%s4012_s6 + $0xb8] sm:$0xff] %vm2293_vm2, %v2188_v63  ;;  %3370 = vtanh.f32 %v1805_v30  ;;  %v4636_v31 = vadd.f32 %v4424_v14, %v4178_v8  ;;  %v4640_v29 = vadd.f32 %v4424_v14, %v4196_v62  ;;  %v1167_v49 = vmul.f32 0.5, %v4531_v25  ;;  %v4650_v62 = vpop.f32.mrb[54].mxu1 }
 0x175   : > { %v3365_v61 = vpop.eup %3364  ;;  %2381 = vst.msk [vmem:[%s4012_s6 + $0x2b8] sm:$0xff] %vm2293_vm2, %v2252_v4  ;;  %v2058_v20 = vadd.f32 1.0, %v3363_v52  ;;  %v1869_v18 = vmul.f32 0.7978846, %v1741_v27  ;;  %v1808_v22 = vmul.f32 0.7978846, %v1680_v55  ;;  %v1744_v38 = vadd.f32 %v1616_v3, %v4600_v13 }
 0x176   : > { %v2122_v17 = vadd.f32 1.0, %v3365_v61  ;;  %v1550_v35 = vmul.f32 %v1422_v58, %v4604_v46  ;;  %v1358_v8 = vmul.f32 0.044715, %v4636_v31  ;;  %v1231_v30 = vmul.f32 0.5, %v4542_v16  ;;  %v4662_v16 = vpop.f32.mrb[55].mxu0 }
 0x177   : > { %v3367_v21 = vpop.eup %3366  ;;  %v2186_v63 = vmul.f32 %v2058_v20, %v1162_v11  ;;  %3372 = vtanh.f32 %v1869_v18  ;;  %v1872_v40 = vmul.f32 0.7978846, %v1744_v38  ;;  %v1299_v3 = vmul.f32 0.044715, %v4640_v29 }
 0x178   : > { %v2250_v4 = vmul.f32 %v2122_v17, %v1226_v54  ;;  %v2063_v27 = vadd.f32 1.0, %v3367_v21  ;;  %3374 = vtanh.f32 %v1808_v22  ;;  %v1678_v25 = vadd.f32 %v1550_v35, %v4604_v46  ;;  %v4686_v21 = vpop.f32.mrb[55].mxu1 }
 0x179   : > { %2315 = vst.msk [vmem:[%s4012_s6 + $0xa8] sm:$0xff] %vm2293_vm2, %v2186_v63  ;;  %3376 = vtanh.f32 %v1872_v40  ;;  %v1486_v55 = vmul.f32 %v1358_v8, %v4636_v31  ;;  %v4660_v11 = vadd.f32 %v4424_v14, %v4202_v0  ;;  %v4668_v58 = vadd.f32 %v4424_v14, %v4204_v45 }
 0x17a   : > { %2379 = vst.msk [vmem:[%s4012_s6 + $0x2a8] sm:$0xff] %vm2293_vm2, %v2250_v4  ;;  %v2191_v54 = vmul.f32 %v2063_v27, %v1167_v49  ;;  %v1806_v52 = vmul.f32 0.7978846, %v1678_v25  ;;  %v4672_v61 = vadd.f32 %v4424_v14, %v4208_v12  ;;  %v1165_v20 = vmul.f32 0.5, %v4574_v6 }
 0x17b   : > { %v1614_v18 = vmul.f32 %v1486_v55, %v4636_v31  ;;  %v1427_v0 = vmul.f32 %v1299_v3, %v4640_v29  ;;  %v1363_v22 = vmul.f32 0.044715, %v4660_v11  ;;  %v1229_v17 = vmul.f32 0.5, %v4578_v50 }
 0x17c   : > { %v3369_v38 = vpop.eup %3368  ;;  %2320 = vst.msk [vmem:[%s4012_s6 + $0xd0] sm:$0xff] %vm2293_vm2, %v2191_v54  ;;  %v1168_v45 = vmul.f32 0.5, %v4582_v33  ;;  %3378 = vtanh.f32 %v1806_v52  ;;  %v1297_v49 = vmul.f32 0.044715, %v4668_v58  ;;  %v1232_v40 = vmul.f32 0.5, %v4600_v13 }
 0x17d   : > { %v2127_v12 = vadd.f32 1.0, %v3369_v38  ;;  %v1742_v35 = vadd.f32 %v1614_v18, %v4636_v31  ;;  %v1555_v6 = vmul.f32 %v1427_v0, %v4640_v29  ;;  %v1491_v8 = vmul.f32 %v1363_v22, %v4660_v11 }
 0x17e   : > { %v3371_v63 = vpop.eup %3370  ;;  %v1425_v50 = vmul.f32 %v1297_v49, %v4668_v58  ;;  %v1361_v33 = vmul.f32 0.044715, %v4672_v61  ;;  %v4693_v4 = vadd.f32 %v4424_v14, %v4210_v34  ;;  %v4701_v18 = vadd.f32 %v4424_v14, %v4213_v43 }
 0x17f   : > { %v2255_v27 = vmul.f32 %v2127_v12, %v1231_v30  ;;  %v2061_v25 = vadd.f32 1.0, %v3371_v63  ;;  %v1870_v55 = vmul.f32 0.7978846, %v1742_v35  ;;  %v1683_v3 = vadd.f32 %v1555_v6, %v4640_v29 }
 0x180   : > { %v1619_v54 = vmul.f32 %v1491_v8, %v4660_v11  ;;  %v1553_v52 = vmul.f32 %v1425_v50, %v4668_v58  ;;  %v1489_v13 = vmul.f32 %v1361_v33, %v4672_v61  ;;  %v1300_v22 = vmul.f32 0.044715, %v4693_v4 }
 0x181   : > { %v3373_v0 = vpop.eup %3372  ;;  %2384 = vst.msk [vmem:[%s4012_s6 + $0x2d0] sm:$0xff] %vm2293_vm2, %v2255_v27  ;;  %v2189_v34 = vmul.f32 %v2061_v25, %v1165_v20  ;;  %3380 = vtanh.f32 %v1870_v55  ;;  %v1811_v30 = vmul.f32 0.7978846, %v1683_v3  ;;  %v1166_v63 = vmul.f32 0.5, %v4604_v46  ;;  %v4713_v55 = vpop.f32.mrb[56].mxu0 }
 0x182   : > { %v3375_v38 = vpop.eup %3374  ;;  %v2125_v49 = vadd.f32 1.0, %v3373_v0  ;;  %v1747_v12 = vadd.f32 %v1619_v54, %v4660_v11  ;;  %v1681_v35 = vadd.f32 %v1553_v52, %v4668_v58  ;;  %v1617_v6 = vmul.f32 %v1489_v13, %v4672_v61  ;;  %v4718_v0 = vpop.f32.mrb[56].mxu1 }
 0x183   : > { %v3377_v8 = vpop.eup %3376  ;;  %2318 = vst.msk [vmem:[%s4012_s6 + $0xc0] sm:$0xff] %vm2293_vm2, %v2189_v34  ;;  %v2064_v43 = vadd.f32 1.0, %v3375_v38  ;;  %3382 = vtanh.f32 %v1811_v30  ;;  %v1428_v20 = vmul.f32 %v1300_v22, %v4693_v4  ;;  %v1364_v13 = vmul.f32 0.044715, %v4701_v18  ;;  %v4720_v46 = vpop.f32.mrb[57].mxu0 }
 0x184   : > { %v2253_v50 = vmul.f32 %v2125_v49, %v1229_v17  ;;  %v2128_v33 = vadd.f32 1.0, %v3377_v8  ;;  %v1875_v27 = vmul.f32 0.7978846, %v1747_v12  ;;  %v1809_v25 = vmul.f32 0.7978846, %v1681_v35  ;;  %v4732_v22 = vpop.f32.mrb[57].mxu1 }
 0x185   : > { %v2192_v3 = vmul.f32 %v2064_v43, %v1168_v45  ;;  %v1745_v54 = vadd.f32 %v1617_v6, %v4672_v61  ;;  %v1556_v52 = vmul.f32 %v1428_v20, %v4693_v4  ;;  %v4726_v30 = vadd.f32 %v4424_v14, %v4222_v51  ;;  %v4743_v6 = vpop.f32.mrb[58].mxu0 }
 0x186   : > { %v3379_v34 = vpop.eup %3378  ;;  %2382 = vst.msk [vmem:[%s4012_s6 + $0x2c0] sm:$0xff] %vm2293_vm2, %v2253_v50  ;;  %v2256_v17 = vmul.f32 %v2128_v33, %v1232_v40  ;;  %3384 = vtanh.f32 %v1875_v27  ;;  %v4730_v45 = vadd.f32 %v4424_v14, %v4224_v15  ;;  %v1230_v40 = vmul.f32 0.5, %v4636_v31  ;;  %5742 = vst [vmem:[#allocation23_spill] sm:$0xff] %v4743_v6  ;;  %v5743_v27 = vld [vmem:[#allocation3_spill] sm:$0xff] }
 0x187   : > { %2321 = vst.msk [vmem:[%s4012_s6 + $0xd8] sm:$0xff] %vm2293_vm2, %v2192_v3  ;;  %v2062_v38 = vadd.f32 1.0, %v3379_v34  ;;  %3386 = vtanh.f32 %v1809_v25  ;;  %v1873_v49 = vmul.f32 0.7978846, %v1745_v54  ;;  %v1684_v12 = vadd.f32 %v1556_v52, %v4693_v4 }
 0x188   : > { %2385 = vst.msk [vmem:[%s4012_s6 + $0x2d8] sm:$0xff] %vm2293_vm2, %v2256_v17  ;;  %v1171_v51 = vmul.f32 0.5, %v4640_v29  ;;  %v1492_v35 = vmul.f32 %v1364_v13, %v4701_v18  ;;  %v1298_v15 = vmul.f32 0.044715, %v4726_v30  ;;  %v1362_v20 = vmul.f32 0.044715, %v4730_v45 }
 0x189   : > { %v2190_v8 = vmul.f32 %v2062_v38, %v1166_v63  ;;  %3388 = vtanh.f32 %v1873_v49  ;;  %v1812_v43 = vmul.f32 0.7978846, %v1684_v12  ;;  %v4750_v31 = vadd.f32 %v4424_v14, %v5743_v27  ;;  %v5744_v29 = vld [vmem:[#allocation4_spill] sm:$0xff]  ;;  %v5745_v38 = vld [vmem:[#allocation5_spill] sm:$0xff]  ;;  %v4767_v12 = vpop.f32.mrb[58].mxu1 }
 0x18a   : > { %v1620_v50 = vmul.f32 %v1492_v35, %v4701_v18  ;;  %v1426_v33 = vmul.f32 %v1298_v15, %v4726_v30  ;;  %v4754_v25 = vadd.f32 %v4424_v14, %v5744_v29  ;;  %v1235_v63 = vmul.f32 0.5, %v4660_v11  ;;  %5746 = vst [vmem:[#allocation3_spill] sm:$0xff] %v4767_v12  ;;  %v4788_v6 = vpop.f32.mrb[59].mxu1 }
 0x18b   : > { %v3381_v3 = vpop.eup %3380  ;;  %2319 = vst.msk [vmem:[%s4012_s6 + $0xc8] sm:$0xff] %vm2293_vm2, %v2190_v8  ;;  %v1169_v54 = vmul.f32 0.5, %v4668_v58  ;;  %3390 = vtanh.f32 %v1812_v43  ;;  %v1490_v52 = vmul.f32 %v1362_v20, %v4730_v45  ;;  %v4765_v49 = vadd.f32 %v4424_v14, %v5745_v38  ;;  %v5747_v38 = vld [vmem:[#allocation6_spill] sm:$0xff] }
 0x18c   : > { %v2126_v13 = vadd.f32 1.0, %v3381_v3  ;;  %v1748_v34 = vadd.f32 %v1620_v50, %v4701_v18  ;;  %v1554_v17 = vmul.f32 %v1426_v33, %v4726_v30  ;;  %v1233_v11 = vmul.f32 0.5, %v4672_v61 }
 0x18d   : > { %v3383_v35 = vpop.eup %3382  ;;  %v1618_v58 = vmul.f32 %v1490_v52, %v4730_v45  ;;  %v1303_v15 = vmul.f32 0.044715, %v4750_v31  ;;  %v1367_v8 = vmul.f32 0.044715, %v4754_v25  ;;  %v4779_v61 = vadd.f32 %v4424_v14, %v5747_v38  ;;  %v4781_v52 = vpop.f32.mrb[59].mxu0 }
 0x18e   : > { %v2254_v43 = vmul.f32 %v2126_v13, %v1230_v40  ;;  %v2067_v20 = vadd.f32 1.0, %v3383_v35  ;;  %v1876_v50 = vmul.f32 0.7978846, %v1748_v34  ;;  %v1682_v33 = vadd.f32 %v1554_v17, %v4726_v30 }
 0x18f   : > { %v1746_v27 = vadd.f32 %v1618_v58, %v4730_v45  ;;  %v1431_v29 = vmul.f32 %v1303_v15, %v4750_v31  ;;  %v1495_v3 = vmul.f32 %v1367_v8, %v4754_v25  ;;  %v1301_v34 = vmul.f32 0.044715, %v4765_v49 }
 0x190   : > { %v3385_v12 = vpop.eup %3384  ;;  %2383 = vst.msk [vmem:[%s4012_s6 + $0x2c8] sm:$0xff] %vm2293_vm2, %v2254_v43  ;;  %v2195_v40 = vmul.f32 %v2067_v20, %v1171_v51  ;;  %3392 = vtanh.f32 %v1876_v50  ;;  %v1810_v13 = vmul.f32 0.7978846, %v1682_v33  ;;  %v1172_v43 = vmul.f32 0.5, %v4693_v4 }
 0x191   : > { %v3387_v17 = vpop.eup %3386  ;;  %v2131_v35 = vadd.f32 1.0, %v3385_v12  ;;  %v1874_v58 = vmul.f32 0.7978846, %v1746_v27  ;;  %v1559_v15 = vmul.f32 %v1431_v29, %v4750_v31  ;;  %v1623_v8 = vmul.f32 %v1495_v3, %v4754_v25 }
 0x192   : > { %2324 = vst.msk [vmem:[%s4012_s6 + $0xf0] sm:$0xff] %vm2293_vm2, %v2195_v40  ;;  %v2065_v38 = vadd.f32 1.0, %v3387_v17  ;;  %3394 = vtanh.f32 %v1810_v13  ;;  %v1429_v51 = vmul.f32 %v1301_v34, %v4765_v49  ;;  %v1365_v40 = vmul.f32 0.044715, %v4779_v61  ;;  %v5748_v34 = vld [vmem:[#allocation7_spill] sm:$0xff] }
 0x193   : > { %v3389_v20 = vpop.eup %3388  ;;  %v2259_v50 = vmul.f32 %v2131_v35, %v1235_v63  ;;  %3396 = vtanh.f32 %v1874_v58  ;;  %v1687_v12 = vadd.f32 %v1559_v15, %v4750_v31  ;;  %v1751_v33 = vadd.f32 %v1623_v8, %v4754_v25  ;;  %v5749_v35 = vld [vmem:[#allocation8_spill] sm:$0xff] }
 0x194   : > { %v2193_v27 = vmul.f32 %v2065_v38, %v1169_v54  ;;  %v2129_v29 = vadd.f32 1.0, %v3389_v20  ;;  %v1557_v3 = vmul.f32 %v1429_v51, %v4765_v49  ;;  %v4802_v63 = vadd.f32 %v4424_v14, %v5748_v34 }
 0x195   : > { %v3391_v17 = vpop.eup %3390  ;;  %2388 = vst.msk [vmem:[%s4012_s6 + $0x2f0] sm:$0xff] %vm2293_vm2, %v2259_v50  ;;  %v1815_v4 = vmul.f32 0.7978846, %v1687_v12  ;;  %v1879_v13 = vmul.f32 0.7978846, %v1751_v33  ;;  %v4806_v58 = vadd.f32 %v4424_v14, %v5749_v35  ;;  %v1493_v38 = vmul.f32 %v1365_v40, %v4779_v61  ;;  %v5751_v40 = vld [vmem:[#allocation9_spill] sm:$0xff] }
 0x196   : > { %2322 = vst.msk [vmem:[%s4012_s6 + $0xe0] sm:$0xff] %vm2293_vm2, %v2193_v27  ;;  %v2257_v54 = vmul.f32 %v2129_v29, %v1233_v11  ;;  %v2068_v15 = vadd.f32 1.0, %v3391_v17  ;;  %v1685_v8 = vadd.f32 %v1557_v3, %v4765_v49  ;;  %v1236_v51 = vmul.f32 0.5, %v4701_v18  ;;  %v4818_v27 = vpop.f32.mrb[60].mxu0  ;;  %v4820_v29 = vpop.f32.mrb[60].mxu1  ;;  %v5753_v35 = vld [vmem:[#allocation10_spill] sm:$0xff] }
 0x197   : > { %v1170_v20 = vmul.f32 0.5, %v4726_v30  ;;  %3398 = vtanh.f32 %v1815_v4  ;;  %v1304_v50 = vmul.f32 0.044715, %v4802_v63  ;;  %v1621_v11 = vmul.f32 %v1493_v38, %v4779_v61  ;;  %5750 = vst [vmem:[#allocation4_spill] sm:$0xff] %v4820_v29  ;;  %v4829_v4 = vpop.f32.mrb[61].mxu0 }
 0x198   : > { %2386 = vst.msk [vmem:[%s4012_s6 + $0x2e0] sm:$0xff] %vm2293_vm2, %v2257_v54  ;;  %v2196_v12 = vmul.f32 %v2068_v15, %v1172_v43  ;;  %3400 = vtanh.f32 %v1879_v13  ;;  %v1813_v33 = vmul.f32 0.7978846, %v1685_v8  ;;  %v1234_v3 = vmul.f32 0.5, %v4730_v45  ;;  %5752 = vst [vmem:[#allocation5_spill] sm:$0xff] %v4829_v4 }
 0x199   : > { %v1432_v18 = vmul.f32 %v1304_v50, %v4802_v63  ;;  %v1368_v30 = vmul.f32 0.044715, %v4806_v58  ;;  %v4827_v17 = vadd.f32 %v4424_v14, %v5751_v40  ;;  %v1175_v13 = vmul.f32 0.5, %v4750_v31  ;;  %v4845_v50 = vpop.f32.mrb[61].mxu1 }
 0x19a   : > { %v3393_v43 = vpop.eup %3392  ;;  %2325 = vst.msk [vmem:[%s4012_s6 + $0xf8] sm:$0xff] %vm2293_vm2, %v2196_v12  ;;  %3402 = vtanh.f32 %v1813_v33  ;;  %v1749_v34 = vadd.f32 %v1621_v11, %v4779_v61  ;;  %v4837_v45 = vadd.f32 %v4424_v14, %v5753_v35  ;;  %v4843_v38 = vadd.f32 %v4424_v14, %v4298_v9  ;;  %5754 = vst [vmem:[#allocation6_spill] sm:$0xff] %v4845_v50 }
 0x19b   : > { %v2132_v54 = vadd.f32 1.0, %v3393_v43  ;;  %v1560_v15 = vmul.f32 %v1432_v18, %v4802_v63  ;;  %v1496_v8 = vmul.f32 %v1368_v30, %v4806_v58  ;;  %v1239_v12 = vmul.f32 0.5, %v4754_v25 }
 0x19c   : > { %v3395_v31 = vpop.eup %3394  ;;  %v1877_v33 = vmul.f32 0.7978846, %v1749_v34  ;;  %v1302_v11 = vmul.f32 0.044715, %v4827_v17  ;;  %v4851_v40 = vadd.f32 %v4424_v14, %v4301_v39  ;;  %v1366_v25 = vmul.f32 0.044715, %v4837_v45 }
 0x19d   : > { %v3397_v18 = vpop.eup %3396  ;;  %v2260_v43 = vmul.f32 %v2132_v54, %v1236_v51  ;;  %v2066_v30 = vadd.f32 1.0, %v3395_v31  ;;  %v1688_v35 = vadd.f32 %v1560_v15, %v4802_v63  ;;  %v1624_v9 = vmul.f32 %v1496_v8, %v4806_v58  ;;  %v4857_v34 = vpop.f32.mrb[62].mxu0 }
 0x19e   : > { %v2130_v4 = vadd.f32 1.0, %v3397_v18  ;;  %3404 = vtanh.f32 %v1877_v33  ;;  %v1430_v50 = vmul.f32 %v1302_v11, %v4827_v17  ;;  %v1307_v54 = vmul.f32 0.044715, %v4843_v38  ;;  %v4866_v11 = vpop.f32.mrb[62].mxu1 }
 0x19f   : > { %2389 = vst.msk [vmem:[%s4012_s6 + $0x2f8] sm:$0xff] %vm2293_vm2, %v2260_v43  ;;  %v2194_v39 = vmul.f32 %v2066_v30, %v1170_v20  ;;  %v1816_v29 = vmul.f32 0.7978846, %v1688_v35  ;;  %v1752_v51 = vadd.f32 %v1624_v9, %v4806_v58  ;;  %v1173_v8 = vmul.f32 0.5, %v4765_v49  ;;  %5755 = vst [vmem:[#allocation7_spill] sm:$0xff] %v4866_v11 }
 0x1a0   : > { %v2258_v15 = vmul.f32 %v2130_v4, %v1234_v3  ;;  %v1558_v31 = vmul.f32 %v1430_v50, %v4827_v17  ;;  %v1494_v33 = vmul.f32 %v1366_v25, %v4837_v45  ;;  %v1435_v43 = vmul.f32 %v1307_v54, %v4843_v38 }
 0x1a1   : > { %v3399_v18 = vpop.eup %3398  ;;  %2323 = vst.msk [vmem:[%s4012_s6 + $0xe8] sm:$0xff] %vm2293_vm2, %v2194_v39  ;;  %3406 = vtanh.f32 %v1816_v29  ;;  %v1880_v20 = vmul.f32 0.7978846, %v1752_v51  ;;  %v1371_v30 = vmul.f32 0.044715, %v4851_v40  ;;  %v4878_v50 = vadd.f32 %v4424_v14, %v4303_v28 }
 0x1a2   : > { %v3401_v35 = vpop.eup %3400  ;;  %2387 = vst.msk [vmem:[%s4012_s6 + $0x2e8] sm:$0xff] %vm2293_vm2, %v2258_v15  ;;  %v2071_v3 = vadd.f32 1.0, %v3399_v18  ;;  %v1686_v49 = vadd.f32 %v1558_v31, %v4827_v17  ;;  %v1622_v4 = vmul.f32 %v1494_v33, %v4837_v45  ;;  %v1563_v29 = vmul.f32 %v1435_v43, %v4843_v38  ;;  %v4882_v39 = vpop.f32.mrb[63].mxu0 }
 0x1a3   : > { %v2135_v9 = vadd.f32 1.0, %v3401_v35  ;;  %3408 = vtanh.f32 %v1880_v20  ;;  %v1499_v25 = vmul.f32 %v1371_v30, %v4851_v40  ;;  %v4884_v51 = vpop.f32.mrb[63].mxu1  ;;  %v1237_v31 = vmul.f32 0.5, %v4779_v61 }
 0x1a4   : > { %5756 = vst [vmem:[#allocation8_spill] sm:$0xff] %v4884_v51  ;;  %v3403_v54 = vpop.eup %3402  ;;  %v2199_v15 = vmul.f32 %v2071_v3, %v1175_v13  ;;  %v1814_v33 = vmul.f32 0.7978846, %v1686_v49  ;;  %v1750_v28 = vadd.f32 %v1622_v4, %v4837_v45  ;;  %v1691_v20 = vadd.f32 %v1563_v29, %v4843_v38  ;;  %v5757_v49 = vld [vmem:[#allocation11_spill] sm:$0xff] }
 0x1a5   : > { %v2263_v18 = vmul.f32 %v2135_v9, %v1239_v12  ;;  %v2069_v11 = vadd.f32 1.0, %v3403_v54  ;;  %v1627_v43 = vmul.f32 %v1499_v25, %v4851_v40  ;;  %v1305_v35 = vmul.f32 0.044715, %v4878_v50 }
 0x1a6   : > { %2328 = vst.msk [vmem:[%s4012_s6 + $0x110] sm:$0xff] %vm2293_vm2, %v2199_v15  ;;  %3410 = vtanh.f32 %v1814_v33  ;;  %v1878_v30 = vmul.f32 0.7978846, %v1750_v28  ;;  %v4895_v13 = vadd.f32 %v4424_v14, %v4306_v24  ;;  %v1819_v12 = vmul.f32 0.7978846, %v1691_v20 }
 0x1a7   : > { %2392 = vst.msk [vmem:[%s4012_s6 + $0x310] sm:$0xff] %vm2293_vm2, %v2263_v18  ;;  %v2197_v61 = vmul.f32 %v2069_v11, %v1173_v8  ;;  %v1755_v3 = vadd.f32 %v1627_v43, %v4851_v40  ;;  %v4902_v4 = vadd.f32 %v4424_v14, %v5757_v49  ;;  %v1176_v29 = vmul.f32 0.5, %v4802_v63  ;;  %v5758_v63 = vld [vmem:[#allocation12_spill] sm:$0xff] }
 0x1a8   : > { %v3405_v9 = vpop.eup %3404  ;;  %3412 = vtanh.f32 %v1878_v30  ;;  %v1433_v25 = vmul.f32 %v1305_v35, %v4878_v50  ;;  %v1369_v54 = vmul.f32 0.044715, %v4895_v13  ;;  %v1240_v8 = vmul.f32 0.5, %v4806_v58  ;;  %v5759_v30 = vld [vmem:[#allocation13_spill] sm:$0xff]  ;;  %v5760_v58 = vld [vmem:[#allocation14_spill] sm:$0xff] }
 0x1a9   : > { %2326 = vst.msk [vmem:[%s4012_s6 + $0x100] sm:$0xff] %vm2293_vm2, %v2197_v61  ;;  %v2133_v24 = vadd.f32 1.0, %v3405_v9  ;;  %3414 = vtanh.f32 %v1819_v12  ;;  %v1883_v11 = vmul.f32 0.7978846, %v1755_v3  ;;  %v1308_v28 = vmul.f32 0.044715, %v4902_v4 }
 0x1aa   : > { %v1561_v15 = vmul.f32 %v1433_v25, %v4878_v50  ;;  %v1497_v33 = vmul.f32 %v1369_v54, %v4895_v13  ;;  %v4915_v18 = vadd.f32 %v4424_v14, %v5758_v63  ;;  %v4919_v35 = vadd.f32 %v4424_v14, %v5759_v30 }
 0x1ab   : > { %v3407_v20 = vpop.eup %3406  ;;  %v2261_v43 = vmul.f32 %v2133_v24, %v1237_v31  ;;  %3416 = vtanh.f32 %v1883_v11  ;;  %v4923_v61 = vadd.f32 %v4424_v14, %v5760_v58  ;;  %v1436_v9 = vmul.f32 %v1308_v28, %v4902_v4 }
 0x1ac   : > { %v2072_v12 = vadd.f32 1.0, %v3407_v20  ;;  %v1689_v3 = vadd.f32 %v1561_v15, %v4878_v50  ;;  %v1625_v49 = vmul.f32 %v1497_v33, %v4895_v13  ;;  %v1174_v31 = vmul.f32 0.5, %v4827_v17 }
 0x1ad   : > { %v3409_v25 = vpop.eup %3408  ;;  %2390 = vst.msk [vmem:[%s4012_s6 + $0x300] sm:$0xff] %vm2293_vm2, %v2261_v43  ;;  %v1238_v54 = vmul.f32 0.5, %v4837_v45  ;;  %v1372_v24 = vmul.f32 0.044715, %v4915_v18  ;;  %v1306_v14 = vmul.f32 0.044715, %v4919_v35  ;;  %v1564_v28 = vmul.f32 %v1436_v9, %v4902_v4 }
 0x1ae   : > { %v2200_v11 = vmul.f32 %v2072_v12, %v1176_v29  ;;  %v2136_v63 = vadd.f32 1.0, %v3409_v25  ;;  %v1817_v20 = vmul.f32 0.7978846, %v1689_v3  ;;  %v1753_v15 = vadd.f32 %v1625_v49, %v4895_v13 }
 0x1af   : > { %v1179_v33 = vmul.f32 0.5, %v4843_v38  ;;  %v1500_v43 = vmul.f32 %v1372_v24, %v4915_v18  ;;  %v1434_v17 = vmul.f32 %v1306_v14, %v4919_v35  ;;  %v1370_v29 = vmul.f32 0.044715, %v4923_v61  ;;  %v5761_v24 = vld [vmem:[#allocation15_spill] sm:$0xff] }
 0x1b0   : > { %v3411_v30 = vpop.eup %3410  ;;  %2329 = vst.msk [vmem:[%s4012_s6 + $0x118] sm:$0xff] %vm2293_vm2, %v2200_v11  ;;  %v2264_v45 = vmul.f32 %v2136_v63, %v1240_v8  ;;  %3418 = vtanh.f32 %v1817_v20  ;;  %v1881_v58 = vmul.f32 0.7978846, %v1753_v15  ;;  %v1692_v3 = vadd.f32 %v1564_v28, %v4902_v4  ;;  %v4951_v8 = vld [vmem:[%s5719_s2] ss:$0 sm:$0xff]  ;;  %v5762_v11 = vld [vmem:[#allocation16_spill] sm:$0xff] }
 0x1b1   : > { %v2070_v12 = vadd.f32 1.0, %v3411_v30  ;;  %v1628_v49 = vmul.f32 %v1500_v43, %v4915_v18  ;;  %v1562_v38 = vmul.f32 %v1434_v17, %v4919_v35  ;;  %v1498_v25 = vmul.f32 %v1370_v29, %v4923_v61 }
 0x1b2   : > { %v3413_v9 = vpop.eup %3412  ;;  %2393 = vst.msk [vmem:[%s4012_s6 + $0x318] sm:$0xff] %vm2293_vm2, %v2264_v45  ;;  %3420 = vtanh.f32 %v1881_v58  ;;  %v4955_v14 = vadd.f32 %v4951_v8, %v5761_v24  ;;  %v4959_v63 = vadd.f32 %v4951_v8, %v5762_v11  ;;  %v1820_v43 = vmul.f32 0.7978846, %v1692_v3 }
 0x1b3   : > { %v3415_v20 = vpop.eup %3414  ;;  %v2198_v15 = vmul.f32 %v2070_v12, %v1174_v31  ;;  %v2134_v28 = vadd.f32 1.0, %v3413_v9  ;;  %v1756_v17 = vadd.f32 %v1628_v49, %v4915_v18  ;;  %v1243_v45 = vmul.f32 0.5, %v4851_v40 }
 0x1b4   : > { %v2075_v30 = vadd.f32 1.0, %v3415_v20  ;;  %v1690_v58 = vadd.f32 %v1562_v38, %v4919_v35  ;;  %v1626_v29 = vmul.f32 %v1498_v25, %v4923_v61  ;;  %3422 = vtanh.f32 %v1820_v43 }
 0x1b5   : > { %v3417_v24 = vpop.eup %3416  ;;  %2327 = vst.msk [vmem:[%s4012_s6 + $0x108] sm:$0xff] %vm2293_vm2, %v2198_v15  ;;  %v2262_v11 = vmul.f32 %v2134_v28, %v1238_v54  ;;  %v1884_v51 = vmul.f32 0.7978846, %v1756_v17  ;;  %v1311_v31 = vmul.f32 0.044715, %v4955_v14  ;;  %v1177_v40 = vmul.f32 0.5, %v4878_v50 }
 0x1b6   : > { %v2203_v12 = vmul.f32 %v2075_v30, %v1179_v33  ;;  %v2139_v3 = vadd.f32 1.0, %v3417_v24  ;;  %v1818_v9 = vmul.f32 0.7978846, %v1690_v58  ;;  %v1754_v49 = vadd.f32 %v1626_v29, %v4923_v61  ;;  %v5763_v33 = vld [vmem:[#allocation17_spill] sm:$0xff]  ;;  %v5764_v17 = vld [vmem:[#allocation18_spill] sm:$0xff] }
 0x1b7   : > { %2391 = vst.msk [vmem:[%s4012_s6 + $0x308] sm:$0xff] %vm2293_vm2, %v2262_v11  ;;  %3424 = vtanh.f32 %v1884_v51  ;;  %v1439_v38 = vmul.f32 %v1311_v31, %v4955_v14  ;;  %v1375_v25 = vmul.f32 0.044715, %v4959_v63  ;;  %v4978_v15 = vadd.f32 %v4951_v8, %v5763_v33  ;;  %v5765_v51 = vld [vmem:[#allocation19_spill] sm:$0xff] }
 0x1b8   : > { %2332 = vst.msk [vmem:[%s4012_s6 + $0x130] sm:$0xff] %vm2293_vm2, %v2203_v12  ;;  %v2267_v54 = vmul.f32 %v2139_v3, %v1243_v45  ;;  %3426 = vtanh.f32 %v1818_v9  ;;  %v1882_v20 = vmul.f32 0.7978846, %v1754_v49  ;;  %v4984_v50 = vadd.f32 %v4951_v8, %v5764_v17  ;;  %v5766_v3 = vld [vmem:[#allocation20_spill] sm:$0xff] }
 0x1b9   : > { %v1567_v28 = vmul.f32 %v1439_v38, %v4955_v14  ;;  %v1503_v43 = vmul.f32 %v1375_v25, %v4959_v63  ;;  %v4988_v30 = vadd.f32 %v4951_v8, %v5765_v51  ;;  %v1241_v45 = vmul.f32 0.5, %v4895_v13 }
 0x1ba   : > { %v3419_v58 = vpop.eup %3418  ;;  %2396 = vst.msk [vmem:[%s4012_s6 + $0x330] sm:$0xff] %vm2293_vm2, %v2267_v54  ;;  %v1180_v29 = vmul.f32 0.5, %v4902_v4  ;;  %3428 = vtanh.f32 %v1882_v20  ;;  %v1309_v24 = vmul.f32 0.044715, %v4978_v15  ;;  %v4999_v9 = vadd.f32 %v4951_v8, %v5766_v3 }
 0x1bb   : > { %v2073_v11 = vadd.f32 1.0, %v3419_v58  ;;  %v1695_v31 = vadd.f32 %v1567_v28, %v4955_v14  ;;  %v1631_v12 = vmul.f32 %v1503_v43, %v4959_v63  ;;  %v1244_v38 = vmul.f32 0.5, %v4915_v18 }
 0x1bc   : > { %v3421_v49 = vpop.eup %3420  ;;  %v1437_v13 = vmul.f32 %v1309_v24, %v4978_v15  ;;  %v1373_v4 = vmul.f32 0.044715, %v4984_v50  ;;  %v1312_v25 = vmul.f32 0.044715, %v4988_v30  ;;  %v1178_v43 = vmul.f32 0.5, %v4919_v35 }
 0x1bd   : > { %v2201_v54 = vmul.f32 %v2073_v11, %v1177_v40  ;;  %v2137_v20 = vadd.f32 1.0, %v3421_v49  ;;  %v1823_v33 = vmul.f32 0.7978846, %v1695_v31  ;;  %v1759_v28 = vadd.f32 %v1631_v12, %v4959_v63 }
 0x1be   : > { %v1565_v17 = vmul.f32 %v1437_v13, %v4978_v15  ;;  %v1501_v51 = vmul.f32 %v1373_v4, %v4984_v50  ;;  %v1440_v18 = vmul.f32 %v1312_v25, %v4988_v30  ;;  %v3423_v58 = vpop.eup %3422  ;;  %v1376_v40 = vmul.f32 0.044715, %v4999_v9  ;;  %v5767_v4 = vld [vmem:[#allocation21_spill] sm:$0xff]  ;;  %v5768_v25 = vld [vmem:[#allocation22_spill] sm:$0xff] }
 0x1bf   : > { %2330 = vst.msk [vmem:[%s4012_s6 + $0x120] sm:$0xff] %vm2293_vm2, %v2201_v54  ;;  %v2265_v24 = vmul.f32 %v2137_v20, %v1241_v45  ;;  %3430 = vtanh.f32 %v1823_v33  ;;  %v1887_v3 = vmul.f32 0.7978846, %v1759_v28  ;;  %v2076_v11 = vadd.f32 1.0, %v3423_v58 }
 0x1c0   : > { %v1693_v31 = vadd.f32 %v1565_v17, %v4978_v15  ;;  %v1629_v12 = vmul.f32 %v1501_v51, %v4984_v50  ;;  %v1568_v35 = vmul.f32 %v1440_v18, %v4988_v30  ;;  %v1504_v13 = vmul.f32 %v1376_v40, %v4999_v9 }
 0x1c1   : > { %v3425_v49 = vpop.eup %3424  ;;  %2394 = vst.msk [vmem:[%s4012_s6 + $0x320] sm:$0xff] %vm2293_vm2, %v2265_v24  ;;  %3432 = vtanh.f32 %v1887_v3  ;;  %v5021_v45 = vadd.f32 %v4951_v8, %v5767_v4  ;;  %v5025_v54 = vadd.f32 %v4951_v8, %v5768_v25  ;;  %v2204_v33 = vmul.f32 %v2076_v11, %v1180_v29 }
 0x1c2   : > { %v3427_v20 = vpop.eup %3426  ;;  %v2140_v28 = vadd.f32 1.0, %v3425_v49  ;;  %v1821_v17 = vmul.f32 0.7978846, %v1693_v31  ;;  %v1757_v51 = vadd.f32 %v1629_v12, %v4984_v50  ;;  %v1242_v58 = vmul.f32 0.5, %v4923_v61 }
 0x1c3   : > { %v2074_v18 = vadd.f32 1.0, %v3427_v20  ;;  %v1696_v24 = vadd.f32 %v1568_v35, %v4988_v30  ;;  %v1632_v3 = vmul.f32 %v1504_v13, %v4999_v9  ;;  %2333 = vst.msk [vmem:[%s4012_s6 + $0x138] sm:$0xff] %vm2293_vm2, %v2204_v33  ;;  %v1310_v29 = vmul.f32 0.044715, %v5021_v45 }
 0x1c4   : > { %v3429_v40 = vpop.eup %3428  ;;  %v2268_v4 = vmul.f32 %v2140_v28, %v1244_v38  ;;  %3434 = vtanh.f32 %v1821_v17  ;;  %v1885_v25 = vmul.f32 0.7978846, %v1757_v51  ;;  %v1183_v61 = vmul.f32 0.5, %v4955_v14 }
 0x1c5   : > { %v2202_v11 = vmul.f32 %v2074_v18, %v1178_v43  ;;  %v2138_v31 = vadd.f32 1.0, %v3429_v40  ;;  %v1824_v49 = vmul.f32 0.7978846, %v1696_v24  ;;  %v1760_v12 = vadd.f32 %v1632_v3, %v4999_v9 }
 0x1c6   : > { %2397 = vst.msk [vmem:[%s4012_s6 + $0x338] sm:$0xff] %vm2293_vm2, %v2268_v4  ;;  %3436 = vtanh.f32 %v1885_v25  ;;  %v1438_v35 = vmul.f32 %v1310_v29, %v5021_v45  ;;  %v1374_v13 = vmul.f32 0.044715, %v5025_v54  ;;  %v5044_v43 = vadd.f32 %v4951_v8, %v4397_v53 }
 0x1c7   : > { %2331 = vst.msk [vmem:[%s4012_s6 + $0x128] sm:$0xff] %vm2293_vm2, %v2202_v11  ;;  %v2266_v38 = vmul.f32 %v2138_v31, %v1242_v58  ;;  %3438 = vtanh.f32 %v1824_v49  ;;  %v1888_v20 = vmul.f32 0.7978846, %v1760_v12  ;;  %v5050_v14 = vadd.f32 %v4951_v8, %v4402_v23 }
 0x1c8   : > { %v1566_v33 = vmul.f32 %v1438_v35, %v5021_v45  ;;  %v1502_v28 = vmul.f32 %v1374_v13, %v5025_v54  ;;  %v5054_v17 = vadd.f32 %v4951_v8, %v4404_v1  ;;  %v1247_v18 = vmul.f32 0.5, %v4959_v63 }
 0x1c9   : > { %v3431_v51 = vpop.eup %3430  ;;  %2395 = vst.msk [vmem:[%s4012_s6 + $0x328] sm:$0xff] %vm2293_vm2, %v2266_v38  ;;  %v1181_v53 = vmul.f32 0.5, %v4978_v15  ;;  %3440 = vtanh.f32 %v1888_v20  ;;  %v1315_v58 = vmul.f32 0.044715, %v5044_v43  ;;  %v5065_v1 = vadd.f32 %v4951_v8, %v4408_v48 }
 0x1ca   : > { %v2079_v24 = vadd.f32 1.0, %v3431_v51  ;;  %v1694_v3 = vadd.f32 %v1566_v33, %v5021_v45  ;;  %v1630_v23 = vmul.f32 %v1502_v28, %v5025_v54  ;;  %v1245_v4 = vmul.f32 0.5, %v4984_v50 }
 0x1cb   : > { %v3433_v40 = vpop.eup %3432  ;;  %v1443_v63 = vmul.f32 %v1315_v58, %v5044_v43  ;;  %v1379_v15 = vmul.f32 0.044715, %v5050_v14  ;;  %v1313_v25 = vmul.f32 0.044715, %v5054_v17  ;;  %v1184_v12 = vmul.f32 0.5, %v4988_v30 }
 0x1cc   : > { %v2207_v29 = vmul.f32 %v2079_v24, %v1183_v61  ;;  %v2143_v11 = vadd.f32 1.0, %v3433_v40  ;;  %v1822_v31 = vmul.f32 0.7978846, %v1694_v3  ;;  %v1758_v49 = vadd.f32 %v1630_v23, %v5025_v54 }
 0x1cd   : > { %v1571_v48 = vmul.f32 %v1443_v63, %v5044_v43  ;;  %v1507_v35 = vmul.f32 %v1379_v15, %v5050_v14  ;;  %v1441_v50 = vmul.f32 %v1313_v25, %v5054_v17  ;;  %v1377_v61 = vmul.f32 0.044715, %v5065_v1 }
 0x1ce   : > { %v3435_v13 = vpop.eup %3434  ;;  %2336 = vst.msk [vmem:[%s4012_s6 + $0x150] sm:$0xff] %vm2293_vm2, %v2207_v29  ;;  %v2271_v38 = vmul.f32 %v2143_v11, %v1247_v18  ;;  %3442 = vtanh.f32 %v1822_v31  ;;  %v1886_v20 = vmul.f32 0.7978846, %v1758_v49  ;;  %v5087_v18 = vadd.f32 %v4951_v8, %v4430_v59 }
 0x1cf   : > { %v2077_v33 = vadd.f32 1.0, %v3435_v13  ;;  %v1699_v28 = vadd.f32 %v1571_v48, %v5044_v43  ;;  %v1635_v51 = vmul.f32 %v1507_v35, %v5050_v14  ;;  %v1569_v30 = vmul.f32 %v1441_v50, %v5054_v17 }
 0x1d0   : > { %v3437_v58 = vpop.eup %3436  ;;  %2400 = vst.msk [vmem:[%s4012_s6 + $0x350] sm:$0xff] %vm2293_vm2, %v2271_v38  ;;  %3444 = vtanh.f32 %v1886_v20  ;;  %v1505_v24 = vmul.f32 %v1377_v61, %v5065_v1  ;;  %v5091_v3 = vadd.f32 %v4951_v8, %v4455_v57  ;;  %v1248_v11 = vmul.f32 0.5, %v4999_v9 }
 0x1d1   : > { %v3439_v23 = vpop.eup %3438  ;;  %v2205_v40 = vmul.f32 %v2077_v33, %v1181_v53  ;;  %v2141_v63 = vadd.f32 1.0, %v3437_v58  ;;  %v1827_v15 = vmul.f32 0.7978846, %v1699_v28  ;;  %v1763_v25 = vadd.f32 %v1635_v51, %v5050_v14 }
 0x1d2   : > { %v2080_v29 = vadd.f32 1.0, %v3439_v23  ;;  %v1697_v31 = vadd.f32 %v1569_v30, %v5054_v17  ;;  %v1633_v49 = vmul.f32 %v1505_v24, %v5065_v1  ;;  %v1316_v53 = vmul.f32 0.044715, %v5087_v18 }
 0x1d3   : > { %v3441_v59 = vpop.eup %3440  ;;  %2334 = vst.msk [vmem:[%s4012_s6 + $0x140] sm:$0xff] %vm2293_vm2, %v2205_v40  ;;  %v2269_v57 = vmul.f32 %v2141_v63, %v1245_v4  ;;  %3446 = vtanh.f32 %v1827_v15  ;;  %v1891_v48 = vmul.f32 0.7978846, %v1763_v25  ;;  %v1182_v9 = vmul.f32 0.5, %v5021_v45 }
 0x1d4   : > { %v2208_v35 = vmul.f32 %v2080_v29, %v1184_v12  ;;  %v2144_v50 = vadd.f32 1.0, %v3441_v59  ;;  %v1825_v13 = vmul.f32 0.7978846, %v1697_v31  ;;  %v1761_v38 = vadd.f32 %v1633_v49, %v5065_v1 }
 0x1d5   : > { %2398 = vst.msk [vmem:[%s4012_s6 + $0x340] sm:$0xff] %vm2293_vm2, %v2269_v57  ;;  %3448 = vtanh.f32 %v1891_v48  ;;  %v1444_v20 = vmul.f32 %v1316_v53, %v5087_v18  ;;  %v1380_v61 = vmul.f32 0.044715, %v5091_v3  ;;  %v5110_v12 = vadd.f32 %v4951_v8, %v4469_v37 }
 0x1d6   : > { %2337 = vst.msk [vmem:[%s4012_s6 + $0x158] sm:$0xff] %vm2293_vm2, %v2208_v35  ;;  %v2272_v4 = vmul.f32 %v2144_v50, %v1248_v11  ;;  %3450 = vtanh.f32 %v1825_v13  ;;  %v1889_v33 = vmul.f32 0.7978846, %v1761_v38  ;;  %v5116_v45 = vadd.f32 %v4951_v8, %v4476_v7 }
 0x1d7   : > { %v1572_v28 = vmul.f32 %v1444_v20, %v5087_v18  ;;  %v1508_v51 = vmul.f32 %v1380_v61, %v5091_v3  ;;  %v5120_v30 = vadd.f32 %v4951_v8, %v4506_v41  ;;  %v1246_v24 = vmul.f32 0.5, %v5025_v54 }
 0x1d8   : > { %v3443_v58 = vpop.eup %3442  ;;  %2401 = vst.msk [vmem:[%s4012_s6 + $0x358] sm:$0xff] %vm2293_vm2, %v2272_v4  ;;  %v1187_v37 = vmul.f32 0.5, %v5044_v43  ;;  %3452 = vtanh.f32 %v1889_v33  ;;  %v1314_v23 = vmul.f32 0.044715, %v5110_v12  ;;  %v5131_v41 = vadd.f32 %v4951_v8, %v4520_v5 }
 0x1d9   : > { %v2078_v40 = vadd.f32 1.0, %v3443_v58  ;;  %v1700_v63 = vadd.f32 %v1572_v28, %v5087_v18  ;;  %v1636_v7 = vmul.f32 %v1508_v51, %v5091_v3  ;;  %v1251_v25 = vmul.f32 0.5, %v5050_v14 }
 0x1da   : > { %v3445_v15 = vpop.eup %3444  ;;  %v1442_v54 = vmul.f32 %v1314_v23, %v5110_v12  ;;  %v1378_v43 = vmul.f32 0.044715, %v5116_v45  ;;  %v1319_v29 = vmul.f32 0.044715, %v5120_v30  ;;  %v1185_v57 = vmul.f32 0.5, %v5054_v17 }
 0x1db   : > { %v2206_v11 = vmul.f32 %v2078_v40, %v1182_v9  ;;  %v2142_v31 = vadd.f32 1.0, %v3445_v15  ;;  %v1828_v49 = vmul.f32 0.7978846, %v1700_v63  ;;  %v1764_v59 = vadd.f32 %v1636_v7, %v5091_v3 }
 0x1dc   : > { %v1570_v5 = vmul.f32 %v1442_v54, %v5110_v12  ;;  %v1506_v48 = vmul.f32 %v1378_v43, %v5116_v45  ;;  %v1447_v14 = vmul.f32 %v1319_v29, %v5120_v30  ;;  %v1383_v13 = vmul.f32 0.044715, %v5131_v41 }
 0x1dd   : > { %v3447_v53 = vpop.eup %3446  ;;  %2335 = vst.msk [vmem:[%s4012_s6 + $0x148] sm:$0xff] %vm2293_vm2, %v2206_v11  ;;  %v2270_v35 = vmul.f32 %v2142_v31, %v1246_v24  ;;  %3454 = vtanh.f32 %v1828_v49  ;;  %v1892_v50 = vmul.f32 0.7978846, %v1764_v59  ;;  %v5153_v33 = vadd.f32 %v4951_v8, %v4522_v10 }
 0x1de   : > { %v2083_v38 = vadd.f32 1.0, %v3447_v53  ;;  %v1698_v9 = vadd.f32 %v1570_v5, %v5110_v12  ;;  %v1634_v20 = vmul.f32 %v1506_v48, %v5116_v45  ;;  %v1575_v17 = vmul.f32 %v1447_v14, %v5120_v30 }
 0x1df   : > { %v3449_v61 = vpop.eup %3448  ;;  %2399 = vst.msk [vmem:[%s4012_s6 + $0x348] sm:$0xff] %vm2293_vm2, %v2270_v35  ;;  %3456 = vtanh.f32 %v1892_v50  ;;  %v1511_v4 = vmul.f32 %v1383_v13, %v5131_v41  ;;  %v5157_v28 = vadd.f32 %v4951_v8, %v4533_v44  ;;  %v1249_v7 = vmul.f32 0.5, %v5065_v1 }
 0x1e0   : > { %v3451_v51 = vpop.eup %3450  ;;  %v2211_v58 = vmul.f32 %v2083_v38, %v1187_v37  ;;  %v2147_v24 = vadd.f32 1.0, %v3449_v61  ;;  %v1826_v23 = vmul.f32 0.7978846, %v1698_v9  ;;  %v1762_v40 = vadd.f32 %v1634_v20, %v5116_v45 }
 0x1e1   : > { %v2081_v63 = vadd.f32 1.0, %v3451_v51  ;;  %v1703_v15 = vadd.f32 %v1575_v17, %v5120_v30  ;;  %v1639_v54 = vmul.f32 %v1511_v4, %v5131_v41  ;;  %v1317_v37 = vmul.f32 0.044715, %v5153_v33 }
 0x1e2   : > { %v3453_v10 = vpop.eup %3452  ;;  %2340 = vst.msk [vmem:[%s4012_s6 + $0x170] sm:$0xff] %vm2293_vm2, %v2211_v58  ;;  %v2275_v44 = vmul.f32 %v2147_v24, %v1251_v25  ;;  %3458 = vtanh.f32 %v1826_v23  ;;  %v1890_v43 = vmul.f32 0.7978846, %v1762_v40  ;;  %v1188_v1 = vmul.f32 0.5, %v5087_v18 }
 0x1e3   : > { %v2209_v29 = vmul.f32 %v2081_v63, %v1185_v57  ;;  %v2145_v11 = vadd.f32 1.0, %v3453_v10  ;;  %v1831_v31 = vmul.f32 0.7978846, %v1703_v15  ;;  %v1767_v49 = vadd.f32 %v1639_v54, %v5131_v41 }
 0x1e4   : > { %2404 = vst.msk [vmem:[%s4012_s6 + $0x370] sm:$0xff] %vm2293_vm2, %v2275_v44  ;;  %3460 = vtanh.f32 %v1890_v43  ;;  %v1445_v59 = vmul.f32 %v1317_v37, %v5153_v33  ;;  %v1381_v5 = vmul.f32 0.044715, %v5157_v28  ;;  %v5176_v57 = vadd.f32 %v4951_v8, %v4547_v60 }
 0x1e5   : > { %2338 = vst.msk [vmem:[%s4012_s6 + $0x160] sm:$0xff] %vm2293_vm2, %v2209_v29  ;;  %v2273_v25 = vmul.f32 %v2145_v11, %v1249_v7  ;;  %3462 = vtanh.f32 %v1831_v31  ;;  %v1895_v48 = vmul.f32 0.7978846, %v1767_v49  ;;  %v5182_v18 = vadd.f32 %v4951_v8, %v4553_v56 }
 0x1e6   : > { %v1573_v14 = vmul.f32 %v1445_v59, %v5153_v33  ;;  %v1509_v53 = vmul.f32 %v1381_v5, %v5157_v28  ;;  %v5186_v35 = vadd.f32 %v4951_v8, %v4566_v26  ;;  %v1252_v13 = vmul.f32 0.5, %v5091_v3 }
 0x1e7   : > { %v3455_v50 = vpop.eup %3454  ;;  %2402 = vst.msk [vmem:[%s4012_s6 + $0x360] sm:$0xff] %vm2293_vm2, %v2273_v25  ;;  %v1186_v60 = vmul.f32 0.5, %v5110_v12  ;;  %3464 = vtanh.f32 %v1895_v48  ;;  %v1320_v38 = vmul.f32 0.044715, %v5176_v57  ;;  %v5197_v26 = vadd.f32 %v4951_v8, %v4568_v47 }
 0x1e8   : > { %v2084_v9 = vadd.f32 1.0, %v3455_v50  ;;  %v1701_v20 = vadd.f32 %v1573_v14, %v5153_v33  ;;  %v1637_v56 = vmul.f32 %v1509_v53, %v5157_v28  ;;  %v1250_v61 = vmul.f32 0.5, %v5116_v45 }
 0x1e9   : > { %v3457_v17 = vpop.eup %3456  ;;  %v1448_v3 = vmul.f32 %v1320_v38, %v5176_v57  ;;  %v1384_v12 = vmul.f32 0.044715, %v5182_v18  ;;  %v1318_v4 = vmul.f32 0.044715, %v5186_v35  ;;  %v1191_v40 = vmul.f32 0.5, %v5120_v30 }
 0x1ea   : > { %v2212_v51 = vmul.f32 %v2084_v9, %v1188_v1  ;;  %v2148_v58 = vadd.f32 1.0, %v3457_v17  ;;  %v1829_v24 = vmul.f32 0.7978846, %v1701_v20  ;;  %v1765_v23 = vadd.f32 %v1637_v56, %v5157_v28 }
 0x1eb   : > { %v1576_v47 = vmul.f32 %v1448_v3, %v5176_v57  ;;  %v1512_v63 = vmul.f32 %v1384_v12, %v5182_v18  ;;  %v1446_v45 = vmul.f32 %v1318_v4, %v5186_v35  ;;  %v1382_v10 = vmul.f32 0.044715, %v5197_v26 }
 0x1ec   : > { %v3459_v7 = vpop.eup %3458  ;;  %2341 = vst.msk [vmem:[%s4012_s6 + $0x178] sm:$0xff] %vm2293_vm2, %v2212_v51  ;;  %v2276_v15 = vmul.f32 %v2148_v58, %v1252_v13  ;;  %3466 = vtanh.f32 %v1829_v24  ;;  %v1893_v54 = vmul.f32 0.7978846, %v1765_v23  ;;  %v5219_v31 = vadd.f32 %v4951_v8, %v4609_v32 }
 0x1ed   : > { %v2082_v44 = vadd.f32 1.0, %v3459_v7  ;;  %v1704_v43 = vadd.f32 %v1576_v47, %v5176_v57  ;;  %v1640_v37 = vmul.f32 %v1512_v63, %v5182_v18  ;;  %v1574_v30 = vmul.f32 %v1446_v45, %v5186_v35 }
 0x1ee   : > { %v3461_v29 = vpop.eup %3460  ;;  %2405 = vst.msk [vmem:[%s4012_s6 + $0x378] sm:$0xff] %vm2293_vm2, %v2276_v15  ;;  %3468 = vtanh.f32 %v1893_v54  ;;  %v1510_v11 = vmul.f32 %v1382_v10, %v5197_v26  ;;  %v5223_v49 = vadd.f32 %v4951_v8, %v4611_v36  ;;  %v1255_v53 = vmul.f32 0.5, %v5131_v41 }
 0x1ef   : > { %v3463_v1 = vpop.eup %3462  ;;  %v2210_v59 = vmul.f32 %v2082_v44, %v1186_v60  ;;  %v2146_v5 = vadd.f32 1.0, %v3461_v29  ;;  %v1832_v25 = vmul.f32 0.7978846, %v1704_v43  ;;  %v1768_v48 = vadd.f32 %v1640_v37, %v5182_v18 }
 0x1f0   : > { %v2087_v14 = vadd.f32 1.0, %v3463_v1  ;;  %v1702_v50 = vadd.f32 %v1574_v30, %v5186_v35  ;;  %v1638_v13 = vmul.f32 %v1510_v11, %v5197_v26  ;;  %v1323_v60 = vmul.f32 0.044715, %v5219_v31 }
 0x1f1   : > { %v3465_v32 = vpop.eup %3464  ;;  %2339 = vst.msk [vmem:[%s4012_s6 + $0x168] sm:$0xff] %vm2293_vm2, %v2210_v59  ;;  %v2274_v36 = vmul.f32 %v2146_v5, %v1250_v61  ;;  %3470 = vtanh.f32 %v1832_v25  ;;  %v1896_v38 = vmul.f32 0.7978846, %v1768_v48  ;;  %v1189_v41 = vmul.f32 0.5, %v5153_v33 }
 0x1f2   : > { %v2215_v9 = vmul.f32 %v2087_v14, %v1191_v40  ;;  %v2151_v20 = vadd.f32 1.0, %v3465_v32  ;;  %v1830_v56 = vmul.f32 0.7978846, %v1702_v50  ;;  %v1766_v17 = vadd.f32 %v1638_v13, %v5197_v26 }
 0x1f3   : > { %2403 = vst.msk [vmem:[%s4012_s6 + $0x368] sm:$0xff] %vm2293_vm2, %v2274_v36  ;;  %3472 = vtanh.f32 %v1896_v38  ;;  %v1451_v3 = vmul.f32 %v1323_v60, %v5219_v31  ;;  %v1387_v12 = vmul.f32 0.044715, %v5223_v49  ;;  %v5242_v51 = vadd.f32 %v4951_v8, %v4621_v42 }
 0x1f4   : > { %2344 = vst.msk [vmem:[%s4012_s6 + $0x190] sm:$0xff] %vm2293_vm2, %v2215_v9  ;;  %v2279_v61 = vmul.f32 %v2151_v20, %v1255_v53  ;;  %3474 = vtanh.f32 %v1830_v56  ;;  %v1894_v4 = vmul.f32 0.7978846, %v1766_v17  ;;  %v5248_v33 = vadd.f32 %v4951_v8, %v4629_v19 }
 0x1f5   : > { %v1579_v58 = vmul.f32 %v1451_v3, %v5219_v31  ;;  %v1515_v24 = vmul.f32 %v1387_v12, %v5223_v49  ;;  %v5252_v23 = vadd.f32 %v4951_v8, %v4648_v2  ;;  %v1253_v47 = vmul.f32 0.5, %v5157_v28 }
 0x1f6   : > { %v3467_v40 = vpop.eup %3466  ;;  %2408 = vst.msk [vmem:[%s4012_s6 + $0x390] sm:$0xff] %vm2293_vm2, %v2279_v61  ;;  %v1192_v42 = vmul.f32 0.5, %v5176_v57  ;;  %3476 = vtanh.f32 %v1894_v4  ;;  %v1321_v63 = vmul.f32 0.044715, %v5242_v51  ;;  %v5263_v2 = vadd.f32 %v4951_v8, %v4650_v62 }
 0x1f7   : > { %v2085_v45 = vadd.f32 1.0, %v3467_v40  ;;  %v1707_v7 = vadd.f32 %v1579_v58, %v5219_v31  ;;  %v1643_v19 = vmul.f32 %v1515_v24, %v5223_v49  ;;  %v1256_v54 = vmul.f32 0.5, %v5182_v18 }
 0x1f8   : > { %v3469_v15 = vpop.eup %3468  ;;  %v1449_v28 = vmul.f32 %v1321_v63, %v5242_v51  ;;  %v1385_v57 = vmul.f32 0.044715, %v5248_v33  ;;  %v1324_v10 = vmul.f32 0.044715, %v5252_v23  ;;  %v1190_v29 = vmul.f32 0.5, %v5186_v35 }
 0x1f9   : > { %v2213_v44 = vmul.f32 %v2085_v45, %v1189_v41  ;;  %v2149_v43 = vadd.f32 1.0, %v3469_v15  ;;  %v1835_v37 = vmul.f32 0.7978846, %v1707_v7  ;;  %v1771_v30 = vadd.f32 %v1643_v19, %v5223_v49 }
 0x1fa   : > { %v1577_v62 = vmul.f32 %v1449_v28, %v5242_v51  ;;  %v1513_v11 = vmul.f32 %v1385_v57, %v5248_v33  ;;  %v1452_v18 = vmul.f32 %v1324_v10, %v5252_v23  ;;  %v1388_v25 = vmul.f32 0.044715, %v5263_v2 }
 0x1fb   : > { %v3471_v1 = vpop.eup %3470  ;;  %2342 = vst.msk [vmem:[%s4012_s6 + $0x180] sm:$0xff] %vm2293_vm2, %v2213_v44  ;;  %v2277_v59 = vmul.f32 %v2149_v43, %v1253_v47  ;;  %3478 = vtanh.f32 %v1835_v37  ;;  %v1899_v5 = vmul.f32 0.7978846, %v1771_v30  ;;  %v5285_v32 = vadd.f32 %v4951_v8, %v4662_v16 }
 0x1fc   : > { %v2088_v48 = vadd.f32 1.0, %v3471_v1  ;;  %v1705_v14 = vadd.f32 %v1577_v62, %v5242_v51  ;;  %v1641_v53 = vmul.f32 %v1513_v11, %v5248_v33  ;;  %v1580_v35 = vmul.f32 %v1452_v18, %v5252_v23 }
 0x1fd   : > { %v3473_v50 = vpop.eup %3472  ;;  %2406 = vst.msk [vmem:[%s4012_s6 + $0x380] sm:$0xff] %vm2293_vm2, %v2277_v59  ;;  %3480 = vtanh.f32 %v1899_v5  ;;  %v1516_v13 = vmul.f32 %v1388_v25, %v5263_v2  ;;  %v5289_v36 = vadd.f32 %v4951_v8, %v4686_v21  ;;  %v1254_v41 = vmul.f32 0.5, %v5197_v26 }
 0x1fe   : > { %v3475_v38 = vpop.eup %3474  ;;  %v2216_v60 = vmul.f32 %v2088_v48, %v1192_v42  ;;  %v2152_v9 = vadd.f32 1.0, %v3473_v50  ;;  %v1833_v20 = vmul.f32 0.7978846, %v1705_v14  ;;  %v1769_v56 = vadd.f32 %v1641_v53, %v5248_v33 }
 0x1ff   : > { %v2086_v17 = vadd.f32 1.0, %v3475_v38  ;;  %v1708_v3 = vadd.f32 %v1580_v35, %v5252_v23  ;;  %v1644_v12 = vmul.f32 %v1516_v13, %v5263_v2  ;;  %v1322_v4 = vmul.f32 0.044715, %v5285_v32 }
 0x200   : > { %v3477_v16 = vpop.eup %3476  ;;  %2345 = vst.msk [vmem:[%s4012_s6 + $0x198] sm:$0xff] %vm2293_vm2, %v2216_v60  ;;  %v2280_v21 = vmul.f32 %v2152_v9, %v1256_v54  ;;  %3482 = vtanh.f32 %v1833_v20  ;;  %v1897_v61 = vmul.f32 0.7978846, %v1769_v56  ;;  %v1195_v26 = vmul.f32 0.5, %v5219_v31  ;;  %v5769_v20 = vld [vmem:[#allocation23_spill] sm:$0xff] }
 0x201   : > { %v2214_v58 = vmul.f32 %v2086_v17, %v1190_v29  ;;  %v2150_v24 = vadd.f32 1.0, %v3477_v16  ;;  %v1836_v40 = vmul.f32 0.7978846, %v1708_v3  ;;  %v1772_v47 = vadd.f32 %v1644_v12, %v5263_v2  ;;  %v5770_v17 = vld [vmem:[#allocation3_spill] sm:$0xff] }
 0x202   : > { %2409 = vst.msk [vmem:[%s4012_s6 + $0x398] sm:$0xff] %vm2293_vm2, %v2280_v21  ;;  %3484 = vtanh.f32 %v1897_v61  ;;  %v1450_v42 = vmul.f32 %v1322_v4, %v5285_v32  ;;  %v1386_v63 = vmul.f32 0.044715, %v5289_v36  ;;  %v5308_v19 = vadd.f32 %v4951_v8, %v4713_v55 }
 0x203   : > { %2343 = vst.msk [vmem:[%s4012_s6 + $0x188] sm:$0xff] %vm2293_vm2, %v2214_v58  ;;  %v2278_v45 = vmul.f32 %v2150_v24, %v1254_v41  ;;  %3486 = vtanh.f32 %v1836_v40  ;;  %v1900_v7 = vmul.f32 0.7978846, %v1772_v47  ;;  %v5314_v31 = vadd.f32 %v4951_v8, %v4718_v0 }
 0x204   : > { %v1578_v15 = vmul.f32 %v1450_v42, %v5285_v32  ;;  %v1514_v54 = vmul.f32 %v1386_v63, %v5289_v36  ;;  %v5318_v28 = vadd.f32 %v4951_v8, %v4720_v46  ;;  %v1259_v10 = vmul.f32 0.5, %v5223_v49 }
 0x205   : > { %v3479_v57 = vpop.eup %3478  ;;  %2407 = vst.msk [vmem:[%s4012_s6 + $0x388] sm:$0xff] %vm2293_vm2, %v2278_v45  ;;  %v1193_v55 = vmul.f32 0.5, %v5242_v51  ;;  %3488 = vtanh.f32 %v1900_v7  ;;  %v1327_v44 = vmul.f32 0.044715, %v5308_v19  ;;  %v5329_v46 = vadd.f32 %v4951_v8, %v4732_v22 }
 0x206   : > { %v2091_v43 = vadd.f32 1.0, %v3479_v57  ;;  %v1706_v37 = vadd.f32 %v1578_v15, %v5285_v32  ;;  %v1642_v0 = vmul.f32 %v1514_v54, %v5289_v36  ;;  %v1257_v29 = vmul.f32 0.5, %v5248_v33 }
 0x207   : > { %v3481_v30 = vpop.eup %3480  ;;  %v1455_v49 = vmul.f32 %v1327_v44, %v5308_v19  ;;  %v1391_v51 = vmul.f32 0.044715, %v5314_v31  ;;  %v1325_v62 = vmul.f32 0.044715, %v5318_v28  ;;  %v1196_v5 = vmul.f32 0.5, %v5252_v23 }
 0x208   : > { %v2219_v11 = vmul.f32 %v2091_v43, %v1195_v26  ;;  %v2155_v18 = vadd.f32 1.0, %v3481_v30  ;;  %v1834_v1 = vmul.f32 0.7978846, %v1706_v37  ;;  %v1770_v59 = vadd.f32 %v1642_v0, %v5289_v36 }
 0x209   : > { %v1583_v22 = vmul.f32 %v1455_v49, %v5308_v19  ;;  %v1519_v25 = vmul.f32 %v1391_v51, %v5314_v31  ;;  %v1453_v33 = vmul.f32 %v1325_v62, %v5318_v28  ;;  %v1389_v35 = vmul.f32 0.044715, %v5329_v46 }
 0x20a   : > { %v3483_v48 = vpop.eup %3482  ;;  %2348 = vst.msk [vmem:[%s4012_s6 + $0x1b0] sm:$0xff] %vm2293_vm2, %v2219_v11  ;;  %v2283_v14 = vmul.f32 %v2155_v18, %v1259_v10  ;;  %3490 = vtanh.f32 %v1834_v1  ;;  %v1898_v53 = vmul.f32 0.7978846, %v1770_v59  ;;  %v5351_v56 = vadd.f32 %v4951_v8, %v5769_v20  ;;  %v5771_v18 = vld [vmem:[#allocation4_spill] sm:$0xff] }
 0x20b   : > { %v2089_v50 = vadd.f32 1.0, %v3483_v48  ;;  %v1711_v13 = vadd.f32 %v1583_v22, %v5308_v19  ;;  %v1647_v38 = vmul.f32 %v1519_v25, %v5314_v31  ;;  %v1581_v23 = vmul.f32 %v1453_v33, %v5318_v28 }
 0x20c   : > { %v3485_v60 = vpop.eup %3484  ;;  %2412 = vst.msk [vmem:[%s4012_s6 + $0x3b0] sm:$0xff] %vm2293_vm2, %v2283_v14  ;;  %3492 = vtanh.f32 %v1898_v53  ;;  %v1517_v9 = vmul.f32 %v1389_v35, %v5329_v46  ;;  %v5355_v41 = vadd.f32 %v4951_v8, %v5770_v17  ;;  %v1260_v58 = vmul.f32 0.5, %v5263_v2 }
 0x20d   : > { %v3487_v3 = vpop.eup %3486  ;;  %v2217_v12 = vmul.f32 %v2089_v50, %v1193_v55  ;;  %v2153_v16 = vadd.f32 1.0, %v3485_v60  ;;  %v1839_v21 = vmul.f32 0.7978846, %v1711_v13  ;;  %v1775_v61 = vadd.f32 %v1647_v38, %v5314_v31 }
 0x20e   : > { %v2092_v4 = vadd.f32 1.0, %v3487_v3  ;;  %v1709_v24 = vadd.f32 %v1581_v23, %v5318_v28  ;;  %v1645_v40 = vmul.f32 %v1517_v9, %v5329_v46  ;;  %v1328_v63 = vmul.f32 0.044715, %v5351_v56 }
 0x20f   : > { %v3489_v47 = vpop.eup %3488  ;;  %2346 = vst.msk [vmem:[%s4012_s6 + $0x1a0] sm:$0xff] %vm2293_vm2, %v2217_v12  ;;  %v2281_v26 = vmul.f32 %v2153_v16, %v1257_v29  ;;  %3494 = vtanh.f32 %v1839_v21  ;;  %v1903_v42 = vmul.f32 0.7978846, %v1775_v61  ;;  %v1194_v2 = vmul.f32 0.5, %v5285_v32  ;;  %v5772_v12 = vld [vmem:[#allocation5_spill] sm:$0xff]  ;;  %v5773_v21 = vld [vmem:[#allocation6_spill] sm:$0xff] }
 0x210   : > { %v2220_v45 = vmul.f32 %v2092_v4, %v1196_v5  ;;  %v2156_v7 = vadd.f32 1.0, %v3489_v47  ;;  %v1837_v15 = vmul.f32 0.7978846, %v1709_v24  ;;  %v1773_v54 = vadd.f32 %v1645_v40, %v5329_v46 }
 0x211   : > { %2410 = vst.msk [vmem:[%s4012_s6 + $0x3a0] sm:$0xff] %vm2293_vm2, %v2281_v26  ;;  %3496 = vtanh.f32 %v1903_v42  ;;  %v1456_v57 = vmul.f32 %v1328_v63, %v5351_v56  ;;  %v1392_v10 = vmul.f32 0.044715, %v5355_v41  ;;  %v5374_v43 = vadd.f32 %v4951_v8, %v4781_v52 }
 0x212   : > { %2349 = vst.msk [vmem:[%s4012_s6 + $0x1b8] sm:$0xff] %vm2293_vm2, %v2220_v45  ;;  %v2284_v55 = vmul.f32 %v2156_v7, %v1260_v58  ;;  %3498 = vtanh.f32 %v1837_v15  ;;  %v1901_v44 = vmul.f32 0.7978846, %v1773_v54  ;;  %v5380_v32 = vadd.f32 %v4951_v8, %v4788_v6 }
 0x213   : > { %v1584_v37 = vmul.f32 %v1456_v57, %v5351_v56  ;;  %v1520_v0 = vmul.f32 %v1392_v10, %v5355_v41  ;;  %v5384_v30 = vadd.f32 %v4951_v8, %v4818_v27  ;;  %v1258_v49 = vmul.f32 0.5, %v5289_v36 }
 0x214   : > { %v3491_v29 = vpop.eup %3490  ;;  %2413 = vst.msk [vmem:[%s4012_s6 + $0x3b8] sm:$0xff] %vm2293_vm2, %v2284_v55  ;;  %v1199_v52 = vmul.f32 0.5, %v5308_v19  ;;  %3500 = vtanh.f32 %v1901_v44  ;;  %v1326_v51 = vmul.f32 0.044715, %v5374_v43  ;;  %v5395_v27 = vadd.f32 %v4951_v8, %v5771_v18 }
 0x215   : > { %v2090_v62 = vadd.f32 1.0, %v3491_v29  ;;  %v1712_v11 = vadd.f32 %v1584_v37, %v5351_v56  ;;  %v1648_v6 = vmul.f32 %v1520_v0, %v5355_v41  ;;  %v1263_v59 = vmul.f32 0.5, %v5314_v31  ;;  %v3528_v29 = vld [vmem:[%s5719_s2] ss:$0 sm:$0xff] }
 0x216   : > { %v3493_v1 = vpop.eup %3492  ;;  %v1454_v36 = vmul.f32 %v1326_v51, %v5374_v43  ;;  %v1390_v19 = vmul.f32 0.044715, %v5380_v32  ;;  %v1331_v5 = vmul.f32 0.044715, %v5384_v30  ;;  %v1197_v14 = vmul.f32 0.5, %v5318_v28 }
 0x217   : > { %v2218_v22 = vmul.f32 %v2090_v62, %v1194_v2  ;;  %v2154_v25 = vadd.f32 1.0, %v3493_v1  ;;  %v1840_v33 = vmul.f32 0.7978846, %v1712_v11  ;;  %v1776_v48 = vadd.f32 %v1648_v6, %v5355_v41  ;;  %v5774_v62 = vld [vmem:[#allocation7_spill] sm:$0xff] }
 0x218   : > { %v1582_v53 = vmul.f32 %v1454_v36, %v5374_v43  ;;  %v1518_v35 = vmul.f32 %v1390_v19, %v5380_v32  ;;  %v1459_v31 = vmul.f32 %v1331_v5, %v5384_v30  ;;  %v1395_v23 = vmul.f32 0.044715, %v5395_v27  ;;  %v5775_v5 = vld [vmem:[#allocation8_spill] sm:$0xff] }
 0x219   : > { %v3495_v50 = vpop.eup %3494  ;;  %2347 = vst.msk [vmem:[%s4012_s6 + $0x1a8] sm:$0xff] %vm2293_vm2, %v2218_v22  ;;  %v2282_v13 = vmul.f32 %v2154_v25, %v1258_v49  ;;  %3502 = vtanh.f32 %v1840_v33  ;;  %v1904_v38 = vmul.f32 0.7978846, %v1776_v48  ;;  %v5417_v16 = vadd.f32 %v4951_v8, %v5772_v12 }
 0x21a   : > { %v2095_v60 = vadd.f32 1.0, %v3495_v50  ;;  %v1710_v9 = vadd.f32 %v1582_v53, %v5374_v43  ;;  %v1646_v20 = vmul.f32 %v1518_v35, %v5380_v32  ;;  %v1587_v28 = vmul.f32 %v1459_v31, %v5384_v30 }
 0x21b   : > { %v3497_v17 = vpop.eup %3496  ;;  %2411 = vst.msk [vmem:[%s4012_s6 + $0x3a8] sm:$0xff] %vm2293_vm2, %v2282_v13  ;;  %3504 = vtanh.f32 %v1904_v38  ;;  %v1523_v3 = vmul.f32 %v1395_v23, %v5395_v27  ;;  %v5421_v61 = vadd.f32 %v4951_v8, %v5773_v21  ;;  %v1261_v42 = vmul.f32 0.5, %v5329_v46 }
 0x21c   : > { %v3499_v4 = vpop.eup %3498  ;;  %v2223_v58 = vmul.f32 %v2095_v60, %v1199_v52  ;;  %v2159_v24 = vadd.f32 1.0, %v3497_v17  ;;  %v1838_v40 = vmul.f32 0.7978846, %v1710_v9  ;;  %v1774_v47 = vadd.f32 %v1646_v20, %v5380_v32 }
 0x21d   : > { %v2093_v26 = vadd.f32 1.0, %v3499_v4  ;;  %v1715_v63 = vadd.f32 %v1587_v28, %v5384_v30  ;;  %v1651_v45 = vmul.f32 %v1523_v3, %v5395_v27  ;;  %v1329_v54 = vmul.f32 0.044715, %v5417_v16 }
 0x21e   : > { %v3501_v7 = vpop.eup %3500  ;;  %2352 = vst.msk [vmem:[%s4012_s6 + $0x1d0] sm:$0xff] %vm2293_vm2, %v2223_v58  ;;  %v2287_v8 = vmul.f32 %v2159_v24, %v1263_v59  ;;  %3506 = vtanh.f32 %v1838_v40  ;;  %v1902_v15 = vmul.f32 0.7978846, %v1774_v47  ;;  %v1393_v44 = vmul.f32 0.044715, %v5421_v61 }
 0x21f   : > { %v2221_v2 = vmul.f32 %v2093_v26, %v1197_v14  ;;  %v2157_v57 = vadd.f32 1.0, %v3501_v7  ;;  %v1843_v10 = vmul.f32 0.7978846, %v1715_v63  ;;  %v1779_v55 = vadd.f32 %v1651_v45, %v5395_v27 }
 0x220   : > { %2416 = vst.msk [vmem:[%s4012_s6 + $0x3d0] sm:$0xff] %vm2293_vm2, %v2287_v8  ;;  %3508 = vtanh.f32 %v1902_v15  ;;  %v1457_v46 = vmul.f32 %v1329_v54, %v5417_v16  ;;  %v5441_v49 = vadd.f32 %v3528_v29, %v4857_v34  ;;  %v1521_v51 = vmul.f32 %v1393_v44, %v5421_v61 }
 0x221   : > { %2350 = vst.msk [vmem:[%s4012_s6 + $0x1c0] sm:$0xff] %vm2293_vm2, %v2221_v2  ;;  %v2285_v37 = vmul.f32 %v2157_v57, %v1261_v42  ;;  %3510 = vtanh.f32 %v1843_v10  ;;  %v1907_v0 = vmul.f32 0.7978846, %v1779_v55  ;;  %v5446_v11 = vadd.f32 %v3528_v29, %v5774_v62 }
 0x222   : > { %v1585_v52 = vmul.f32 %v1457_v46, %v5417_v16  ;;  %v5449_v6 = vadd.f32 %v3528_v29, %v4882_v39  ;;  %v1200_v1 = vmul.f32 0.5, %v5351_v56  ;;  %v1332_v59 = vmul.f32 0.044715, %v5441_v49 }
 0x223   : > { %v3503_v18 = vpop.eup %3502  ;;  %2414 = vst.msk [vmem:[%s4012_s6 + $0x3c0] sm:$0xff] %vm2293_vm2, %v2285_v37  ;;  %3512 = vtanh.f32 %v1907_v0  ;;  %v1649_v19 = vmul.f32 %v1521_v51, %v5421_v61  ;;  %v5458_v22 = vadd.f32 %v3528_v29, %v5775_v5  ;;  %v1264_v39 = vmul.f32 0.5, %v5355_v41 }
 0x224   : > { %v2096_v34 = vadd.f32 1.0, %v3503_v18  ;;  %v1713_v36 = vadd.f32 %v1585_v52, %v5417_v16  ;;  %v1460_v33 = vmul.f32 %v1332_v59, %v5441_v49  ;;  %v1396_v48 = vmul.f32 0.044715, %v5446_v11 }
 0x225   : > { %v3505_v25 = vpop.eup %3504  ;;  %v1330_v56 = vmul.f32 0.044715, %v5449_v6  ;;  %v1777_v31 = vadd.f32 %v1649_v19, %v5421_v61  ;;  %v1198_v50 = vmul.f32 0.5, %v5374_v43  ;;  %v1394_v20 = vmul.f32 0.044715, %v5458_v22 }
 0x226   : > { %v2224_v14 = vmul.f32 %v2096_v34, %v1200_v1  ;;  %v2160_v53 = vadd.f32 1.0, %v3505_v25  ;;  %v1841_v35 = vmul.f32 0.7978846, %v1713_v36  ;;  %v1588_v13 = vmul.f32 %v1460_v33, %v5441_v49 }
 0x227   : > { %v1524_v38 = vmul.f32 %v1396_v48, %v5446_v11  ;;  %v1458_v41 = vmul.f32 %v1330_v56, %v5449_v6  ;;  %v1905_v9 = vmul.f32 0.7978846, %v1777_v31  ;;  %v1262_v21 = vmul.f32 0.5, %v5380_v32 }
 0x228   : > { %v3507_v23 = vpop.eup %3506  ;;  %2353 = vst.msk [vmem:[%s4012_s6 + $0x1d8] sm:$0xff] %vm2293_vm2, %v2224_v14  ;;  %v2288_v60 = vmul.f32 %v2160_v53, %v1264_v39  ;;  %3514 = vtanh.f32 %v1841_v35  ;;  %v1716_v17 = vadd.f32 %v1588_v13, %v5441_v49  ;;  %v1522_v4 = vmul.f32 %v1394_v20, %v5458_v22 }
 0x229   : > { %v2094_v28 = vadd.f32 1.0, %v3507_v23  ;;  %v1652_v3 = vmul.f32 %v1524_v38, %v5446_v11  ;;  %v1586_v43 = vmul.f32 %v1458_v41, %v5449_v6  ;;  %3516 = vtanh.f32 %v1905_v9 }
 0x22a   : > { %v3509_v12 = vpop.eup %3508  ;;  %2417 = vst.msk [vmem:[%s4012_s6 + $0x3d8] sm:$0xff] %vm2293_vm2, %v2288_v60  ;;  %v1844_v47 = vmul.f32 0.7978846, %v1716_v17  ;;  %v1203_v42 = vmul.f32 0.5, %v5384_v30  ;;  %v1650_v7 = vmul.f32 %v1522_v4, %v5458_v22  ;;  %v1267_v15 = vmul.f32 0.5, %v5395_v27 }
 0x22b   : > { %v3511_v58 = vpop.eup %3510  ;;  %v2222_v24 = vmul.f32 %v2094_v28, %v1198_v50  ;;  %v2158_v40 = vadd.f32 1.0, %v3509_v12  ;;  %v1780_v26 = vadd.f32 %v1652_v3, %v5446_v11  ;;  %v1714_v45 = vadd.f32 %v1586_v43, %v5449_v6 }
 0x22c   : > { %v2099_v63 = vadd.f32 1.0, %v3511_v58  ;;  %3518 = vtanh.f32 %v1844_v47  ;;  %v1778_v30 = vadd.f32 %v1650_v7, %v5458_v22  ;;  %v1201_v27 = vmul.f32 0.5, %v5417_v16 }
 0x22d   : > { %v3513_v8 = vpop.eup %3512  ;;  %2351 = vst.msk [vmem:[%s4012_s6 + $0x1c8] sm:$0xff] %vm2293_vm2, %v2222_v24  ;;  %v2286_v32 = vmul.f32 %v2158_v40, %v1262_v21  ;;  %v1908_v54 = vmul.f32 0.7978846, %v1780_v26  ;;  %v1842_v10 = vmul.f32 0.7978846, %v1714_v45  ;;  %v1265_v52 = vmul.f32 0.5, %v5421_v61 }
 0x22e   : > { %v2227_v2 = vmul.f32 %v2099_v63, %v1203_v42  ;;  %v2163_v57 = vadd.f32 1.0, %v3513_v8  ;;  %v1906_v46 = vmul.f32 0.7978846, %v1778_v30  ;;  %v1204_v1 = vmul.f32 0.5, %v5441_v49 }
 0x22f   : > { %2415 = vst.msk [vmem:[%s4012_s6 + $0x3c8] sm:$0xff] %vm2293_vm2, %v2286_v32  ;;  %3520 = vtanh.f32 %v1908_v54  ;;  %v1268_v19 = vmul.f32 0.5, %v5446_v11  ;;  %v1202_v5 = vmul.f32 0.5, %v5449_v6  ;;  %v1266_v48 = vmul.f32 0.5, %v5458_v22 }
 0x230   : > { %2356 = vst.msk [vmem:[%s4012_s6 + $0x1f0] sm:$0xff] %vm2293_vm2, %v2227_v2  ;;  %v2291_v55 = vmul.f32 %v2163_v57, %v1267_v15  ;;  %3522 = vtanh.f32 %v1842_v10 }
 0x231   : > { %3524 = vtanh.f32 %v1906_v46 }
 0x232   : > { %v3515_v44 = vpop.eup %3514  ;;  %2420 = vst.msk [vmem:[%s4012_s6 + $0x3f0] sm:$0xff] %vm2293_vm2, %v2291_v55 }
 0x233   : > { %v2097_v37 = vadd.f32 1.0, %v3515_v44  ;;  %v3517_v0 = vpop.eup %3516 }
 0x234   : > { %v2161_v51 = vadd.f32 1.0, %v3517_v0 }
 0x235   : > { %v2225_v29 = vmul.f32 %v2097_v37, %v1201_v27 }
 0x236   : > { %v3519_v62 = vpop.eup %3518  ;;  %v2289_v18 = vmul.f32 %v2161_v51, %v1265_v52 }
 0x237   : > { %2354 = vst.msk [vmem:[%s4012_s6 + $0x1e0] sm:$0xff] %vm2293_vm2, %v2225_v29  ;;  %v2100_v59 = vadd.f32 1.0, %v3519_v62 }
 0x238   : > { %2418 = vst.msk [vmem:[%s4012_s6 + $0x3e0] sm:$0xff] %vm2293_vm2, %v2289_v18 }
 0x239   : > { %v3521_v34 = vpop.eup %3520  ;;  %v2228_v36 = vmul.f32 %v2100_v59, %v1204_v1 }
 0x23a   : > { %v3523_v16 = vpop.eup %3522  ;;  %v2164_v61 = vadd.f32 1.0, %v3521_v34  ;;  %2428 = sbr.rel (!%p3662_p4) target bundleno = 649 (0x289), region = 36 }
 0x23b   : > { %v2098_v25 = vadd.f32 1.0, %v3523_v16  ;;  %v3525_v39 = vpop.eup %3524  ;;  %2357 = vst.msk [vmem:[%s4012_s6 + $0x1f8] sm:$0xff] %vm2293_vm2, %v2228_v36 }
 0x23c   : > { %v2292_v33 = vmul.f32 %v2164_v61, %v1268_v19  ;;  %v2162_v56 = vadd.f32 1.0, %v3525_v39 }
 0x23d   : > { %v2226_v49 = vmul.f32 %v2098_v25, %v1202_v5 }
 0x23e   : > { %2421 = vst.msk [vmem:[%s4012_s6 + $0x3f8] sm:$0xff] %vm2293_vm2, %v2292_v33  ;;  %v2290_v14 = vmul.f32 %v2162_v56, %v1266_v48 }
 0x23f   : > { %2355 = vst.msk [vmem:[%s4012_s6 + $0x1e8] sm:$0xff] %vm2293_vm2, %v2226_v49 }
 0x240   : > { %2419 = vst.msk [vmem:[%s4012_s6 + $0x3e8] sm:$0xff] %vm2293_vm2, %v2290_v14 }
 0x241   : > { %s5785_s14 = smov (!%p2431_p8, %s2430_s14), 128 }
 0x242   : > { %s2964_s24 = sshll.u32 %s5785_s14, 7 }
 0x243   : > { %p2967_p9 = scmp.eq.s32.totalorder %s2964_s24, 0 }
 0x244   : > { %s5524_s25 = sshrl.u32 (!%p2967_p9), %s5785_s14, 6 }
 0x245   : > { %2439 = sbr.rel (%p2967_p9) target bundleno = 649 (0x289), region = 40  ;;  %p2968_p10 = scmp.le.s32.totalorder (!%p2967_p9), %s5524_s25, 0 }
 0x24c   : > { %2845 = sbr.rel (%p2968_p10) target bundleno = 628 (0x274), region = 116  ;;  %s5776_s15 = smov (!%p2968_p10), %s5518_s22 }
 0x24d   : > { %s5777_s20 = smov (!%p2968_p10), %s4012_s6  ;;  %s5533_s23 = smov (!%p2968_p10), 0  }
 0x24e   : > { %s5535_s26 = smov (!%p2968_p10), 0  }
 0x253 LB: >> { %v2627_v11 = vld [vmem:[%s3591_s20] sm:$0xff]  ;;  %v2629_v6 = vld [vmem:[%s3591_s20 + $0x8] sm:$0xff]  ;;  %v2631_v22 = vld [vmem:[%s3591_s20 + $0x10] sm:$0xff]  ;;  %s2755_s27 = sadd.s32 1, %s3595_s23  ;;  %s2621_s26 = sadd.s32 1, %s3599_s26   ;;  %s3599_s26 = sphi %s5535_s26, %s2621_s26   ;;  %s3595_s23 = sphi %s5533_s23, %s5780_s23   ;;  %s3591_s20 = sphi %s5777_s20, %s5779_s20   ;;  %s3587_s15 = sphi %s5776_s15, %s5778_s15  }
 0x254   : >> { %2628 = vst [vmem:[%s3587_s15] sm:$0xff] %v2627_v11  ;;  %2630 = vst [vmem:[%s3587_s15 + $0x8] sm:$0xff] %v2629_v6  ;;  %v2633_v53 = vld [vmem:[%s3591_s20 + $0x18] sm:$0xff]  ;;  %v2635_v35 = vld [vmem:[%s3591_s20 + $0x20] sm:$0xff]  ;;  %p2756_p11 = scmp.ge.s32.totalorder %s2755_s27, %s5524_s25  ;;  %p2620_p12 = scmp.ge.s32.totalorder %s2621_s26, %s5524_s25 }
 0x255   : >> { %2632 = vst [vmem:[%s3587_s15 + $0x10] sm:$0xff] %v2631_v22  ;;  %v2637_v31 = vld [vmem:[%s3591_s20 + $0x28] sm:$0xff]  ;;  %2634 = vst [vmem:[%s3587_s15 + $0x18] sm:$0xff] %v2633_v53  ;;  %v2639_v50 = vld [vmem:[%s3591_s20 + $0x30] sm:$0xff] }
 0x256   : >> { %2636 = vst [vmem:[%s3587_s15 + $0x20] sm:$0xff] %v2635_v35  ;;  %2638 = vst [vmem:[%s3587_s15 + $0x28] sm:$0xff] %v2637_v31  ;;  %v2641_v13 = vld [vmem:[%s3591_s20 + $0x38] sm:$0xff]  ;;  %v2643_v38 = vld [vmem:[%s3591_s20 + $0x40] sm:$0xff]  ;;  %s5787_s27 = smov (%p2756_p11, %s2755_s27), 0 }
 0x257   : >> { %2640 = vst [vmem:[%s3587_s15 + $0x30] sm:$0xff] %v2639_v50  ;;  %2642 = vst [vmem:[%s3587_s15 + $0x38] sm:$0xff] %v2641_v13  ;;  %v2645_v41 = vld [vmem:[%s3591_s20 + $0x48] sm:$0xff]  ;;  %v2647_v23 = vld [vmem:[%s3591_s20 + $0x50] sm:$0xff]  ;;  %s2969_s28 = sshll.u32 %s5787_s27, 9  ;;  %s5780_s23 = smov %s5787_s27 }
 0x258   : >> { %2644 = vst [vmem:[%s3587_s15 + $0x40] sm:$0xff] %v2643_v38  ;;  %v2649_v60 = vld [vmem:[%s3591_s20 + $0x58] sm:$0xff]  ;;  %2646 = vst [vmem:[%s3587_s15 + $0x48] sm:$0xff] %v2645_v41  ;;  %v2651_v9 = vld [vmem:[%s3591_s20 + $0x60] sm:$0xff]  ;;  %s5591_s29 = scalar_lea.vmem %s4012_s6, %s2969_s28 [#allocation2]   ;;  %s5594_s30 = scalar_lea.vmem %s5518_s22, %s2969_s28  }
 0x259   : >> { %2648 = vst [vmem:[%s3587_s15 + $0x50] sm:$0xff] %v2647_v23  ;;  %2650 = vst [vmem:[%s3587_s15 + $0x58] sm:$0xff] %v2649_v60  ;;  %v2653_v20 = vld [vmem:[%s3591_s20 + $0x68] sm:$0xff]  ;;  %v2655_v28 = vld [vmem:[%s3591_s20 + $0x70] sm:$0xff] }
 0x25a   : >> { %2652 = vst [vmem:[%s3587_s15 + $0x60] sm:$0xff] %v2651_v9  ;;  %2654 = vst [vmem:[%s3587_s15 + $0x68] sm:$0xff] %v2653_v20  ;;  %v2657_v17 = vld [vmem:[%s3591_s20 + $0x78] sm:$0xff]  ;;  %v2659_v3 = vld [vmem:[%s3591_s20 + $0x80] sm:$0xff] }
 0x25b   : >> { %2656 = vst [vmem:[%s3587_s15 + $0x70] sm:$0xff] %v2655_v28  ;;  %v2661_v43 = vld [vmem:[%s3591_s20 + $0x88] sm:$0xff]  ;;  %2658 = vst [vmem:[%s3587_s15 + $0x78] sm:$0xff] %v2657_v17  ;;  %v2663_v12 = vld [vmem:[%s3591_s20 + $0x90] sm:$0xff] }
 0x25c   : >> { %2660 = vst [vmem:[%s3587_s15 + $0x80] sm:$0xff] %v2659_v3  ;;  %2662 = vst [vmem:[%s3587_s15 + $0x88] sm:$0xff] %v2661_v43  ;;  %v2665_v21 = vld [vmem:[%s3591_s20 + $0x98] sm:$0xff]  ;;  %v2667_v4 = vld [vmem:[%s3591_s20 + $0xa0] sm:$0xff] }
 0x25d   : >> { %2664 = vst [vmem:[%s3587_s15 + $0x90] sm:$0xff] %v2663_v12  ;;  %2666 = vst [vmem:[%s3587_s15 + $0x98] sm:$0xff] %v2665_v21  ;;  %v2669_v58 = vld [vmem:[%s3591_s20 + $0xa8] sm:$0xff]  ;;  %v2671_v24 = vld [vmem:[%s3591_s20 + $0xb0] sm:$0xff] }
 0x25e   : >> { %2668 = vst [vmem:[%s3587_s15 + $0xa0] sm:$0xff] %v2667_v4  ;;  %v2673_v40 = vld [vmem:[%s3591_s20 + $0xb8] sm:$0xff]  ;;  %2670 = vst [vmem:[%s3587_s15 + $0xa8] sm:$0xff] %v2669_v58  ;;  %v2675_v47 = vld [vmem:[%s3591_s20 + $0xc0] sm:$0xff] }
 0x25f   : >> { %2672 = vst [vmem:[%s3587_s15 + $0xb0] sm:$0xff] %v2671_v24  ;;  %2674 = vst [vmem:[%s3587_s15 + $0xb8] sm:$0xff] %v2673_v40  ;;  %v2677_v26 = vld [vmem:[%s3591_s20 + $0xc8] sm:$0xff]  ;;  %v2679_v42 = vld [vmem:[%s3591_s20 + $0xd0] sm:$0xff] }
 0x260   : >> { %2676 = vst [vmem:[%s3587_s15 + $0xc0] sm:$0xff] %v2675_v47  ;;  %2678 = vst [vmem:[%s3587_s15 + $0xc8] sm:$0xff] %v2677_v26  ;;  %v2681_v63 = vld [vmem:[%s3591_s20 + $0xd8] sm:$0xff]  ;;  %v2683_v45 = vld [vmem:[%s3591_s20 + $0xe0] sm:$0xff] }
 0x261   : >> { %2680 = vst [vmem:[%s3587_s15 + $0xd0] sm:$0xff] %v2679_v42  ;;  %v2685_v7 = vld [vmem:[%s3591_s20 + $0xe8] sm:$0xff]  ;;  %2682 = vst [vmem:[%s3587_s15 + $0xd8] sm:$0xff] %v2681_v63  ;;  %v2687_v8 = vld [vmem:[%s3591_s20 + $0xf0] sm:$0xff] }
 0x262   : >> { %2684 = vst [vmem:[%s3587_s15 + $0xe0] sm:$0xff] %v2683_v45  ;;  %2686 = vst [vmem:[%s3587_s15 + $0xe8] sm:$0xff] %v2685_v7  ;;  %v2689_v32 = vld [vmem:[%s3591_s20 + $0xf8] sm:$0xff]  ;;  %v2691_v15 = vld [vmem:[%s3591_s20 + $0x100] sm:$0xff] }
 0x263   : >> { %2688 = vst [vmem:[%s3587_s15 + $0xf0] sm:$0xff] %v2687_v8  ;;  %2690 = vst [vmem:[%s3587_s15 + $0xf8] sm:$0xff] %v2689_v32  ;;  %v2693_v54 = vld [vmem:[%s3591_s20 + $0x108] sm:$0xff]  ;;  %v2695_v2 = vld [vmem:[%s3591_s20 + $0x110] sm:$0xff] }
 0x264   : >> { %2692 = vst [vmem:[%s3587_s15 + $0x100] sm:$0xff] %v2691_v15  ;;  %v2697_v57 = vld [vmem:[%s3591_s20 + $0x118] sm:$0xff]  ;;  %2694 = vst [vmem:[%s3587_s15 + $0x108] sm:$0xff] %v2693_v54  ;;  %v2699_v10 = vld [vmem:[%s3591_s20 + $0x120] sm:$0xff] }
 0x265   : >> { %2696 = vst [vmem:[%s3587_s15 + $0x110] sm:$0xff] %v2695_v2  ;;  %2698 = vst [vmem:[%s3587_s15 + $0x118] sm:$0xff] %v2697_v57  ;;  %v2701_v30 = vld [vmem:[%s3591_s20 + $0x128] sm:$0xff]  ;;  %v2703_v55 = vld [vmem:[%s3591_s20 + $0x130] sm:$0xff] }
 0x266   : >> { %2700 = vst [vmem:[%s3587_s15 + $0x120] sm:$0xff] %v2699_v10  ;;  %2702 = vst [vmem:[%s3587_s15 + $0x128] sm:$0xff] %v2701_v30  ;;  %v2705_v46 = vld [vmem:[%s3591_s20 + $0x138] sm:$0xff]  ;;  %v2707_v44 = vld [vmem:[%s3591_s20 + $0x140] sm:$0xff] }
 0x267   : >> { %2704 = vst [vmem:[%s3587_s15 + $0x130] sm:$0xff] %v2703_v55  ;;  %v2709_v27 = vld [vmem:[%s3591_s20 + $0x148] sm:$0xff]  ;;  %2706 = vst [vmem:[%s3587_s15 + $0x138] sm:$0xff] %v2705_v46  ;;  %v2711_v37 = vld [vmem:[%s3591_s20 + $0x150] sm:$0xff] }
 0x268   : >> { %2708 = vst [vmem:[%s3587_s15 + $0x140] sm:$0xff] %v2707_v44  ;;  %2710 = vst [vmem:[%s3587_s15 + $0x148] sm:$0xff] %v2709_v27  ;;  %v2713_v0 = vld [vmem:[%s3591_s20 + $0x158] sm:$0xff]  ;;  %v2715_v29 = vld [vmem:[%s3591_s20 + $0x160] sm:$0xff] }
 0x269   : >> { %2712 = vst [vmem:[%s3587_s15 + $0x150] sm:$0xff] %v2711_v37  ;;  %2714 = vst [vmem:[%s3587_s15 + $0x158] sm:$0xff] %v2713_v0  ;;  %v2717_v52 = vld [vmem:[%s3591_s20 + $0x168] sm:$0xff]  ;;  %v2719_v51 = vld [vmem:[%s3591_s20 + $0x170] sm:$0xff] }
 0x26a   : >> { %2716 = vst [vmem:[%s3587_s15 + $0x160] sm:$0xff] %v2715_v29  ;;  %v2721_v62 = vld [vmem:[%s3591_s20 + $0x178] sm:$0xff]  ;;  %2718 = vst [vmem:[%s3587_s15 + $0x168] sm:$0xff] %v2717_v52  ;;  %v2723_v18 = vld [vmem:[%s3591_s20 + $0x180] sm:$0xff] }
 0x26b   : >> { %2720 = vst [vmem:[%s3587_s15 + $0x170] sm:$0xff] %v2719_v51  ;;  %2722 = vst [vmem:[%s3587_s15 + $0x178] sm:$0xff] %v2721_v62  ;;  %v2725_v1 = vld [vmem:[%s3591_s20 + $0x188] sm:$0xff]  ;;  %v2727_v59 = vld [vmem:[%s3591_s20 + $0x190] sm:$0xff] }
 0x26c   : >> { %2724 = vst [vmem:[%s3587_s15 + $0x180] sm:$0xff] %v2723_v18  ;;  %2726 = vst [vmem:[%s3587_s15 + $0x188] sm:$0xff] %v2725_v1  ;;  %v2729_v34 = vld [vmem:[%s3591_s20 + $0x198] sm:$0xff]  ;;  %v2731_v16 = vld [vmem:[%s3591_s20 + $0x1a0] sm:$0xff] }
 0x26d   : >> { %2728 = vst [vmem:[%s3587_s15 + $0x190] sm:$0xff] %v2727_v59  ;;  %v2733_v36 = vld [vmem:[%s3591_s20 + $0x1a8] sm:$0xff]  ;;  %2730 = vst [vmem:[%s3587_s15 + $0x198] sm:$0xff] %v2729_v34  ;;  %v2735_v19 = vld [vmem:[%s3591_s20 + $0x1b0] sm:$0xff]  ;;  %2623 = sbr.rel (!%p2620_p12) target bundleno = 595 (0x253), region = 122 }
 0x26e   : >> { %2732 = vst [vmem:[%s3587_s15 + $0x1a0] sm:$0xff] %v2731_v16  ;;  %2734 = vst [vmem:[%s3587_s15 + $0x1a8] sm:$0xff] %v2733_v36  ;;  %v2737_v61 = vld [vmem:[%s3591_s20 + $0x1b8] sm:$0xff]  ;;  %v2739_v5 = vld [vmem:[%s3591_s20 + $0x1c0] sm:$0xff] }
 0x26f   : >> { %2736 = vst [vmem:[%s3587_s15 + $0x1b0] sm:$0xff] %v2735_v19  ;;  %2738 = vst [vmem:[%s3587_s15 + $0x1b8] sm:$0xff] %v2737_v61  ;;  %v2741_v25 = vld [vmem:[%s3591_s20 + $0x1c8] sm:$0xff]  ;;  %v2743_v39 = vld [vmem:[%s3591_s20 + $0x1d0] sm:$0xff] }
 0x270   : >> { %2740 = vst [vmem:[%s3587_s15 + $0x1c0] sm:$0xff] %v2739_v5  ;;  %v2745_v33 = vld [vmem:[%s3591_s20 + $0x1d8] sm:$0xff]  ;;  %2742 = vst [vmem:[%s3587_s15 + $0x1c8] sm:$0xff] %v2741_v25  ;;  %v2747_v49 = vld [vmem:[%s3591_s20 + $0x1e0] sm:$0xff] }
 0x271   : >> { %2744 = vst [vmem:[%s3587_s15 + $0x1d0] sm:$0xff] %v2743_v39  ;;  %2746 = vst [vmem:[%s3587_s15 + $0x1d8] sm:$0xff] %v2745_v33  ;;  %v2749_v48 = vld [vmem:[%s3591_s20 + $0x1e8] sm:$0xff]  ;;  %v2751_v56 = vld [vmem:[%s3591_s20 + $0x1f0] sm:$0xff] }
 0x272   : >> { %2748 = vst [vmem:[%s3587_s15 + $0x1e0] sm:$0xff] %v2747_v49  ;;  %2750 = vst [vmem:[%s3587_s15 + $0x1e8] sm:$0xff] %v2749_v48  ;;  %v2753_v14 = vld [vmem:[%s3591_s20 + $0x1f8] sm:$0xff]  ;;  %s5779_s20 = smov %s5591_s29 }
 0x273   : >> { %2752 = vst [vmem:[%s3587_s15 + $0x1f0] sm:$0xff] %v2751_v56  ;;  %2754 = vst [vmem:[%s3587_s15 + $0x1f8] sm:$0xff] %v2753_v14  ;;  %s5778_s15 = smov %s5594_s30 }
 0x274 PF: > { %s5699_s4 = sand.u32 63, %s5785_s14   ;;  %s2980_s5 = sshll.u32 %s5524_s25, 9 }
 0x275   : > { %s2766_s7 = scalar_lea.vmem %s4012_s6, %s2980_s5 [#allocation2]   ;;  %s2768_s8 = scalar_lea.vmem %s5518_s22, %s2980_s5  }
 0x276   : > { %p2974_p13 = scmp.le.s32.totalorder %s5699_s4, 0 }
 0x277   : > { %s3601_s9 = smov (!%p2974_p13), %s2768_s8   ;;  %s3605_s10 = smov (!%p2974_p13), %s2766_s7  }
 0x278   : > { %2859 = sbr.rel (%p2974_p13) target bundleno = 649 (0x289), region = 127  ;;  %s3609_s11 = smov (!%p2974_p13), 0  }
 0x279   : > { %s3613_s12 = smov (!%p2974_p13), 0  }
 0x27f LB: >> { %v2778_v11 = vld [vmem:[%s3607_s10] sm:$0xff]  ;;  %s2780_s14 = sadd.s32 1, %s3611_s11  ;;  %s2772_s12 = sadd.s32 1, %s3615_s12   ;;  %s3615_s12 = sphi %s3613_s12, %s2772_s12   ;;  %s3611_s11 = sphi %s3609_s11, %s3610_s11   ;;  %s3607_s10 = sphi %s3605_s10, %s2785_s10   ;;  %s3603_s9 = sphi %s3601_s9, %s2786_s9  }
 0x280   : >> { %2779 = vst [vmem:[%s3603_s9] sm:$0xff] %v2778_v11  ;;  %p2781_p0 = scmp.ge.s32.totalorder %s2780_s14, %s5699_s4  ;;  %p2771_p1 = scmp.ge.s32.totalorder %s2772_s12, %s5699_s4 }
 0x282   : >> { %s5789_s14 = smov (%p2781_p0, %s2780_s14), 0  ;;  %2774 = sbr.rel (!%p2771_p1) target bundleno = 639 (0x27f), region = 133 }
 0x283   : >> { %s2975_s6 = sshll.u32 %s5789_s14, 3  ;;  %s3610_s11 = smov %s5789_s14  }
 0x284   : >> { %s2785_s10 = scalar_lea.vmem %s2766_s7, %s2975_s6 [#allocation2]   ;;  %s2786_s9 = scalar_lea.vmem %s2768_s8, %s2975_s6  }
 0x289 PF: > { %p10_p2 = scmp.ge.s32.totalorder %s3652_s16, 4   ;;  %s5781_s12 = smov %s3579_s13 }
 0x28a   : > { %s5782_s13 = smov %s3660_s19  ;;  %s5783_s14 = smov %s3652_s16 }
 0x28b   :  { %12 = sbr.rel (!%p10_p2) target bundleno = 2 (0x2), region = 144 }

// kernel: forward.9
= control target key start
LH: loop header
LB: loop body
LE: loop exit
PB: predicated region body
PF: predicated region fallthrough
CT: control target
= control target key end

     0   :  { %v1594_v0 = vmov 0   ;;  %vm316_vm0 = vcmask 523264   ;;  %vm1372_vm1 = vcmask 521216   ;;  %s3028_s1 = inlined_call_operand.vmem [shape: bf16[192,64], index: 1, kind: input, shape index: {}]   ;;  %s3029_s0 = inlined_call_operand.vmem [shape: f32[526,192], index: 0, kind: input, shape index: {}]   ;;  %s3030_s2 = inlined_call_operand.vmem [shape: f32[1,64], index: 2, kind: input, shape index: {}]   ;;  %s3031_s3 = inlined_call_operand.vmem [shape: f32[526,64], index: 3, kind: output, shape index: {}]  }
   0x1   :  { %416 = vmatprep.subr.bf16.mxu0 %v1594_v0  ;;  %1424 = vmatprep.subr.bf16.mxu1 %v1594_v0  ;;  %v1449_v1 = vld [vmem:[%s3028_s1] sm:$0xff]   ;;  %v1450_v2 = vld [vmem:[%s3028_s1 + $0x8] sm:$0xff]   ;;  %v1451_v3 = vld [vmem:[%s3028_s1 + $0x10] sm:$0xff]  }
   0x2   :  { %417 = vmatpush1.bf16.msra.mxu0 %v1449_v1  ;;  %1436 = vmatpush1.bf16.msra.mxu1 %v1449_v1  ;;  %v1452_v4 = vld [vmem:[%s3028_s1 + $0x18] sm:$0xff]   ;;  %v16_v5 = vld [vmem:[%s3029_s0 + $0x8] sm:$0xff]  ;;  %v1453_v10 = vld [vmem:[%s3028_s1 + $0x20] sm:$0xff]  }
   0x3   :  { %418 = vmatprep.subr.bf16.mxu0 %v1594_v0  ;;  %1425 = vmatprep.subr.bf16.mxu1 %v1594_v0  ;;  %v18_v6 = vld [vmem:[%s3029_s0 + $0x18] sm:$0xff]  ;;  %v84_v7 = vld [vmem:[%s3029_s0 + $0x228] sm:$0xff]  ;;  %v1455_v13 = vld [vmem:[%s3028_s1 + $0x30] sm:$0xff]  }
   0x4   :  { %v148_v8 = vpack.c.bf16 %v18_v6, %v16_v5  ;;  %v86_v9 = vld [vmem:[%s3029_s0 + $0x238] sm:$0xff]  ;;  %v1454_v12 = vld [vmem:[%s3028_s1 + $0x28] sm:$0xff]   ;;  %v1457_v15 = vld [vmem:[%s3028_s1 + $0x40] sm:$0xff]  }
   0x5   :  { %v182_v11 = vpack.c.bf16 %v86_v9, %v84_v7  ;;  %v1456_v14 = vld [vmem:[%s3028_s1 + $0x38] sm:$0xff]   ;;  %v1458_v16 = vld [vmem:[%s3028_s1 + $0x48] sm:$0xff]   ;;  %v1459_v17 = vld [vmem:[%s3028_s1 + $0x50] sm:$0xff]  }
   0x6   :  { %419 = vmatpush1.bf16.msra.mxu0 %v1450_v2  ;;  %1437 = vmatpush1.bf16.msra.mxu1 %v1450_v2  ;;  %v1460_v18 = vld [vmem:[%s3028_s1 + $0x58] sm:$0xff]   ;;  %v15_v19 = vld [vmem:[%s3029_s0] sm:$0xff]  ;;  %v17_v20 = vld [vmem:[%s3029_s0 + $0x10] sm:$0xff] }
   0x7   :  { %420 = vmatprep.subr.bf16.mxu0 %v1594_v0  ;;  %1426 = vmatprep.subr.bf16.mxu1 %v1594_v0  ;;  %v83_v21 = vld [vmem:[%s3029_s0 + $0x220] sm:$0xff]  ;;  %v85_v22 = vld [vmem:[%s3029_s0 + $0x230] sm:$0xff]  ;;  %v20_v23 = vld [vmem:[%s3029_s0 + $0x28] sm:$0xff]  ;;  %v147_v27 = vpack.c.bf16 %v17_v20, %v15_v19 }
   0x8   :  { %1391 = vmatprep.mubr.msk.bf16.mxu0 %vm316_vm0, %v148_v8  ;;  %1408 = vmatprep.mubr.msk.bf16.mxu1 %vm316_vm0, %v182_v11  ;;  %v22_v24 = vld [vmem:[%s3029_s0 + $0x38] sm:$0xff]  ;;  %v88_v25 = vld [vmem:[%s3029_s0 + $0x248] sm:$0xff]  ;;  %v181_v28 = vpack.c.bf16 %v85_v22, %v83_v21  ;;  %v19_v31 = vld [vmem:[%s3029_s0 + $0x20] sm:$0xff] }
   0x9   :  { %v90_v26 = vld [vmem:[%s3029_s0 + $0x258] sm:$0xff]  ;;  %v150_v29 = vpack.c.bf16 %v22_v24, %v20_v23  ;;  %v21_v32 = vld [vmem:[%s3029_s0 + $0x30] sm:$0xff]  ;;  %v87_v33 = vld [vmem:[%s3029_s0 + $0x240] sm:$0xff] }
   0xa   :  { %421 = vmatpush1.bf16.msra.mxu0 %v1451_v3  ;;  %1438 = vmatpush1.bf16.msra.mxu1 %v1451_v3  ;;  %v184_v30 = vpack.c.bf16 %v90_v26, %v88_v25  ;;  %v89_v34 = vld [vmem:[%s3029_s0 + $0x250] sm:$0xff]  ;;  %v24_v35 = vld [vmem:[%s3029_s0 + $0x48] sm:$0xff]  ;;  %v26_v36 = vld [vmem:[%s3029_s0 + $0x58] sm:$0xff]  ;;  %v149_v39 = vpack.c.bf16 %v21_v32, %v19_v31 }
   0xb   :  { %422 = vmatprep.subr.bf16.mxu0 %v1594_v0  ;;  %1427 = vmatprep.subr.bf16.mxu1 %v1594_v0  ;;  %v92_v37 = vld [vmem:[%s3029_s0 + $0x268] sm:$0xff]  ;;  %v94_v38 = vld [vmem:[%s3029_s0 + $0x278] sm:$0xff]  ;;  %v183_v40 = vpack.c.bf16 %v89_v34, %v87_v33  ;;  %v152_v41 = vpack.c.bf16 %v26_v36, %v24_v35  ;;  %v23_v43 = vld [vmem:[%s3029_s0 + $0x40] sm:$0xff] }
   0xc   :  { %v186_v42 = vpack.c.bf16 %v94_v38, %v92_v37  ;;  %v25_v44 = vld [vmem:[%s3029_s0 + $0x50] sm:$0xff]  ;;  %v91_v45 = vld [vmem:[%s3029_s0 + $0x260] sm:$0xff]  ;;  %v28_v47 = vld [vmem:[%s3029_s0 + $0x68] sm:$0xff] }
   0xd   :  { %v93_v46 = vld [vmem:[%s3029_s0 + $0x270] sm:$0xff]  ;;  %v30_v48 = vld [vmem:[%s3029_s0 + $0x78] sm:$0xff]  ;;  %v96_v49 = vld [vmem:[%s3029_s0 + $0x288] sm:$0xff]  ;;  %v151_v51 = vpack.c.bf16 %v25_v44, %v23_v43 }
   0xe   :  { %423 = vmatpush1.bf16.msra.mxu0 %v1452_v4  ;;  %1439 = vmatpush1.bf16.msra.mxu1 %v1452_v4  ;;  %v98_v50 = vld [vmem:[%s3029_s0 + $0x298] sm:$0xff]  ;;  %v185_v52 = vpack.c.bf16 %v93_v46, %v91_v45  ;;  %v154_v53 = vpack.c.bf16 %v30_v48, %v28_v47  ;;  %v27_v55 = vld [vmem:[%s3029_s0 + $0x60] sm:$0xff]  ;;  %v29_v56 = vld [vmem:[%s3029_s0 + $0x70] sm:$0xff] }
   0xf   :  { %424 = vmatprep.subr.bf16.mxu0 %v1594_v0  ;;  %1428 = vmatprep.subr.bf16.mxu1 %v1594_v0  ;;  %v188_v54 = vpack.c.bf16 %v98_v50, %v96_v49  ;;  %v95_v57 = vld [vmem:[%s3029_s0 + $0x280] sm:$0xff]  ;;  %v97_v58 = vld [vmem:[%s3029_s0 + $0x290] sm:$0xff]  ;;  %v32_v59 = vld [vmem:[%s3029_s0 + $0x88] sm:$0xff]  ;;  %v153_v63 = vpack.c.bf16 %v29_v56, %v27_v55 }
  0x10   :  { %v34_v60 = vld [vmem:[%s3029_s0 + $0x98] sm:$0xff]  ;;  %v100_v61 = vld [vmem:[%s3029_s0 + $0x2a8] sm:$0xff]  ;;  %v31_v3 = vld [vmem:[%s3029_s0 + $0x80] sm:$0xff] }
  0x11   :  { %v102_v62 = vld [vmem:[%s3029_s0 + $0x2b8] sm:$0xff]  ;;  %v156_v1 = vpack.c.bf16 %v34_v60, %v32_v59  ;;  %v33_v4 = vld [vmem:[%s3029_s0 + $0x90] sm:$0xff]  ;;  %v99_v5 = vld [vmem:[%s3029_s0 + $0x2a0] sm:$0xff] }
  0x12   :  { %425 = vmatpush1.bf16.msra.mxu0 %v1453_v10  ;;  %1440 = vmatpush1.bf16.msra.mxu1 %v1453_v10  ;;  %v190_v2 = vpack.c.bf16 %v102_v62, %v100_v61  ;;  %v101_v6 = vld [vmem:[%s3029_s0 + $0x2b0] sm:$0xff]  ;;  %v36_v7 = vld [vmem:[%s3029_s0 + $0xa8] sm:$0xff]  ;;  %v38_v8 = vld [vmem:[%s3029_s0 + $0xb8] sm:$0xff]  ;;  %v155_v11 = vpack.c.bf16 %v33_v4, %v31_v3 }
  0x13   :  { %426 = vmatprep.subr.bf16.mxu0 %v1594_v0  ;;  %1429 = vmatprep.subr.bf16.mxu1 %v1594_v0  ;;  %v104_v9 = vld [vmem:[%s3029_s0 + $0x2c8] sm:$0xff]  ;;  %v106_v10 = vld [vmem:[%s3029_s0 + $0x2d8] sm:$0xff] }
  0x14   :  { %v40_v19 = vld [vmem:[%s3029_s0 + $0xc8] sm:$0xff]  ;;  %v42_v20 = vld [vmem:[%s3029_s0 + $0xd8] sm:$0xff] }
  0x15   :  { %v108_v21 = vld [vmem:[%s3029_s0 + $0x2e8] sm:$0xff]  ;;  %v110_v22 = vld [vmem:[%s3029_s0 + $0x2f8] sm:$0xff]  ;;  %v160_v25 = vpack.c.bf16 %v42_v20, %v40_v19 }
  0x16   :  { %427 = vmatpush1.bf16.msra.mxu0 %v1454_v12  ;;  %1441 = vmatpush1.bf16.msra.mxu1 %v1454_v12  ;;  %v189_v12 = vpack.c.bf16 %v101_v6, %v99_v5  ;;  %v194_v26 = vpack.c.bf16 %v110_v22, %v108_v21  ;;  %v44_v31 = vld [vmem:[%s3029_s0 + $0xe8] sm:$0xff]  ;;  %v46_v32 = vld [vmem:[%s3029_s0 + $0xf8] sm:$0xff] }
  0x17   :  { %428 = vmatprep.subr.bf16.mxu0 %v1594_v0  ;;  %1430 = vmatprep.subr.bf16.mxu1 %v1594_v0  ;;  %v112_v33 = vld [vmem:[%s3029_s0 + $0x308] sm:$0xff]  ;;  %v114_v34 = vld [vmem:[%s3029_s0 + $0x318] sm:$0xff]  ;;  %v162_v37 = vpack.c.bf16 %v46_v32, %v44_v31 }
  0x18   :  { %v196_v38 = vpack.c.bf16 %v114_v34, %v112_v33  ;;  %v48_v43 = vld [vmem:[%s3029_s0 + $0x108] sm:$0xff]  ;;  %v50_v44 = vld [vmem:[%s3029_s0 + $0x118] sm:$0xff] }
  0x19   :  { %v116_v45 = vld [vmem:[%s3029_s0 + $0x328] sm:$0xff]  ;;  %v118_v46 = vld [vmem:[%s3029_s0 + $0x338] sm:$0xff]  ;;  %v164_v49 = vpack.c.bf16 %v50_v44, %v48_v43 }
  0x1a   :  { %429 = vmatpush1.bf16.msra.mxu0 %v1455_v13  ;;  %1442 = vmatpush1.bf16.msra.mxu1 %v1455_v13  ;;  %v158_v13 = vpack.c.bf16 %v38_v8, %v36_v7  ;;  %v198_v50 = vpack.c.bf16 %v118_v46, %v116_v45  ;;  %v52_v55 = vld [vmem:[%s3029_s0 + $0x128] sm:$0xff]  ;;  %v54_v56 = vld [vmem:[%s3029_s0 + $0x138] sm:$0xff] }
  0x1b   :  { %430 = vmatprep.subr.bf16.mxu0 %v1594_v0  ;;  %1431 = vmatprep.subr.bf16.mxu1 %v1594_v0  ;;  %v166_v61 = vpack.c.bf16 %v54_v56, %v52_v55  ;;  %v56_v3 = vld [vmem:[%s3029_s0 + $0x148] sm:$0xff]  ;;  %v58_v4 = vld [vmem:[%s3029_s0 + $0x158] sm:$0xff] }
  0x1c   :  { %v124_v5 = vld [vmem:[%s3029_s0 + $0x368] sm:$0xff]  ;;  %v126_v6 = vld [vmem:[%s3029_s0 + $0x378] sm:$0xff] }
  0x1e   :  { %431 = vmatpush1.bf16.msra.mxu0 %v1456_v14  ;;  %1443 = vmatpush1.bf16.msra.mxu1 %v1456_v14  ;;  %v192_v14 = vpack.c.bf16 %v106_v10, %v104_v9  ;;  %v168_v9 = vpack.c.bf16 %v58_v4, %v56_v3  ;;  %v202_v10 = vpack.c.bf16 %v126_v6, %v124_v5 }
  0x1f   :  { %432 = vmatprep.subr.bf16.mxu0 %v1594_v0  ;;  %1432 = vmatprep.subr.bf16.mxu1 %v1594_v0 }
  0x22   :  { %433 = vmatpush1.bf16.msra.mxu0 %v1457_v15  ;;  %1444 = vmatpush1.bf16.msra.mxu1 %v1457_v15  ;;  %v35_v15 = vld [vmem:[%s3029_s0 + $0xa0] sm:$0xff] }
  0x23   :  { %434 = vmatprep.subr.bf16.mxu0 %v1594_v0  ;;  %1433 = vmatprep.subr.bf16.mxu1 %v1594_v0 }
  0x26   :  { %435 = vmatpush1.bf16.msra.mxu0 %v1458_v16  ;;  %1445 = vmatpush1.bf16.msra.mxu1 %v1458_v16  ;;  %v37_v16 = vld [vmem:[%s3029_s0 + $0xb0] sm:$0xff] }
  0x27   :  { %436 = vmatprep.subr.bf16.mxu0 %v1594_v0  ;;  %1434 = vmatprep.subr.bf16.mxu1 %v1594_v0  ;;  %v157_v23 = vpack.c.bf16 %v37_v16, %v35_v15  ;;  %v60_v15 = vld [vmem:[%s3029_s0 + $0x168] sm:$0xff]  ;;  %v62_v16 = vld [vmem:[%s3029_s0 + $0x178] sm:$0xff] }
  0x28   :  { %v170_v21 = vpack.c.bf16 %v62_v16, %v60_v15  ;;  %v79_v16 = vld [vmem:[%s3029_s0 + $0x200] sm:$0xff] }
  0x2a   :  { %437 = vmatpush1.bf16.msra.mxu0 %v1459_v17  ;;  %1446 = vmatpush1.bf16.msra.mxu1 %v1459_v17  ;;  %v103_v17 = vld [vmem:[%s3029_s0 + $0x2c0] sm:$0xff] }
  0x2b   :  { %438 = vmatprep.subr.bf16.mxu0 %v1594_v0  ;;  %1435 = vmatprep.subr.bf16.mxu1 %v1594_v0  ;;  %v187_v0 = vpack.c.bf16 %v97_v58, %v95_v57  ;;  %v120_v57 = vld [vmem:[%s3029_s0 + $0x348] sm:$0xff]  ;;  %v122_v58 = vld [vmem:[%s3029_s0 + $0x358] sm:$0xff] }
  0x2c   :  { %v200_v62 = vpack.c.bf16 %v122_v58, %v120_v57 }
  0x2e   :  { %439 = vmatpush1.bf16.msra.mxu0 %v1460_v18  ;;  %1447 = vmatpush1.bf16.msra.mxu1 %v1460_v18  ;;  %v105_v18 = vld [vmem:[%s3029_s0 + $0x2d0] sm:$0xff] }
  0x2f   :  { %v191_v24 = vpack.c.bf16 %v105_v18, %v103_v17  ;;  %v128_v17 = vld [vmem:[%s3029_s0 + $0x388] sm:$0xff]  ;;  %v130_v18 = vld [vmem:[%s3029_s0 + $0x398] sm:$0xff] }
  0x30   :  { %v204_v22 = vpack.c.bf16 %v130_v18, %v128_v17  ;;  %v81_v17 = vld [vmem:[%s3029_s0 + $0x210] sm:$0xff] }
  0x31   :  { %449 = vmatmul.mubr.bf16.vlgmr.msra.gmra.mrb[0].mxu0 %v147_v27  ;;  %585 = vmatmul.mubr.bf16.vlgmr.msra.gmra.mrb[0].mxu1 %v181_v28  ;;  %v39_v27 = vld [vmem:[%s3029_s0 + $0xc0] sm:$0xff]  ;;  %v41_v28 = vld [vmem:[%s3029_s0 + $0xd0] sm:$0xff]  ;;  %v179_v18 = vpack.c.bf16 %v81_v17, %v79_v16 }
  0x32   :  { %1392 = vmatprep.mubr.msk.bf16.mxu0 %vm316_vm0, %v150_v29  ;;  %1409 = vmatprep.mubr.msk.bf16.mxu1 %vm316_vm0, %v184_v30  ;;  %v107_v29 = vld [vmem:[%s3029_s0 + $0x2e0] sm:$0xff]  ;;  %v109_v30 = vld [vmem:[%s3029_s0 + $0x2f0] sm:$0xff]  ;;  %v159_v35 = vpack.c.bf16 %v41_v28, %v39_v27  ;;  %v64_v27 = vld [vmem:[%s3029_s0 + $0x188] sm:$0xff] }
  0x33   :  { %v193_v36 = vpack.c.bf16 %v109_v30, %v107_v29  ;;  %v66_v28 = vld [vmem:[%s3029_s0 + $0x198] sm:$0xff]  ;;  %v132_v29 = vld [vmem:[%s3029_s0 + $0x3a8] sm:$0xff] }
  0x34   :  { %v134_v30 = vld [vmem:[%s3029_s0 + $0x3b8] sm:$0xff]  ;;  %v172_v33 = vpack.c.bf16 %v66_v28, %v64_v27 }
  0x35   :  { %v206_v34 = vpack.c.bf16 %v134_v30, %v132_v29 }
  0x39   :  { %457 = vmatmul.mubr.bf16.gmra.mrb[4].mxu0 %v149_v39  ;;  %593 = vmatmul.mubr.bf16.gmra.mrb[4].mxu1 %v183_v40  ;;  %v43_v39 = vld [vmem:[%s3029_s0 + $0xe0] sm:$0xff]  ;;  %v45_v40 = vld [vmem:[%s3029_s0 + $0xf0] sm:$0xff] }
  0x3a   :  { %1393 = vmatprep.mubr.msk.bf16.mxu0 %vm316_vm0, %v152_v41  ;;  %1410 = vmatprep.mubr.msk.bf16.mxu1 %vm316_vm0, %v186_v42  ;;  %v111_v41 = vld [vmem:[%s3029_s0 + $0x300] sm:$0xff]  ;;  %v113_v42 = vld [vmem:[%s3029_s0 + $0x310] sm:$0xff]  ;;  %v161_v47 = vpack.c.bf16 %v45_v40, %v43_v39  ;;  %v68_v39 = vld [vmem:[%s3029_s0 + $0x1a8] sm:$0xff] }
  0x3b   :  { %v195_v48 = vpack.c.bf16 %v113_v42, %v111_v41  ;;  %v70_v40 = vld [vmem:[%s3029_s0 + $0x1b8] sm:$0xff]  ;;  %v136_v41 = vld [vmem:[%s3029_s0 + $0x3c8] sm:$0xff] }
  0x3c   :  { %v138_v42 = vld [vmem:[%s3029_s0 + $0x3d8] sm:$0xff]  ;;  %v174_v45 = vpack.c.bf16 %v70_v40, %v68_v39 }
  0x3d   :  { %v208_v46 = vpack.c.bf16 %v138_v42, %v136_v41 }
  0x41   :  { %465 = vmatmul.mubr.bf16.gmra.mrb[8].mxu0 %v151_v51  ;;  %601 = vmatmul.mubr.bf16.gmra.mrb[8].mxu1 %v185_v52  ;;  %v47_v51 = vld [vmem:[%s3029_s0 + $0x100] sm:$0xff]  ;;  %v49_v52 = vld [vmem:[%s3029_s0 + $0x110] sm:$0xff] }
  0x42   :  { %1394 = vmatprep.mubr.msk.bf16.mxu0 %vm316_vm0, %v154_v53  ;;  %1411 = vmatprep.mubr.msk.bf16.mxu1 %vm316_vm0, %v188_v54  ;;  %v115_v53 = vld [vmem:[%s3029_s0 + $0x320] sm:$0xff]  ;;  %v117_v54 = vld [vmem:[%s3029_s0 + $0x330] sm:$0xff]  ;;  %v163_v59 = vpack.c.bf16 %v49_v52, %v47_v51  ;;  %v72_v51 = vld [vmem:[%s3029_s0 + $0x1c8] sm:$0xff] }
  0x43   :  { %v197_v60 = vpack.c.bf16 %v117_v54, %v115_v53  ;;  %v74_v52 = vld [vmem:[%s3029_s0 + $0x1d8] sm:$0xff]  ;;  %v140_v53 = vld [vmem:[%s3029_s0 + $0x3e8] sm:$0xff] }
  0x44   :  { %v142_v54 = vld [vmem:[%s3029_s0 + $0x3f8] sm:$0xff]  ;;  %v176_v57 = vpack.c.bf16 %v74_v52, %v72_v51 }
  0x45   :  { %v210_v58 = vpack.c.bf16 %v142_v54, %v140_v53 }
  0x49   :  { %473 = vmatmul.mubr.bf16.gmra.mrb[12].mxu0 %v153_v63  ;;  %609 = vmatmul.mubr.bf16.gmra.mrb[12].mxu1 %v187_v0  ;;  %v51_v63 = vld [vmem:[%s3029_s0 + $0x120] sm:$0xff]  ;;  %v53_v0 = vld [vmem:[%s3029_s0 + $0x130] sm:$0xff] }
  0x4a   :  { %1395 = vmatprep.mubr.msk.bf16.mxu0 %vm316_vm0, %v156_v1  ;;  %1412 = vmatprep.mubr.msk.bf16.mxu1 %vm316_vm0, %v190_v2  ;;  %v119_v1 = vld [vmem:[%s3029_s0 + $0x340] sm:$0xff]  ;;  %v121_v2 = vld [vmem:[%s3029_s0 + $0x350] sm:$0xff]  ;;  %v165_v7 = vpack.c.bf16 %v53_v0, %v51_v63  ;;  %v76_v63 = vld [vmem:[%s3029_s0 + $0x1e8] sm:$0xff] }
  0x4b   :  { %v199_v8 = vpack.c.bf16 %v121_v2, %v119_v1  ;;  %v78_v0 = vld [vmem:[%s3029_s0 + $0x1f8] sm:$0xff]  ;;  %v144_v1 = vld [vmem:[%s3029_s0 + $0x408] sm:$0xff] }
  0x4c   :  { %v146_v2 = vld [vmem:[%s3029_s0 + $0x418] sm:$0x3f]  ;;  %v178_v5 = vpack.c.bf16 %v78_v0, %v76_v63 }
  0x4d   :  { %v212_v6 = vpack.c.bf16 %v146_v2, %v144_v1 }
  0x51   :  { %481 = vmatmul.mubr.bf16.gmra.mrb[16].mxu0 %v155_v11  ;;  %617 = vmatmul.mubr.bf16.gmra.mrb[16].mxu1 %v189_v12  ;;  %v55_v11 = vld [vmem:[%s3029_s0 + $0x140] sm:$0xff]  ;;  %v57_v12 = vld [vmem:[%s3029_s0 + $0x150] sm:$0xff] }
  0x52   :  { %1396 = vmatprep.mubr.msk.bf16.mxu0 %vm316_vm0, %v158_v13  ;;  %1413 = vmatprep.mubr.msk.bf16.mxu1 %vm316_vm0, %v192_v14  ;;  %v123_v13 = vld [vmem:[%s3029_s0 + $0x360] sm:$0xff]  ;;  %v125_v14 = vld [vmem:[%s3029_s0 + $0x370] sm:$0xff]  ;;  %v167_v19 = vpack.c.bf16 %v57_v12, %v55_v11  ;;  %v80_v11 = vld [vmem:[%s3029_s0 + $0x208] sm:$0xff] }
  0x53   :  { %v201_v20 = vpack.c.bf16 %v125_v14, %v123_v13  ;;  %v82_v12 = vld [vmem:[%s3029_s0 + $0x218] sm:$0xff] }
  0x54   :  { %v180_v15 = vpack.c.bf16 %v82_v12, %v80_v11 }
  0x59   :  { %489 = vmatmul.mubr.bf16.gmra.mrb[20].mxu0 %v157_v23  ;;  %625 = vmatmul.mubr.bf16.gmra.mrb[20].mxu1 %v191_v24  ;;  %v59_v23 = vld [vmem:[%s3029_s0 + $0x160] sm:$0xff]  ;;  %v61_v24 = vld [vmem:[%s3029_s0 + $0x170] sm:$0xff] }
  0x5a   :  { %1397 = vmatprep.mubr.msk.bf16.mxu0 %vm316_vm0, %v160_v25  ;;  %1414 = vmatprep.mubr.msk.bf16.mxu1 %vm316_vm0, %v194_v26  ;;  %v127_v25 = vld [vmem:[%s3029_s0 + $0x380] sm:$0xff]  ;;  %v129_v26 = vld [vmem:[%s3029_s0 + $0x390] sm:$0xff]  ;;  %v169_v31 = vpack.c.bf16 %v61_v24, %v59_v23 }
  0x5b   :  { %v203_v32 = vpack.c.bf16 %v129_v26, %v127_v25 }
  0x61   :  { %497 = vmatmul.mubr.bf16.gmra.mrb[24].mxu0 %v159_v35  ;;  %633 = vmatmul.mubr.bf16.gmra.mrb[24].mxu1 %v193_v36  ;;  %v63_v35 = vld [vmem:[%s3029_s0 + $0x180] sm:$0xff]  ;;  %v65_v36 = vld [vmem:[%s3029_s0 + $0x190] sm:$0xff] }
  0x62   :  { %1398 = vmatprep.mubr.msk.bf16.mxu0 %vm316_vm0, %v162_v37  ;;  %1415 = vmatprep.mubr.msk.bf16.mxu1 %vm316_vm0, %v196_v38  ;;  %v131_v37 = vld [vmem:[%s3029_s0 + $0x3a0] sm:$0xff]  ;;  %v133_v38 = vld [vmem:[%s3029_s0 + $0x3b0] sm:$0xff]  ;;  %v171_v43 = vpack.c.bf16 %v65_v36, %v63_v35 }
  0x63   :  { %v205_v44 = vpack.c.bf16 %v133_v38, %v131_v37 }
  0x69   :  { %505 = vmatmul.mubr.bf16.gmra.mrb[28].mxu0 %v161_v47  ;;  %641 = vmatmul.mubr.bf16.gmra.mrb[28].mxu1 %v195_v48  ;;  %v67_v47 = vld [vmem:[%s3029_s0 + $0x1a0] sm:$0xff]  ;;  %v69_v48 = vld [vmem:[%s3029_s0 + $0x1b0] sm:$0xff] }
  0x6a   :  { %1399 = vmatprep.mubr.msk.bf16.mxu0 %vm316_vm0, %v164_v49  ;;  %1416 = vmatprep.mubr.msk.bf16.mxu1 %vm316_vm0, %v198_v50  ;;  %v135_v49 = vld [vmem:[%s3029_s0 + $0x3c0] sm:$0xff]  ;;  %v137_v50 = vld [vmem:[%s3029_s0 + $0x3d0] sm:$0xff]  ;;  %v173_v55 = vpack.c.bf16 %v69_v48, %v67_v47 }
  0x6b   :  { %v207_v56 = vpack.c.bf16 %v137_v50, %v135_v49 }
  0x71   :  { %513 = vmatmul.mubr.bf16.gmra.mrb[32].mxu0 %v163_v59  ;;  %649 = vmatmul.mubr.bf16.gmra.mrb[32].mxu1 %v197_v60  ;;  %v71_v59 = vld [vmem:[%s3029_s0 + $0x1c0] sm:$0xff]  ;;  %v73_v60 = vld [vmem:[%s3029_s0 + $0x1d0] sm:$0xff] }
  0x72   :  { %1400 = vmatprep.mubr.msk.bf16.mxu0 %vm316_vm0, %v166_v61  ;;  %1417 = vmatprep.mubr.msk.bf16.mxu1 %vm316_vm0, %v200_v62  ;;  %v139_v61 = vld [vmem:[%s3029_s0 + $0x3e0] sm:$0xff]  ;;  %v141_v62 = vld [vmem:[%s3029_s0 + $0x3f0] sm:$0xff]  ;;  %v175_v3 = vpack.c.bf16 %v73_v60, %v71_v59 }
  0x73   :  { %v209_v4 = vpack.c.bf16 %v141_v62, %v139_v61 }
  0x79   :  { %521 = vmatmul.mubr.bf16.gmra.mrb[36].mxu0 %v165_v7  ;;  %657 = vmatmul.mubr.bf16.gmra.mrb[36].mxu1 %v199_v8  ;;  %v75_v7 = vld [vmem:[%s3029_s0 + $0x1e0] sm:$0xff]  ;;  %v77_v8 = vld [vmem:[%s3029_s0 + $0x1f0] sm:$0xff] }
  0x7a   :  { %1401 = vmatprep.mubr.msk.bf16.mxu0 %vm316_vm0, %v168_v9  ;;  %1418 = vmatprep.mubr.msk.bf16.mxu1 %vm316_vm0, %v202_v10  ;;  %v143_v9 = vld [vmem:[%s3029_s0 + $0x400] sm:$0xff]  ;;  %v145_v10 = vld [vmem:[%s3029_s0 + $0x410] sm:$0x3f]  ;;  %v177_v13 = vpack.c.bf16 %v77_v8, %v75_v7 }
  0x7b   :  { %v211_v14 = vpack.c.bf16 %v145_v10, %v143_v9 }
  0x81   :  { %529 = vmatmul.mubr.bf16.gmra.mrb[40].mxu0 %v167_v19  ;;  %665 = vmatmul.mubr.bf16.gmra.mrb[40].mxu1 %v201_v20  ;;  %v2107_v19 = vld [vmem:[%s3030_s2] ss:$0 sm:$0xff] }
  0x82   :  { %1402 = vmatprep.mubr.msk.bf16.mxu0 %vm316_vm0, %v170_v21  ;;  %1419 = vmatprep.mubr.msk.bf16.mxu1 %vm316_vm0, %v204_v22 }
  0x89   :  { %537 = vmatmul.mubr.bf16.gmra.mrb[44].mxu0 %v169_v31  ;;  %673 = vmatmul.mubr.bf16.gmra.mrb[44].mxu1 %v203_v32 }
  0x8a   :  { %1403 = vmatprep.mubr.msk.bf16.mxu0 %vm316_vm0, %v172_v33  ;;  %1420 = vmatprep.mubr.msk.bf16.mxu1 %vm316_vm0, %v206_v34 }
  0x91   :  { %545 = vmatmul.mubr.bf16.gmra.mrb[48].mxu0 %v171_v43  ;;  %681 = vmatmul.mubr.bf16.gmra.mrb[48].mxu1 %v205_v44 }
  0x92   :  { %1404 = vmatprep.mubr.msk.bf16.mxu0 %vm316_vm0, %v174_v45  ;;  %1421 = vmatprep.mubr.msk.bf16.mxu1 %vm316_vm0, %v208_v46 }
  0x99   :  { %553 = vmatmul.mubr.bf16.gmra.mrb[52].mxu0 %v173_v55  ;;  %689 = vmatmul.mubr.bf16.gmra.mrb[52].mxu1 %v207_v56 }
  0x9a   :  { %1405 = vmatprep.mubr.msk.bf16.mxu0 %vm316_vm0, %v176_v57  ;;  %1422 = vmatprep.mubr.msk.bf16.mxu1 %vm316_vm0, %v210_v58 }
  0xa1   :  { %561 = vmatmul.mubr.bf16.gmra.mrb[56].mxu0 %v175_v3  ;;  %697 = vmatmul.mubr.bf16.gmra.mrb[56].mxu1 %v209_v4 }
  0xa2   :  { %1406 = vmatprep.mubr.msk.bf16.mxu0 %vm316_vm0, %v178_v5  ;;  %1423 = vmatprep.mubr.msk.bf16.mxu1 %vm316_vm0, %v212_v6 }
  0xa9   :  { %569 = vmatmul.mubr.bf16.gmra.mrb[60].mxu0 %v177_v13  ;;  %705 = vmatmul.mubr.bf16.gmra.mrb[60].mxu1 %v211_v14 }
  0xaa   :  { %1407 = vmatprep.mubr.msk.bf16.mxu0 %vm316_vm0, %v180_v15 }
  0xb1   :  { %577 = vmatmul.mubr.bf16.gmra.mrb[64].mxu0 %v179_v18 }
 0x104   :  { %v450_v20 = vpop.f32.mrb[0].mxu0  ;;  %v586_v21 = vpop.f32.mrb[0].mxu1 }
 0x105   :  { %v2110_v22 = vadd.f32 %v2107_v19, %v450_v20  ;;  %v2113_v23 = vadd.f32 %v2107_v19, %v586_v21  ;;  %v452_v24 = vpop.f32.mrb[1].mxu0  ;;  %v588_v25 = vpop.f32.mrb[1].mxu1 }
 0x106   :  { %v453_v26 = vpop.f32.mrb[2].mxu0  ;;  %v589_v27 = vpop.f32.mrb[2].mxu1 }
 0x107   :  { %v779_v28 = vmul.f32 0.044715, %v2110_v22  ;;  %v813_v29 = vmul.f32 0.044715, %v2113_v23  ;;  %v2118_v30 = vadd.f32 %v2107_v19, %v453_v26  ;;  %v2121_v31 = vadd.f32 %v2107_v19, %v589_v27  ;;  %v455_v32 = vpop.f32.mrb[3].mxu0  ;;  %v591_v33 = vpop.f32.mrb[3].mxu1 }
 0x108   :  { %v713_v20 = vmul.f32 0.5, %v2110_v22 }
 0x109   :  { %v845_v34 = vmul.f32 %v779_v28, %v2110_v22  ;;  %v879_v35 = vmul.f32 %v813_v29, %v2113_v23  ;;  %v780_v36 = vmul.f32 0.044715, %v2118_v30  ;;  %v814_v37 = vmul.f32 0.044715, %v2121_v31 }
 0x10a   :  { %v747_v28 = vmul.f32 0.5, %v2113_v23 }
 0x10b   :  { %v911_v38 = vmul.f32 %v845_v34, %v2110_v22  ;;  %v945_v39 = vmul.f32 %v879_v35, %v2113_v23  ;;  %v846_v40 = vmul.f32 %v780_v36, %v2118_v30  ;;  %v880_v41 = vmul.f32 %v814_v37, %v2121_v31 }
 0x10c   :  { %v458_v42 = vpop.f32.mrb[4].mxu0  ;;  %v594_v43 = vpop.f32.mrb[4].mxu1  ;;  %v714_v37 = vmul.f32 0.5, %v2118_v30 }
 0x10d   :  { %v977_v44 = vadd.f32 %v911_v38, %v2110_v22  ;;  %v1011_v45 = vadd.f32 %v945_v39, %v2113_v23  ;;  %v2134_v46 = vadd.f32 %v2107_v19, %v458_v42  ;;  %v2137_v47 = vadd.f32 %v2107_v19, %v594_v43  ;;  %v460_v48 = vpop.f32.mrb[5].mxu0  ;;  %v596_v49 = vpop.f32.mrb[5].mxu1 }
 0x10e   :  { %v912_v50 = vmul.f32 %v846_v40, %v2118_v30  ;;  %v946_v51 = vmul.f32 %v880_v41, %v2121_v31  ;;  %v461_v52 = vpop.f32.mrb[6].mxu0  ;;  %v597_v53 = vpop.f32.mrb[6].mxu1 }
 0x10f   :  { %v1043_v54 = vmul.f32 0.7978846, %v977_v44  ;;  %v1077_v55 = vmul.f32 0.7978846, %v1011_v45  ;;  %v781_v58 = vmul.f32 0.044715, %v2134_v46  ;;  %v2146_v62 = vadd.f32 %v2107_v19, %v461_v52 }
 0x110   :  { %v978_v56 = vadd.f32 %v912_v50, %v2118_v30  ;;  %v1012_v57 = vadd.f32 %v946_v51, %v2121_v31  ;;  %v815_v59 = vmul.f32 0.044715, %v2137_v47  ;;  %v463_v60 = vpop.f32.mrb[7].mxu0  ;;  %v599_v61 = vpop.f32.mrb[7].mxu1  ;;  %v2149_v63 = vadd.f32 %v2107_v19, %v597_v53 }
 0x111   :  { %1461 = vtanh.f32 %v1043_v54  ;;  %v847_v2 = vmul.f32 %v781_v58, %v2134_v46  ;;  %v782_v4 = vmul.f32 0.044715, %v2146_v62  ;;  %v748_v51 = vmul.f32 0.5, %v2121_v31 }
 0x112   :  { %1463 = vtanh.f32 %v1077_v55  ;;  %v1044_v0 = vmul.f32 0.7978846, %v978_v56  ;;  %v1078_v1 = vmul.f32 0.7978846, %v1012_v57  ;;  %v881_v3 = vmul.f32 %v815_v59, %v2137_v47 }
 0x113   :  { %v913_v5 = vmul.f32 %v847_v2, %v2134_v46  ;;  %v816_v6 = vmul.f32 0.044715, %v2149_v63  ;;  %v848_v10 = vmul.f32 %v782_v4, %v2146_v62 }
 0x114   :  { %1465 = vtanh.f32 %v1044_v0  ;;  %v466_v7 = vpop.f32.mrb[8].mxu0  ;;  %v602_v8 = vpop.f32.mrb[8].mxu1  ;;  %v947_v9 = vmul.f32 %v881_v3, %v2137_v47 }
 0x115   :  { %1467 = vtanh.f32 %v1078_v1  ;;  %v2159_v11 = vadd.f32 %v2107_v19, %v466_v7  ;;  %v468_v12 = vpop.f32.mrb[9].mxu0  ;;  %v604_v13 = vpop.f32.mrb[9].mxu1  ;;  %v979_v14 = vadd.f32 %v913_v5, %v2134_v46  ;;  %v882_v15 = vmul.f32 %v816_v6, %v2149_v63 }
 0x116   :  { %v2164_v16 = vadd.f32 %v2107_v19, %v602_v8  ;;  %v469_v17 = vpop.f32.mrb[10].mxu0  ;;  %v605_v18 = vpop.f32.mrb[10].mxu1  ;;  %v1013_v21 = vadd.f32 %v947_v9, %v2137_v47  ;;  %v914_v24 = vmul.f32 %v848_v10, %v2146_v62 }
 0x117   :  { %v783_v25 = vmul.f32 0.044715, %v2159_v11  ;;  %v471_v26 = vpop.f32.mrb[11].mxu0  ;;  %v607_v27 = vpop.f32.mrb[11].mxu1  ;;  %v1045_v29 = vmul.f32 0.7978846, %v979_v14  ;;  %v948_v32 = vmul.f32 %v882_v15, %v2149_v63  ;;  %v2176_v36 = vadd.f32 %v2107_v19, %v469_v17 }
 0x118   :  { %v817_v33 = vmul.f32 0.044715, %v2164_v16  ;;  %v1079_v34 = vmul.f32 0.7978846, %v1013_v21  ;;  %v980_v35 = vadd.f32 %v914_v24, %v2146_v62  ;;  %v2183_v42 = vadd.f32 %v2107_v19, %v605_v18 }
 0x119   :  { %v849_v22 = vmul.f32 %v783_v25, %v2159_v11  ;;  %1469 = vtanh.f32 %v1045_v29  ;;  %v1014_v38 = vadd.f32 %v948_v32, %v2149_v63  ;;  %v784_v30 = vmul.f32 0.044715, %v2176_v36 }
 0x11a   :  { %v883_v23 = vmul.f32 %v817_v33, %v2164_v16  ;;  %1471 = vtanh.f32 %v1079_v34  ;;  %v1046_v40 = vmul.f32 0.7978846, %v980_v35  ;;  %v818_v31 = vmul.f32 0.044715, %v2183_v42 }
 0x11b   :  { %v1462_v39 = vpop.eup %1461  ;;  %v915_v41 = vmul.f32 %v849_v22, %v2159_v11  ;;  %v1080_v45 = vmul.f32 0.7978846, %v1014_v38  ;;  %v850_v58 = vmul.f32 %v784_v30, %v2176_v36  ;;  %v715_v15 = vmul.f32 0.5, %v2134_v46 }
 0x11c   :  { %v1464_v43 = vpop.eup %1463  ;;  %v1175_v44 = vadd.f32 1.0, %v1462_v39  ;;  %v949_v48 = vmul.f32 %v883_v23, %v2164_v16  ;;  %v474_v49 = vpop.f32.mrb[12].mxu0  ;;  %1473 = vtanh.f32 %v1046_v40  ;;  %v884_v12 = vmul.f32 %v818_v31, %v2183_v42 }
 0x11d   :  { %v1209_v50 = vadd.f32 1.0, %v1464_v43  ;;  %v981_v52 = vadd.f32 %v915_v41, %v2159_v11  ;;  %v610_v53 = vpop.f32.mrb[12].mxu1  ;;  %v476_v54 = vpop.f32.mrb[13].mxu0  ;;  %1475 = vtanh.f32 %v1080_v45  ;;  %v916_v6 = vmul.f32 %v850_v58, %v2176_v36 }
 0x11e   :  { %v1466_v55 = vpop.eup %1465  ;;  %v1241_v56 = vmul.f32 %v1175_v44, %v713_v20  ;;  %v1015_v57 = vadd.f32 %v949_v48, %v2164_v16  ;;  %v612_v59 = vpop.f32.mrb[13].mxu1  ;;  %v2198_v7 = vadd.f32 %v2107_v19, %v474_v49  ;;  %v2206_v13 = vadd.f32 %v2107_v19, %v610_v53 }
 0x11f   :  { %v477_v60 = vpop.f32.mrb[14].mxu0  ;;  %v1468_v61 = vpop.eup %1467  ;;  %v1275_v0 = vmul.f32 %v1209_v50, %v747_v28  ;;  %v1176_v1 = vadd.f32 1.0, %v1466_v55  ;;  %v1047_v2 = vmul.f32 0.7978846, %v981_v52  ;;  %v982_v17 = vadd.f32 %v916_v6, %v2176_v36 }
 0x120   :  { %v613_v3 = vpop.f32.mrb[14].mxu1  ;;  %1307 = vst.msk [vmem:[%s3031_s3] sm:$0xff] %vm316_vm0, %v1241_v56  ;;  %v1210_v4 = vadd.f32 1.0, %v1468_v61  ;;  %v1081_v5 = vmul.f32 0.7978846, %v1015_v57  ;;  %v479_v8 = vpop.f32.mrb[15].mxu0  ;;  %v950_v20 = vmul.f32 %v884_v12, %v2183_v42  ;;  %v2225_v28 = vadd.f32 %v2107_v19, %v477_v60 }
 0x121   :  { %v615_v9 = vpop.f32.mrb[15].mxu1  ;;  %1341 = vst.msk [vmem:[%s3031_s3 + $0x110] sm:$0xff] %vm316_vm0, %v1275_v0  ;;  %v1242_v10 = vmul.f32 %v1176_v1, %v714_v37  ;;  %1477 = vtanh.f32 %v1047_v2  ;;  %v749_v18 = vmul.f32 0.5, %v2137_v47  ;;  %v785_v21 = vmul.f32 0.044715, %v2198_v7 }
 0x122   :  { %v1276_v14 = vmul.f32 %v1210_v4, %v748_v51  ;;  %1479 = vtanh.f32 %v1081_v5  ;;  %v819_v24 = vmul.f32 0.044715, %v2206_v13  ;;  %v716_v46 = vmul.f32 0.5, %v2146_v62 }
 0x123   :  { %1308 = vst.msk [vmem:[%s3031_s3 + $0x8] sm:$0xff] %vm316_vm0, %v1242_v10  ;;  %v1470_v25 = vpop.eup %1469  ;;  %v750_v26 = vmul.f32 0.5, %v2149_v63  ;;  %v1048_v27 = vmul.f32 0.7978846, %v982_v17  ;;  %v1016_v34 = vadd.f32 %v950_v20, %v2183_v42  ;;  %v851_v35 = vmul.f32 %v785_v21, %v2198_v7 }
 0x124   :  { %1342 = vst.msk [vmem:[%s3031_s3 + $0x118] sm:$0xff] %vm316_vm0, %v1276_v14  ;;  %v482_v47 = vpop.f32.mrb[16].mxu0  ;;  %v618_v29 = vpop.f32.mrb[16].mxu1  ;;  %v1177_v33 = vadd.f32 1.0, %v1470_v25  ;;  %v885_v22 = vmul.f32 %v819_v24, %v2206_v13  ;;  %v786_v62 = vmul.f32 0.044715, %v2225_v28  ;;  %v2232_v63 = vadd.f32 %v2107_v19, %v613_v3 }
 0x125   :  { %v1472_v32 = vpop.eup %1471  ;;  %v484_v37 = vpop.f32.mrb[17].mxu0  ;;  %1481 = vtanh.f32 %v1048_v27  ;;  %v1082_v44 = vmul.f32 0.7978846, %v1016_v34  ;;  %v917_v45 = vmul.f32 %v851_v35, %v2198_v7  ;;  %v717_v53 = vmul.f32 0.5, %v2159_v11 }
 0x126   :  { %v620_v38 = vpop.f32.mrb[17].mxu1  ;;  %v1211_v23 = vadd.f32 1.0, %v1472_v32  ;;  %v485_v39 = vpop.f32.mrb[18].mxu0  ;;  %v1243_v43 = vmul.f32 %v1177_v33, %v715_v15  ;;  %v951_v48 = vmul.f32 %v885_v22, %v2206_v13  ;;  %v852_v54 = vmul.f32 %v786_v62, %v2225_v28 }
 0x127   :  { %v621_v40 = vpop.f32.mrb[18].mxu1  ;;  %v1474_v41 = vpop.eup %1473  ;;  %1483 = vtanh.f32 %v1082_v44  ;;  %v983_v56 = vadd.f32 %v917_v45, %v2198_v7  ;;  %v820_v59 = vmul.f32 0.044715, %v2232_v63  ;;  %v2251_v60 = vadd.f32 %v2107_v19, %v482_v47 }
 0x128   :  { %v487_v30 = vpop.f32.mrb[19].mxu0  ;;  %v623_v49 = vpop.f32.mrb[19].mxu1  ;;  %v1277_v51 = vmul.f32 %v1211_v23, %v749_v18  ;;  %v1178_v52 = vadd.f32 1.0, %v1474_v41  ;;  %1309 = vst.msk [vmem:[%s3031_s3 + $0x10] sm:$0xff] %vm316_vm0, %v1243_v43  ;;  %v1017_v57 = vadd.f32 %v951_v48, %v2206_v13  ;;  %v918_v11 = vmul.f32 %v852_v54, %v2225_v28 }
 0x129   :  { %v1476_v50 = vpop.eup %1475  ;;  %v1049_v1 = vmul.f32 0.7978846, %v983_v56  ;;  %v2254_v31 = vadd.f32 %v2107_v19, %v618_v29  ;;  %v751_v5 = vmul.f32 0.5, %v2164_v16  ;;  %v886_v8 = vmul.f32 %v820_v59, %v2232_v63 }
 0x12a   :  { %v1212_v55 = vadd.f32 1.0, %v1476_v50  ;;  %1343 = vst.msk [vmem:[%s3031_s3 + $0x120] sm:$0xff] %vm316_vm0, %v1277_v51  ;;  %v1244_v58 = vmul.f32 %v1178_v52, %v716_v46  ;;  %v1083_v2 = vmul.f32 0.7978846, %v1017_v57  ;;  %v984_v6 = vadd.f32 %v918_v11, %v2225_v28 }
 0x12b   :  { %v1478_v61 = vpop.eup %1477  ;;  %v718_v14 = vmul.f32 0.5, %v2176_v36  ;;  %1485 = vtanh.f32 %v1049_v1  ;;  %v787_v15 = vmul.f32 0.044715, %v2251_v60  ;;  %v952_v21 = vmul.f32 %v886_v8, %v2232_v63 }
 0x12c   :  { %v1278_v0 = vmul.f32 %v1212_v55, %v750_v26  ;;  %v1480_v3 = vpop.eup %1479  ;;  %1310 = vst.msk [vmem:[%s3031_s3 + $0x18] sm:$0xff] %vm316_vm0, %v1244_v58  ;;  %v1179_v4 = vadd.f32 1.0, %v1478_v61  ;;  %v490_v9 = vpop.f32.mrb[20].mxu0  ;;  %1487 = vtanh.f32 %v1083_v2  ;;  %v1050_v20 = vmul.f32 0.7978846, %v984_v6 }
 0x12d   :  { %v626_v10 = vpop.f32.mrb[20].mxu1  ;;  %v1213_v12 = vadd.f32 1.0, %v1480_v3  ;;  %v492_v17 = vpop.f32.mrb[21].mxu0  ;;  %v853_v26 = vmul.f32 %v787_v15, %v2251_v60  ;;  %v821_v27 = vmul.f32 0.044715, %v2254_v31  ;;  %v2275_v36 = vadd.f32 %v2107_v19, %v485_v39 }
 0x12e   :  { %1344 = vst.msk [vmem:[%s3031_s3 + $0x128] sm:$0xff] %vm316_vm0, %v1278_v0  ;;  %v628_v18 = vpop.f32.mrb[21].mxu1  ;;  %v1245_v16 = vmul.f32 %v1179_v4, %v717_v53  ;;  %v493_v24 = vpop.f32.mrb[22].mxu0  ;;  %1489 = vtanh.f32 %v1050_v20  ;;  %v1018_v33 = vadd.f32 %v952_v21, %v2232_v63  ;;  %v2283_v34 = vadd.f32 %v2107_v19, %v621_v40 }
 0x12f   :  { %v2270_v25 = vpop.f32.mrb[22].mxu1  ;;  %v1279_v46 = vmul.f32 %v1213_v12, %v751_v5  ;;  %v495_v47 = vpop.f32.mrb[23].mxu0  ;;  %v2286_v35 = vadd.f32 %v2107_v19, %v490_v9  ;;  %v752_v37 = vmul.f32 0.5, %v2183_v42  ;;  %v919_v38 = vmul.f32 %v853_v26, %v2251_v60 }
 0x130   :  { %v631_v29 = vpop.f32.mrb[23].mxu1  ;;  %v1482_v32 = vpop.eup %1481  ;;  %1311 = vst.msk [vmem:[%s3031_s3 + $0x20] sm:$0xff] %vm316_vm0, %v1245_v16  ;;  %v887_v23 = vmul.f32 %v821_v27, %v2254_v31  ;;  %v719_v62 = vmul.f32 0.5, %v2198_v7  ;;  %v753_v39 = vmul.f32 0.5, %v2206_v13  ;;  %v1084_v40 = vmul.f32 0.7978846, %v1018_v33 }
 0x131   :  { %1345 = vst.msk [vmem:[%s3031_s3 + $0x130] sm:$0xff] %vm316_vm0, %v1279_v46  ;;  %v1180_v22 = vadd.f32 1.0, %v1482_v32  ;;  %v788_v41 = vmul.f32 0.044715, %v2275_v36  ;;  %v1484_v43 = vpop.eup %1483  ;;  %v985_v45 = vadd.f32 %v919_v38, %v2251_v60  ;;  %v822_v30 = vmul.f32 0.044715, %v2283_v34 }
 0x132   :  { %v953_v48 = vmul.f32 %v887_v23, %v2254_v31  ;;  %v1214_v42 = vadd.f32 1.0, %v1484_v43  ;;  %1491 = vtanh.f32 %v1084_v40  ;;  %v789_v50 = vmul.f32 0.044715, %v2286_v35 }
 0x133   :  { %v1246_v44 = vmul.f32 %v1180_v22, %v718_v14  ;;  %v854_v49 = vmul.f32 %v788_v41, %v2275_v36  ;;  %v1051_v13 = vmul.f32 0.7978846, %v985_v45  ;;  %v888_v53 = vmul.f32 %v822_v30, %v2283_v34 }
 0x134   :  { %v498_v7 = vpop.f32.mrb[24].mxu0  ;;  %v2303_v51 = vpop.f32.mrb[24].mxu1  ;;  %v1019_v52 = vadd.f32 %v953_v48, %v2254_v31  ;;  %v2312_v54 = vadd.f32 %v2107_v19, %v626_v10  ;;  %v1280_v57 = vmul.f32 %v1214_v42, %v752_v37  ;;  %v720_v58 = vmul.f32 0.5, %v2225_v28 }
 0x135   :  { %1312 = vst.msk [vmem:[%s3031_s3 + $0x28] sm:$0xff] %vm316_vm0, %v1246_v44  ;;  %v500_v55 = vpop.f32.mrb[25].mxu0  ;;  %v636_v56 = vpop.f32.mrb[25].mxu1  ;;  %v920_v11 = vmul.f32 %v854_v49, %v2275_v36  ;;  %v855_v59 = vmul.f32 %v789_v50, %v2286_v35  ;;  %1493 = vtanh.f32 %v1051_v13  ;;  %v954_v3 = vmul.f32 %v888_v53, %v2283_v34 }
 0x136   :  { %v501_v61 = vpop.f32.mrb[26].mxu0  ;;  %v2317_v0 = vpop.f32.mrb[26].mxu1  ;;  %v1085_v2 = vmul.f32 0.7978846, %v1019_v52  ;;  %v2321_v4 = vadd.f32 %v2107_v19, %v493_v24  ;;  %1346 = vst.msk [vmem:[%s3031_s3 + $0x138] sm:$0xff] %vm316_vm0, %v1280_v57  ;;  %v754_v15 = vmul.f32 0.5, %v2232_v63  ;;  %v2342_v32 = vadd.f32 %v2107_v19, %v2270_v25 }
 0x137   :  { %v1486_v1 = vpop.eup %1485  ;;  %v503_v5 = vpop.f32.mrb[27].mxu0  ;;  %v986_v9 = vadd.f32 %v920_v11, %v2275_v36  ;;  %v921_v10 = vmul.f32 %v855_v59, %v2286_v35  ;;  %v823_v12 = vmul.f32 0.044715, %v2312_v54  ;;  %v1020_v17 = vadd.f32 %v954_v3, %v2283_v34 }
 0x138   :  { %v639_v6 = vpop.f32.mrb[27].mxu1  ;;  %v1488_v8 = vpop.eup %1487  ;;  %v1181_v28 = vadd.f32 1.0, %v1486_v1  ;;  %1495 = vtanh.f32 %v1085_v2  ;;  %v790_v47 = vmul.f32 0.044715, %v2321_v4  ;;  %v2354_v23 = vadd.f32 %v2107_v19, %v498_v7 }
 0x139   :  { %v1215_v14 = vadd.f32 1.0, %v1488_v8  ;;  %v1490_v18 = vpop.eup %1489  ;;  %v1052_v20 = vmul.f32 0.7978846, %v986_v9  ;;  %v987_v21 = vadd.f32 %v921_v10, %v2286_v35  ;;  %v889_v24 = vmul.f32 %v823_v12, %v2312_v54 }
 0x13a   :  { %v1247_v16 = vmul.f32 %v1181_v28, %v719_v62  ;;  %v1182_v26 = vadd.f32 1.0, %v1490_v18  ;;  %v1086_v27 = vmul.f32 0.7978846, %v1020_v17  ;;  %v856_v38 = vmul.f32 %v790_v47, %v2321_v4 }
 0x13b   :  { %v1281_v46 = vmul.f32 %v1215_v14, %v753_v39  ;;  %1497 = vtanh.f32 %v1052_v20  ;;  %v1053_v63 = vmul.f32 0.7978846, %v987_v21  ;;  %v955_v29 = vmul.f32 %v889_v24, %v2312_v54 }
 0x13c   :  { %1313 = vst.msk [vmem:[%s3031_s3 + $0x30] sm:$0xff] %vm316_vm0, %v1247_v16  ;;  %v2344_v33 = vpop.f32.mrb[28].mxu0  ;;  %v2346_v22 = vpop.f32.mrb[28].mxu1  ;;  %v1248_v37 = vmul.f32 %v1182_v26, %v720_v58  ;;  %1499 = vtanh.f32 %v1086_v27  ;;  %v721_v40 = vmul.f32 0.5, %v2251_v60  ;;  %v824_v43 = vmul.f32 0.044715, %v2342_v32 }
 0x13d   :  { %1347 = vst.msk [vmem:[%s3031_s3 + $0x140] sm:$0xff] %vm316_vm0, %v1281_v46  ;;  %v508_v62 = vpop.f32.mrb[29].mxu0  ;;  %v644_v39 = vpop.f32.mrb[29].mxu1  ;;  %1501 = vtanh.f32 %v1053_v63  ;;  %v1021_v41 = vadd.f32 %v955_v29, %v2312_v54  ;;  %v755_v30 = vmul.f32 0.5, %v2254_v31  ;;  %v922_v42 = vmul.f32 %v856_v38, %v2321_v4 }
 0x13e   :  { %v1492_v25 = vpop.eup %1491  ;;  %v2359_v44 = vpop.f32.mrb[30].mxu0  ;;  %1314 = vst.msk [vmem:[%s3031_s3 + $0x38] sm:$0xff] %vm316_vm0, %v1248_v37  ;;  %v791_v60 = vmul.f32 0.044715, %v2354_v23  ;;  %v890_v13 = vmul.f32 %v824_v43, %v2342_v32  ;;  %v2373_v52 = vadd.f32 %v2107_v19, %v2303_v51  ;;  %v2376_v53 = vadd.f32 %v2107_v19, %v501_v61 }
 0x13f   :  { %v2361_v45 = vpop.f32.mrb[30].mxu1  ;;  %v1216_v48 = vadd.f32 1.0, %v1492_v25  ;;  %v511_v49 = vpop.f32.mrb[31].mxu0  ;;  %v1087_v7 = vmul.f32 0.7978846, %v1021_v41  ;;  %v722_v31 = vmul.f32 0.5, %v2275_v36  ;;  %v988_v57 = vadd.f32 %v922_v42, %v2321_v4 }
 0x140   :  { %v647_v50 = vpop.f32.mrb[31].mxu1  ;;  %v1494_v55 = vpop.eup %1493  ;;  %v857_v58 = vmul.f32 %v791_v60, %v2354_v23  ;;  %v956_v59 = vmul.f32 %v890_v13, %v2342_v32  ;;  %v2384_v1 = vadd.f32 %v2107_v19, %v2317_v0  ;;  %v756_v36 = vmul.f32 0.5, %v2283_v34 }
 0x141   :  { %v1282_v56 = vmul.f32 %v1216_v48, %v754_v15  ;;  %v1183_v11 = vadd.f32 1.0, %v1494_v55  ;;  %1503 = vtanh.f32 %v1087_v7  ;;  %v1054_v61 = vmul.f32 0.7978846, %v988_v57 }
 0x142   :  { %v1496_v51 = vpop.eup %1495  ;;  %v923_v2 = vmul.f32 %v857_v58, %v2354_v23  ;;  %v825_v3 = vmul.f32 0.044715, %v2373_v52  ;;  %v1022_v8 = vadd.f32 %v956_v59, %v2342_v32  ;;  %v792_v0 = vmul.f32 0.044715, %v2376_v53 }
 0x143   :  { %1348 = vst.msk [vmem:[%s3031_s3 + $0x148] sm:$0xff] %vm316_vm0, %v1282_v56  ;;  %v1249_v5 = vmul.f32 %v1183_v11, %v721_v40  ;;  %v1217_v6 = vadd.f32 1.0, %v1496_v51  ;;  %v723_v10 = vmul.f32 0.5, %v2286_v35  ;;  %1505 = vtanh.f32 %v1054_v61 }
 0x144   :  { %v2395_v28 = vpop.f32.mrb[32].mxu0  ;;  %v2397_v9 = vpop.f32.mrb[32].mxu1  ;;  %v989_v34 = vadd.f32 %v923_v2, %v2354_v23  ;;  %v891_v12 = vmul.f32 %v825_v3, %v2373_v52  ;;  %v1088_v16 = vmul.f32 0.7978846, %v1022_v8  ;;  %v858_v20 = vmul.f32 %v792_v0, %v2376_v53 }
 0x145   :  { %v516_v14 = vpop.f32.mrb[33].mxu0  ;;  %v652_v15 = vpop.f32.mrb[33].mxu1  ;;  %1315 = vst.msk [vmem:[%s3031_s3 + $0x40] sm:$0xff] %vm316_vm0, %v1249_v5  ;;  %v1283_v18 = vmul.f32 %v1217_v6, %v755_v30  ;;  %v826_v21 = vmul.f32 0.044715, %v2384_v1  ;;  %v2415_v63 = vadd.f32 %v2107_v19, %v2344_v33  ;;  %v757_v48 = vmul.f32 0.5, %v2312_v54 }
 0x146   :  { %v1498_v17 = vpop.eup %1497  ;;  %v2408_v35 = vpop.f32.mrb[34].mxu0  ;;  %v1055_v27 = vmul.f32 0.7978846, %v989_v34  ;;  %v957_v47 = vmul.f32 %v891_v12, %v2373_v52  ;;  %1507 = vtanh.f32 %v1088_v16  ;;  %v924_v39 = vmul.f32 %v858_v20, %v2376_v53 }
 0x147   :  { %v2410_v24 = vpop.f32.mrb[34].mxu1  ;;  %v1500_v46 = vpop.eup %1499  ;;  %v1184_v26 = vadd.f32 1.0, %v1498_v17  ;;  %1349 = vst.msk [vmem:[%s3031_s3 + $0x150] sm:$0xff] %vm316_vm0, %v1283_v18  ;;  %v892_v25 = vmul.f32 %v826_v21, %v2384_v1  ;;  %v793_v50 = vmul.f32 0.044715, %v2415_v63  ;;  %v2434_v7 = vadd.f32 %v2107_v19, %v2346_v22 }
 0x148   :  { %v519_v29 = vpop.f32.mrb[35].mxu0  ;;  %v655_v37 = vpop.f32.mrb[35].mxu1  ;;  %v1218_v62 = vadd.f32 1.0, %v1500_v46  ;;  %1509 = vtanh.f32 %v1055_v27  ;;  %v1023_v33 = vadd.f32 %v957_v47, %v2373_v52  ;;  %v990_v30 = vadd.f32 %v924_v39, %v2376_v53 }
 0x149   :  { %v1502_v38 = vpop.eup %1501  ;;  %v1250_v40 = vmul.f32 %v1184_v26, %v722_v31  ;;  %v958_v42 = vmul.f32 %v892_v25, %v2384_v1  ;;  %v2443_v56 = vadd.f32 %v2107_v19, %v2359_v44  ;;  %v2447_v31 = vadd.f32 %v2107_v19, %v2361_v45 }
 0x14a   :  { %v1185_v41 = vadd.f32 1.0, %v1502_v38  ;;  %v1284_v43 = vmul.f32 %v1218_v62, %v756_v36  ;;  %v1089_v49 = vmul.f32 0.7978846, %v1023_v33  ;;  %v1056_v54 = vmul.f32 0.7978846, %v990_v30 }
 0x14b   :  { %1316 = vst.msk [vmem:[%s3031_s3 + $0x48] sm:$0xff] %vm316_vm0, %v1250_v40  ;;  %v1504_v13 = vpop.eup %1503  ;;  %v1024_v55 = vadd.f32 %v958_v42, %v2384_v1  ;;  %v724_v11 = vmul.f32 0.5, %v2321_v4  ;;  %v859_v44 = vmul.f32 %v793_v50, %v2415_v63  ;;  %v758_v45 = vmul.f32 0.5, %v2342_v32 }
 0x14c   :  { %v1251_v60 = vmul.f32 %v1185_v41, %v723_v10  ;;  %1350 = vst.msk [vmem:[%s3031_s3 + $0x158] sm:$0xff] %vm316_vm0, %v1284_v43  ;;  %v2449_v57 = vpop.f32.mrb[36].mxu0  ;;  %v2451_v22 = vpop.f32.mrb[36].mxu1  ;;  %v1219_v58 = vadd.f32 1.0, %v1504_v13  ;;  %1511 = vtanh.f32 %v1089_v49  ;;  %v827_v61 = vmul.f32 0.044715, %v2434_v7 }
 0x14d   :  { %v524_v59 = vpop.f32.mrb[37].mxu0  ;;  %v660_v51 = vpop.f32.mrb[37].mxu1  ;;  %1513 = vtanh.f32 %v1056_v54  ;;  %v1090_v36 = vmul.f32 0.7978846, %v1024_v55  ;;  %v725_v6 = vmul.f32 0.5, %v2354_v23  ;;  %v925_v8 = vmul.f32 %v859_v44, %v2415_v63 }
 0x14e   :  { %1317 = vst.msk [vmem:[%s3031_s3 + $0x50] sm:$0xff] %vm316_vm0, %v1251_v60  ;;  %v2461_v2 = vpop.f32.mrb[38].mxu0  ;;  %v1506_v3 = vpop.eup %1505  ;;  %v1285_v5 = vmul.f32 %v1219_v58, %v757_v48  ;;  %v794_v4 = vmul.f32 0.044715, %v2443_v56  ;;  %v893_v32 = vmul.f32 %v827_v61, %v2434_v7  ;;  %v828_v12 = vmul.f32 0.044715, %v2447_v31 }
 0x14f   :  { %v2466_v0 = vpop.f32.mrb[38].mxu1  ;;  %v527_v10 = vpop.f32.mrb[39].mxu0  ;;  %v1186_v34 = vadd.f32 1.0, %v1506_v3  ;;  %1515 = vtanh.f32 %v1090_v36  ;;  %v759_v23 = vmul.f32 0.5, %v2373_v52  ;;  %v991_v15 = vadd.f32 %v925_v8, %v2415_v63 }
 0x150   :  { %v663_v14 = vpop.f32.mrb[39].mxu1  ;;  %1351 = vst.msk [vmem:[%s3031_s3 + $0x160] sm:$0xff] %vm316_vm0, %v1285_v5  ;;  %v860_v17 = vmul.f32 %v794_v4, %v2443_v56  ;;  %v2479_v18 = vadd.f32 %v2107_v19, %v2395_v28  ;;  %v1508_v16 = vpop.eup %1507  ;;  %v726_v21 = vmul.f32 0.5, %v2376_v53  ;;  %v959_v46 = vmul.f32 %v893_v32, %v2434_v7 }
 0x151   :  { %v1252_v20 = vmul.f32 %v1186_v34, %v724_v11  ;;  %v894_v26 = vmul.f32 %v828_v12, %v2447_v31  ;;  %v1220_v47 = vadd.f32 1.0, %v1508_v16  ;;  %v1057_v29 = vmul.f32 0.7978846, %v991_v15 }
 0x152   :  { %v1510_v27 = vpop.eup %1509  ;;  %v926_v52 = vmul.f32 %v860_v17, %v2443_v56  ;;  %v2487_v37 = vadd.f32 %v2107_v19, %v2397_v9  ;;  %v1025_v53 = vadd.f32 %v959_v46, %v2434_v7  ;;  %v795_v62 = vmul.f32 0.044715, %v2479_v18 }
 0x153   :  { %1318 = vst.msk [vmem:[%s3031_s3 + $0x58] sm:$0xff] %vm316_vm0, %v1252_v20  ;;  %v1187_v28 = vadd.f32 1.0, %v1510_v27  ;;  %v960_v38 = vmul.f32 %v894_v26, %v2447_v31  ;;  %v1286_v40 = vmul.f32 %v1220_v47, %v758_v45  ;;  %1517 = vtanh.f32 %v1057_v29 }
 0x154   :  { %v2496_v39 = vpop.f32.mrb[40].mxu0  ;;  %v2498_v25 = vpop.f32.mrb[40].mxu1  ;;  %v992_v9 = vadd.f32 %v926_v52, %v2443_v56  ;;  %v2503_v41 = vadd.f32 %v2107_v19, %v2408_v35  ;;  %v1091_v30 = vmul.f32 0.7978846, %v1025_v53  ;;  %v861_v60 = vmul.f32 %v795_v62, %v2479_v18 }
 0x155   :  { %v532_v33 = vpop.f32.mrb[41].mxu0  ;;  %v668_v43 = vpop.f32.mrb[41].mxu1  ;;  %v1253_v48 = vmul.f32 %v1187_v28, %v725_v6  ;;  %v1026_v42 = vadd.f32 %v960_v38, %v2447_v31  ;;  %1352 = vst.msk [vmem:[%s3031_s3 + $0x168] sm:$0xff] %vm316_vm0, %v1286_v40  ;;  %v760_v35 = vmul.f32 0.5, %v2384_v1  ;;  %v829_v55 = vmul.f32 0.044715, %v2487_v37 }
 0x156   :  { %v2507_v49 = vpop.f32.mrb[42].mxu0  ;;  %v2509_v50 = vpop.f32.mrb[42].mxu1  ;;  %v1058_v54 = vmul.f32 0.7978846, %v992_v9  ;;  %v2519_v58 = vadd.f32 %v2107_v19, %v2410_v24  ;;  %1519 = vtanh.f32 %v1091_v30  ;;  %v927_v45 = vmul.f32 %v861_v60, %v2479_v18 }
 0x157   :  { %v1512_v13 = vpop.eup %1511  ;;  %v535_v11 = vpop.f32.mrb[43].mxu0  ;;  %1319 = vst.msk [vmem:[%s3031_s3 + $0x60] sm:$0xff] %vm316_vm0, %v1253_v48  ;;  %v1092_v51 = vmul.f32 0.7978846, %v1026_v42  ;;  %v895_v61 = vmul.f32 %v829_v55, %v2487_v37  ;;  %v727_v6 = vmul.f32 0.5, %v2415_v63  ;;  %v2539_v63 = vadd.f32 %v2107_v19, %v2449_v57 }
 0x158   :  { %v1514_v44 = vpop.eup %1513  ;;  %v1221_v59 = vadd.f32 1.0, %v1512_v13  ;;  %v671_v1 = vpop.f32.mrb[43].mxu1  ;;  %1521 = vtanh.f32 %v1058_v54  ;;  %v796_v24 = vmul.f32 0.044715, %v2503_v41  ;;  %v993_v8 = vadd.f32 %v927_v45, %v2479_v18 }
 0x159   :  { %v1188_v36 = vadd.f32 1.0, %v1514_v44  ;;  %v1516_v3 = vpop.eup %1515  ;;  %1523 = vtanh.f32 %v1092_v51  ;;  %v961_v34 = vmul.f32 %v895_v61, %v2487_v37  ;;  %v830_v14 = vmul.f32 0.044715, %v2519_v58 }
 0x15a   :  { %v1287_v5 = vmul.f32 %v1221_v59, %v759_v23  ;;  %v1222_v10 = vadd.f32 1.0, %v1516_v3  ;;  %v862_v32 = vmul.f32 %v796_v24, %v2503_v41  ;;  %v1059_v12 = vmul.f32 0.7978846, %v993_v8 }
 0x15b   :  { %v1254_v4 = vmul.f32 %v1188_v36, %v726_v21  ;;  %v2543_v23 = vadd.f32 %v2107_v19, %v2451_v22  ;;  %v1027_v20 = vadd.f32 %v961_v34, %v2487_v37  ;;  %v2557_v57 = vadd.f32 %v2107_v19, %v2461_v2 }
 0x15c   :  { %1353 = vst.msk [vmem:[%s3031_s3 + $0x170] sm:$0xff] %vm316_vm0, %v1287_v5  ;;  %v2545_v15 = vpop.f32.mrb[44].mxu0  ;;  %v2547_v17 = vpop.f32.mrb[44].mxu1  ;;  %v1288_v16 = vmul.f32 %v1222_v10, %v760_v35  ;;  %v928_v21 = vmul.f32 %v862_v32, %v2503_v41  ;;  %v761_v26 = vmul.f32 0.5, %v2434_v7  ;;  %1525 = vtanh.f32 %v1059_v12 }
 0x15d   :  { %1320 = vst.msk [vmem:[%s3031_s3 + $0x68] sm:$0xff] %vm316_vm0, %v1254_v4  ;;  %v540_v22 = vpop.f32.mrb[45].mxu0  ;;  %v676_v46 = vpop.f32.mrb[45].mxu1  ;;  %v896_v27 = vmul.f32 %v830_v14, %v2519_v58  ;;  %v797_v47 = vmul.f32 0.044715, %v2539_v63  ;;  %v728_v2 = vmul.f32 0.5, %v2443_v56 }
 0x15e   :  { %v2562_v29 = vpop.f32.mrb[46].mxu0  ;;  %v2564_v52 = vpop.f32.mrb[46].mxu1  ;;  %1354 = vst.msk [vmem:[%s3031_s3 + $0x178] sm:$0xff] %vm316_vm0, %v1288_v16  ;;  %v1093_v53 = vmul.f32 0.7978846, %v1027_v20  ;;  %v994_v7 = vadd.f32 %v928_v21, %v2503_v41  ;;  %v762_v9 = vmul.f32 0.5, %v2447_v31  ;;  %v2582_v31 = vadd.f32 %v2107_v19, %v2466_v0 }
 0x15f   :  { %v1518_v28 = vpop.eup %1517  ;;  %v831_v38 = vmul.f32 0.044715, %v2543_v23  ;;  %v543_v62 = vpop.f32.mrb[47].mxu0  ;;  %v962_v33 = vmul.f32 %v896_v27, %v2519_v58  ;;  %v863_v43 = vmul.f32 %v797_v47, %v2539_v63  ;;  %v798_v56 = vmul.f32 0.044715, %v2557_v57 }
 0x160   :  { %v1189_v40 = vadd.f32 1.0, %v1518_v28  ;;  %v679_v48 = vpop.f32.mrb[47].mxu1  ;;  %1527 = vtanh.f32 %v1093_v53  ;;  %v1060_v30 = vmul.f32 0.7978846, %v994_v7  ;;  %v1520_v60 = vpop.eup %1519  ;;  %v729_v1 = vmul.f32 0.5, %v2479_v18 }
 0x161   :  { %v897_v42 = vmul.f32 %v831_v38, %v2543_v23  ;;  %v1028_v35 = vadd.f32 %v962_v33, %v2519_v58  ;;  %v929_v54 = vmul.f32 %v863_v43, %v2539_v63  ;;  %v1223_v11 = vadd.f32 1.0, %v1520_v60  ;;  %v2611_v21 = vld [vmem:[%s3030_s2] ss:$0 sm:$0xff] }
 0x162   :  { %v1255_v13 = vmul.f32 %v1189_v40, %v727_v6  ;;  %v1522_v55 = vpop.eup %1521  ;;  %1529 = vtanh.f32 %v1060_v30  ;;  %v864_v59 = vmul.f32 %v798_v56, %v2557_v57  ;;  %v832_v18 = vmul.f32 0.044715, %v2582_v31 }
 0x163   :  { %v963_v44 = vmul.f32 %v897_v42, %v2543_v23  ;;  %v1524_v51 = vpop.eup %1523  ;;  %v1190_v45 = vadd.f32 1.0, %v1522_v55  ;;  %v1094_v36 = vmul.f32 0.7978846, %v1028_v35  ;;  %v995_v19 = vadd.f32 %v929_v54, %v2539_v63 }
 0x164   :  { %1321 = vst.msk [vmem:[%s3031_s3 + $0x70] sm:$0xff] %vm316_vm0, %v1255_v13  ;;  %v2592_v0 = vpop.f32.mrb[48].mxu0  ;;  %v2594_v61 = vpop.f32.mrb[48].mxu1  ;;  %v1289_v24 = vmul.f32 %v1223_v11, %v761_v26  ;;  %v1224_v3 = vadd.f32 1.0, %v1524_v51  ;;  %v930_v6 = vmul.f32 %v864_v59, %v2557_v57  ;;  %v2615_v22 = vadd.f32 %v2611_v21, %v2496_v39 }
 0x165   :  { %v1029_v5 = vadd.f32 %v963_v44, %v2543_v23  ;;  %v548_v8 = vpop.f32.mrb[49].mxu0  ;;  %v684_v4 = vpop.f32.mrb[49].mxu1  ;;  %v1256_v10 = vmul.f32 %v1190_v45, %v728_v2  ;;  %1531 = vtanh.f32 %v1094_v36  ;;  %v1061_v34 = vmul.f32 0.7978846, %v995_v19 }
 0x166   :  { %v2599_v32 = vpop.f32.mrb[50].mxu0  ;;  %v2601_v12 = vpop.f32.mrb[50].mxu1  ;;  %1355 = vst.msk [vmem:[%s3031_s3 + $0x180] sm:$0xff] %vm316_vm0, %v1289_v24  ;;  %v1290_v14 = vmul.f32 %v1224_v3, %v762_v9  ;;  %v996_v20 = vadd.f32 %v930_v6, %v2557_v57  ;;  %v898_v47 = vmul.f32 %v832_v18, %v2582_v31  ;;  %v2624_v28 = vadd.f32 %v2611_v21, %v2498_v25 }
 0x167   :  { %v1095_v16 = vmul.f32 0.7978846, %v1029_v5  ;;  %v551_v46 = vpop.f32.mrb[51].mxu0  ;;  %v687_v26 = vpop.f32.mrb[51].mxu1  ;;  %1322 = vst.msk [vmem:[%s3031_s3 + $0x78] sm:$0xff] %vm316_vm0, %v1256_v10  ;;  %1533 = vtanh.f32 %v1061_v34  ;;  %v2628_v2 = vadd.f32 %v2611_v21, %v2507_v49  ;;  %v763_v53 = vmul.f32 0.5, %v2487_v37 }
 0x168   :  { %v1526_v27 = vpop.eup %1525  ;;  %1356 = vst.msk [vmem:[%s3031_s3 + $0x188] sm:$0xff] %vm316_vm0, %v1290_v14  ;;  %v1062_v7 = vmul.f32 0.7978846, %v996_v20  ;;  %v730_v38 = vmul.f32 0.5, %v2503_v41  ;;  %v964_v62 = vmul.f32 %v898_v47, %v2582_v31  ;;  %v799_v25 = vmul.f32 0.044715, %v2615_v22 }
 0x169   :  { %v1191_v39 = vadd.f32 1.0, %v1526_v27  ;;  %1535 = vtanh.f32 %v1095_v16  ;;  %v833_v40 = vmul.f32 0.044715, %v2624_v28  ;;  %v764_v33 = vmul.f32 0.5, %v2519_v58 }
 0x16a   :  { %v1528_v49 = vpop.eup %1527  ;;  %1537 = vtanh.f32 %v1062_v7  ;;  %v800_v43 = vmul.f32 0.044715, %v2628_v2  ;;  %v1030_v37 = vadd.f32 %v964_v62, %v2582_v31  ;;  %v865_v30 = vmul.f32 %v799_v25, %v2615_v22 }
 0x16b   :  { %v1257_v9 = vmul.f32 %v1191_v39, %v729_v1  ;;  %v1225_v48 = vadd.f32 1.0, %v1528_v49  ;;  %v899_v41 = vmul.f32 %v833_v40, %v2624_v28  ;;  %v731_v58 = vmul.f32 0.5, %v2539_v63 }
 0x16c   :  { %v2644_v42 = vpop.f32.mrb[52].mxu0  ;;  %v2646_v56 = vpop.f32.mrb[52].mxu1  ;;  %v866_v13 = vmul.f32 %v800_v43, %v2628_v2  ;;  %v2656_v35 = vadd.f32 %v2611_v21, %v2509_v50  ;;  %v2660_v54 = vadd.f32 %v2611_v21, %v2545_v15  ;;  %v1096_v51 = vmul.f32 0.7978846, %v1030_v37 }
 0x16d   :  { %v1530_v60 = vpop.eup %1529  ;;  %1323 = vst.msk [vmem:[%s3031_s3 + $0x80] sm:$0xff] %vm316_vm0, %v1257_v9  ;;  %v556_v55 = vpop.f32.mrb[53].mxu0  ;;  %v1291_v44 = vmul.f32 %v1225_v48, %v763_v53  ;;  %v931_v45 = vmul.f32 %v865_v30, %v2615_v22  ;;  %v765_v36 = vmul.f32 0.5, %v2543_v23  ;;  %v965_v50 = vmul.f32 %v899_v41, %v2624_v28 }
 0x16e   :  { %v692_v11 = vpop.f32.mrb[53].mxu1  ;;  %v1192_v59 = vadd.f32 1.0, %v1530_v60  ;;  %v2663_v1 = vpop.f32.mrb[54].mxu0  ;;  %v932_v19 = vmul.f32 %v866_v13, %v2628_v2  ;;  %v834_v15 = vmul.f32 0.044715, %v2656_v35  ;;  %1539 = vtanh.f32 %v1096_v51 }
 0x16f   :  { %v2665_v63 = vpop.f32.mrb[54].mxu1  ;;  %v559_v24 = vpop.f32.mrb[55].mxu0  ;;  %1357 = vst.msk [vmem:[%s3031_s3 + $0x190] sm:$0xff] %vm316_vm0, %v1291_v44  ;;  %v997_v8 = vadd.f32 %v931_v45, %v2615_v22  ;;  %v2678_v23 = vadd.f32 %v2611_v21, %v2547_v17  ;;  %v1031_v10 = vadd.f32 %v965_v50, %v2624_v28  ;;  %v732_v16 = vmul.f32 0.5, %v2557_v57 }
 0x170   :  { %v695_v3 = vpop.f32.mrb[55].mxu1  ;;  %v1532_v5 = vpop.eup %1531  ;;  %v1258_v6 = vmul.f32 %v1192_v59, %v730_v38  ;;  %v998_v34 = vadd.f32 %v932_v19, %v2628_v2  ;;  %v900_v18 = vmul.f32 %v834_v15, %v2656_v35  ;;  %v801_v46 = vmul.f32 0.044715, %v2660_v54 }
 0x171   :  { %v1226_v4 = vadd.f32 1.0, %v1532_v5  ;;  %v1534_v14 = vpop.eup %1533  ;;  %v1063_v20 = vmul.f32 0.7978846, %v997_v8  ;;  %v2691_v17 = vadd.f32 %v2611_v21, %v2562_v29  ;;  %v1097_v39 = vmul.f32 0.7978846, %v1031_v10 }
 0x172   :  { %1324 = vst.msk [vmem:[%s3031_s3 + $0x88] sm:$0xff] %vm316_vm0, %v1258_v6  ;;  %v1193_v47 = vadd.f32 1.0, %v1534_v14  ;;  %v1064_v53 = vmul.f32 0.7978846, %v998_v34  ;;  %v966_v38 = vmul.f32 %v900_v18, %v2656_v35  ;;  %v867_v62 = vmul.f32 %v801_v46, %v2660_v54 }
 0x173   :  { %v1536_v26 = vpop.eup %1535  ;;  %v1292_v27 = vmul.f32 %v1226_v4, %v764_v33  ;;  %1541 = vtanh.f32 %v1063_v20  ;;  %v766_v49 = vmul.f32 0.5, %v2582_v31  ;;  %v835_v9 = vmul.f32 0.044715, %v2678_v23 }
 0x174   :  { %v1227_v7 = vadd.f32 1.0, %v1536_v26  ;;  %v2695_v25 = vpop.f32.mrb[56].mxu0  ;;  %v2697_v57 = vpop.f32.mrb[56].mxu1  ;;  %v1259_v29 = vmul.f32 %v1193_v47, %v731_v58  ;;  %1543 = vtanh.f32 %v1097_v39  ;;  %v1032_v30 = vadd.f32 %v966_v38, %v2656_v35 }
 0x175   :  { %v1538_v40 = vpop.eup %1537  ;;  %1358 = vst.msk [vmem:[%s3031_s3 + $0x198] sm:$0xff] %vm316_vm0, %v1292_v27  ;;  %v564_v33 = vpop.f32.mrb[57].mxu0  ;;  %1545 = vtanh.f32 %v1064_v53  ;;  %v933_v31 = vmul.f32 %v867_v62, %v2660_v54  ;;  %v901_v58 = vmul.f32 %v835_v9, %v2678_v23  ;;  %v802_v13 = vmul.f32 0.044715, %v2691_v17 }
 0x176   :  { %v700_v43 = vpop.f32.mrb[57].mxu1  ;;  %v1293_v48 = vmul.f32 %v1227_v7, %v765_v36  ;;  %v1194_v37 = vadd.f32 1.0, %v1538_v40  ;;  %v2706_v41 = vpop.f32.mrb[58].mxu0  ;;  %1325 = vst.msk [vmem:[%s3031_s3 + $0x90] sm:$0xff] %vm316_vm0, %v1259_v29  ;;  %v2719_v55 = vadd.f32 %v2611_v21, %v2564_v52  ;;  %v1098_v51 = vmul.f32 0.7978846, %v1032_v30 }
 0x177   :  { %v2708_v60 = vpop.f32.mrb[58].mxu1  ;;  %v567_v11 = vpop.f32.mrb[59].mxu0  ;;  %v2727_v45 = vadd.f32 %v2611_v21, %v2592_v0  ;;  %v2731_v36 = vadd.f32 %v2611_v21, %v2594_v61  ;;  %v733_v52 = vmul.f32 0.5, %v2615_v22  ;;  %v999_v50 = vadd.f32 %v933_v31, %v2660_v54 }
 0x178   :  { %v703_v44 = vpop.f32.mrb[59].mxu1  ;;  %1359 = vst.msk [vmem:[%s3031_s3 + $0x1a0] sm:$0xff] %vm316_vm0, %v1293_v48  ;;  %v1260_v59 = vmul.f32 %v1194_v37, %v732_v16  ;;  %v967_v19 = vmul.f32 %v901_v58, %v2678_v23  ;;  %v868_v15 = vmul.f32 %v802_v13, %v2691_v17  ;;  %v1540_v24 = vpop.eup %1539  ;;  %v767_v0 = vmul.f32 0.5, %v2624_v28 }
 0x179   :  { %1547 = vtanh.f32 %v1098_v51  ;;  %v836_v61 = vmul.f32 0.044715, %v2719_v55  ;;  %v803_v3 = vmul.f32 0.044715, %v2727_v45  ;;  %v1228_v22 = vadd.f32 1.0, %v1540_v24 }
 0x17a   :  { %1326 = vst.msk [vmem:[%s3031_s3 + $0x98] sm:$0xff] %vm316_vm0, %v1260_v59  ;;  %v1065_v5 = vmul.f32 0.7978846, %v999_v50  ;;  %v1033_v6 = vadd.f32 %v967_v19, %v2678_v23  ;;  %v934_v8 = vmul.f32 %v868_v15, %v2691_v17  ;;  %v734_v4 = vmul.f32 0.5, %v2628_v2 }
 0x17b   :  { %v902_v10 = vmul.f32 %v836_v61, %v2719_v55  ;;  %v869_v34 = vmul.f32 %v803_v3, %v2727_v45  ;;  %v837_v18 = vmul.f32 0.044715, %v2731_v36  ;;  %v1294_v16 = vmul.f32 %v1228_v22, %v766_v49 }
 0x17c   :  { %v2750_v28 = vpop.f32.mrb[60].mxu0  ;;  %v2752_v14 = vpop.f32.mrb[60].mxu1  ;;  %1549 = vtanh.f32 %v1065_v5  ;;  %v1099_v20 = vmul.f32 0.7978846, %v1033_v6  ;;  %v1000_v46 = vadd.f32 %v934_v8, %v2691_v17  ;;  %v2760_v7 = vadd.f32 %v2611_v21, %v2599_v32 }
 0x17d   :  { %v572_v26 = vpop.f32.mrb[61].mxu0  ;;  %v708_v27 = vpop.f32.mrb[61].mxu1  ;;  %v968_v2 = vmul.f32 %v902_v10, %v2719_v55  ;;  %v935_v39 = vmul.f32 %v869_v34, %v2727_v45  ;;  %v903_v53 = vmul.f32 %v837_v18, %v2731_v36  ;;  %1360 = vst.msk [vmem:[%s3031_s3 + $0x1a8] sm:$0xff] %vm316_vm0, %v1294_v16  ;;  %v2772_v9 = vadd.f32 %v2611_v21, %v2601_v12 }
 0x17e   :  { %v1542_v47 = vpop.eup %1541  ;;  %v2762_v38 = vpop.f32.mrb[62].mxu0  ;;  %1551 = vtanh.f32 %v1099_v20  ;;  %v1066_v49 = vmul.f32 0.7978846, %v1000_v46  ;;  %v768_v11 = vmul.f32 0.5, %v2656_v35  ;;  %v735_v19 = vmul.f32 0.5, %v2660_v54 }
 0x17f   :  { %v2764_v62 = vpop.f32.mrb[62].mxu1  ;;  %v1544_v40 = vpop.eup %1543  ;;  %v1195_v29 = vadd.f32 1.0, %v1542_v47  ;;  %v1034_v37 = vadd.f32 %v968_v2, %v2719_v55  ;;  %v1001_v30 = vadd.f32 %v935_v39, %v2727_v45  ;;  %v969_v31 = vmul.f32 %v903_v53, %v2731_v36 }
 0x180   :  { %v575_v33 = vpop.f32.mrb[63].mxu0  ;;  %v711_v32 = vpop.f32.mrb[63].mxu1  ;;  %v1229_v48 = vadd.f32 1.0, %v1544_v40  ;;  %1553 = vtanh.f32 %v1066_v49  ;;  %v804_v15 = vmul.f32 0.044715, %v2760_v7  ;;  %v2796_v61 = vadd.f32 %v2611_v21, %v2646_v56 }
 0x181   :  { %v1546_v43 = vpop.eup %1545  ;;  %v1261_v58 = vmul.f32 %v1195_v29, %v733_v52  ;;  %v1100_v59 = vmul.f32 0.7978846, %v1034_v37  ;;  %v1067_v51 = vmul.f32 0.7978846, %v1001_v30  ;;  %v1035_v12 = vadd.f32 %v969_v31, %v2731_v36 }
 0x182   :  { %v1196_v13 = vadd.f32 1.0, %v1546_v43  ;;  %v1295_v44 = vmul.f32 %v1229_v48, %v767_v0  ;;  %v838_v52 = vmul.f32 0.044715, %v2772_v9  ;;  %v2792_v0 = vadd.f32 %v2611_v21, %v2644_v42 }
 0x183   :  { %1327 = vst.msk [vmem:[%s3031_s3 + $0xa0] sm:$0xff] %vm316_vm0, %v1261_v58  ;;  %v1548_v24 = vpop.eup %1547  ;;  %1555 = vtanh.f32 %v1100_v59  ;;  %v1101_v35 = vmul.f32 0.7978846, %v1035_v12  ;;  %v870_v22 = vmul.f32 %v804_v15, %v2760_v7  ;;  %v769_v42 = vmul.f32 0.5, %v2678_v23 }
 0x184   :  { %v1262_v50 = vmul.f32 %v1196_v13, %v734_v4  ;;  %1361 = vst.msk [vmem:[%s3031_s3 + $0x1b0] sm:$0xff] %vm316_vm0, %v1295_v44  ;;  %v2798_v54 = vpop.f32.mrb[64].mxu0  ;;  %v1230_v3 = vadd.f32 1.0, %v1548_v24  ;;  %1557 = vtanh.f32 %v1067_v51  ;;  %v904_v5 = vmul.f32 %v838_v52, %v2772_v9 }
 0x185   :  { %v580_v6 = vpop.f32.mrb[65].mxu0  ;;  %v736_v8 = vmul.f32 0.5, %v2691_v17  ;;  %1559 = vtanh.f32 %v1101_v35  ;;  %v805_v56 = vmul.f32 0.044715, %v2792_v0  ;;  %v936_v18 = vmul.f32 %v870_v22, %v2760_v7 }
 0x186   :  { %1328 = vst.msk [vmem:[%s3031_s3 + $0xa8] sm:$0xff] %vm316_vm0, %v1262_v50  ;;  %v2809_v4 = vpop.f32.mrb[66].mxu0  ;;  %v1550_v10 = vpop.eup %1549  ;;  %v1296_v34 = vmul.f32 %v1230_v3, %v768_v11  ;;  %v970_v16 = vmul.f32 %v904_v5, %v2772_v9  ;;  %v839_v20 = vmul.f32 0.044715, %v2796_v61  ;;  %v770_v27 = vmul.f32 0.5, %v2719_v55 }
 0x187   :  { %v583_v46 = vpop.f32.mrb[67].mxu0  ;;  %v1197_v26 = vadd.f32 1.0, %v1550_v10  ;;  %v871_v23 = vmul.f32 %v805_v56, %v2792_v0  ;;  %v2818_v17 = vadd.f32 %v2611_v21, %v2663_v1  ;;  %v1002_v2 = vadd.f32 %v936_v18, %v2760_v7 }
 0x188   :  { %v1552_v47 = vpop.eup %1551  ;;  %1362 = vst.msk [vmem:[%s3031_s3 + $0x1b8] sm:$0xff] %vm316_vm0, %v1296_v34  ;;  %v1036_v39 = vadd.f32 %v970_v16, %v2772_v9  ;;  %v905_v53 = vmul.f32 %v839_v20, %v2796_v61  ;;  %v2829_v55 = vadd.f32 %v2611_v21, %v2665_v63  ;;  %v737_v1 = vmul.f32 0.5, %v2727_v45 }
 0x189   :  { %v1263_v40 = vmul.f32 %v1197_v26, %v735_v19  ;;  %v1231_v29 = vadd.f32 1.0, %v1552_v47  ;;  %v937_v49 = vmul.f32 %v871_v23, %v2792_v0  ;;  %v1068_v32 = vmul.f32 0.7978846, %v1002_v2 }
 0x18a   :  { %v1554_v33 = vpop.eup %1553  ;;  %v1102_v43 = vmul.f32 0.7978846, %v1036_v39  ;;  %v971_v48 = vmul.f32 %v905_v53, %v2796_v61  ;;  %v806_v37 = vmul.f32 0.044715, %v2818_v17  ;;  %v2842_v45 = vadd.f32 %v2611_v21, %v2695_v25 }
 0x18b   :  { %1329 = vst.msk [vmem:[%s3031_s3 + $0xb0] sm:$0xff] %vm316_vm0, %v1263_v40  ;;  %v1297_v63 = vmul.f32 %v1231_v29, %v769_v42  ;;  %v1198_v30 = vadd.f32 1.0, %v1554_v33  ;;  %v1003_v31 = vadd.f32 %v937_v49, %v2792_v0  ;;  %1561 = vtanh.f32 %v1068_v32 }
 0x18c   :  { %v1037_v58 = vadd.f32 %v971_v48, %v2796_v61  ;;  %v872_v13 = vmul.f32 %v806_v37, %v2818_v17  ;;  %v840_v11 = vmul.f32 0.044715, %v2829_v55  ;;  %v771_v51 = vmul.f32 0.5, %v2731_v36 }
 0x18d   :  { %v1556_v44 = vpop.eup %1555  ;;  %1363 = vst.msk [vmem:[%s3031_s3 + $0x1c0] sm:$0xff] %vm316_vm0, %v1297_v63  ;;  %v1264_v59 = vmul.f32 %v1198_v30, %v736_v8  ;;  %1563 = vtanh.f32 %v1102_v43  ;;  %v1069_v12 = vmul.f32 0.7978846, %v1003_v31  ;;  %v807_v3 = vmul.f32 0.044715, %v2842_v45 }
 0x18e   :  { %v1558_v25 = vpop.eup %1557  ;;  %v1232_v50 = vadd.f32 1.0, %v1556_v44  ;;  %v1103_v19 = vmul.f32 0.7978846, %v1037_v58  ;;  %v938_v15 = vmul.f32 %v872_v13, %v2818_v17  ;;  %v906_v52 = vmul.f32 %v840_v11, %v2829_v55 }
 0x18f   :  { %v1560_v24 = vpop.eup %1559  ;;  %1330 = vst.msk [vmem:[%s3031_s3 + $0xb8] sm:$0xff] %vm316_vm0, %v1264_v59  ;;  %v1199_v35 = vadd.f32 1.0, %v1558_v25  ;;  %1565 = vtanh.f32 %v1069_v12  ;;  %v2861_v36 = vadd.f32 %v2611_v21, %v2697_v57  ;;  %v873_v56 = vmul.f32 %v807_v3, %v2842_v45 }
 0x190   :  { %v1298_v22 = vmul.f32 %v1232_v50, %v770_v27  ;;  %v1233_v5 = vadd.f32 1.0, %v1560_v24  ;;  %1567 = vtanh.f32 %v1103_v19  ;;  %v1004_v6 = vadd.f32 %v938_v15, %v2818_v17 }
 0x191   :  { %v1265_v42 = vmul.f32 %v1199_v35, %v737_v1  ;;  %v972_v8 = vmul.f32 %v906_v52, %v2829_v55  ;;  %v841_v57 = vmul.f32 0.044715, %v2861_v36  ;;  %v2873_v18 = vadd.f32 %v2611_v21, %v2706_v41 }
 0x192   :  { %1364 = vst.msk [vmem:[%s3031_s3 + $0x1c8] sm:$0xff] %vm316_vm0, %v1298_v22  ;;  %v1299_v10 = vmul.f32 %v1233_v5, %v771_v51  ;;  %v1070_v34 = vmul.f32 0.7978846, %v1004_v6  ;;  %v939_v20 = vmul.f32 %v873_v56, %v2842_v45  ;;  %v2883_v46 = vadd.f32 %v2611_v21, %v2708_v60 }
 0x193   :  { %1331 = vst.msk [vmem:[%s3031_s3 + $0xc0] sm:$0xff] %vm316_vm0, %v1265_v42  ;;  %v1038_v16 = vadd.f32 %v972_v8, %v2829_v55  ;;  %v2887_v26 = vadd.f32 %v2611_v21, %v2750_v28  ;;  %v738_v41 = vmul.f32 0.5, %v2760_v7  ;;  %v907_v27 = vmul.f32 %v841_v57, %v2861_v36 }
 0x194   :  { %1365 = vst.msk [vmem:[%s3031_s3 + $0x1d0] sm:$0xff] %vm316_vm0, %v1299_v10  ;;  %1569 = vtanh.f32 %v1070_v34  ;;  %v808_v23 = vmul.f32 0.044715, %v2873_v18  ;;  %v772_v47 = vmul.f32 0.5, %v2772_v9  ;;  %v1005_v2 = vadd.f32 %v939_v20, %v2842_v45 }
 0x195   :  { %v1104_v60 = vmul.f32 0.7978846, %v1038_v16  ;;  %v842_v28 = vmul.f32 0.044715, %v2883_v46  ;;  %v1562_v39 = vpop.eup %1561  ;;  %v739_v53 = vmul.f32 0.5, %v2792_v0  ;;  %v973_v40 = vmul.f32 %v907_v27, %v2861_v36 }
 0x196   :  { %v874_v29 = vmul.f32 %v808_v23, %v2873_v18  ;;  %v809_v7 = vmul.f32 0.044715, %v2887_v26  ;;  %v1200_v49 = vadd.f32 1.0, %v1562_v39  ;;  %v1071_v33 = vmul.f32 0.7978846, %v1005_v2 }
 0x197   :  { %v1564_v1 = vpop.eup %1563  ;;  %1571 = vtanh.f32 %v1104_v60  ;;  %v908_v9 = vmul.f32 %v842_v28, %v2883_v46  ;;  %v1039_v43 = vadd.f32 %v973_v40, %v2861_v36  ;;  %v2910_v31 = vadd.f32 %v2611_v21, %v2752_v14 }
 0x198   :  { %v1234_v32 = vadd.f32 1.0, %v1564_v1  ;;  %v940_v48 = vmul.f32 %v874_v29, %v2873_v18  ;;  %v875_v37 = vmul.f32 %v809_v7, %v2887_v26  ;;  %v1266_v63 = vmul.f32 %v1200_v49, %v738_v41 }
 0x199   :  { %v1566_v0 = vpop.eup %1565  ;;  %1573 = vtanh.f32 %v1071_v33  ;;  %v974_v30 = vmul.f32 %v908_v9, %v2883_v46  ;;  %v1105_v44 = vmul.f32 0.7978846, %v1039_v43  ;;  %v773_v51 = vmul.f32 0.5, %v2796_v61 }
 0x19a   :  { %v1568_v58 = vpop.eup %1567  ;;  %v1300_v13 = vmul.f32 %v1234_v32, %v772_v47  ;;  %v1201_v11 = vadd.f32 1.0, %v1566_v0  ;;  %v1006_v59 = vadd.f32 %v940_v48, %v2873_v18  ;;  %1332 = vst.msk [vmem:[%s3031_s3 + $0xc8] sm:$0xff] %vm316_vm0, %v1266_v63  ;;  %v941_v50 = vmul.f32 %v875_v37, %v2887_v26 }
 0x19b   :  { %v1235_v12 = vadd.f32 1.0, %v1568_v58  ;;  %v1040_v25 = vadd.f32 %v974_v30, %v2883_v46  ;;  %1575 = vtanh.f32 %v1105_v44  ;;  %v843_v15 = vmul.f32 0.044715, %v2910_v31 }
 0x19c   :  { %1366 = vst.msk [vmem:[%s3031_s3 + $0x1d8] sm:$0xff] %vm316_vm0, %v1300_v13  ;;  %v1267_v14 = vmul.f32 %v1201_v11, %v739_v53  ;;  %v1072_v19 = vmul.f32 0.7978846, %v1006_v59  ;;  %v1007_v35 = vadd.f32 %v941_v50, %v2887_v26  ;;  %v2928_v61 = vadd.f32 %v2611_v21, %v2762_v38 }
 0x19d   :  { %v1301_v52 = vmul.f32 %v1235_v12, %v773_v51  ;;  %v1106_v24 = vmul.f32 0.7978846, %v1040_v25  ;;  %v909_v22 = vmul.f32 %v843_v15, %v2910_v31  ;;  %v2937_v5 = vadd.f32 %v2611_v21, %v2764_v62 }
 0x19e   :  { %v1570_v3 = vpop.eup %1569  ;;  %1333 = vst.msk [vmem:[%s3031_s3 + $0xd0] sm:$0xff] %vm316_vm0, %v1267_v14  ;;  %1577 = vtanh.f32 %v1072_v19  ;;  %v740_v38 = vmul.f32 0.5, %v2818_v17  ;;  %v1073_v42 = vmul.f32 0.7978846, %v1007_v35  ;;  %v774_v8 = vmul.f32 0.5, %v2829_v55 }
 0x19f   :  { %1367 = vst.msk [vmem:[%s3031_s3 + $0x1e0] sm:$0xff] %vm316_vm0, %v1301_v52  ;;  %v1202_v6 = vadd.f32 1.0, %v1570_v3  ;;  %1579 = vtanh.f32 %v1106_v24  ;;  %v975_v56 = vmul.f32 %v909_v22, %v2910_v31  ;;  %v810_v10 = vmul.f32 0.044715, %v2928_v61 }
 0x1a0   :  { %v844_v34 = vmul.f32 0.044715, %v2937_v5  ;;  %1581 = vtanh.f32 %v1073_v42  ;;  %v2950_v16 = vadd.f32 %v2611_v21, %v2798_v54  ;;  %v2954_v17 = vadd.f32 %v2611_v21, %v2809_v4 }
 0x1a1   :  { %v1572_v62 = vpop.eup %1571  ;;  %v1268_v57 = vmul.f32 %v1202_v6, %v740_v38  ;;  %v1041_v55 = vadd.f32 %v975_v56, %v2910_v31  ;;  %v876_v41 = vmul.f32 %v810_v10, %v2928_v61  ;;  %v741_v54 = vmul.f32 0.5, %v2842_v45 }
 0x1a2   :  { %v1236_v20 = vadd.f32 1.0, %v1572_v62  ;;  %v910_v27 = vmul.f32 %v844_v34, %v2937_v5  ;;  %v811_v47 = vmul.f32 0.044715, %v2950_v16  ;;  %v812_v21 = vmul.f32 0.044715, %v2954_v17 }
 0x1a3   :  { %v1574_v23 = vpop.eup %1573  ;;  %1334 = vst.msk [vmem:[%s3031_s3 + $0xd8] sm:$0xff] %vm316_vm0, %v1268_v57  ;;  %v1107_v2 = vmul.f32 0.7978846, %v1041_v55  ;;  %v942_v28 = vmul.f32 %v876_v41, %v2928_v61  ;;  %v775_v7 = vmul.f32 0.5, %v2861_v36  ;;  %v742_v48 = vmul.f32 0.5, %v2873_v18 }
 0x1a4   :  { %v1302_v4 = vmul.f32 %v1236_v20, %v774_v8  ;;  %v1203_v60 = vadd.f32 1.0, %v1574_v23  ;;  %v976_v39 = vmul.f32 %v910_v27, %v2937_v5  ;;  %v877_v53 = vmul.f32 %v811_v47, %v2950_v16 }
 0x1a5   :  { %v878_v40 = vmul.f32 %v812_v21, %v2954_v17  ;;  %v1576_v29 = vpop.eup %1575  ;;  %1583 = vtanh.f32 %v1107_v2  ;;  %v1008_v1 = vadd.f32 %v942_v28, %v2928_v61  ;;  %v776_v13 = vmul.f32 0.5, %v2883_v46 }
 0x1a6   :  { %1368 = vst.msk [vmem:[%s3031_s3 + $0x1e8] sm:$0xff] %vm316_vm0, %v1302_v4  ;;  %v1269_v45 = vmul.f32 %v1203_v60, %v741_v54  ;;  %v1237_v49 = vadd.f32 1.0, %v1576_v29  ;;  %v1042_v33 = vadd.f32 %v976_v39, %v2937_v5  ;;  %v943_v9 = vmul.f32 %v877_v53, %v2950_v16 }
 0x1a7   :  { %v944_v32 = vmul.f32 %v878_v40, %v2954_v17  ;;  %v1074_v37 = vmul.f32 0.7978846, %v1008_v1  ;;  %v743_v25 = vmul.f32 0.5, %v2887_v26  ;;  %v777_v26 = vmul.f32 0.5, %v2910_v31 }
 0x1a8   :  { %v1578_v43 = vpop.eup %1577  ;;  %1335 = vst.msk [vmem:[%s3031_s3 + $0xe0] sm:$0xff] %vm316_vm0, %v1269_v45  ;;  %v1303_v0 = vmul.f32 %v1237_v49, %v775_v7  ;;  %v1108_v30 = vmul.f32 0.7978846, %v1042_v33  ;;  %v1009_v58 = vadd.f32 %v943_v9, %v2950_v16  ;;  %v744_v3 = vmul.f32 0.5, %v2928_v61 }
 0x1a9   :  { %v1580_v36 = vpop.eup %1579  ;;  %v1204_v63 = vadd.f32 1.0, %v1578_v43  ;;  %1585 = vtanh.f32 %v1074_v37  ;;  %v1010_v44 = vadd.f32 %v944_v32, %v2954_v17  ;;  %v778_v38 = vmul.f32 0.5, %v2937_v5 }
 0x1aa   :  { %v1238_v11 = vadd.f32 1.0, %v1580_v36  ;;  %v1582_v59 = vpop.eup %1581  ;;  %1369 = vst.msk [vmem:[%s3031_s3 + $0x1f0] sm:$0xff] %vm316_vm0, %v1303_v0  ;;  %1587 = vtanh.f32 %v1108_v30  ;;  %v1075_v51 = vmul.f32 0.7978846, %v1009_v58  ;;  %v745_v10 = vmul.f32 0.5, %v2950_v16 }
 0x1ab   :  { %v1270_v18 = vmul.f32 %v1204_v63, %v742_v48  ;;  %v1205_v50 = vadd.f32 1.0, %v1582_v59  ;;  %v1076_v14 = vmul.f32 0.7978846, %v1010_v44  ;;  %v746_v62 = vmul.f32 0.5, %v2954_v17 }
 0x1ac   :  { %v1304_v12 = vmul.f32 %v1238_v11, %v776_v13  ;;  %1589 = vtanh.f32 %v1075_v51 }
 0x1ad   :  { %1336 = vst.msk [vmem:[%s3031_s3 + $0xe8] sm:$0xff] %vm316_vm0, %v1270_v18  ;;  %v1271_v46 = vmul.f32 %v1205_v50, %v743_v25  ;;  %1591 = vtanh.f32 %v1076_v14 }
 0x1ae   :  { %1370 = vst.msk [vmem:[%s3031_s3 + $0x1f8] sm:$0xff] %vm316_vm0, %v1304_v12 }
 0x1af   :  { %v1584_v19 = vpop.eup %1583  ;;  %1337 = vst.msk [vmem:[%s3031_s3 + $0xf0] sm:$0xff] %vm316_vm0, %v1271_v46 }
 0x1b0   :  { %v1239_v15 = vadd.f32 1.0, %v1584_v19 }
 0x1b2   :  { %v1305_v52 = vmul.f32 %v1239_v15, %v777_v26 }
 0x1b3   :  { %v1586_v24 = vpop.eup %1585 }
 0x1b4   :  { %v1588_v35 = vpop.eup %1587  ;;  %1371 = vst.msk [vmem:[%s3031_s3 + $0x200] sm:$0xff] %vm316_vm0, %v1305_v52  ;;  %v1206_v22 = vadd.f32 1.0, %v1586_v24 }
 0x1b5   :  { %v1240_v6 = vadd.f32 1.0, %v1588_v35 }
 0x1b6   :  { %v1590_v42 = vpop.eup %1589  ;;  %v1272_v8 = vmul.f32 %v1206_v22, %v744_v3 }
 0x1b7   :  { %v1592_v56 = vpop.eup %1591  ;;  %v1306_v31 = vmul.f32 %v1240_v6, %v778_v38  ;;  %v1207_v34 = vadd.f32 1.0, %v1590_v42 }
 0x1b8   :  { %1338 = vst.msk [vmem:[%s3031_s3 + $0xf8] sm:$0xff] %vm316_vm0, %v1272_v8  ;;  %v1208_v61 = vadd.f32 1.0, %v1592_v56 }
 0x1b9   :  { %1373 = vst.msk [vmem:[%s3031_s3 + $0x208] sm:$0x3f] %vm1372_vm1, %v1306_v31  ;;  %v1273_v5 = vmul.f32 %v1207_v34, %v745_v10 }
 0x1ba   :  { %v1274_v57 = vmul.f32 %v1208_v61, %v746_v62 }
 0x1bb   :  { %1339 = vst.msk [vmem:[%s3031_s3 + $0x100] sm:$0xff] %vm316_vm0, %v1273_v5 }
 0x1bc   :  { %1340 = vst.msk [vmem:[%s3031_s3 + $0x108] sm:$0xff] %vm316_vm0, %v1274_v57 }

// kernel: forward.10
= control target key start
LH: loop header
LB: loop body
LE: loop exit
PB: predicated region body
PF: predicated region fallthrough
CT: control target
= control target key end

     0   :  { %v906_v0 = vmov 0   ;;  %vm218_vm0 = vcmask 523264   ;;  %vm767_vm1 = vcmask 521216   ;;  %s1620_s1 = inlined_call_operand.vmem [shape: bf16[192,64], index: 1, kind: input, shape index: {}]   ;;  %s1621_s0 = inlined_call_operand.vmem [shape: f32[262,192], index: 0, kind: input, shape index: {}]   ;;  %s1622_s2 = inlined_call_operand.vmem [shape: f32[1,64], index: 2, kind: input, shape index: {}]   ;;  %s1623_s3 = inlined_call_operand.vmem [shape: f32[262,64], index: 3, kind: output, shape index: {}]  }
   0x1   :  { %270 = vmatprep.subr.bf16.mxu0 %v906_v0  ;;  %803 = vmatprep.subr.bf16.mxu1 %v906_v0  ;;  %v828_v1 = vld [vmem:[%s1620_s1] sm:$0xff]   ;;  %v829_v2 = vld [vmem:[%s1620_s1 + $0x8] sm:$0xff]   ;;  %v830_v3 = vld [vmem:[%s1620_s1 + $0x10] sm:$0xff]  }
   0x2   :  { %271 = vmatpush1.bf16.msra.mxu0 %v828_v1  ;;  %815 = vmatpush1.bf16.msra.mxu1 %v828_v1  ;;  %v831_v4 = vld [vmem:[%s1620_s1 + $0x18] sm:$0xff]   ;;  %v16_v5 = vld [vmem:[%s1621_s0 + $0x8] sm:$0xff]  ;;  %v832_v10 = vld [vmem:[%s1620_s1 + $0x20] sm:$0xff]  }
   0x3   :  { %272 = vmatprep.subr.bf16.mxu0 %v906_v0  ;;  %804 = vmatprep.subr.bf16.mxu1 %v906_v0  ;;  %v18_v6 = vld [vmem:[%s1621_s0 + $0x18] sm:$0xff]  ;;  %v52_v7 = vld [vmem:[%s1621_s0 + $0x128] sm:$0xff]  ;;  %v834_v13 = vld [vmem:[%s1620_s1 + $0x30] sm:$0xff]  }
   0x4   :  { %v82_v8 = vpack.c.bf16 %v18_v6, %v16_v5  ;;  %v54_v9 = vld [vmem:[%s1621_s0 + $0x138] sm:$0xff]  ;;  %v833_v12 = vld [vmem:[%s1620_s1 + $0x28] sm:$0xff]   ;;  %v836_v15 = vld [vmem:[%s1620_s1 + $0x40] sm:$0xff]  }
   0x5   :  { %v100_v11 = vpack.c.bf16 %v54_v9, %v52_v7  ;;  %v835_v14 = vld [vmem:[%s1620_s1 + $0x38] sm:$0xff]   ;;  %v837_v16 = vld [vmem:[%s1620_s1 + $0x48] sm:$0xff]   ;;  %v838_v17 = vld [vmem:[%s1620_s1 + $0x50] sm:$0xff]  }
   0x6   :  { %273 = vmatpush1.bf16.msra.mxu0 %v829_v2  ;;  %816 = vmatpush1.bf16.msra.mxu1 %v829_v2  ;;  %v839_v18 = vld [vmem:[%s1620_s1 + $0x58] sm:$0xff]   ;;  %v15_v19 = vld [vmem:[%s1621_s0] sm:$0xff]  ;;  %v17_v20 = vld [vmem:[%s1621_s0 + $0x10] sm:$0xff] }
   0x7   :  { %274 = vmatprep.subr.bf16.mxu0 %v906_v0  ;;  %805 = vmatprep.subr.bf16.mxu1 %v906_v0  ;;  %v51_v21 = vld [vmem:[%s1621_s0 + $0x120] sm:$0xff]  ;;  %v53_v22 = vld [vmem:[%s1621_s0 + $0x130] sm:$0xff]  ;;  %v20_v23 = vld [vmem:[%s1621_s0 + $0x28] sm:$0xff]  ;;  %v81_v27 = vpack.c.bf16 %v17_v20, %v15_v19 }
   0x8   :  { %786 = vmatprep.mubr.msk.bf16.mxu0 %vm218_vm0, %v82_v8  ;;  %795 = vmatprep.mubr.msk.bf16.mxu1 %vm218_vm0, %v100_v11  ;;  %v22_v24 = vld [vmem:[%s1621_s0 + $0x38] sm:$0xff]  ;;  %v56_v25 = vld [vmem:[%s1621_s0 + $0x148] sm:$0xff]  ;;  %v99_v28 = vpack.c.bf16 %v53_v22, %v51_v21  ;;  %v19_v31 = vld [vmem:[%s1621_s0 + $0x20] sm:$0xff] }
   0x9   :  { %v58_v26 = vld [vmem:[%s1621_s0 + $0x158] sm:$0xff]  ;;  %v84_v29 = vpack.c.bf16 %v22_v24, %v20_v23  ;;  %v21_v32 = vld [vmem:[%s1621_s0 + $0x30] sm:$0xff]  ;;  %v55_v33 = vld [vmem:[%s1621_s0 + $0x140] sm:$0xff] }
   0xa   :  { %275 = vmatpush1.bf16.msra.mxu0 %v830_v3  ;;  %817 = vmatpush1.bf16.msra.mxu1 %v830_v3  ;;  %v102_v30 = vpack.c.bf16 %v58_v26, %v56_v25  ;;  %v57_v34 = vld [vmem:[%s1621_s0 + $0x150] sm:$0xff]  ;;  %v24_v35 = vld [vmem:[%s1621_s0 + $0x48] sm:$0xff]  ;;  %v26_v36 = vld [vmem:[%s1621_s0 + $0x58] sm:$0xff]  ;;  %v83_v39 = vpack.c.bf16 %v21_v32, %v19_v31 }
   0xb   :  { %276 = vmatprep.subr.bf16.mxu0 %v906_v0  ;;  %806 = vmatprep.subr.bf16.mxu1 %v906_v0  ;;  %v60_v37 = vld [vmem:[%s1621_s0 + $0x168] sm:$0xff]  ;;  %v62_v38 = vld [vmem:[%s1621_s0 + $0x178] sm:$0xff]  ;;  %v101_v40 = vpack.c.bf16 %v57_v34, %v55_v33  ;;  %v86_v41 = vpack.c.bf16 %v26_v36, %v24_v35  ;;  %v23_v43 = vld [vmem:[%s1621_s0 + $0x40] sm:$0xff] }
   0xc   :  { %v104_v42 = vpack.c.bf16 %v62_v38, %v60_v37  ;;  %v25_v44 = vld [vmem:[%s1621_s0 + $0x50] sm:$0xff]  ;;  %v59_v45 = vld [vmem:[%s1621_s0 + $0x160] sm:$0xff]  ;;  %v28_v47 = vld [vmem:[%s1621_s0 + $0x68] sm:$0xff] }
   0xd   :  { %v61_v46 = vld [vmem:[%s1621_s0 + $0x170] sm:$0xff]  ;;  %v30_v48 = vld [vmem:[%s1621_s0 + $0x78] sm:$0xff]  ;;  %v64_v49 = vld [vmem:[%s1621_s0 + $0x188] sm:$0xff]  ;;  %v85_v51 = vpack.c.bf16 %v25_v44, %v23_v43 }
   0xe   :  { %277 = vmatpush1.bf16.msra.mxu0 %v831_v4  ;;  %818 = vmatpush1.bf16.msra.mxu1 %v831_v4  ;;  %v66_v50 = vld [vmem:[%s1621_s0 + $0x198] sm:$0xff]  ;;  %v103_v52 = vpack.c.bf16 %v61_v46, %v59_v45  ;;  %v88_v53 = vpack.c.bf16 %v30_v48, %v28_v47  ;;  %v27_v55 = vld [vmem:[%s1621_s0 + $0x60] sm:$0xff]  ;;  %v29_v56 = vld [vmem:[%s1621_s0 + $0x70] sm:$0xff] }
   0xf   :  { %278 = vmatprep.subr.bf16.mxu0 %v906_v0  ;;  %807 = vmatprep.subr.bf16.mxu1 %v906_v0  ;;  %v106_v54 = vpack.c.bf16 %v66_v50, %v64_v49  ;;  %v63_v57 = vld [vmem:[%s1621_s0 + $0x180] sm:$0xff]  ;;  %v65_v58 = vld [vmem:[%s1621_s0 + $0x190] sm:$0xff]  ;;  %v32_v59 = vld [vmem:[%s1621_s0 + $0x88] sm:$0xff]  ;;  %v87_v63 = vpack.c.bf16 %v29_v56, %v27_v55 }
  0x10   :  { %v34_v60 = vld [vmem:[%s1621_s0 + $0x98] sm:$0xff]  ;;  %v68_v61 = vld [vmem:[%s1621_s0 + $0x1a8] sm:$0xff]  ;;  %v31_v3 = vld [vmem:[%s1621_s0 + $0x80] sm:$0xff] }
  0x11   :  { %v70_v62 = vld [vmem:[%s1621_s0 + $0x1b8] sm:$0xff]  ;;  %v90_v1 = vpack.c.bf16 %v34_v60, %v32_v59  ;;  %v33_v4 = vld [vmem:[%s1621_s0 + $0x90] sm:$0xff]  ;;  %v67_v5 = vld [vmem:[%s1621_s0 + $0x1a0] sm:$0xff] }
  0x12   :  { %279 = vmatpush1.bf16.msra.mxu0 %v832_v10  ;;  %819 = vmatpush1.bf16.msra.mxu1 %v832_v10  ;;  %v108_v2 = vpack.c.bf16 %v70_v62, %v68_v61  ;;  %v69_v6 = vld [vmem:[%s1621_s0 + $0x1b0] sm:$0xff]  ;;  %v36_v7 = vld [vmem:[%s1621_s0 + $0xa8] sm:$0xff]  ;;  %v38_v8 = vld [vmem:[%s1621_s0 + $0xb8] sm:$0xff]  ;;  %v89_v11 = vpack.c.bf16 %v33_v4, %v31_v3 }
  0x13   :  { %280 = vmatprep.subr.bf16.mxu0 %v906_v0  ;;  %808 = vmatprep.subr.bf16.mxu1 %v906_v0  ;;  %v72_v9 = vld [vmem:[%s1621_s0 + $0x1c8] sm:$0xff]  ;;  %v74_v10 = vld [vmem:[%s1621_s0 + $0x1d8] sm:$0xff]  ;;  %v43_v38 = vld [vmem:[%s1621_s0 + $0xe0] sm:$0xff] }
  0x14   :  { %v40_v19 = vld [vmem:[%s1621_s0 + $0xc8] sm:$0xff]  ;;  %v42_v20 = vld [vmem:[%s1621_s0 + $0xd8] sm:$0xff]  ;;  %v47_v46 = vld [vmem:[%s1621_s0 + $0x100] sm:$0xff] }
  0x15   :  { %v76_v21 = vld [vmem:[%s1621_s0 + $0x1e8] sm:$0xff]  ;;  %v78_v22 = vld [vmem:[%s1621_s0 + $0x1f8] sm:$0xff]  ;;  %v94_v25 = vpack.c.bf16 %v42_v20, %v40_v19  ;;  %v49_v47 = vld [vmem:[%s1621_s0 + $0x110] sm:$0xff] }
  0x16   :  { %281 = vmatpush1.bf16.msra.mxu0 %v833_v12  ;;  %820 = vmatpush1.bf16.msra.mxu1 %v833_v12  ;;  %v107_v12 = vpack.c.bf16 %v69_v6, %v67_v5  ;;  %v112_v26 = vpack.c.bf16 %v78_v22, %v76_v21  ;;  %v44_v31 = vld [vmem:[%s1621_s0 + $0xe8] sm:$0xff]  ;;  %v46_v32 = vld [vmem:[%s1621_s0 + $0xf8] sm:$0xff]  ;;  %v97_v48 = vpack.c.bf16 %v49_v47, %v47_v46  ;;  %v1205_v49 = vld [vmem:[%s1622_s2] ss:$0 sm:$0xff] }
  0x17   :  { %282 = vmatprep.subr.bf16.mxu0 %v906_v0  ;;  %809 = vmatprep.subr.bf16.mxu1 %v906_v0  ;;  %v80_v33 = vld [vmem:[%s1621_s0 + $0x208] sm:$0x3f]  ;;  %v96_v36 = vpack.c.bf16 %v46_v32, %v44_v31 }
  0x18   :  { %v114_v37 = vpack.c.bf16 %v80_v33, %v80_v33 }
  0x1a   :  { %283 = vmatpush1.bf16.msra.mxu0 %v834_v13  ;;  %821 = vmatpush1.bf16.msra.mxu1 %v834_v13  ;;  %v92_v13 = vpack.c.bf16 %v38_v8, %v36_v7 }
  0x1b   :  { %284 = vmatprep.subr.bf16.mxu0 %v906_v0  ;;  %810 = vmatprep.subr.bf16.mxu1 %v906_v0 }
  0x1e   :  { %285 = vmatpush1.bf16.msra.mxu0 %v835_v14  ;;  %822 = vmatpush1.bf16.msra.mxu1 %v835_v14  ;;  %v110_v14 = vpack.c.bf16 %v74_v10, %v72_v9 }
  0x1f   :  { %286 = vmatprep.subr.bf16.mxu0 %v906_v0  ;;  %811 = vmatprep.subr.bf16.mxu1 %v906_v0 }
  0x22   :  { %287 = vmatpush1.bf16.msra.mxu0 %v836_v15  ;;  %823 = vmatpush1.bf16.msra.mxu1 %v836_v15  ;;  %v35_v15 = vld [vmem:[%s1621_s0 + $0xa0] sm:$0xff] }
  0x23   :  { %288 = vmatprep.subr.bf16.mxu0 %v906_v0  ;;  %812 = vmatprep.subr.bf16.mxu1 %v906_v0 }
  0x26   :  { %289 = vmatpush1.bf16.msra.mxu0 %v837_v16  ;;  %824 = vmatpush1.bf16.msra.mxu1 %v837_v16  ;;  %v37_v16 = vld [vmem:[%s1621_s0 + $0xb0] sm:$0xff] }
  0x27   :  { %290 = vmatprep.subr.bf16.mxu0 %v906_v0  ;;  %813 = vmatprep.subr.bf16.mxu1 %v906_v0  ;;  %v91_v23 = vpack.c.bf16 %v37_v16, %v35_v15 }
  0x2a   :  { %291 = vmatpush1.bf16.msra.mxu0 %v838_v17  ;;  %825 = vmatpush1.bf16.msra.mxu1 %v838_v17  ;;  %v71_v17 = vld [vmem:[%s1621_s0 + $0x1c0] sm:$0xff] }
  0x2b   :  { %292 = vmatprep.subr.bf16.mxu0 %v906_v0  ;;  %814 = vmatprep.subr.bf16.mxu1 %v906_v0  ;;  %v105_v0 = vpack.c.bf16 %v65_v58, %v63_v57 }
  0x2e   :  { %293 = vmatpush1.bf16.msra.mxu0 %v839_v18  ;;  %826 = vmatpush1.bf16.msra.mxu1 %v839_v18  ;;  %v73_v18 = vld [vmem:[%s1621_s0 + $0x1d0] sm:$0xff] }
  0x2f   :  { %v109_v24 = vpack.c.bf16 %v73_v18, %v71_v17 }
  0x31   :  { %303 = vmatmul.mubr.bf16.vlgmr.msra.gmra.mrb[0].mxu0 %v81_v27  ;;  %375 = vmatmul.mubr.bf16.vlgmr.msra.gmra.mrb[0].mxu1 %v99_v28  ;;  %v39_v27 = vld [vmem:[%s1621_s0 + $0xc0] sm:$0xff]  ;;  %v41_v28 = vld [vmem:[%s1621_s0 + $0xd0] sm:$0xff] }
  0x32   :  { %787 = vmatprep.mubr.msk.bf16.mxu0 %vm218_vm0, %v84_v29  ;;  %796 = vmatprep.mubr.msk.bf16.mxu1 %vm218_vm0, %v102_v30  ;;  %v75_v29 = vld [vmem:[%s1621_s0 + $0x1e0] sm:$0xff]  ;;  %v77_v30 = vld [vmem:[%s1621_s0 + $0x1f0] sm:$0xff]  ;;  %v93_v34 = vpack.c.bf16 %v41_v28, %v39_v27 }
  0x33   :  { %v111_v35 = vpack.c.bf16 %v77_v30, %v75_v29 }
  0x39   :  { %311 = vmatmul.mubr.bf16.gmra.mrb[4].mxu0 %v83_v39  ;;  %383 = vmatmul.mubr.bf16.gmra.mrb[4].mxu1 %v101_v40  ;;  %v45_v39 = vld [vmem:[%s1621_s0 + $0xf0] sm:$0xff]  ;;  %v79_v40 = vld [vmem:[%s1621_s0 + $0x200] sm:$0x3f] }
  0x3a   :  { %788 = vmatprep.mubr.msk.bf16.mxu0 %vm218_vm0, %v86_v41  ;;  %797 = vmatprep.mubr.msk.bf16.mxu1 %vm218_vm0, %v104_v42  ;;  %v48_v41 = vld [vmem:[%s1621_s0 + $0x108] sm:$0xff]  ;;  %v50_v42 = vld [vmem:[%s1621_s0 + $0x118] sm:$0xff]  ;;  %v95_v43 = vpack.c.bf16 %v45_v39, %v43_v38  ;;  %v113_v44 = vpack.c.bf16 %v79_v40, %v79_v40 }
  0x3b   :  { %v98_v45 = vpack.c.bf16 %v50_v42, %v48_v41 }
  0x41   :  { %319 = vmatmul.mubr.bf16.gmra.mrb[8].mxu0 %v85_v51  ;;  %391 = vmatmul.mubr.bf16.gmra.mrb[8].mxu1 %v103_v52 }
  0x42   :  { %789 = vmatprep.mubr.msk.bf16.mxu0 %vm218_vm0, %v88_v53  ;;  %798 = vmatprep.mubr.msk.bf16.mxu1 %vm218_vm0, %v106_v54 }
  0x49   :  { %327 = vmatmul.mubr.bf16.gmra.mrb[12].mxu0 %v87_v63  ;;  %399 = vmatmul.mubr.bf16.gmra.mrb[12].mxu1 %v105_v0 }
  0x4a   :  { %790 = vmatprep.mubr.msk.bf16.mxu0 %vm218_vm0, %v90_v1  ;;  %799 = vmatprep.mubr.msk.bf16.mxu1 %vm218_vm0, %v108_v2 }
  0x51   :  { %335 = vmatmul.mubr.bf16.gmra.mrb[16].mxu0 %v89_v11  ;;  %407 = vmatmul.mubr.bf16.gmra.mrb[16].mxu1 %v107_v12 }
  0x52   :  { %791 = vmatprep.mubr.msk.bf16.mxu0 %vm218_vm0, %v92_v13  ;;  %800 = vmatprep.mubr.msk.bf16.mxu1 %vm218_vm0, %v110_v14 }
  0x59   :  { %343 = vmatmul.mubr.bf16.gmra.mrb[20].mxu0 %v91_v23  ;;  %415 = vmatmul.mubr.bf16.gmra.mrb[20].mxu1 %v109_v24 }
  0x5a   :  { %792 = vmatprep.mubr.msk.bf16.mxu0 %vm218_vm0, %v94_v25  ;;  %801 = vmatprep.mubr.msk.bf16.mxu1 %vm218_vm0, %v112_v26 }
  0x61   :  { %351 = vmatmul.mubr.bf16.gmra.mrb[24].mxu0 %v93_v34  ;;  %423 = vmatmul.mubr.bf16.gmra.mrb[24].mxu1 %v111_v35 }
  0x62   :  { %793 = vmatprep.mubr.msk.bf16.mxu0 %vm218_vm0, %v96_v36  ;;  %802 = vmatprep.mubr.msk.bf16.mxu1 %vm218_vm0, %v114_v37 }
  0x69   :  { %359 = vmatmul.mubr.bf16.gmra.mrb[28].mxu0 %v95_v43  ;;  %431 = vmatmul.mubr.bf16.gmra.mrb[28].mxu1 %v113_v44 }
  0x6a   :  { %794 = vmatprep.mubr.msk.bf16.mxu0 %vm218_vm0, %v98_v45 }
  0x71   :  { %367 = vmatmul.mubr.bf16.gmra.mrb[32].mxu0 %v97_v48 }
 0x104   :  { %v304_v50 = vpop.f32.mrb[0].mxu0  ;;  %v376_v51 = vpop.f32.mrb[0].mxu1 }
 0x105   :  { %v1208_v52 = vadd.f32 %v1205_v49, %v304_v50  ;;  %v1211_v53 = vadd.f32 %v1205_v49, %v376_v51  ;;  %v306_v54 = vpop.f32.mrb[1].mxu0  ;;  %v378_v55 = vpop.f32.mrb[1].mxu1 }
 0x106   :  { %v307_v56 = vpop.f32.mrb[2].mxu0  ;;  %v379_v57 = vpop.f32.mrb[2].mxu1 }
 0x107   :  { %v471_v58 = vmul.f32 0.044715, %v1208_v52  ;;  %v489_v59 = vmul.f32 0.044715, %v1211_v53  ;;  %v1216_v60 = vadd.f32 %v1205_v49, %v307_v56  ;;  %v1219_v61 = vadd.f32 %v1205_v49, %v379_v57  ;;  %v309_v62 = vpop.f32.mrb[3].mxu0  ;;  %v381_v63 = vpop.f32.mrb[3].mxu1 }
 0x108   :  { %v438_v50 = vmul.f32 0.5, %v1208_v52 }
 0x109   :  { %v504_v0 = vmul.f32 %v471_v58, %v1208_v52  ;;  %v522_v1 = vmul.f32 %v489_v59, %v1211_v53  ;;  %v472_v2 = vmul.f32 0.044715, %v1216_v60  ;;  %v490_v3 = vmul.f32 0.044715, %v1219_v61 }
 0x10a   :  { %v456_v58 = vmul.f32 0.5, %v1211_v53 }
 0x10b   :  { %v537_v4 = vmul.f32 %v504_v0, %v1208_v52  ;;  %v555_v5 = vmul.f32 %v522_v1, %v1211_v53  ;;  %v505_v6 = vmul.f32 %v472_v2, %v1216_v60  ;;  %v523_v7 = vmul.f32 %v490_v3, %v1219_v61 }
 0x10c   :  { %v312_v8 = vpop.f32.mrb[4].mxu0  ;;  %v384_v9 = vpop.f32.mrb[4].mxu1  ;;  %v439_v3 = vmul.f32 0.5, %v1216_v60 }
 0x10d   :  { %v570_v10 = vadd.f32 %v537_v4, %v1208_v52  ;;  %v588_v11 = vadd.f32 %v555_v5, %v1211_v53  ;;  %v1232_v12 = vadd.f32 %v1205_v49, %v312_v8  ;;  %v1235_v13 = vadd.f32 %v1205_v49, %v384_v9  ;;  %v314_v14 = vpop.f32.mrb[5].mxu0  ;;  %v386_v15 = vpop.f32.mrb[5].mxu1 }
 0x10e   :  { %v538_v16 = vmul.f32 %v505_v6, %v1216_v60  ;;  %v556_v17 = vmul.f32 %v523_v7, %v1219_v61  ;;  %v315_v18 = vpop.f32.mrb[6].mxu0  ;;  %v387_v19 = vpop.f32.mrb[6].mxu1 }
 0x10f   :  { %v603_v20 = vmul.f32 0.7978846, %v570_v10  ;;  %v621_v21 = vmul.f32 0.7978846, %v588_v11  ;;  %v473_v24 = vmul.f32 0.044715, %v1232_v12  ;;  %v1244_v28 = vadd.f32 %v1205_v49, %v315_v18 }
 0x110   :  { %v571_v22 = vadd.f32 %v538_v16, %v1216_v60  ;;  %v589_v23 = vadd.f32 %v556_v17, %v1219_v61  ;;  %v491_v25 = vmul.f32 0.044715, %v1235_v13  ;;  %v317_v26 = vpop.f32.mrb[7].mxu0  ;;  %v389_v27 = vpop.f32.mrb[7].mxu1  ;;  %v1247_v29 = vadd.f32 %v1205_v49, %v387_v19 }
 0x111   :  { %840 = vtanh.f32 %v603_v20  ;;  %v506_v32 = vmul.f32 %v473_v24, %v1232_v12  ;;  %v474_v34 = vmul.f32 0.044715, %v1244_v28  ;;  %v457_v17 = vmul.f32 0.5, %v1219_v61 }
 0x112   :  { %842 = vtanh.f32 %v621_v21  ;;  %v604_v30 = vmul.f32 0.7978846, %v571_v22  ;;  %v622_v31 = vmul.f32 0.7978846, %v589_v23  ;;  %v524_v33 = vmul.f32 %v491_v25, %v1235_v13 }
 0x113   :  { %v539_v35 = vmul.f32 %v506_v32, %v1232_v12  ;;  %v492_v36 = vmul.f32 0.044715, %v1247_v29  ;;  %v507_v40 = vmul.f32 %v474_v34, %v1244_v28 }
 0x114   :  { %844 = vtanh.f32 %v604_v30  ;;  %v320_v37 = vpop.f32.mrb[8].mxu0  ;;  %v392_v38 = vpop.f32.mrb[8].mxu1  ;;  %v557_v39 = vmul.f32 %v524_v33, %v1235_v13 }
 0x115   :  { %846 = vtanh.f32 %v622_v31  ;;  %v1257_v41 = vadd.f32 %v1205_v49, %v320_v37  ;;  %v322_v42 = vpop.f32.mrb[9].mxu0  ;;  %v394_v43 = vpop.f32.mrb[9].mxu1  ;;  %v572_v44 = vadd.f32 %v539_v35, %v1232_v12  ;;  %v525_v45 = vmul.f32 %v492_v36, %v1247_v29 }
 0x116   :  { %v1262_v46 = vadd.f32 %v1205_v49, %v392_v38  ;;  %v323_v47 = vpop.f32.mrb[10].mxu0  ;;  %v395_v48 = vpop.f32.mrb[10].mxu1  ;;  %v590_v51 = vadd.f32 %v557_v39, %v1235_v13  ;;  %v540_v54 = vmul.f32 %v507_v40, %v1244_v28 }
 0x117   :  { %v475_v55 = vmul.f32 0.044715, %v1257_v41  ;;  %v325_v56 = vpop.f32.mrb[11].mxu0  ;;  %v397_v57 = vpop.f32.mrb[11].mxu1  ;;  %v605_v59 = vmul.f32 0.7978846, %v572_v44  ;;  %v558_v62 = vmul.f32 %v525_v45, %v1247_v29  ;;  %v1274_v2 = vadd.f32 %v1205_v49, %v323_v47 }
 0x118   :  { %v493_v63 = vmul.f32 0.044715, %v1262_v46  ;;  %v623_v0 = vmul.f32 0.7978846, %v590_v51  ;;  %v573_v1 = vadd.f32 %v540_v54, %v1244_v28  ;;  %v1281_v8 = vadd.f32 %v1205_v49, %v395_v48 }
 0x119   :  { %v508_v52 = vmul.f32 %v475_v55, %v1257_v41  ;;  %848 = vtanh.f32 %v605_v59  ;;  %v591_v4 = vadd.f32 %v558_v62, %v1247_v29  ;;  %v476_v60 = vmul.f32 0.044715, %v1274_v2 }
 0x11a   :  { %v526_v53 = vmul.f32 %v493_v63, %v1262_v46  ;;  %850 = vtanh.f32 %v623_v0  ;;  %v606_v6 = vmul.f32 0.7978846, %v573_v1  ;;  %v494_v61 = vmul.f32 0.044715, %v1281_v8 }
 0x11b   :  { %v841_v5 = vpop.eup %840  ;;  %v541_v7 = vmul.f32 %v508_v52, %v1257_v41  ;;  %v624_v11 = vmul.f32 0.7978846, %v591_v4  ;;  %v509_v24 = vmul.f32 %v476_v60, %v1274_v2  ;;  %v440_v45 = vmul.f32 0.5, %v1232_v12 }
 0x11c   :  { %v843_v9 = vpop.eup %842  ;;  %v669_v10 = vadd.f32 1.0, %v841_v5  ;;  %v559_v14 = vmul.f32 %v526_v53, %v1262_v46  ;;  %v328_v15 = vpop.f32.mrb[12].mxu0  ;;  %852 = vtanh.f32 %v606_v6  ;;  %v527_v42 = vmul.f32 %v494_v61, %v1281_v8 }
 0x11d   :  { %v687_v16 = vadd.f32 1.0, %v843_v9  ;;  %v574_v18 = vadd.f32 %v541_v7, %v1257_v41  ;;  %v400_v19 = vpop.f32.mrb[12].mxu1  ;;  %v330_v20 = vpop.f32.mrb[13].mxu0  ;;  %854 = vtanh.f32 %v624_v11  ;;  %v542_v36 = vmul.f32 %v509_v24, %v1274_v2 }
 0x11e   :  { %v845_v21 = vpop.eup %844  ;;  %v702_v22 = vmul.f32 %v669_v10, %v438_v50  ;;  %v592_v23 = vadd.f32 %v559_v14, %v1262_v46  ;;  %v402_v25 = vpop.f32.mrb[13].mxu1  ;;  %v1296_v37 = vadd.f32 %v1205_v49, %v328_v15  ;;  %v1304_v43 = vadd.f32 %v1205_v49, %v400_v19 }
 0x11f   :  { %v331_v26 = vpop.f32.mrb[14].mxu0  ;;  %v847_v27 = vpop.eup %846  ;;  %v720_v30 = vmul.f32 %v687_v16, %v456_v58  ;;  %v670_v31 = vadd.f32 1.0, %v845_v21  ;;  %v607_v32 = vmul.f32 0.7978846, %v574_v18  ;;  %v575_v47 = vadd.f32 %v542_v36, %v1274_v2 }
 0x120   :  { %v403_v33 = vpop.f32.mrb[14].mxu1  ;;  %735 = vst.msk [vmem:[%s1623_s3] sm:$0xff] %vm218_vm0, %v702_v22  ;;  %v688_v34 = vadd.f32 1.0, %v847_v27  ;;  %v625_v35 = vmul.f32 0.7978846, %v592_v23  ;;  %v333_v38 = vpop.f32.mrb[15].mxu0  ;;  %v560_v50 = vmul.f32 %v527_v42, %v1281_v8  ;;  %v1323_v58 = vadd.f32 %v1205_v49, %v331_v26 }
 0x121   :  { %v405_v39 = vpop.f32.mrb[15].mxu1  ;;  %753 = vst.msk [vmem:[%s1623_s3 + $0x90] sm:$0xff] %vm218_vm0, %v720_v30  ;;  %v703_v40 = vmul.f32 %v670_v31, %v439_v3  ;;  %856 = vtanh.f32 %v607_v32  ;;  %v458_v48 = vmul.f32 0.5, %v1235_v13  ;;  %v477_v51 = vmul.f32 0.044715, %v1296_v37 }
 0x122   :  { %v721_v44 = vmul.f32 %v688_v34, %v457_v17  ;;  %858 = vtanh.f32 %v625_v35  ;;  %v495_v54 = vmul.f32 0.044715, %v1304_v43  ;;  %v441_v12 = vmul.f32 0.5, %v1244_v28 }
 0x123   :  { %736 = vst.msk [vmem:[%s1623_s3 + $0x8] sm:$0xff] %vm218_vm0, %v703_v40  ;;  %v849_v55 = vpop.eup %848  ;;  %v459_v56 = vmul.f32 0.5, %v1247_v29  ;;  %v608_v57 = vmul.f32 0.7978846, %v575_v47  ;;  %v593_v0 = vadd.f32 %v560_v50, %v1281_v8  ;;  %v510_v1 = vmul.f32 %v477_v51, %v1296_v37 }
 0x124   :  { %754 = vst.msk [vmem:[%s1623_s3 + $0x98] sm:$0xff] %vm218_vm0, %v721_v44  ;;  %v336_v13 = vpop.f32.mrb[16].mxu0  ;;  %v408_v59 = vpop.f32.mrb[16].mxu1  ;;  %v671_v63 = vadd.f32 1.0, %v849_v55  ;;  %v528_v52 = vmul.f32 %v495_v54, %v1304_v43  ;;  %v478_v28 = vmul.f32 0.044715, %v1323_v58  ;;  %v1330_v29 = vadd.f32 %v1205_v49, %v403_v33 }
 0x125   :  { %v851_v62 = vpop.eup %850  ;;  %v338_v3 = vpop.f32.mrb[17].mxu0  ;;  %860 = vtanh.f32 %v608_v57  ;;  %v626_v10 = vmul.f32 0.7978846, %v593_v0  ;;  %v543_v11 = vmul.f32 %v510_v1, %v1296_v37  ;;  %v442_v19 = vmul.f32 0.5, %v1257_v41 }
 0x126   :  { %v410_v4 = vpop.f32.mrb[17].mxu1  ;;  %v689_v53 = vadd.f32 1.0, %v851_v62  ;;  %v339_v5 = vpop.f32.mrb[18].mxu0  ;;  %v704_v9 = vmul.f32 %v671_v63, %v440_v45  ;;  %v561_v14 = vmul.f32 %v528_v52, %v1304_v43  ;;  %v511_v20 = vmul.f32 %v478_v28, %v1323_v58 }
 0x127   :  { %v411_v6 = vpop.f32.mrb[18].mxu1  ;;  %v853_v7 = vpop.eup %852  ;;  %862 = vtanh.f32 %v626_v10  ;;  %v576_v22 = vadd.f32 %v543_v11, %v1296_v37  ;;  %v496_v25 = vmul.f32 0.044715, %v1330_v29  ;;  %v1349_v26 = vadd.f32 %v1205_v49, %v336_v13 }
 0x128   :  { %v341_v60 = vpop.f32.mrb[19].mxu0  ;;  %v413_v15 = vpop.f32.mrb[19].mxu1  ;;  %v722_v17 = vmul.f32 %v689_v53, %v458_v48  ;;  %v672_v18 = vadd.f32 1.0, %v853_v7  ;;  %737 = vst.msk [vmem:[%s1623_s3 + $0x10] sm:$0xff] %vm218_vm0, %v704_v9  ;;  %v594_v23 = vadd.f32 %v561_v14, %v1304_v43  ;;  %v544_v41 = vmul.f32 %v511_v20, %v1323_v58 }
 0x129   :  { %v855_v16 = vpop.eup %854  ;;  %v609_v31 = vmul.f32 0.7978846, %v576_v22  ;;  %v1352_v61 = vadd.f32 %v1205_v49, %v408_v59  ;;  %v460_v35 = vmul.f32 0.5, %v1262_v46  ;;  %v529_v38 = vmul.f32 %v496_v25, %v1330_v29 }
 0x12a   :  { %v690_v21 = vadd.f32 1.0, %v855_v16  ;;  %755 = vst.msk [vmem:[%s1623_s3 + $0xa0] sm:$0xff] %vm218_vm0, %v722_v17  ;;  %v705_v24 = vmul.f32 %v672_v18, %v441_v12  ;;  %v627_v32 = vmul.f32 0.7978846, %v594_v23  ;;  %v577_v36 = vadd.f32 %v544_v41, %v1323_v58 }
 0x12b   :  { %v857_v27 = vpop.eup %856  ;;  %v443_v44 = vmul.f32 0.5, %v1274_v2  ;;  %864 = vtanh.f32 %v609_v31  ;;  %v479_v45 = vmul.f32 0.044715, %v1349_v26  ;;  %v562_v51 = vmul.f32 %v529_v38, %v1330_v29 }
 0x12c   :  { %v723_v30 = vmul.f32 %v690_v21, %v459_v56  ;;  %v859_v33 = vpop.eup %858  ;;  %738 = vst.msk [vmem:[%s1623_s3 + $0x18] sm:$0xff] %vm218_vm0, %v705_v24  ;;  %v673_v34 = vadd.f32 1.0, %v857_v27  ;;  %v344_v39 = vpop.f32.mrb[20].mxu0  ;;  %866 = vtanh.f32 %v627_v32  ;;  %v610_v50 = vmul.f32 0.7978846, %v577_v36 }
 0x12d   :  { %v416_v40 = vpop.f32.mrb[20].mxu1  ;;  %v691_v42 = vadd.f32 1.0, %v859_v33  ;;  %v346_v47 = vpop.f32.mrb[21].mxu0  ;;  %v512_v56 = vmul.f32 %v479_v45, %v1349_v26  ;;  %v497_v57 = vmul.f32 0.044715, %v1352_v61  ;;  %v1373_v2 = vadd.f32 %v1205_v49, %v339_v5 }
 0x12e   :  { %756 = vst.msk [vmem:[%s1623_s3 + $0xa8] sm:$0xff] %vm218_vm0, %v723_v30  ;;  %v418_v48 = vpop.f32.mrb[21].mxu1  ;;  %v706_v46 = vmul.f32 %v673_v34, %v442_v19  ;;  %v347_v54 = vpop.f32.mrb[22].mxu0  ;;  %868 = vtanh.f32 %v610_v50  ;;  %v595_v63 = vadd.f32 %v562_v51, %v1330_v29  ;;  %v1381_v0 = vadd.f32 %v1205_v49, %v411_v6 }
 0x12f   :  { %v1368_v55 = vpop.f32.mrb[22].mxu1  ;;  %v724_v12 = vmul.f32 %v691_v42, %v460_v35  ;;  %v349_v13 = vpop.f32.mrb[23].mxu0  ;;  %v1384_v1 = vadd.f32 %v1205_v49, %v344_v39  ;;  %v461_v3 = vmul.f32 0.5, %v1281_v8  ;;  %v545_v4 = vmul.f32 %v512_v56, %v1349_v26 }
 0x130   :  { %v421_v59 = vpop.f32.mrb[23].mxu1  ;;  %v861_v62 = vpop.eup %860  ;;  %739 = vst.msk [vmem:[%s1623_s3 + $0x20] sm:$0xff] %vm218_vm0, %v706_v46  ;;  %v530_v53 = vmul.f32 %v497_v57, %v1352_v61  ;;  %v444_v28 = vmul.f32 0.5, %v1296_v37  ;;  %v462_v5 = vmul.f32 0.5, %v1304_v43  ;;  %v628_v6 = vmul.f32 0.7978846, %v595_v63 }
 0x131   :  { %757 = vst.msk [vmem:[%s1623_s3 + $0xb0] sm:$0xff] %vm218_vm0, %v724_v12  ;;  %v674_v52 = vadd.f32 1.0, %v861_v62  ;;  %v480_v7 = vmul.f32 0.044715, %v1373_v2  ;;  %v863_v9 = vpop.eup %862  ;;  %v578_v11 = vadd.f32 %v545_v4, %v1349_v26  ;;  %v498_v60 = vmul.f32 0.044715, %v1381_v0 }
 0x132   :  { %v563_v14 = vmul.f32 %v530_v53, %v1352_v61  ;;  %v692_v8 = vadd.f32 1.0, %v863_v9  ;;  %870 = vtanh.f32 %v628_v6  ;;  %v481_v16 = vmul.f32 0.044715, %v1384_v1 }
 0x133   :  { %v707_v10 = vmul.f32 %v674_v52, %v443_v44  ;;  %v513_v15 = vmul.f32 %v480_v7, %v1373_v2  ;;  %v611_v43 = vmul.f32 0.7978846, %v578_v11  ;;  %v531_v19 = vmul.f32 %v498_v60, %v1381_v0 }
 0x134   :  { %v352_v37 = vpop.f32.mrb[24].mxu0  ;;  %v1401_v17 = vpop.f32.mrb[24].mxu1  ;;  %v596_v18 = vadd.f32 %v563_v14, %v1352_v61  ;;  %v1410_v20 = vadd.f32 %v1205_v49, %v416_v40  ;;  %v725_v23 = vmul.f32 %v692_v8, %v461_v3  ;;  %v445_v24 = vmul.f32 0.5, %v1323_v58 }
 0x135   :  { %740 = vst.msk [vmem:[%s1623_s3 + $0x28] sm:$0xff] %vm218_vm0, %v707_v10  ;;  %v354_v21 = vpop.f32.mrb[25].mxu0  ;;  %v426_v22 = vpop.f32.mrb[25].mxu1  ;;  %v546_v41 = vmul.f32 %v513_v15, %v1373_v2  ;;  %v514_v25 = vmul.f32 %v481_v16, %v1384_v1  ;;  %872 = vtanh.f32 %v611_v43  ;;  %v564_v33 = vmul.f32 %v531_v19, %v1381_v0 }
 0x136   :  { %v355_v27 = vpop.f32.mrb[26].mxu0  ;;  %v1415_v30 = vpop.f32.mrb[26].mxu1  ;;  %v629_v32 = vmul.f32 0.7978846, %v596_v18  ;;  %v1419_v34 = vadd.f32 %v1205_v49, %v347_v54  ;;  %758 = vst.msk [vmem:[%s1623_s3 + $0xb8] sm:$0xff] %vm218_vm0, %v725_v23  ;;  %v463_v45 = vmul.f32 0.5, %v1330_v29  ;;  %v1440_v62 = vadd.f32 %v1205_v49, %v1368_v55 }
 0x137   :  { %v865_v31 = vpop.eup %864  ;;  %v357_v35 = vpop.f32.mrb[27].mxu0  ;;  %v579_v39 = vadd.f32 %v546_v41, %v1373_v2  ;;  %v547_v40 = vmul.f32 %v514_v25, %v1384_v1  ;;  %v499_v42 = vmul.f32 0.044715, %v1410_v20  ;;  %v597_v47 = vadd.f32 %v564_v33, %v1381_v0 }
 0x138   :  { %v429_v36 = vpop.f32.mrb[27].mxu1  ;;  %v867_v38 = vpop.eup %866  ;;  %v675_v58 = vadd.f32 1.0, %v865_v31  ;;  %874 = vtanh.f32 %v629_v32  ;;  %v482_v13 = vmul.f32 0.044715, %v1419_v34  ;;  %v1452_v53 = vadd.f32 %v1205_v49, %v352_v37 }
 0x139   :  { %v693_v44 = vadd.f32 1.0, %v867_v38  ;;  %v869_v48 = vpop.eup %868  ;;  %v612_v50 = vmul.f32 0.7978846, %v579_v39  ;;  %v580_v51 = vadd.f32 %v547_v40, %v1384_v1  ;;  %v532_v54 = vmul.f32 %v499_v42, %v1410_v20 }
 0x13a   :  { %v708_v46 = vmul.f32 %v675_v58, %v444_v28  ;;  %v676_v56 = vadd.f32 1.0, %v869_v48  ;;  %v630_v57 = vmul.f32 0.7978846, %v597_v47  ;;  %v515_v4 = vmul.f32 %v482_v13, %v1419_v34 }
 0x13b   :  { %v726_v12 = vmul.f32 %v693_v44, %v462_v5  ;;  %876 = vtanh.f32 %v612_v50  ;;  %v613_v29 = vmul.f32 0.7978846, %v580_v51  ;;  %v565_v59 = vmul.f32 %v532_v54, %v1410_v20 }
 0x13c   :  { %741 = vst.msk [vmem:[%s1623_s3 + $0x30] sm:$0xff] %vm218_vm0, %v708_v46  ;;  %v1442_v63 = vpop.f32.mrb[28].mxu0  ;;  %v1444_v52 = vpop.f32.mrb[28].mxu1  ;;  %v709_v3 = vmul.f32 %v676_v56, %v445_v24  ;;  %878 = vtanh.f32 %v630_v57  ;;  %v446_v6 = vmul.f32 0.5, %v1349_v26  ;;  %v500_v9 = vmul.f32 0.044715, %v1440_v62 }
 0x13d   :  { %759 = vst.msk [vmem:[%s1623_s3 + $0xc0] sm:$0xff] %vm218_vm0, %v726_v12  ;;  %v362_v28 = vpop.f32.mrb[29].mxu0  ;;  %v434_v5 = vpop.f32.mrb[29].mxu1  ;;  %880 = vtanh.f32 %v613_v29  ;;  %v598_v7 = vadd.f32 %v565_v59, %v1410_v20  ;;  %v464_v60 = vmul.f32 0.5, %v1352_v61  ;;  %v548_v8 = vmul.f32 %v515_v4, %v1419_v34 }
 0x13e   :  { %v871_v55 = vpop.eup %870  ;;  %v1457_v10 = vpop.f32.mrb[30].mxu0  ;;  %742 = vst.msk [vmem:[%s1623_s3 + $0x38] sm:$0xff] %vm218_vm0, %v709_v3  ;;  %v483_v26 = vmul.f32 0.044715, %v1452_v53  ;;  %v533_v43 = vmul.f32 %v500_v9, %v1440_v62  ;;  %v1469_v18 = vadd.f32 %v1205_v49, %v1401_v17  ;;  %v1472_v19 = vadd.f32 %v1205_v49, %v355_v27 }
 0x13f   :  { %v435_v11 = vpop.f32.mrb[30].mxu1  ;;  %v694_v14 = vadd.f32 1.0, %v871_v55  ;;  %v365_v15 = vpop.f32.mrb[31].mxu0  ;;  %v631_v37 = vmul.f32 0.7978846, %v598_v7  ;;  %v447_v61 = vmul.f32 0.5, %v1373_v2  ;;  %v581_v23 = vadd.f32 %v548_v8, %v1419_v34 }
 0x140   :  { %v436_v16 = vpop.f32.mrb[31].mxu1  ;;  %v873_v21 = vpop.eup %872  ;;  %v516_v24 = vmul.f32 %v483_v26, %v1452_v53  ;;  %v566_v25 = vmul.f32 %v533_v43, %v1440_v62  ;;  %v1480_v31 = vadd.f32 %v1205_v49, %v1415_v30  ;;  %v465_v2 = vmul.f32 0.5, %v1381_v0 }
 0x141   :  { %v727_v22 = vmul.f32 %v694_v14, %v463_v45  ;;  %v677_v41 = vadd.f32 1.0, %v873_v21  ;;  %882 = vtanh.f32 %v631_v37  ;;  %v614_v27 = vmul.f32 0.7978846, %v581_v23 }
 0x142   :  { %v875_v17 = vpop.eup %874  ;;  %v549_v32 = vmul.f32 %v516_v24, %v1452_v53  ;;  %v501_v33 = vmul.f32 0.044715, %v1469_v18  ;;  %v599_v38 = vadd.f32 %v566_v25, %v1440_v62  ;;  %v484_v30 = vmul.f32 0.044715, %v1472_v19 }
 0x143   :  { %760 = vst.msk [vmem:[%s1623_s3 + $0xc8] sm:$0xff] %vm218_vm0, %v727_v22  ;;  %v710_v35 = vmul.f32 %v677_v41, %v446_v6  ;;  %v695_v36 = vadd.f32 1.0, %v875_v17  ;;  %v448_v39 = vmul.f32 0.5, %v1384_v1  ;;  %884 = vtanh.f32 %v614_v27 }
 0x144   :  { %v368_v58 = vpop.f32.mrb[32].mxu0  ;;  %v582_v40 = vadd.f32 %v549_v32, %v1452_v53  ;;  %v534_v42 = vmul.f32 %v501_v33, %v1469_v18  ;;  %v632_v47 = vmul.f32 0.7978846, %v599_v38  ;;  %v517_v48 = vmul.f32 %v484_v30, %v1472_v19 }
 0x145   :  { %v370_v0 = vpop.f32.mrb[33].mxu0  ;;  %v877_v44 = vpop.eup %876  ;;  %743 = vst.msk [vmem:[%s1623_s3 + $0x40] sm:$0xff] %vm218_vm0, %v710_v35  ;;  %v728_v45 = vmul.f32 %v695_v36, %v464_v60  ;;  %v502_v46 = vmul.f32 0.044715, %v1480_v31  ;;  %v1503_v56 = vadd.f32 %v1205_v49, %v1442_v63  ;;  %v1521_v14 = vadd.f32 %v1205_v49, %v1444_v52 }
 0x146   :  { %v371_v50 = vpop.f32.mrb[34].mxu0  ;;  %v879_v1 = vpop.eup %878  ;;  %v678_v51 = vadd.f32 1.0, %v877_v44  ;;  %v615_v54 = vmul.f32 0.7978846, %v582_v40  ;;  %v567_v12 = vmul.f32 %v534_v42, %v1469_v18  ;;  %886 = vtanh.f32 %v632_v47 }
 0x147   :  { %v373_v57 = vpop.f32.mrb[35].mxu0  ;;  %v881_v13 = vpop.eup %880  ;;  %761 = vst.msk [vmem:[%s1623_s3 + $0xd0] sm:$0xff] %vm218_vm0, %v728_v45  ;;  %v696_v29 = vadd.f32 1.0, %v879_v1  ;;  %v550_v59 = vmul.f32 %v517_v48, %v1472_v19  ;;  %v535_v3 = vmul.f32 %v502_v46, %v1480_v31  ;;  %v485_v11 = vmul.f32 0.044715, %v1503_v56 }
 0x148   :  { %v711_v4 = vmul.f32 %v678_v51, %v447_v61  ;;  %v679_v28 = vadd.f32 1.0, %v881_v13  ;;  %888 = vtanh.f32 %v615_v54  ;;  %v600_v5 = vadd.f32 %v567_v12, %v1469_v18 }
 0x149   :  { %v729_v63 = vmul.f32 %v696_v29, %v465_v2  ;;  %v583_v55 = vadd.f32 %v550_v59, %v1472_v19  ;;  %v568_v6 = vmul.f32 %v535_v3, %v1480_v31  ;;  %v1530_v15 = vadd.f32 %v1205_v49, %v1457_v10 }
 0x14a   :  { %744 = vst.msk [vmem:[%s1623_s3 + $0x48] sm:$0xff] %vm218_vm0, %v711_v4  ;;  %v712_v7 = vmul.f32 %v679_v28, %v448_v39  ;;  %v633_v9 = vmul.f32 0.7978846, %v600_v5  ;;  %v1533_v16 = vadd.f32 %v1205_v49, %v368_v58  ;;  %v466_v52 = vmul.f32 0.5, %v1410_v20 }
 0x14b   :  { %v883_v60 = vpop.eup %882  ;;  %762 = vst.msk [vmem:[%s1623_s3 + $0xd8] sm:$0xff] %vm218_vm0, %v729_v63  ;;  %v616_v8 = vmul.f32 0.7978846, %v583_v55  ;;  %v601_v26 = vadd.f32 %v568_v6, %v1480_v31  ;;  %v518_v43 = vmul.f32 %v485_v11, %v1503_v56  ;;  %v503_v22 = vmul.f32 0.044715, %v1521_v14 }
 0x14c   :  { %745 = vst.msk [vmem:[%s1623_s3 + $0x50] sm:$0xff] %vm218_vm0, %v712_v7  ;;  %v697_v37 = vadd.f32 1.0, %v883_v60  ;;  %890 = vtanh.f32 %v633_v9  ;;  %v449_v23 = vmul.f32 0.5, %v1419_v34  ;;  %v486_v41 = vmul.f32 0.044715, %v1530_v15 }
 0x14d   :  { %892 = vtanh.f32 %v616_v8  ;;  %v634_v21 = vmul.f32 0.7978846, %v601_v26  ;;  %v885_v10 = vpop.eup %884  ;;  %v551_v24 = vmul.f32 %v518_v43, %v1503_v56  ;;  %v536_v20 = vmul.f32 %v503_v22, %v1521_v14 }
 0x14e   :  { %v730_v61 = vmul.f32 %v697_v37, %v466_v52  ;;  %v680_v25 = vadd.f32 1.0, %v885_v10  ;;  %v487_v17 = vmul.f32 0.044715, %v1533_v16  ;;  %v519_v27 = vmul.f32 %v486_v41, %v1530_v15 }
 0x14f   :  { %894 = vtanh.f32 %v634_v21  ;;  %v584_v2 = vadd.f32 %v551_v24, %v1503_v56  ;;  %v1554_v34 = vadd.f32 %v1205_v49, %v371_v50  ;;  %v467_v35 = vmul.f32 0.5, %v1440_v62 }
 0x150   :  { %763 = vst.msk [vmem:[%s1623_s3 + $0xe0] sm:$0xff] %vm218_vm0, %v730_v61  ;;  %v887_v32 = vpop.eup %886  ;;  %v713_v33 = vmul.f32 %v680_v25, %v449_v23  ;;  %v569_v36 = vmul.f32 %v536_v20, %v1521_v14  ;;  %v520_v38 = vmul.f32 %v487_v17, %v1533_v16  ;;  %v450_v39 = vmul.f32 0.5, %v1452_v53 }
 0x151   :  { %v698_v58 = vadd.f32 1.0, %v887_v32  ;;  %v617_v40 = vmul.f32 0.7978846, %v584_v2  ;;  %v552_v42 = vmul.f32 %v519_v27, %v1530_v15  ;;  %v488_v44 = vmul.f32 0.044715, %v1554_v34 }
 0x152   :  { %v889_v30 = vpop.eup %888  ;;  %746 = vst.msk [vmem:[%s1623_s3 + $0x58] sm:$0xff] %vm218_vm0, %v713_v33  ;;  %v602_v0 = vadd.f32 %v569_v36, %v1521_v14  ;;  %v553_v62 = vmul.f32 %v520_v38, %v1533_v16  ;;  %v468_v51 = vmul.f32 0.5, %v1469_v18  ;;  %v451_v59 = vmul.f32 0.5, %v1472_v19 }
 0x153   :  { %v681_v49 = vadd.f32 1.0, %v889_v30  ;;  %v731_v45 = vmul.f32 %v698_v58, %v467_v35  ;;  %896 = vtanh.f32 %v617_v40  ;;  %v585_v47 = vadd.f32 %v552_v42, %v1530_v15 }
 0x154   :  { %v635_v48 = vmul.f32 0.7978846, %v602_v0  ;;  %v586_v46 = vadd.f32 %v553_v62, %v1533_v16  ;;  %v521_v50 = vmul.f32 %v488_v44, %v1554_v34  ;;  %v469_v63 = vmul.f32 0.5, %v1480_v31 }
 0x155   :  { %v714_v53 = vmul.f32 %v681_v49, %v450_v39  ;;  %764 = vst.msk [vmem:[%s1623_s3 + $0xe8] sm:$0xff] %vm218_vm0, %v731_v45  ;;  %v618_v54 = vmul.f32 0.7978846, %v585_v47  ;;  %v452_v31 = vmul.f32 0.5, %v1503_v56  ;;  %v470_v26 = vmul.f32 0.5, %v1521_v14 }
 0x156   :  { %v891_v1 = vpop.eup %890  ;;  %898 = vtanh.f32 %v635_v48  ;;  %v619_v13 = vmul.f32 0.7978846, %v586_v46  ;;  %v554_v29 = vmul.f32 %v521_v50, %v1554_v34  ;;  %v453_v43 = vmul.f32 0.5, %v1530_v15 }
 0x157   :  { %v893_v12 = vpop.eup %892  ;;  %747 = vst.msk [vmem:[%s1623_s3 + $0x60] sm:$0xff] %vm218_vm0, %v714_v53  ;;  %v699_v57 = vadd.f32 1.0, %v891_v1  ;;  %900 = vtanh.f32 %v618_v54  ;;  %v454_v56 = vmul.f32 0.5, %v1533_v16  ;;  %v455_v15 = vmul.f32 0.5, %v1554_v34 }
 0x158   :  { %v682_v3 = vadd.f32 1.0, %v893_v12  ;;  %902 = vtanh.f32 %v619_v13  ;;  %v587_v18 = vadd.f32 %v554_v29, %v1554_v34 }
 0x159   :  { %v895_v4 = vpop.eup %894  ;;  %v732_v28 = vmul.f32 %v699_v57, %v468_v51 }
 0x15a   :  { %v715_v5 = vmul.f32 %v682_v3, %v451_v59  ;;  %v700_v55 = vadd.f32 1.0, %v895_v4  ;;  %v620_v6 = vmul.f32 0.7978846, %v587_v18 }
 0x15b   :  { %765 = vst.msk [vmem:[%s1623_s3 + $0xf0] sm:$0xff] %vm218_vm0, %v732_v28 }
 0x15c   :  { %748 = vst.msk [vmem:[%s1623_s3 + $0x68] sm:$0xff] %vm218_vm0, %v715_v5  ;;  %v733_v19 = vmul.f32 %v700_v55, %v469_v63  ;;  %904 = vtanh.f32 %v620_v6 }
 0x15d   :  { %v897_v7 = vpop.eup %896 }
 0x15e   :  { %766 = vst.msk [vmem:[%s1623_s3 + $0xf8] sm:$0xff] %vm218_vm0, %v733_v19  ;;  %v683_v9 = vadd.f32 1.0, %v897_v7 }
 0x160   :  { %v899_v11 = vpop.eup %898  ;;  %v716_v60 = vmul.f32 %v683_v9, %v452_v31 }
 0x161   :  { %v901_v8 = vpop.eup %900  ;;  %v701_v52 = vadd.f32 1.0, %v899_v11 }
 0x162   :  { %v903_v37 = vpop.eup %902  ;;  %749 = vst.msk [vmem:[%s1623_s3 + $0x70] sm:$0xff] %vm218_vm0, %v716_v60  ;;  %v684_v21 = vadd.f32 1.0, %v901_v8 }
 0x163   :  { %v734_v22 = vmul.f32 %v701_v52, %v470_v26  ;;  %v685_v10 = vadd.f32 1.0, %v903_v37 }
 0x164   :  { %v717_v61 = vmul.f32 %v684_v21, %v453_v43 }
 0x165   :  { %768 = vst.msk [vmem:[%s1623_s3 + $0x100] sm:$0x3f] %vm767_vm1, %v734_v22  ;;  %v718_v14 = vmul.f32 %v685_v10, %v454_v56 }
 0x166   :  { %v905_v23 = vpop.eup %904  ;;  %750 = vst.msk [vmem:[%s1623_s3 + $0x78] sm:$0xff] %vm218_vm0, %v717_v61 }
 0x167   :  { %751 = vst.msk [vmem:[%s1623_s3 + $0x80] sm:$0xff] %vm218_vm0, %v718_v14  ;;  %v686_v16 = vadd.f32 1.0, %v905_v23 }
 0x169   :  { %v719_v24 = vmul.f32 %v686_v16, %v455_v15 }
 0x16b   :  { %752 = vst.msk [vmem:[%s1623_s3 + $0x88] sm:$0xff] %vm218_vm0, %v719_v24 }

// kernel: forward.11
= control target key start
LH: loop header
LB: loop body
LE: loop exit
PB: predicated region body
PF: predicated region fallthrough
CT: control target
= control target key end

     0   :  { %v570_v0 = vmov 0   ;;  %vm170_vm0 = vcmask 523264   ;;  %vm471_vm1 = vcmask 517120   ;;  %s963_s1 = inlined_call_operand.vmem [shape: bf16[192,64], index: 1, kind: input, shape index: {}]   ;;  %s964_s0 = inlined_call_operand.vmem [shape: f32[130,192], index: 0, kind: input, shape index: {}]   ;;  %s965_s2 = inlined_call_operand.vmem [shape: f32[1,64], index: 2, kind: input, shape index: {}]   ;;  %s966_s3 = inlined_call_operand.vmem [shape: f32[130,64], index: 3, kind: output, shape index: {}]  }
   0x1   :  { %198 = vmatprep.subr.bf16.mxu0 %v570_v0  ;;  %499 = vmatprep.subr.bf16.mxu1 %v570_v0  ;;  %v524_v1 = vld [vmem:[%s963_s1] sm:$0xff]   ;;  %v525_v2 = vld [vmem:[%s963_s1 + $0x8] sm:$0xff]   ;;  %v526_v3 = vld [vmem:[%s963_s1 + $0x10] sm:$0xff]  }
   0x2   :  { %199 = vmatpush1.bf16.msra.mxu0 %v524_v1  ;;  %511 = vmatpush1.bf16.msra.mxu1 %v524_v1  ;;  %v527_v4 = vld [vmem:[%s963_s1 + $0x18] sm:$0xff]   ;;  %v16_v5 = vld [vmem:[%s964_s0 + $0x8] sm:$0xff]  ;;  %v528_v10 = vld [vmem:[%s963_s1 + $0x20] sm:$0xff]  }
   0x3   :  { %200 = vmatprep.subr.bf16.mxu0 %v570_v0  ;;  %500 = vmatprep.subr.bf16.mxu1 %v570_v0  ;;  %v18_v6 = vld [vmem:[%s964_s0 + $0x18] sm:$0xff]  ;;  %v36_v7 = vld [vmem:[%s964_s0 + $0xa8] sm:$0xff]  ;;  %v530_v13 = vld [vmem:[%s963_s1 + $0x30] sm:$0xff]  }
   0x4   :  { %v50_v8 = vpack.c.bf16 %v18_v6, %v16_v5  ;;  %v38_v9 = vld [vmem:[%s964_s0 + $0xb8] sm:$0xff]  ;;  %v529_v12 = vld [vmem:[%s963_s1 + $0x28] sm:$0xff]   ;;  %v532_v15 = vld [vmem:[%s963_s1 + $0x40] sm:$0xff]  }
   0x5   :  { %v60_v11 = vpack.c.bf16 %v38_v9, %v36_v7  ;;  %v531_v14 = vld [vmem:[%s963_s1 + $0x38] sm:$0xff]   ;;  %v533_v16 = vld [vmem:[%s963_s1 + $0x48] sm:$0xff]   ;;  %v534_v17 = vld [vmem:[%s963_s1 + $0x50] sm:$0xff]  }
   0x6   :  { %201 = vmatpush1.bf16.msra.mxu0 %v525_v2  ;;  %512 = vmatpush1.bf16.msra.mxu1 %v525_v2  ;;  %v535_v18 = vld [vmem:[%s963_s1 + $0x58] sm:$0xff]   ;;  %v15_v19 = vld [vmem:[%s964_s0] sm:$0xff]  ;;  %v17_v20 = vld [vmem:[%s964_s0 + $0x10] sm:$0xff] }
   0x7   :  { %202 = vmatprep.subr.bf16.mxu0 %v570_v0  ;;  %501 = vmatprep.subr.bf16.mxu1 %v570_v0  ;;  %v35_v21 = vld [vmem:[%s964_s0 + $0xa0] sm:$0xff]  ;;  %v37_v22 = vld [vmem:[%s964_s0 + $0xb0] sm:$0xff]  ;;  %v20_v23 = vld [vmem:[%s964_s0 + $0x28] sm:$0xff]  ;;  %v49_v27 = vpack.c.bf16 %v17_v20, %v15_v19 }
   0x8   :  { %490 = vmatprep.mubr.msk.bf16.mxu0 %vm170_vm0, %v50_v8  ;;  %495 = vmatprep.mubr.msk.bf16.mxu1 %vm170_vm0, %v60_v11  ;;  %v22_v24 = vld [vmem:[%s964_s0 + $0x38] sm:$0xff]  ;;  %v40_v25 = vld [vmem:[%s964_s0 + $0xc8] sm:$0xff]  ;;  %v59_v28 = vpack.c.bf16 %v37_v22, %v35_v21  ;;  %v19_v31 = vld [vmem:[%s964_s0 + $0x20] sm:$0xff] }
   0x9   :  { %v42_v26 = vld [vmem:[%s964_s0 + $0xd8] sm:$0xff]  ;;  %v52_v29 = vpack.c.bf16 %v22_v24, %v20_v23  ;;  %v21_v32 = vld [vmem:[%s964_s0 + $0x30] sm:$0xff]  ;;  %v39_v33 = vld [vmem:[%s964_s0 + $0xc0] sm:$0xff] }
   0xa   :  { %203 = vmatpush1.bf16.msra.mxu0 %v526_v3  ;;  %513 = vmatpush1.bf16.msra.mxu1 %v526_v3  ;;  %v62_v30 = vpack.c.bf16 %v42_v26, %v40_v25  ;;  %v41_v34 = vld [vmem:[%s964_s0 + $0xd0] sm:$0xff]  ;;  %v24_v35 = vld [vmem:[%s964_s0 + $0x48] sm:$0xff]  ;;  %v26_v36 = vld [vmem:[%s964_s0 + $0x58] sm:$0xff]  ;;  %v51_v39 = vpack.c.bf16 %v21_v32, %v19_v31 }
   0xb   :  { %204 = vmatprep.subr.bf16.mxu0 %v570_v0  ;;  %502 = vmatprep.subr.bf16.mxu1 %v570_v0  ;;  %v44_v37 = vld [vmem:[%s964_s0 + $0xe8] sm:$0xff]  ;;  %v46_v38 = vld [vmem:[%s964_s0 + $0xf8] sm:$0xff]  ;;  %v61_v40 = vpack.c.bf16 %v41_v34, %v39_v33  ;;  %v54_v41 = vpack.c.bf16 %v26_v36, %v24_v35  ;;  %v23_v43 = vld [vmem:[%s964_s0 + $0x40] sm:$0xff] }
   0xc   :  { %v64_v42 = vpack.c.bf16 %v46_v38, %v44_v37  ;;  %v25_v44 = vld [vmem:[%s964_s0 + $0x50] sm:$0xff]  ;;  %v43_v45 = vld [vmem:[%s964_s0 + $0xe0] sm:$0xff]  ;;  %v28_v47 = vld [vmem:[%s964_s0 + $0x68] sm:$0xff] }
   0xd   :  { %v45_v46 = vld [vmem:[%s964_s0 + $0xf0] sm:$0xff]  ;;  %v30_v48 = vld [vmem:[%s964_s0 + $0x78] sm:$0xff]  ;;  %v48_v49 = vld [vmem:[%s964_s0 + $0x108] sm:$0x3]  ;;  %v53_v50 = vpack.c.bf16 %v25_v44, %v23_v43 }
   0xe   :  { %205 = vmatpush1.bf16.msra.mxu0 %v527_v4  ;;  %514 = vmatpush1.bf16.msra.mxu1 %v527_v4  ;;  %v63_v51 = vpack.c.bf16 %v45_v46, %v43_v45  ;;  %v56_v52 = vpack.c.bf16 %v30_v48, %v28_v47  ;;  %v66_v53 = vpack.c.bf16 %v48_v49, %v48_v49  ;;  %v27_v54 = vld [vmem:[%s964_s0 + $0x60] sm:$0xff]  ;;  %v29_v55 = vld [vmem:[%s964_s0 + $0x70] sm:$0xff]  ;;  %v32_v57 = vld [vmem:[%s964_s0 + $0x88] sm:$0xff] }
   0xf   :  { %206 = vmatprep.subr.bf16.mxu0 %v570_v0  ;;  %503 = vmatprep.subr.bf16.mxu1 %v570_v0  ;;  %v47_v56 = vld [vmem:[%s964_s0 + $0x100] sm:$0x3]  ;;  %v34_v58 = vld [vmem:[%s964_s0 + $0x98] sm:$0xff]  ;;  %v55_v59 = vpack.c.bf16 %v29_v55, %v27_v54  ;;  %v33_v63 = vld [vmem:[%s964_s0 + $0x90] sm:$0xff] }
  0x10   :  { %v65_v60 = vpack.c.bf16 %v47_v56, %v47_v56  ;;  %v58_v61 = vpack.c.bf16 %v34_v58, %v32_v57  ;;  %v31_v62 = vld [vmem:[%s964_s0 + $0x80] sm:$0xff] }
  0x11   :  { %v765_v1 = vld [vmem:[%s965_s2] ss:$0 sm:$0xff] }
  0x12   :  { %207 = vmatpush1.bf16.msra.mxu0 %v528_v10  ;;  %515 = vmatpush1.bf16.msra.mxu1 %v528_v10 }
  0x13   :  { %208 = vmatprep.subr.bf16.mxu0 %v570_v0  ;;  %504 = vmatprep.subr.bf16.mxu1 %v570_v0 }
  0x16   :  { %209 = vmatpush1.bf16.msra.mxu0 %v529_v12  ;;  %516 = vmatpush1.bf16.msra.mxu1 %v529_v12 }
  0x17   :  { %210 = vmatprep.subr.bf16.mxu0 %v570_v0  ;;  %505 = vmatprep.subr.bf16.mxu1 %v570_v0 }
  0x1a   :  { %211 = vmatpush1.bf16.msra.mxu0 %v530_v13  ;;  %517 = vmatpush1.bf16.msra.mxu1 %v530_v13 }
  0x1b   :  { %212 = vmatprep.subr.bf16.mxu0 %v570_v0  ;;  %506 = vmatprep.subr.bf16.mxu1 %v570_v0 }
  0x1e   :  { %213 = vmatpush1.bf16.msra.mxu0 %v531_v14  ;;  %518 = vmatpush1.bf16.msra.mxu1 %v531_v14 }
  0x1f   :  { %214 = vmatprep.subr.bf16.mxu0 %v570_v0  ;;  %507 = vmatprep.subr.bf16.mxu1 %v570_v0 }
  0x22   :  { %215 = vmatpush1.bf16.msra.mxu0 %v532_v15  ;;  %519 = vmatpush1.bf16.msra.mxu1 %v532_v15 }
  0x23   :  { %216 = vmatprep.subr.bf16.mxu0 %v570_v0  ;;  %508 = vmatprep.subr.bf16.mxu1 %v570_v0 }
  0x26   :  { %217 = vmatpush1.bf16.msra.mxu0 %v533_v16  ;;  %520 = vmatpush1.bf16.msra.mxu1 %v533_v16 }
  0x27   :  { %218 = vmatprep.subr.bf16.mxu0 %v570_v0  ;;  %509 = vmatprep.subr.bf16.mxu1 %v570_v0 }
  0x2a   :  { %219 = vmatpush1.bf16.msra.mxu0 %v534_v17  ;;  %521 = vmatpush1.bf16.msra.mxu1 %v534_v17 }
  0x2b   :  { %220 = vmatprep.subr.bf16.mxu0 %v570_v0  ;;  %510 = vmatprep.subr.bf16.mxu1 %v570_v0  ;;  %v57_v0 = vpack.c.bf16 %v33_v63, %v31_v62 }
  0x2e   :  { %221 = vmatpush1.bf16.msra.mxu0 %v535_v18  ;;  %522 = vmatpush1.bf16.msra.mxu1 %v535_v18 }
  0x31   :  { %231 = vmatmul.mubr.bf16.vlgmr.msra.gmra.mrb[0].mxu0 %v49_v27  ;;  %271 = vmatmul.mubr.bf16.vlgmr.msra.gmra.mrb[0].mxu1 %v59_v28 }
  0x32   :  { %491 = vmatprep.mubr.msk.bf16.mxu0 %vm170_vm0, %v52_v29  ;;  %496 = vmatprep.mubr.msk.bf16.mxu1 %vm170_vm0, %v62_v30 }
  0x39   :  { %239 = vmatmul.mubr.bf16.gmra.mrb[4].mxu0 %v51_v39  ;;  %279 = vmatmul.mubr.bf16.gmra.mrb[4].mxu1 %v61_v40 }
  0x3a   :  { %492 = vmatprep.mubr.msk.bf16.mxu0 %vm170_vm0, %v54_v41  ;;  %497 = vmatprep.mubr.msk.bf16.mxu1 %vm170_vm0, %v64_v42 }
  0x41   :  { %247 = vmatmul.mubr.bf16.gmra.mrb[8].mxu0 %v53_v50  ;;  %287 = vmatmul.mubr.bf16.gmra.mrb[8].mxu1 %v63_v51 }
  0x42   :  { %493 = vmatprep.mubr.msk.bf16.mxu0 %vm170_vm0, %v56_v52  ;;  %498 = vmatprep.mubr.msk.bf16.mxu1 %vm170_vm0, %v66_v53 }
  0x49   :  { %255 = vmatmul.mubr.bf16.gmra.mrb[12].mxu0 %v55_v59  ;;  %295 = vmatmul.mubr.bf16.gmra.mrb[12].mxu1 %v65_v60 }
  0x4a   :  { %494 = vmatprep.mubr.msk.bf16.mxu0 %vm170_vm0, %v58_v61 }
  0x51   :  { %263 = vmatmul.mubr.bf16.gmra.mrb[16].mxu0 %v57_v0 }
 0x104   :  { %v232_v2 = vpop.f32.mrb[0].mxu0  ;;  %v272_v3 = vpop.f32.mrb[0].mxu1 }
 0x105   :  { %v768_v4 = vadd.f32 %v765_v1, %v232_v2  ;;  %v771_v5 = vadd.f32 %v765_v1, %v272_v3  ;;  %v234_v6 = vpop.f32.mrb[1].mxu0  ;;  %v274_v7 = vpop.f32.mrb[1].mxu1 }
 0x106   :  { %v235_v8 = vpop.f32.mrb[2].mxu0  ;;  %v275_v9 = vpop.f32.mrb[2].mxu1 }
 0x107   :  { %v319_v10 = vmul.f32 0.044715, %v768_v4  ;;  %v329_v11 = vmul.f32 0.044715, %v771_v5  ;;  %v776_v12 = vadd.f32 %v765_v1, %v235_v8  ;;  %v779_v13 = vadd.f32 %v765_v1, %v275_v9  ;;  %v237_v14 = vpop.f32.mrb[3].mxu0  ;;  %v277_v15 = vpop.f32.mrb[3].mxu1 }
 0x108   :  { %v302_v2 = vmul.f32 0.5, %v768_v4 }
 0x109   :  { %v336_v16 = vmul.f32 %v319_v10, %v768_v4  ;;  %v346_v17 = vmul.f32 %v329_v11, %v771_v5  ;;  %v320_v18 = vmul.f32 0.044715, %v776_v12  ;;  %v330_v19 = vmul.f32 0.044715, %v779_v13 }
 0x10a   :  { %v312_v10 = vmul.f32 0.5, %v771_v5 }
 0x10b   :  { %v353_v20 = vmul.f32 %v336_v16, %v768_v4  ;;  %v363_v21 = vmul.f32 %v346_v17, %v771_v5  ;;  %v337_v22 = vmul.f32 %v320_v18, %v776_v12  ;;  %v347_v23 = vmul.f32 %v330_v19, %v779_v13 }
 0x10c   :  { %v240_v24 = vpop.f32.mrb[4].mxu0  ;;  %v280_v25 = vpop.f32.mrb[4].mxu1  ;;  %v303_v19 = vmul.f32 0.5, %v776_v12 }
 0x10d   :  { %v370_v26 = vadd.f32 %v353_v20, %v768_v4  ;;  %v380_v27 = vadd.f32 %v363_v21, %v771_v5  ;;  %v792_v28 = vadd.f32 %v765_v1, %v240_v24  ;;  %v795_v29 = vadd.f32 %v765_v1, %v280_v25  ;;  %v242_v30 = vpop.f32.mrb[5].mxu0  ;;  %v282_v31 = vpop.f32.mrb[5].mxu1 }
 0x10e   :  { %v354_v32 = vmul.f32 %v337_v22, %v776_v12  ;;  %v364_v33 = vmul.f32 %v347_v23, %v779_v13  ;;  %v243_v34 = vpop.f32.mrb[6].mxu0  ;;  %v283_v35 = vpop.f32.mrb[6].mxu1 }
 0x10f   :  { %v387_v36 = vmul.f32 0.7978846, %v370_v26  ;;  %v397_v37 = vmul.f32 0.7978846, %v380_v27  ;;  %v321_v40 = vmul.f32 0.044715, %v792_v28  ;;  %v804_v44 = vadd.f32 %v765_v1, %v243_v34 }
 0x110   :  { %v371_v38 = vadd.f32 %v354_v32, %v776_v12  ;;  %v381_v39 = vadd.f32 %v364_v33, %v779_v13  ;;  %v331_v41 = vmul.f32 0.044715, %v795_v29  ;;  %v245_v42 = vpop.f32.mrb[7].mxu0  ;;  %v285_v43 = vpop.f32.mrb[7].mxu1  ;;  %v807_v45 = vadd.f32 %v765_v1, %v283_v35 }
 0x111   :  { %536 = vtanh.f32 %v387_v36  ;;  %v338_v48 = vmul.f32 %v321_v40, %v792_v28  ;;  %v322_v50 = vmul.f32 0.044715, %v804_v44  ;;  %v313_v33 = vmul.f32 0.5, %v779_v13 }
 0x112   :  { %538 = vtanh.f32 %v397_v37  ;;  %v388_v46 = vmul.f32 0.7978846, %v371_v38  ;;  %v398_v47 = vmul.f32 0.7978846, %v381_v39  ;;  %v348_v49 = vmul.f32 %v331_v41, %v795_v29 }
 0x113   :  { %v355_v51 = vmul.f32 %v338_v48, %v792_v28  ;;  %v332_v52 = vmul.f32 0.044715, %v807_v45  ;;  %v339_v56 = vmul.f32 %v322_v50, %v804_v44 }
 0x114   :  { %540 = vtanh.f32 %v388_v46  ;;  %v248_v53 = vpop.f32.mrb[8].mxu0  ;;  %v288_v54 = vpop.f32.mrb[8].mxu1  ;;  %v365_v55 = vmul.f32 %v348_v49, %v795_v29 }
 0x115   :  { %542 = vtanh.f32 %v398_v47  ;;  %v817_v57 = vadd.f32 %v765_v1, %v248_v53  ;;  %v250_v58 = vpop.f32.mrb[9].mxu0  ;;  %v290_v59 = vpop.f32.mrb[9].mxu1  ;;  %v372_v60 = vadd.f32 %v355_v51, %v792_v28  ;;  %v349_v61 = vmul.f32 %v332_v52, %v807_v45 }
 0x116   :  { %v822_v62 = vadd.f32 %v765_v1, %v288_v54  ;;  %v251_v63 = vpop.f32.mrb[10].mxu0  ;;  %v291_v0 = vpop.f32.mrb[10].mxu1  ;;  %v382_v3 = vadd.f32 %v365_v55, %v795_v29  ;;  %v356_v6 = vmul.f32 %v339_v56, %v804_v44 }
 0x117   :  { %v323_v7 = vmul.f32 0.044715, %v817_v57  ;;  %v253_v8 = vpop.f32.mrb[11].mxu0  ;;  %v293_v9 = vpop.f32.mrb[11].mxu1  ;;  %v389_v11 = vmul.f32 0.7978846, %v372_v60  ;;  %v366_v14 = vmul.f32 %v349_v61, %v807_v45  ;;  %v834_v18 = vadd.f32 %v765_v1, %v251_v63 }
 0x118   :  { %v333_v15 = vmul.f32 0.044715, %v822_v62  ;;  %v399_v16 = vmul.f32 0.7978846, %v382_v3  ;;  %v373_v17 = vadd.f32 %v356_v6, %v804_v44  ;;  %v841_v24 = vadd.f32 %v765_v1, %v291_v0 }
 0x119   :  { %v340_v4 = vmul.f32 %v323_v7, %v817_v57  ;;  %544 = vtanh.f32 %v389_v11  ;;  %v383_v20 = vadd.f32 %v366_v14, %v807_v45  ;;  %v324_v12 = vmul.f32 0.044715, %v834_v18 }
 0x11a   :  { %v350_v5 = vmul.f32 %v333_v15, %v822_v62  ;;  %546 = vtanh.f32 %v399_v16  ;;  %v390_v22 = vmul.f32 0.7978846, %v373_v17  ;;  %v334_v13 = vmul.f32 0.044715, %v841_v24 }
 0x11b   :  { %v537_v21 = vpop.eup %536  ;;  %v357_v23 = vmul.f32 %v340_v4, %v817_v57  ;;  %v400_v27 = vmul.f32 0.7978846, %v383_v20  ;;  %v341_v40 = vmul.f32 %v324_v12, %v834_v18  ;;  %v304_v63 = vmul.f32 0.5, %v792_v28 }
 0x11c   :  { %v539_v25 = vpop.eup %538  ;;  %v421_v26 = vadd.f32 1.0, %v537_v21  ;;  %v367_v30 = vmul.f32 %v350_v5, %v822_v62  ;;  %v256_v31 = vpop.f32.mrb[12].mxu0  ;;  %548 = vtanh.f32 %v390_v22  ;;  %v351_v56 = vmul.f32 %v334_v13, %v841_v24 }
 0x11d   :  { %v431_v32 = vadd.f32 1.0, %v539_v25  ;;  %v374_v34 = vadd.f32 %v357_v23, %v817_v57  ;;  %v296_v35 = vpop.f32.mrb[12].mxu1  ;;  %v258_v36 = vpop.f32.mrb[13].mxu0  ;;  %550 = vtanh.f32 %v400_v27  ;;  %v358_v52 = vmul.f32 %v341_v40, %v834_v18 }
 0x11e   :  { %v541_v37 = vpop.eup %540  ;;  %v438_v38 = vmul.f32 %v421_v26, %v302_v2  ;;  %v384_v39 = vadd.f32 %v367_v30, %v822_v62  ;;  %v259_v41 = vpop.f32.mrb[14].mxu0  ;;  %v856_v53 = vadd.f32 %v765_v1, %v256_v31  ;;  %v864_v58 = vadd.f32 %v765_v1, %v296_v35 }
 0x11f   :  { %v298_v42 = vpop.f32.mrb[13].mxu1  ;;  %v543_v43 = vpop.eup %542  ;;  %v448_v46 = vmul.f32 %v431_v32, %v312_v10  ;;  %v422_v47 = vadd.f32 1.0, %v541_v37  ;;  %v391_v48 = vmul.f32 0.7978846, %v374_v34  ;;  %v375_v61 = vadd.f32 %v358_v52, %v834_v18 }
 0x120   :  { %v261_v49 = vpop.f32.mrb[15].mxu0  ;;  %455 = vst.msk [vmem:[%s966_s3] sm:$0xff] %vm170_vm0, %v438_v38  ;;  %v432_v50 = vadd.f32 1.0, %v543_v43  ;;  %v401_v51 = vmul.f32 0.7978846, %v384_v39  ;;  %v299_v54 = vpop.f32.mrb[14].mxu1  ;;  %v368_v0 = vmul.f32 %v351_v56, %v841_v24  ;;  %v882_v10 = vadd.f32 %v765_v1, %v259_v41 }
 0x121   :  { %465 = vst.msk [vmem:[%s966_s3 + $0x50] sm:$0xff] %vm170_vm0, %v448_v46  ;;  %v439_v55 = vmul.f32 %v422_v47, %v303_v19  ;;  %552 = vtanh.f32 %v391_v48  ;;  %v300_v59 = vpop.f32.mrb[15].mxu1  ;;  %v325_v2 = vmul.f32 0.044715, %v856_v53  ;;  %v335_v3 = vmul.f32 0.044715, %v864_v58 }
 0x122   :  { %v449_v60 = vmul.f32 %v432_v50, %v313_v33  ;;  %554 = vtanh.f32 %v401_v51  ;;  %v314_v7 = vmul.f32 0.5, %v795_v29  ;;  %v305_v8 = vmul.f32 0.5, %v804_v44 }
 0x123   :  { %456 = vst.msk [vmem:[%s966_s3 + $0x8] sm:$0xff] %vm170_vm0, %v439_v55  ;;  %v545_v6 = vpop.eup %544  ;;  %v392_v9 = vmul.f32 0.7978846, %v375_v61  ;;  %v385_v15 = vadd.f32 %v368_v0, %v841_v24  ;;  %v342_v16 = vmul.f32 %v325_v2, %v856_v53  ;;  %v352_v17 = vmul.f32 %v335_v3, %v864_v58 }
 0x124   :  { %466 = vst.msk [vmem:[%s966_s3 + $0x58] sm:$0xff] %vm170_vm0, %v449_v60  ;;  %v264_v28 = vpop.f32.mrb[16].mxu0  ;;  %v547_v11 = vpop.eup %546  ;;  %v423_v14 = vadd.f32 1.0, %v545_v6  ;;  %v315_v20 = vmul.f32 0.5, %v807_v45  ;;  %v326_v29 = vmul.f32 0.044715, %v882_v10 }
 0x125   :  { %v266_v4 = vpop.f32.mrb[17].mxu0  ;;  %v433_v19 = vadd.f32 1.0, %v547_v11  ;;  %556 = vtanh.f32 %v392_v9  ;;  %v402_v22 = vmul.f32 0.7978846, %v385_v15  ;;  %v359_v23 = vmul.f32 %v342_v16, %v856_v53 }
 0x126   :  { %v267_v44 = vpop.f32.mrb[18].mxu0  ;;  %v549_v5 = vpop.eup %548  ;;  %v440_v21 = vmul.f32 %v423_v14, %v304_v63  ;;  %v369_v25 = vmul.f32 %v352_v17, %v864_v58  ;;  %v343_v31 = vmul.f32 %v326_v29, %v882_v10  ;;  %v893_v32 = vadd.f32 %v765_v1, %v264_v28 }
 0x127   :  { %v269_v26 = vpop.f32.mrb[19].mxu0  ;;  %v551_v27 = vpop.eup %550  ;;  %v450_v30 = vmul.f32 %v433_v19, %v314_v7  ;;  %v424_v12 = vadd.f32 1.0, %v549_v5  ;;  %558 = vtanh.f32 %v402_v22  ;;  %v376_v33 = vadd.f32 %v359_v23, %v856_v53 }
 0x128   :  { %457 = vst.msk [vmem:[%s966_s3 + $0x10] sm:$0xff] %vm170_vm0, %v440_v21  ;;  %v434_v45 = vadd.f32 1.0, %v551_v27  ;;  %v386_v34 = vadd.f32 %v369_v25, %v864_v58  ;;  %v360_v36 = vmul.f32 %v343_v31, %v882_v10  ;;  %v327_v37 = vmul.f32 0.044715, %v893_v32 }
 0x129   :  { %467 = vst.msk [vmem:[%s966_s3 + $0x60] sm:$0xff] %vm170_vm0, %v450_v30  ;;  %v441_v35 = vmul.f32 %v424_v12, %v305_v8  ;;  %v393_v40 = vmul.f32 0.7978846, %v376_v33  ;;  %v268_v42 = vadd.f32 %v765_v1, %v267_v44  ;;  %v306_v46 = vmul.f32 0.5, %v817_v57 }
 0x12a   :  { %v451_v39 = vmul.f32 %v434_v45, %v315_v20  ;;  %v403_v41 = vmul.f32 0.7978846, %v386_v34  ;;  %v377_v48 = vadd.f32 %v360_v36, %v882_v10  ;;  %v344_v13 = vmul.f32 %v327_v37, %v893_v32 }
 0x12b   :  { %v553_v38 = vpop.eup %552  ;;  %458 = vst.msk [vmem:[%s966_s3 + $0x18] sm:$0xff] %vm170_vm0, %v441_v35  ;;  %v316_v1 = vmul.f32 0.5, %v822_v62  ;;  %560 = vtanh.f32 %v393_v40  ;;  %v328_v50 = vmul.f32 0.044715, %v268_v42  ;;  %v307_v62 = vmul.f32 0.5, %v834_v18 }
 0x12c   :  { %v555_v43 = vpop.eup %554  ;;  %v425_v47 = vadd.f32 1.0, %v553_v38  ;;  %468 = vst.msk [vmem:[%s966_s3 + $0x68] sm:$0xff] %vm170_vm0, %v451_v39  ;;  %562 = vtanh.f32 %v403_v41  ;;  %v394_v52 = vmul.f32 0.7978846, %v377_v48  ;;  %v361_v57 = vmul.f32 %v344_v13, %v893_v32 }
 0x12d   :  { %v435_v49 = vadd.f32 1.0, %v555_v43  ;;  %v345_v55 = vmul.f32 %v328_v50, %v268_v42  ;;  %v317_v6 = vmul.f32 0.5, %v841_v24  ;;  %v308_v11 = vmul.f32 0.5, %v856_v53 }
 0x12e   :  { %v442_v51 = vmul.f32 %v425_v47, %v306_v46  ;;  %564 = vtanh.f32 %v394_v52  ;;  %v378_v59 = vadd.f32 %v361_v57, %v893_v32  ;;  %v318_v14 = vmul.f32 0.5, %v864_v58 }
 0x12f   :  { %v452_v54 = vmul.f32 %v435_v49, %v316_v1  ;;  %v557_v56 = vpop.eup %556  ;;  %v362_v61 = vmul.f32 %v345_v55, %v268_v42  ;;  %v309_v19 = vmul.f32 0.5, %v882_v10  ;;  %v310_v58 = vmul.f32 0.5, %v893_v32 }
 0x130   :  { %459 = vst.msk [vmem:[%s966_s3 + $0x20] sm:$0xff] %vm170_vm0, %v442_v51  ;;  %v426_v60 = vadd.f32 1.0, %v557_v56  ;;  %v395_v63 = vmul.f32 0.7978846, %v378_v59  ;;  %v311_v21 = vmul.f32 0.5, %v268_v42 }
 0x131   :  { %469 = vst.msk [vmem:[%s966_s3 + $0x70] sm:$0xff] %vm170_vm0, %v452_v54  ;;  %v559_v0 = vpop.eup %558  ;;  %v379_v3 = vadd.f32 %v362_v61, %v268_v42 }
 0x132   :  { %v443_v2 = vmul.f32 %v426_v60, %v307_v62  ;;  %v436_v7 = vadd.f32 1.0, %v559_v0  ;;  %566 = vtanh.f32 %v395_v63 }
 0x133   :  { %v396_v8 = vmul.f32 0.7978846, %v379_v3 }
 0x134   :  { %460 = vst.msk [vmem:[%s966_s3 + $0x28] sm:$0xff] %vm170_vm0, %v443_v2  ;;  %v453_v9 = vmul.f32 %v436_v7, %v317_v6 }
 0x135   :  { %v561_v28 = vpop.eup %560  ;;  %568 = vtanh.f32 %v396_v8 }
 0x136   :  { %v563_v18 = vpop.eup %562  ;;  %470 = vst.msk [vmem:[%s966_s3 + $0x78] sm:$0xff] %vm170_vm0, %v453_v9  ;;  %v427_v24 = vadd.f32 1.0, %v561_v28 }
 0x137   :  { %v437_v15 = vadd.f32 1.0, %v563_v18 }
 0x138   :  { %v565_v16 = vpop.eup %564  ;;  %v444_v17 = vmul.f32 %v427_v24, %v308_v11 }
 0x139   :  { %v454_v4 = vmul.f32 %v437_v15, %v318_v14  ;;  %v428_v20 = vadd.f32 1.0, %v565_v16 }
 0x13a   :  { %461 = vst.msk [vmem:[%s966_s3 + $0x30] sm:$0xff] %vm170_vm0, %v444_v17 }
 0x13b   :  { %472 = vst.msk [vmem:[%s966_s3 + $0x80] sm:$0x3] %vm471_vm1, %v454_v4  ;;  %v445_v53 = vmul.f32 %v428_v20, %v309_v19 }
 0x13c   :  { %v567_v29 = vpop.eup %566 }
 0x13d   :  { %462 = vst.msk [vmem:[%s966_s3 + $0x38] sm:$0xff] %vm170_vm0, %v445_v53  ;;  %v429_v10 = vadd.f32 1.0, %v567_v29 }
 0x13f   :  { %v569_v44 = vpop.eup %568  ;;  %v446_v5 = vmul.f32 %v429_v10, %v310_v58 }
 0x140   :  { %v430_v22 = vadd.f32 1.0, %v569_v44 }
 0x141   :  { %463 = vst.msk [vmem:[%s966_s3 + $0x40] sm:$0xff] %vm170_vm0, %v446_v5 }
 0x142   :  { %v447_v23 = vmul.f32 %v430_v22, %v311_v21 }
 0x144   :  { %464 = vst.msk [vmem:[%s966_s3 + $0x48] sm:$0xff] %vm170_vm0, %v447_v23 }

// kernel: forward.12
= control target key start
LH: loop header
LB: loop body
LE: loop exit
PB: predicated region body
PF: predicated region fallthrough
CT: control target
= control target key end

     0   :  { %v374_v0 = vmov 0   ;;  %vm142_vm0 = vcmask 523264   ;;  %s584_s1 = inlined_call_operand.vmem [shape: bf16[192,64], index: 1, kind: input, shape index: {}]   ;;  %s585_s0 = inlined_call_operand.vmem [shape: f32[64,192], index: 0, kind: input, shape index: {}]   ;;  %s586_s2 = inlined_call_operand.vmem [shape: f32[1,64], index: 2, kind: input, shape index: {}]   ;;  %s587_s3 = inlined_call_operand.vmem [shape: f32[64,64], index: 3, kind: output, shape index: {}]  }
   0x1   :  { %155 = vmatprep.subr.bf16.mxu0 %v374_v0  ;;  %321 = vmatprep.subr.bf16.mxu1 %v374_v0  ;;  %v346_v1 = vld [vmem:[%s584_s1] sm:$0xff]   ;;  %v347_v2 = vld [vmem:[%s584_s1 + $0x8] sm:$0xff]   ;;  %v348_v3 = vld [vmem:[%s584_s1 + $0x10] sm:$0xff]  }
   0x2   :  { %156 = vmatpush1.bf16.msra.mxu0 %v346_v1  ;;  %333 = vmatpush1.bf16.msra.mxu1 %v346_v1  ;;  %v349_v4 = vld [vmem:[%s584_s1 + $0x18] sm:$0xff]   ;;  %v16_v5 = vld [vmem:[%s585_s0 + $0x8] sm:$0xff]  ;;  %v350_v10 = vld [vmem:[%s584_s1 + $0x20] sm:$0xff]  }
   0x3   :  { %157 = vmatprep.subr.bf16.mxu0 %v374_v0  ;;  %322 = vmatprep.subr.bf16.mxu1 %v374_v0  ;;  %v18_v6 = vld [vmem:[%s585_s0 + $0x18] sm:$0xff]  ;;  %v24_v7 = vld [vmem:[%s585_s0 + $0x48] sm:$0xff]  ;;  %v352_v13 = vld [vmem:[%s584_s1 + $0x30] sm:$0xff]  }
   0x4   :  { %v32_v8 = vpack.c.bf16 %v18_v6, %v16_v5  ;;  %v26_v9 = vld [vmem:[%s585_s0 + $0x58] sm:$0xff]  ;;  %v351_v12 = vld [vmem:[%s584_s1 + $0x28] sm:$0xff]   ;;  %v354_v15 = vld [vmem:[%s584_s1 + $0x40] sm:$0xff]  }
   0x5   :  { %v36_v11 = vpack.c.bf16 %v26_v9, %v24_v7  ;;  %v353_v14 = vld [vmem:[%s584_s1 + $0x38] sm:$0xff]   ;;  %v355_v16 = vld [vmem:[%s584_s1 + $0x48] sm:$0xff]   ;;  %v356_v17 = vld [vmem:[%s584_s1 + $0x50] sm:$0xff]  }
   0x6   :  { %158 = vmatpush1.bf16.msra.mxu0 %v347_v2  ;;  %334 = vmatpush1.bf16.msra.mxu1 %v347_v2  ;;  %v357_v18 = vld [vmem:[%s584_s1 + $0x58] sm:$0xff]   ;;  %v15_v19 = vld [vmem:[%s585_s0] sm:$0xff]  ;;  %v17_v20 = vld [vmem:[%s585_s0 + $0x10] sm:$0xff] }
   0x7   :  { %159 = vmatprep.subr.bf16.mxu0 %v374_v0  ;;  %323 = vmatprep.subr.bf16.mxu1 %v374_v0  ;;  %v23_v21 = vld [vmem:[%s585_s0 + $0x40] sm:$0xff]  ;;  %v25_v22 = vld [vmem:[%s585_s0 + $0x50] sm:$0xff]  ;;  %v20_v23 = vld [vmem:[%s585_s0 + $0x28] sm:$0xff]  ;;  %v31_v27 = vpack.c.bf16 %v17_v20, %v15_v19 }
   0x8   :  { %317 = vmatprep.mubr.msk.bf16.mxu0 %vm142_vm0, %v32_v8  ;;  %319 = vmatprep.mubr.msk.bf16.mxu1 %vm142_vm0, %v36_v11  ;;  %v22_v24 = vld [vmem:[%s585_s0 + $0x38] sm:$0xff]  ;;  %v28_v25 = vld [vmem:[%s585_s0 + $0x68] sm:$0xff]  ;;  %v35_v28 = vpack.c.bf16 %v25_v22, %v23_v21  ;;  %v19_v31 = vld [vmem:[%s585_s0 + $0x20] sm:$0xff] }
   0x9   :  { %v30_v26 = vld [vmem:[%s585_s0 + $0x78] sm:$0xff]  ;;  %v34_v29 = vpack.c.bf16 %v22_v24, %v20_v23  ;;  %v21_v32 = vld [vmem:[%s585_s0 + $0x30] sm:$0xff]  ;;  %v27_v33 = vld [vmem:[%s585_s0 + $0x60] sm:$0xff] }
   0xa   :  { %160 = vmatpush1.bf16.msra.mxu0 %v348_v3  ;;  %335 = vmatpush1.bf16.msra.mxu1 %v348_v3  ;;  %v38_v30 = vpack.c.bf16 %v30_v26, %v28_v25  ;;  %v29_v34 = vld [vmem:[%s585_s0 + $0x70] sm:$0xff]  ;;  %v33_v35 = vpack.c.bf16 %v21_v32, %v19_v31  ;;  %v304_v37 = vld [vmem:[%s586_s2] ss:$0 sm:$0xff] }
   0xb   :  { %161 = vmatprep.subr.bf16.mxu0 %v374_v0  ;;  %324 = vmatprep.subr.bf16.mxu1 %v374_v0  ;;  %v37_v36 = vpack.c.bf16 %v29_v34, %v27_v33 }
   0xe   :  { %162 = vmatpush1.bf16.msra.mxu0 %v349_v4  ;;  %336 = vmatpush1.bf16.msra.mxu1 %v349_v4 }
   0xf   :  { %163 = vmatprep.subr.bf16.mxu0 %v374_v0  ;;  %325 = vmatprep.subr.bf16.mxu1 %v374_v0 }
  0x12   :  { %164 = vmatpush1.bf16.msra.mxu0 %v350_v10  ;;  %337 = vmatpush1.bf16.msra.mxu1 %v350_v10 }
  0x13   :  { %165 = vmatprep.subr.bf16.mxu0 %v374_v0  ;;  %326 = vmatprep.subr.bf16.mxu1 %v374_v0 }
  0x16   :  { %166 = vmatpush1.bf16.msra.mxu0 %v351_v12  ;;  %338 = vmatpush1.bf16.msra.mxu1 %v351_v12 }
  0x17   :  { %167 = vmatprep.subr.bf16.mxu0 %v374_v0  ;;  %327 = vmatprep.subr.bf16.mxu1 %v374_v0 }
  0x1a   :  { %168 = vmatpush1.bf16.msra.mxu0 %v352_v13  ;;  %339 = vmatpush1.bf16.msra.mxu1 %v352_v13 }
  0x1b   :  { %169 = vmatprep.subr.bf16.mxu0 %v374_v0  ;;  %328 = vmatprep.subr.bf16.mxu1 %v374_v0 }
  0x1e   :  { %170 = vmatpush1.bf16.msra.mxu0 %v353_v14  ;;  %340 = vmatpush1.bf16.msra.mxu1 %v353_v14 }
  0x1f   :  { %171 = vmatprep.subr.bf16.mxu0 %v374_v0  ;;  %329 = vmatprep.subr.bf16.mxu1 %v374_v0 }
  0x22   :  { %172 = vmatpush1.bf16.msra.mxu0 %v354_v15  ;;  %341 = vmatpush1.bf16.msra.mxu1 %v354_v15 }
  0x23   :  { %173 = vmatprep.subr.bf16.mxu0 %v374_v0  ;;  %330 = vmatprep.subr.bf16.mxu1 %v374_v0 }
  0x26   :  { %174 = vmatpush1.bf16.msra.mxu0 %v355_v16  ;;  %342 = vmatpush1.bf16.msra.mxu1 %v355_v16 }
  0x27   :  { %175 = vmatprep.subr.bf16.mxu0 %v374_v0  ;;  %331 = vmatprep.subr.bf16.mxu1 %v374_v0 }
  0x2a   :  { %176 = vmatpush1.bf16.msra.mxu0 %v356_v17  ;;  %343 = vmatpush1.bf16.msra.mxu1 %v356_v17 }
  0x2b   :  { %177 = vmatprep.subr.bf16.mxu0 %v374_v0  ;;  %332 = vmatprep.subr.bf16.mxu1 %v374_v0 }
  0x2e   :  { %178 = vmatpush1.bf16.msra.mxu0 %v357_v18  ;;  %344 = vmatpush1.bf16.msra.mxu1 %v357_v18 }
  0x31   :  { %188 = vmatmul.mubr.bf16.vlgmr.msra.gmra.mrb[0].mxu0 %v31_v27  ;;  %204 = vmatmul.mubr.bf16.vlgmr.msra.gmra.mrb[0].mxu1 %v35_v28 }
  0x32   :  { %318 = vmatprep.mubr.msk.bf16.mxu0 %vm142_vm0, %v34_v29  ;;  %320 = vmatprep.mubr.msk.bf16.mxu1 %vm142_vm0, %v38_v30 }
  0x39   :  { %196 = vmatmul.mubr.bf16.gmra.mrb[4].mxu0 %v33_v35  ;;  %212 = vmatmul.mubr.bf16.gmra.mrb[4].mxu1 %v37_v36 }
 0x104   :  { %v189_v38 = vpop.f32.mrb[0].mxu0  ;;  %v205_v39 = vpop.f32.mrb[0].mxu1 }
 0x105   :  { %v510_v40 = vadd.f32 %v304_v37, %v189_v38  ;;  %v512_v41 = vadd.f32 %v304_v37, %v205_v39  ;;  %v191_v42 = vpop.f32.mrb[1].mxu0  ;;  %v207_v43 = vpop.f32.mrb[1].mxu1 }
 0x106   :  { %v192_v44 = vpop.f32.mrb[2].mxu0  ;;  %v208_v45 = vpop.f32.mrb[2].mxu1 }
 0x107   :  { %v228_v46 = vmul.f32 0.044715, %v510_v40  ;;  %v232_v47 = vmul.f32 0.044715, %v512_v41  ;;  %v516_v48 = vadd.f32 %v304_v37, %v192_v44  ;;  %v518_v49 = vadd.f32 %v304_v37, %v208_v45  ;;  %v194_v50 = vpop.f32.mrb[3].mxu0  ;;  %v210_v51 = vpop.f32.mrb[3].mxu1 }
 0x108   :  { %v220_v39 = vmul.f32 0.5, %v510_v40  ;;  %v224_v44 = vmul.f32 0.5, %v512_v41 }
 0x109   :  { %v236_v52 = vmul.f32 %v228_v46, %v510_v40  ;;  %v240_v53 = vmul.f32 %v232_v47, %v512_v41  ;;  %v229_v54 = vmul.f32 0.044715, %v516_v48  ;;  %v233_v55 = vmul.f32 0.044715, %v518_v49 }
 0x10b   :  { %v244_v56 = vmul.f32 %v236_v52, %v510_v40  ;;  %v248_v57 = vmul.f32 %v240_v53, %v512_v41  ;;  %v237_v58 = vmul.f32 %v229_v54, %v516_v48  ;;  %v241_v59 = vmul.f32 %v233_v55, %v518_v49 }
 0x10c   :  { %v197_v60 = vpop.f32.mrb[4].mxu0  ;;  %v213_v61 = vpop.f32.mrb[4].mxu1  ;;  %v221_v52 = vmul.f32 0.5, %v516_v48 }
 0x10d   :  { %v252_v62 = vadd.f32 %v244_v56, %v510_v40  ;;  %v256_v63 = vadd.f32 %v248_v57, %v512_v41  ;;  %v530_v0 = vadd.f32 %v304_v37, %v197_v60  ;;  %v532_v1 = vadd.f32 %v304_v37, %v213_v61  ;;  %v199_v2 = vpop.f32.mrb[5].mxu0  ;;  %v215_v3 = vpop.f32.mrb[5].mxu1 }
 0x10e   :  { %v245_v4 = vmul.f32 %v237_v58, %v516_v48  ;;  %v249_v5 = vmul.f32 %v241_v59, %v518_v49  ;;  %v200_v6 = vpop.f32.mrb[6].mxu0  ;;  %v216_v7 = vpop.f32.mrb[6].mxu1  ;;  %v225_v40 = vmul.f32 0.5, %v518_v49 }
 0x10f   :  { %v260_v8 = vmul.f32 0.7978846, %v252_v62  ;;  %v264_v9 = vmul.f32 0.7978846, %v256_v63  ;;  %v230_v12 = vmul.f32 0.044715, %v530_v0  ;;  %v201_v16 = vadd.f32 %v304_v37, %v200_v6 }
 0x110   :  { %v253_v10 = vadd.f32 %v245_v4, %v516_v48  ;;  %v257_v11 = vadd.f32 %v249_v5, %v518_v49  ;;  %v234_v13 = vmul.f32 0.044715, %v532_v1  ;;  %v202_v14 = vpop.f32.mrb[7].mxu0  ;;  %v218_v15 = vpop.f32.mrb[7].mxu1  ;;  %v217_v17 = vadd.f32 %v304_v37, %v216_v7 }
 0x111   :  { %358 = vtanh.f32 %v260_v8  ;;  %v238_v20 = vmul.f32 %v230_v12, %v530_v0  ;;  %v231_v22 = vmul.f32 0.044715, %v201_v16  ;;  %v222_v56 = vmul.f32 0.5, %v530_v0 }
 0x112   :  { %360 = vtanh.f32 %v264_v9  ;;  %v261_v18 = vmul.f32 0.7978846, %v253_v10  ;;  %v265_v19 = vmul.f32 0.7978846, %v257_v11  ;;  %v242_v21 = vmul.f32 %v234_v13, %v532_v1 }
 0x113   :  { %v246_v23 = vmul.f32 %v238_v20, %v530_v0  ;;  %v235_v24 = vmul.f32 0.044715, %v217_v17  ;;  %v239_v26 = vmul.f32 %v231_v22, %v201_v16  ;;  %v226_v58 = vmul.f32 0.5, %v532_v1 }
 0x114   :  { %362 = vtanh.f32 %v261_v18  ;;  %v250_v25 = vmul.f32 %v242_v21, %v532_v1  ;;  %v223_v2 = vmul.f32 0.5, %v201_v16  ;;  %v227_v4 = vmul.f32 0.5, %v217_v17 }
 0x115   :  { %364 = vtanh.f32 %v265_v19  ;;  %v254_v27 = vadd.f32 %v246_v23, %v530_v0  ;;  %v243_v28 = vmul.f32 %v235_v24, %v217_v17  ;;  %v247_v30 = vmul.f32 %v239_v26, %v201_v16 }
 0x116   :  { %v258_v29 = vadd.f32 %v250_v25, %v532_v1 }
 0x117   :  { %v262_v31 = vmul.f32 0.7978846, %v254_v27  ;;  %v251_v32 = vmul.f32 %v243_v28, %v217_v17  ;;  %v255_v34 = vadd.f32 %v247_v30, %v201_v16 }
 0x118   :  { %v266_v33 = vmul.f32 0.7978846, %v258_v29 }
 0x119   :  { %366 = vtanh.f32 %v262_v31  ;;  %v259_v35 = vadd.f32 %v251_v32, %v217_v17  ;;  %v263_v37 = vmul.f32 0.7978846, %v255_v34 }
 0x11a   :  { %368 = vtanh.f32 %v266_v33 }
 0x11b   :  { %v359_v36 = vpop.eup %358  ;;  %v267_v43 = vmul.f32 0.7978846, %v259_v35  ;;  %370 = vtanh.f32 %v263_v37 }
 0x11c   :  { %v361_v38 = vpop.eup %360  ;;  %v276_v42 = vadd.f32 1.0, %v359_v36 }
 0x11d   :  { %v280_v45 = vadd.f32 1.0, %v361_v38  ;;  %372 = vtanh.f32 %v267_v43 }
 0x11e   :  { %v363_v46 = vpop.eup %362  ;;  %v284_v47 = vmul.f32 %v276_v42, %v220_v39 }
 0x11f   :  { %v365_v50 = vpop.eup %364  ;;  %v288_v51 = vmul.f32 %v280_v45, %v224_v44  ;;  %v277_v53 = vadd.f32 1.0, %v363_v46 }
 0x120   :  { %292 = vst.msk [vmem:[%s587_s3] sm:$0xff] %vm142_vm0, %v284_v47  ;;  %v281_v54 = vadd.f32 1.0, %v365_v50 }
 0x121   :  { %296 = vst.msk [vmem:[%s587_s3 + $0x20] sm:$0xff] %vm142_vm0, %v288_v51  ;;  %v285_v41 = vmul.f32 %v277_v53, %v221_v52 }
 0x122   :  { %v289_v55 = vmul.f32 %v281_v54, %v225_v40 }
 0x123   :  { %293 = vst.msk [vmem:[%s587_s3 + $0x8] sm:$0xff] %vm142_vm0, %v285_v41  ;;  %v367_v48 = vpop.eup %366 }
 0x124   :  { %297 = vst.msk [vmem:[%s587_s3 + $0x28] sm:$0xff] %vm142_vm0, %v289_v55  ;;  %v369_v49 = vpop.eup %368  ;;  %v278_v57 = vadd.f32 1.0, %v367_v48 }
 0x125   :  { %v282_v59 = vadd.f32 1.0, %v369_v49  ;;  %v371_v60 = vpop.eup %370 }
 0x126   :  { %v286_v61 = vmul.f32 %v278_v57, %v222_v56  ;;  %v279_v3 = vadd.f32 1.0, %v371_v60 }
 0x127   :  { %v373_v62 = vpop.eup %372  ;;  %v290_v63 = vmul.f32 %v282_v59, %v226_v58 }
 0x128   :  { %294 = vst.msk [vmem:[%s587_s3 + $0x10] sm:$0xff] %vm142_vm0, %v286_v61  ;;  %v283_v5 = vadd.f32 1.0, %v373_v62  ;;  %v287_v0 = vmul.f32 %v279_v3, %v223_v2 }
 0x129   :  { %298 = vst.msk [vmem:[%s587_s3 + $0x30] sm:$0xff] %vm142_vm0, %v290_v63 }
 0x12a   :  { %v291_v1 = vmul.f32 %v283_v5, %v227_v4  ;;  %295 = vst.msk [vmem:[%s587_s3 + $0x18] sm:$0xff] %vm142_vm0, %v287_v0 }
 0x12c   :  { %299 = vst.msk [vmem:[%s587_s3 + $0x38] sm:$0xff] %vm142_vm0, %v291_v1 }

// kernel: forward.13
= control target key start
LH: loop header
LB: loop body
LE: loop exit
PB: predicated region body
PF: predicated region fallthrough
CT: control target
= control target key end

     0   :  { %vm177_vm0 = vcmask 523264   ;;  %s312_s1 = inlined_call_operand.vmem [shape: bf16[128,64], index: 1, kind: input, shape index: {}]   ;;  %s313_s0 = inlined_call_operand.vmem [shape: f32[32,128], index: 0, kind: input, shape index: {}]   ;;  %s314_s2 = inlined_call_operand.vmem [shape: f32[1,64], index: 2, kind: input, shape index: {}]   ;;  %s315_s3 = inlined_call_operand.vmem [shape: f32[32,64], index: 3, kind: output, shape index: {}]  }
   0x1   :  { %v225_v0 = vld [vmem:[%s312_s1] sm:$0xff]   ;;  %v226_v1 = vld [vmem:[%s312_s1 + $0x8] sm:$0xff]   ;;  %v227_v2 = vld [vmem:[%s312_s1 + $0x10] sm:$0xff]  }
   0x2   :  { %205 = vmatprep.subr.bf16.mxu0 %v225_v0  ;;  %v228_v3 = vld [vmem:[%s312_s1 + $0x18] sm:$0xff]   ;;  %v15_v4 = vld [vmem:[%s313_s0] sm:$0xff]  ;;  %v16_v5 = vld [vmem:[%s313_s0 + $0x8] sm:$0xff] }
   0x3   :  { %206 = vmatpush3.bf16.msra.mxu0 %v225_v0  ;;  %v19_v6 = vpack.c.bf16 %v16_v5, %v15_v4  ;;  %v229_v7 = vld [vmem:[%s312_s1 + $0x20] sm:$0xff]   ;;  %v230_v8 = vld [vmem:[%s312_s1 + $0x28] sm:$0xff]   ;;  %v231_v9 = vld [vmem:[%s312_s1 + $0x30] sm:$0xff]  }
   0x4   :  { %207 = vmatprep.subr.bf16.mxu0 %v226_v1  ;;  %v232_v10 = vld [vmem:[%s312_s1 + $0x38] sm:$0xff]   ;;  %v17_v11 = vld [vmem:[%s313_s0 + $0x10] sm:$0xff]  ;;  %v186_v14 = vld [vmem:[%s314_s2] ss:$0 sm:$0xff] }
   0x5   :  { %221 = vmatprep.mubr.bf16.mxu0 %v19_v6  ;;  %v18_v12 = vld [vmem:[%s313_s0 + $0x18] sm:$0xff] }
   0x6   :  { %v20_v13 = vpack.c.bf16 %v18_v12, %v17_v11 }
   0x7   :  { %208 = vmatpush3.bf16.msra.mxu0 %v226_v1 }
   0x8   :  { %209 = vmatprep.subr.bf16.mxu0 %v227_v2 }
   0xb   :  { %210 = vmatpush3.bf16.msra.mxu0 %v227_v2 }
   0xc   :  { %211 = vmatprep.subr.bf16.mxu0 %v228_v3 }
   0xf   :  { %212 = vmatpush3.bf16.msra.mxu0 %v228_v3 }
  0x10   :  { %213 = vmatprep.subr.bf16.mxu0 %v229_v7 }
  0x13   :  { %214 = vmatpush3.bf16.msra.mxu0 %v229_v7 }
  0x14   :  { %215 = vmatprep.subr.bf16.mxu0 %v230_v8 }
  0x17   :  { %216 = vmatpush3.bf16.msra.mxu0 %v230_v8 }
  0x18   :  { %217 = vmatprep.subr.bf16.mxu0 %v231_v9 }
  0x1b   :  { %218 = vmatpush3.bf16.msra.mxu0 %v231_v9 }
  0x1c   :  { %219 = vmatprep.subr.bf16.mxu0 %v232_v10 }
  0x1f   :  { %220 = vmatpush3.bf16.msra.mxu0 %v232_v10 }
  0x22   :  { %222 = vmatmul.mubr.bf16.vlgmr.msra.gmra.mrb[0].mxu0 %v20_v13 }
  0xf5   :  { %v223_v15 = vpop.f32.mrb[0].mxu0 }
  0xf6   :  { %v135_v16 = vadd.f32 %v223_v15, %v186_v14  ;;  %v126_v17 = vpop.f32.mrb[1].mxu0 }
  0xf7   :  { %v127_v18 = vadd.f32 %v186_v14, %v126_v17  ;;  %v224_v19 = vpop.f32.mrb[2].mxu0 }
  0xf8   :  { %v147_v20 = vmul.f32 0.044715, %v135_v16  ;;  %v138_v21 = vadd.f32 %v224_v19, %v186_v14  ;;  %v129_v22 = vpop.f32.mrb[3].mxu0  ;;  %v143_v45 = vmul.f32 0.5, %v135_v16 }
  0xf9   :  { %v145_v23 = vmul.f32 0.044715, %v127_v18  ;;  %v130_v24 = vadd.f32 %v186_v14, %v129_v22  ;;  %v141_v48 = vmul.f32 0.5, %v127_v18 }
  0xfa   :  { %v151_v25 = vmul.f32 %v147_v20, %v135_v16  ;;  %v148_v26 = vmul.f32 0.044715, %v138_v21  ;;  %v144_v52 = vmul.f32 0.5, %v138_v21 }
  0xfb   :  { %v149_v27 = vmul.f32 %v145_v23, %v127_v18  ;;  %v146_v28 = vmul.f32 0.044715, %v130_v24  ;;  %v142_v55 = vmul.f32 0.5, %v130_v24 }
  0xfc   :  { %v155_v29 = vmul.f32 %v151_v25, %v135_v16  ;;  %v152_v30 = vmul.f32 %v148_v26, %v138_v21 }
  0xfd   :  { %v153_v31 = vmul.f32 %v149_v27, %v127_v18  ;;  %v150_v32 = vmul.f32 %v146_v28, %v130_v24 }
  0xfe   :  { %v159_v33 = vadd.f32 %v155_v29, %v135_v16  ;;  %v156_v34 = vmul.f32 %v152_v30, %v138_v21 }
  0xff   :  { %v157_v35 = vadd.f32 %v153_v31, %v127_v18  ;;  %v154_v36 = vmul.f32 %v150_v32, %v130_v24 }
 0x100   :  { %v163_v37 = vmul.f32 0.7978846, %v159_v33  ;;  %v160_v38 = vadd.f32 %v156_v34, %v138_v21 }
 0x101   :  { %v161_v39 = vmul.f32 0.7978846, %v157_v35  ;;  %v158_v40 = vadd.f32 %v154_v36, %v130_v24 }
 0x102   :  { %233 = vtanh.f32 %v163_v37  ;;  %v164_v41 = vmul.f32 0.7978846, %v160_v38 }
 0x103   :  { %235 = vtanh.f32 %v161_v39  ;;  %v162_v42 = vmul.f32 0.7978846, %v158_v40 }
 0x104   :  { %237 = vtanh.f32 %v164_v41 }
 0x105   :  { %239 = vtanh.f32 %v162_v42 }
 0x10c   :  { %v234_v43 = vpop.eup %233 }
 0x10d   :  { %v236_v44 = vpop.eup %235  ;;  %v171_v46 = vadd.f32 1.0, %v234_v43 }
 0x10e   :  { %v238_v47 = vpop.eup %237  ;;  %v169_v49 = vadd.f32 1.0, %v236_v44 }
 0x10f   :  { %v240_v50 = vpop.eup %239  ;;  %v175_v51 = vmul.f32 %v171_v46, %v143_v45  ;;  %v172_v53 = vadd.f32 1.0, %v238_v47 }
 0x110   :  { %v173_v54 = vmul.f32 %v169_v49, %v141_v48  ;;  %v170_v56 = vadd.f32 1.0, %v240_v50 }
 0x111   :  { %180 = vst.msk [vmem:[%s315_s3 + $0x10] sm:$0xff] %vm177_vm0, %v175_v51  ;;  %v176_v57 = vmul.f32 %v172_v53, %v144_v52 }
 0x112   :  { %178 = vst.msk [vmem:[%s315_s3] sm:$0xff] %vm177_vm0, %v173_v54  ;;  %v174_v58 = vmul.f32 %v170_v56, %v142_v55 }
 0x113   :  { %181 = vst.msk [vmem:[%s315_s3 + $0x18] sm:$0xff] %vm177_vm0, %v176_v57 }
 0x114   :  { %179 = vst.msk [vmem:[%s315_s3 + $0x8] sm:$0xff] %vm177_vm0, %v174_v58 }

// kernel: forward.14
= control target key start
LH: loop header
LB: loop body
LE: loop exit
PB: predicated region body
PF: predicated region fallthrough
CT: control target
= control target key end

     0   :  { %v207_v0 = vmov 0.0   ;;  %vm208_vm0 = vmmov 0   ;;  %vm148_vm1 = vcmask 523264   ;;  %s268_s1 = inlined_call_operand.vmem [shape: bf16[128,64], index: 1, kind: input, shape index: {}]   ;;  %s269_s0 = inlined_call_operand.vmem [shape: f32[16,128], index: 0, kind: input, shape index: {}]   ;;  %s270_s2 = inlined_call_operand.vmem [shape: f32[1,64], index: 2, kind: input, shape index: {}]   ;;  %s271_s3 = inlined_call_operand.vmem [shape: f32[16,64], index: 3, kind: output, shape index: {}]  }
   0x1   :  { %173 = vmatprep.subr.bf16.mxu0 %v207_v0  ;;  %v195_v1 = vld [vmem:[%s268_s1] sm:$0xff]   ;;  %189 = vmatprep.mubr.msk.bf16.mxu0 %vm208_vm0, %v207_v0  ;;  %v196_v2 = vld [vmem:[%s268_s1 + $0x8] sm:$0xff]   ;;  %v197_v3 = vld [vmem:[%s268_s1 + $0x10] sm:$0xff]  }
   0x2   :  { %174 = vmatpush3.bf16.msra.mxu0 %v195_v1  ;;  %v198_v4 = vld [vmem:[%s268_s1 + $0x18] sm:$0xff]   ;;  %v199_v5 = vld [vmem:[%s268_s1 + $0x20] sm:$0xff]   ;;  %v200_v6 = vld [vmem:[%s268_s1 + $0x28] sm:$0xff]  }
   0x3   :  { %175 = vmatprep.subr.bf16.mxu0 %v207_v0  ;;  %v201_v7 = vld [vmem:[%s268_s1 + $0x30] sm:$0xff]   ;;  %v202_v8 = vld [vmem:[%s268_s1 + $0x38] sm:$0xff]   ;;  %v15_v9 = vld [vmem:[%s269_s0] sm:$0xff] }
   0x4   :  { %v16_v10 = vld [vmem:[%s269_s0 + $0x8] sm:$0xff]  ;;  %v155_v12 = vld [vmem:[%s270_s2] ss:$0 sm:$0xff] }
   0x5   :  { %v17_v11 = vpack.c.bf16 %v16_v10, %v15_v9 }
   0x6   :  { %176 = vmatpush3.bf16.msra.mxu0 %v196_v2 }
   0x7   :  { %177 = vmatprep.subr.bf16.mxu0 %v207_v0 }
   0xa   :  { %178 = vmatpush3.bf16.msra.mxu0 %v197_v3 }
   0xb   :  { %179 = vmatprep.subr.bf16.mxu0 %v207_v0 }
   0xe   :  { %180 = vmatpush3.bf16.msra.mxu0 %v198_v4 }
   0xf   :  { %181 = vmatprep.subr.bf16.mxu0 %v207_v0 }
  0x12   :  { %182 = vmatpush3.bf16.msra.mxu0 %v199_v5 }
  0x13   :  { %183 = vmatprep.subr.bf16.mxu0 %v207_v0 }
  0x16   :  { %184 = vmatpush3.bf16.msra.mxu0 %v200_v6 }
  0x17   :  { %185 = vmatprep.subr.bf16.mxu0 %v207_v0 }
  0x1a   :  { %186 = vmatpush3.bf16.msra.mxu0 %v201_v7 }
  0x1b   :  { %187 = vmatprep.subr.bf16.mxu0 %v207_v0 }
  0x1e   :  { %188 = vmatpush3.bf16.msra.mxu0 %v202_v8 }
  0x21   :  { %190 = vmatmul.mubr.bf16.vlgmr.msra.gmra.mrb[0].mxu0 %v17_v11 }
  0xf4   :  { %v123_v13 = vpop.f32.mrb[0].mxu0 }
  0xf5   :  { %v124_v14 = vadd.f32 %v155_v12, %v123_v13  ;;  %v191_v15 = vpop.f32.mrb[1].mxu0 }
  0xf6   :  { %v126_v16 = vpop.f32.mrb[2].mxu0 }
  0xf7   :  { %v132_v17 = vmul.f32 0.044715, %v124_v14  ;;  %v127_v18 = vadd.f32 %v155_v12, %v126_v16  ;;  %v192_v19 = vpop.f32.mrb[3].mxu0  ;;  %v130_v30 = vmul.f32 0.5, %v124_v14 }
  0xf9   :  { %v134_v20 = vmul.f32 %v132_v17, %v124_v14  ;;  %v133_v21 = vmul.f32 0.044715, %v127_v18  ;;  %v131_v34 = vmul.f32 0.5, %v127_v18 }
  0xfb   :  { %v136_v22 = vmul.f32 %v134_v20, %v124_v14  ;;  %v135_v23 = vmul.f32 %v133_v21, %v127_v18 }
  0xfd   :  { %v138_v24 = vadd.f32 %v136_v22, %v124_v14  ;;  %v137_v25 = vmul.f32 %v135_v23, %v127_v18 }
  0xff   :  { %v140_v26 = vmul.f32 0.7978846, %v138_v24  ;;  %v139_v27 = vadd.f32 %v137_v25, %v127_v18 }
 0x101   :  { %203 = vtanh.f32 %v140_v26  ;;  %v141_v28 = vmul.f32 0.7978846, %v139_v27 }
 0x103   :  { %205 = vtanh.f32 %v141_v28 }
 0x10b   :  { %v204_v29 = vpop.eup %203 }
 0x10c   :  { %v144_v31 = vadd.f32 1.0, %v204_v29 }
 0x10d   :  { %v206_v32 = vpop.eup %205 }
 0x10e   :  { %v146_v33 = vmul.f32 %v144_v31, %v130_v30  ;;  %v145_v35 = vadd.f32 1.0, %v206_v32 }
 0x110   :  { %149 = vst.msk [vmem:[%s271_s3] sm:$0xff] %vm148_vm1, %v146_v33  ;;  %v147_v36 = vmul.f32 %v145_v35, %v131_v34 }
 0x112   :  { %150 = vst.msk [vmem:[%s271_s3 + $0x8] sm:$0xff] %vm148_vm1, %v147_v36 }

// kernel: forward.15
= control target key start
LH: loop header
LB: loop body
LE: loop exit
PB: predicated region body
PF: predicated region fallthrough
CT: control target
= control target key end

     0   :  { %s3225_s0 = inlined_call_operand.vmem [shape: f32[2,8,1], index: 0, kind: input, shape index: {}]   ;;  %s3226_s1 = inlined_call_operand.vmem [shape: f32[1,64], index: 1, kind: input, shape index: {}]   ;;  %s3227_s2 = inlined_call_operand.vmem [shape: f32[8,64], index: 2, kind: input, shape index: {}]   ;;  %s3228_s3 = inlined_call_operand.vmem [shape: f32[2,8,64], index: 3, kind: input, shape index: {}]   ;;  %s3229_s4 = inlined_call_operand.vmem [shape: f32[2,1,64], index: 4, kind: input, shape index: {}]   ;;  %s3230_s5 = inlined_call_operand.vmem [shape: f32[2,1,64], index: 5, kind: input, shape index: {}]   ;;  %s3231_s6 = inlined_call_operand.vmem [shape: bf16[2,64,192], index: 6, kind: input, shape index: {}]   ;;  %s3232_s7 = inlined_call_operand.vmem [shape: f32[2,1,192], index: 7, kind: input, shape index: {}]   ;;  %s3233_s8 = inlined_call_operand.vmem [shape: bf16[2,64,64], index: 8, kind: input, shape index: {}]   ;;  %s3234_s9 = inlined_call_operand.vmem [shape: f32[2,1,64], index: 9, kind: input, shape index: {}]   ;;  %s3235_s10 = inlined_call_operand.vmem [shape: f32[2,1,64], index: 10, kind: input, shape index: {}]   ;;  %s3236_s11 = inlined_call_operand.vmem [shape: f32[2,1,64], index: 11, kind: input, shape index: {}]   ;;  %s3237_s12 = inlined_call_operand.vmem [shape: bf16[2,64,256], index: 12, kind: input, shape index: {}]   ;;  %s3238_s13 = inlined_call_operand.vmem [shape: f32[2,1,256], index: 13, kind: input, shape index: {}]   ;;  %s3239_s14 = inlined_call_operand.vmem [shape: bf16[2,256,64], index: 14, kind: input, shape index: {}]   ;;  %s3240_s15 = inlined_call_operand.vmem [shape: f32[2,1,64], index: 15, kind: input, shape index: {}]   ;;  %s3241_s16 = inlined_call_operand.vmem [shape: f32[1,64], index: 16, kind: input, shape index: {}]   ;;  %s3242_s17 = inlined_call_operand.vmem [shape: f32[1,64], index: 17, kind: input, shape index: {}]   ;;  %s3243_s18 = inlined_call_operand.vmem [shape: bf16[64,48], index: 18, kind: input, shape index: {}]   ;;  %s3244_s19 = inlined_call_operand.vmem [shape: f32[1,48], index: 19, kind: input, shape index: {}]   ;;  %s3245_s20 = inlined_call_operand.hbm [shape: f32[2,8,48], index: 20, kind: output, shape index: {}]  }
   0x1   :  { %3262 = sst [smem:[#allocation19_spill]] %s3225_s0 }
   0x2   :  { %3263 = sst [smem:[#allocation20_spill]] %s3226_s1 }
   0x3   :  { %3264 = sst [smem:[#allocation21_spill]] %s3227_s2 }
   0x4   :  { %3265 = sst [smem:[#allocation22_spill]] %s3228_s3 }
   0x5   :  { %3266 = sst [smem:[#allocation23_spill]] %s3229_s4 }
   0x6   :  { %3267 = sst [smem:[#allocation24_spill]] %s3230_s5 }
   0x7   :  { %3268 = sst [smem:[#allocation25_spill]] %s3231_s6 }
   0x8   :  { %3269 = sst [smem:[#allocation26_spill]] %s3232_s7 }
   0x9   :  { %3270 = sst [smem:[#allocation27_spill]] %s3233_s8 }
   0xa   :  { %3271 = sst [smem:[#allocation28_spill]] %s3240_s15 }
   0xb   :  { %3272 = sst [smem:[#allocation29_spill]] %s3241_s16 }
   0xc   :  { %3273 = sst [smem:[#allocation30_spill]] %s3242_s17 }
   0xd   :  { %3274 = sst [smem:[#allocation31_spill]] %s3243_s18 }
   0xe   :  { %3275 = sst [smem:[#allocation32_spill]] %s3244_s19 }
   0xf   :  { %3276 = sst [smem:[#allocation33_spill]] %s3245_s20 }
  0x10   :  { %25 = vsyncpa [#allocation4], 0 }
  0x11   :  { %27 = vsyncpa [#allocation4 + $0x1], 0  ;;  %s2816_s1 = smov 0   ;;  %s2818_s22 = smov 0  }
  0x12   :  { %s2820_s23 = smov 0   ;;  %s2822_s24 = smov 0  }
  0x13   :  { %s2824_s2 = smov 0   ;;  %s2826_s25 = smov 0  }
  0x14   :  { %s2828_s3 = smov 0   ;;  %s2830_s26 = smov 0  }
  0x15 LB: > { %3277 = sst [smem:[#allocation6_spill]] %s2667_s1  ;;  %s2232_s27 = sadd.s32 4294967295, %s2695_s26   ;;  %s2695_s26 = sphi %s2830_s26, %s33_s26   ;;  %s2691_s3 = sphi %s2828_s3, %s3330_s3   ;;  %s2687_s25 = sphi %s2826_s25, %s3329_s25   ;;  %s2683_s2 = sphi %s2824_s2, %s3328_s2   ;;  %s2679_s24 = sphi %s2822_s24, %s3327_s24   ;;  %s2675_s23 = sphi %s2820_s23, %s3326_s23   ;;  %s2671_s22 = sphi %s2818_s22, %s3325_s22   ;;  %s2667_s1 = sphi %s2816_s1, %s3324_s1  }
  0x16   : > { %3278 = sst [smem:[#allocation7_spill]] %s2671_s22  ;;  %s2233_s28 = sadd.s32 4294967294, %s2695_s26  }
  0x17   : > { %3279 = sst [smem:[#allocation8_spill]] %s2675_s23  ;;  %s42_s4 = sadd.s32 1, %s2687_s25 }
  0x18   : > { %3280 = sst [smem:[#allocation9_spill]] %s2679_s24  ;;  %p43_p0 = scmp.ge.s32.totalorder %s42_s4, 2 }
  0x19   : > { %3281 = sst [smem:[#allocation10_spill]] %s2683_s2  ;;  %s45_s29 = sadd.s32 1, %s2691_s3 }
  0x1a   : > { %3282 = sst [smem:[#allocation11_spill]] %s2687_s25  ;;  %p552_p1 = scmp.ne.s32.totalorder %s2675_s23, %s2671_s22 }
  0x1b   : > { %3283 = sst [smem:[#allocation12_spill]] %s2691_s3  ;;  %p553_p2 = scmp.eq.s32.totalorder %s2232_s27, 3 }
  0x1c   : > { %3284 = sst [smem:[#allocation13_spill]] %s2695_s26  ;;  %s3332_s4 = smov (%p43_p0, %s42_s4), 0 }
  0x1d   : > { %3285 = sst [smem:[#allocation14_spill]] %s3332_s4  ;;  %s3334_s29 = smov (!%p43_p0, %s45_s29), %s2691_s3 }
  0x1e   : > { %p2865_p3 = por %p553_p2, %p552_p1  ;;  %p558_p4 = scmp.ne.s32.totalorder %s2671_s22, %s2667_s1 }
  0x1f   : > { %p47_p5 = scmp.ge.s32.totalorder %s3334_s29, 2  ;;  %p559_p6 = scmp.eq.s32.totalorder %s2233_s28, 3 }
  0x20   : > { %s3286_s30 = scalar_select %p2865_p3, 1, 0 }
  0x21   : > { %p2236_p7 = scmp.ge.s32.totalorder %s2695_s26, 1  ;;  %p691_p8 = scmp.lt.s32.totalorder %s2695_s26, 5 }
  0x22   : > { %3287 = sst [smem:[#allocation15_spill]] %s3286_s30  ;;  %s3336_s29 = smov (%p47_p5, %s3334_s29), 0 }
  0x23   : > { %3288 = sst [smem:[#allocation16_spill]] %s3336_s29  ;;  %p2875_p9 = por %p559_p6, %p558_p4 }
  0x24   : > { %p692_p10 = pnand %p2236_p7, %p691_p8  ;;  %s539_s21 = ssub.s32 %s2691_s3, %s3336_s29 }
  0x25   : > { %s3289_s0 = scalar_select %p2875_p9, 1, 0 }
  0x26   : > { %s542_s27 = sadd.s32 1, %s2675_s23  ;;  %p540_p11 = scmp.eq.s32.totalorder %s539_s21, 0 }
  0x27   : > { %3290 = sst [smem:[#allocation17_spill]] %s3289_s0  ;;  %695 = sbr.rel (%p692_p10) target bundleno = 3328 (0xd00), region = 100 }
  0x28   : > { %s2883_s4 = scalar_select %p540_p11, %s2675_s23, %s542_s27  }
  0x29   : > { %s3251_s28 = sand.u32 (!%p692_p10), 1, %s2671_s22   ;;  %p798_p12 = scmp.lt.s32.totalorder (!%p692_p10), %s2683_s2, 1 }
  0x2a   : > { %3291 = sst [smem:[#allocation18_spill]] %s2883_s4  ;;  %s2889_s25 = sshll.u32 (!%p692_p10), %s3251_s28, 3 }
  0x2b   : > { %p806_p13 = scmp.lt.s32.totalorder (!%p692_p10), %s2679_s24, 1  ;;  %s3292_s3 = sld [smem:[#allocation19_spill]] (!%p692_p10) }
  0x2c   : > { %s3293_s26 = sld [smem:[#allocation22_spill]] (!%p692_p10)  ;;  %s3296_s6 = sld [smem:[#allocation25_spill]] (!%p692_p10) }
  0x2d   : > { %s3297_s7 = sld [smem:[#allocation26_spill]] (!%p692_p10)  ;;  %s3298_s8 = sld [smem:[#allocation27_spill]] (!%p692_p10) }
  0x2e   : > { %s799_s0 = scalar_select %p798_p12, %s2683_s2, 1 }
  0x2f   : > { %s2894_s1 = scalar_select %p806_p13, %s2679_s24, 1 }
  0x30   : > { %s2238_s21 = sshll.u32 %s799_s0, 3  ;;  %s797_s27 = scalar_lea.vmem [#allocation3], %s2889_s25 }
  0x31   : > { %s801_s4 = scalar_lea.vmem %s3292_s3, %s2238_s21  ;;  %s2318_s0 = sshll.u32 %s2894_s1, 6 }
  0x32   : > { %s805_s20 = scalar_lea.vmem %s3293_s26, %s2238_s21  ;;  %s2242_s24 = sshll.u32 %s2894_s1, 1 }
  0x33   : > { %s2915_s3 = scalar_lea.vmem %s3296_s6, %s2318_s0  ;;  %s2920_s26 = scalar_lea.vmem %s3297_s7, %s2242_s24 }
  0x34   : > { %s2319_s22 = sshll.u32 %s2894_s1, 5  ;;  %s2943_s5 = scalar_lea.vmem %s3237_s12, %s2318_s0 }
  0x35   : > { %s2930_s21 = scalar_lea.vmem %s3298_s8, %s2319_s22  ;;  %s2948_s28 = scalar_lea.vmem %s3238_s13, %s2242_s24 }
  0x36   : > { %s2321_s22 = sshll.u32 %s2894_s1, 7  ;;  %s3299_s6 = sld [smem:[#allocation28_spill]] }
  0x37   : > { %s2954_s18 = scalar_lea.vmem %s3239_s14, %s2321_s22  ;;  %s3300_s8 = sld [smem:[#allocation9_spill]] }
  0x3c   : > { %s851_s29 = scalar_lea.vmem %s3299_s6, %s2894_s1 }
  0x3d   : > { %p2250_p0 = scmp.ne.s32.totalorder %s3300_s8, 0 }
  0x3e   : > { %v857_v0 = vld [vmem:[%s801_s4] sm:$0xff] (!%p2250_p0)  ;;  %v2697_v1 = vmov (!%p2250_p0), 0   ;;  %s3301_s0 = sld [smem:[#allocation20_spill]] (!%p2250_p0)  ;;  %s3302_s2 = sld [smem:[#allocation21_spill]] (!%p2250_p0)  ;;  %vm875_vm2 = vcmask (!%p2250_p0), 523264  }
  0x3f   : > { %856 = sbr.rel (%p2250_p0) target bundleno = 198 (0xc6), region = 104  ;;  %2526 = vset.pattern.permute.xlu0 (!%p2250_p0), %v2697_v1  ;;  %vm858_vm0 = vcmp.gt.f32.partialorder (!%p2250_p0), %v857_v0, 0.5  ;;  %v860_v4 = vld [vmem:[%s805_s20] sm:$0xff] (!%p2250_p0) }
  0x40   : > { %v861_v2 = vsel (!%p2250_p0), %vm858_vm0, 1, %v2697_v1 }
  0x41   : > { %863 = vperm.xlu0 (!%p2250_p0), %2526, %v861_v2  }
  0x44   : > { %v2251_v3 = vld [vmem:[%s3301_s0] ss:$0 sm:$0xff] (!%p2250_p0) }
  0x45   : > { %v873_v5 = vld [vmem:[%s3302_s2] sm:$0xff] (!%p2250_p0) }
  0xc0   : > { %v864_v6 = vpop.permute.xlu0 %863 }
  0xc1   : > { %vm865_vm1 = vcmp.eq.s32.totalorder %v864_v6, 1 }
  0xc2   : > { %v872_v7 = vsel %vm865_vm1, %v2251_v3, %v860_v4 }
  0xc3   : > { %v874_v8 = vadd.f32 %v873_v5, %v872_v7 }
  0xc5   : > { %876 = vst.msk [vmem:[#allocation2] sm:$0xff] %vm875_vm2, %v874_v8 }
  0xc6 PF: > { %vm880_vm3 = vcmask 523264   ;;  %v2527_v16 = vld [vmem:[%s2915_s3 + $0x4] ss:$8 sps:$4 sm:$0xff]   ;;  %v2529_v17 = vld [vmem:[%s2915_s3] ss:$8 sps:$4 sm:$0xff]   ;;  %v2698_v20 = vmov 0   ;;  %v920_v35 = vlaneseq  ;;  %s3307_s2 = scalar_lea.vmem %s3234_s9, %s2894_s1  ;;  %s3309_s22 = scalar_lea.vmem %s3236_s11, %s2894_s1 }
  0xc7   : > { %v2530_v18 = vld [vmem:[%s2915_s3 + $0x14] ss:$8 sps:$4 sm:$0xff]   ;;  %973 = vmatprep.subr.bf16.mxu1 %v2527_v16  ;;  %v2532_v19 = vld [vmem:[%s2915_s3 + $0x10] ss:$8 sps:$4 sm:$0xff]   ;;  %1005 = vmatprep.mubr.bf16.mxu1 %v2698_v20  ;;  %v2533_v21 = vld [vmem:[%s2915_s3 + $0x24] ss:$8 sps:$4 sm:$0xff]  }
  0xc8   : > { %974 = vmatpush1.bf16.msra.mxu1 %v2529_v17  ;;  %v2535_v22 = vld [vmem:[%s2915_s3 + $0x20] ss:$8 sps:$4 sm:$0xff]   ;;  %v2536_v23 = vld [vmem:[%s2915_s3 + $0x34] ss:$8 sps:$4 sm:$0xff]   ;;  %v2538_v24 = vld [vmem:[%s2915_s3 + $0x30] ss:$8 sps:$4 sm:$0xff]  }
  0xc9   : > { %975 = vmatprep.subr.bf16.mxu1 %v2530_v18  ;;  %s3303_s4 = sld [smem:[#allocation23_spill]]  ;;  %s3305_s17 = sld [smem:[#allocation24_spill]]  ;;  %v2994_v36 = vshrl.u32 %v920_v35, 7  ;;  %v2699_v37 = vmov 0.0   ;;  %v918_v39 = vld [vmem:[%s2920_s26] sm:$0x3] }
  0xca   : > { %2382 = vmatprep.subr.bf16.mxu0 %v2699_v37  ;;  %vm2700_vm4 = vmmov 0   ;;  %s2701_s3 = smov 112   ;;  %s2702_s26 = smov 64   ;;  %vm1019_vm5 = vcmask 130048   ;;  %vm1083_vm6 = vcmask 1043456   ;;  %vm1067_vm7 = vcmask 64512  }
  0xcb   : > { %v922_v38 = vsub.s32 0, %v2994_v36  ;;  %2384 = vmatprep.mubr.msk.bf16.mxu0 %vm2700_vm4, %v2699_v37  ;;  %s2703_s6 = smov 48   ;;  %s2704_s7 = smov 32   ;;  %v926_v47 = vsub.s32 1, %v2994_v36  ;;  %vm1474_vm8 = vcmask 261120   ;;  %vm1476_vm9 = vcmask 392192  }
  0xcc   : > { %v2968_v9 = vld [vmem:[#allocation2] sm:$0xff]  ;;  %976 = vmatpush1.bf16.msra.mxu1 %v2532_v19  ;;  %s2705_s24 = smov 96   ;;  %s2706_s0 = smov 16  }
  0xcd   : > { %v881_v10 = vsel %vm880_vm3, %v2968_v9, 0.0  ;;  %977 = vmatprep.subr.bf16.mxu1 %v2533_v21  ;;  %v923_v40 = vrot.slane %v918_v39, %v922_v38  ;;  %s2707_s23 = smov 80   ;;  %v927_v48 = vrot.slane %v918_v39, %v926_v47 }
  0xce   : > { %882 = vadd.xlane.f32.xlu0 %v881_v10 }
  0xcf   : > { %s3304_s15 = scalar_lea.vmem %s3303_s4, %s2894_s1  ;;  %s3306_s19 = scalar_lea.vmem %s3305_s17, %s2894_s1 }
  0xd0   : > { %978 = vmatpush1.bf16.msra.mxu1 %v2535_v22  ;;  %v2252_v29 = vld [vmem:[%s3304_s15] ss:$0 sm:$0xff]  ;;  %s3308_s4 = scalar_lea.vmem %s3235_s10, %s2894_s1  ;;  %s3311_s17 = sld [smem:[#allocation9_spill]] }
  0xd1   : > { %979 = vmatprep.subr.bf16.mxu1 %v2536_v23  ;;  %v2253_v31 = vld [vmem:[%s3306_s19] ss:$0 sm:$0xff] }
  0xd4   : > { %980 = vmatpush1.bf16.msra.mxu1 %v2538_v24 }
  0xd5   : > { %2370 = vmatprep.subr.bf16.mxu1 %v2699_v37 }
  0xd6   : > { %p2305_p1 = scmp.ne.s32.totalorder %s3311_s17, 1 }
  0xd7   : > { %s3312_s19 = sld [smem:[#allocation31_spill]] (!%p2305_p1)  ;;  %vm2709_vm10 = vmmov (!%p2305_p1), 0   ;;  %s3313_s30 = sld [smem:[#allocation29_spill]] (!%p2305_p1) }
  0xd8   : > { %s3314_s20 = sld [smem:[#allocation30_spill]] (!%p2305_p1) }
 0x15b   : > { %v883_v11 = vpop.xlane.xlu0 %882 }
 0x15c   : > { %v885_v12 = vmul.f32 0.015625, %v883_v11 }
 0x15e   : > { %v886_v13 = vsub.f32 %v2968_v9, %v885_v12 }
 0x160   : > { %v887_v14 = vmul.f32 %v886_v13, %v886_v13 }
 0x162   : > { %v888_v15 = vsel %vm880_vm3, %v887_v14, 0.0 }
 0x163   : > { %889 = vadd.xlane.f32.xlu0 %v888_v15 }
 0x1f0   : > { %v890_v25 = vpop.xlane.xlu0 %889 }
 0x1f1   : > { %v891_v26 = vmul.f32 0.015625, %v890_v25 }
 0x1f3   : > { %v892_v27 = vadd.f32 1e-06, %v891_v26 }
 0x1f5   : > { %2571 = vrsqrt.f32 %v892_v27 }
 0x1ff   : > { %v2572_v28 = vpop.eup %2571 }
 0x200   : > { %v894_v30 = vmul.f32 %v2572_v28, %v886_v13 }
 0x202   : > { %v901_v32 = vmul.f32 %v2252_v29, %v894_v30 }
 0x204   : > { %v908_v33 = vadd.f32 %v2253_v31, %v901_v32 }
 0x206   : > { %v909_v34 = vpack.c.bf16 %v908_v33, %v908_v33 }
 0x208   : > { %2262 = vmatmul.mubr.msk.bf16.vlgmr.msra.gmra.mrb[0].mxu1 %vm880_vm3, %v909_v34 }
 0x209   : > { %2372 = vmatprep.mubr.msk.bf16.mxu1 %vm2700_vm4, %v2699_v37 }
 0x2db   : > { %v1007_v41 = vpop.f32.mrb[0].mxu1 }
 0x2dc   : > { %v1008_v42 = vadd.f32 %v1007_v41, %v923_v40  ;;  %v1009_v43 = vpop.f32.mrb[1].mxu1 }
 0x2dd   : > { %v1011_v44 = vpop.f32.mrb[2].mxu1  ;;  %v1010_v50 = vadd.f32 %v1009_v43, %v927_v48 }
 0x2de   : > { %v1014_v45 = vpack.c.bf16 %v1008_v42, %v1008_v42  ;;  %v1012_v46 = vpop.f32.mrb[3].mxu1 }
 0x2df   : > { %v3017_v53 = vpack.c.bf16 %v1010_v50, %v1010_v50 }
 0x2e0   : > { %1127 = vrot.lane.b32.xlu0 %v1014_v45, %s2701_s3  ;;  %1017 = vrot.lane.b32.xlu1 %v1014_v45, %s2702_s26 }
 0x2e1   : > { %v1085_v56 = vsel %vm1083_vm6, %v3017_v53, 0 }
 0x2e4   : > { %1129 = vrot.lane.b32.xlu1 %v1014_v45, %s2703_s6 }
 0x2e8   : > { %1241 = vrot.lane.b32.xlu1 %v1014_v45, %s2704_s7 }
 0x2ec   : > { %1239 = vrot.lane.b32.xlu1 %v1014_v45, %s2705_s24 }
 0x2f0   : > { %1352 = vrot.lane.b32.xlu1 %v1014_v45, %s2706_s0 }
 0x2f4   : > { %1350 = vrot.lane.b32.xlu1 %v1014_v45, %s2707_s23 }
 0x352   : > { %v1018_v49 = vpop.permute.xlu1 %1017  ;;  %v1128_v57 = vpop.permute.xlu0 %1127 }
 0x353   : > { %v1024_v51 = vsel %vm1019_vm5, %v1018_v49, 0 }
 0x354   : > { %2371 = vmatpush3.bf16.xpose.msra.mxu1 %v1024_v51 }
 0x355   : > { %2376 = vmatprep.subr.bf16.mxu1 %v2699_v37 }
 0x356   : > { %v1130_v52 = vpop.permute.xlu1 %1129 }
 0x357   : > { %v1135_v54 = vsel %vm1019_vm5, %v1130_v52, 0 }
 0x358   : > { %2383 = vmatpush3.bf16.xpose.msra.mxu0 %v1135_v54 }
 0x359   : > { %2394 = vmatprep.subr.bf16.mxu0 %v2699_v37 }
 0x35a   : > { %v1242_v55 = vpop.permute.xlu1 %1241 }
 0x35b   : > { %2373 = vmatmul.mubr.msk.bf16.vlgmr.msra.gmra.mrb[4].mxu1 %vm1019_vm5, %v1014_v45  ;;  %v1247_v59 = vsel %vm1019_vm5, %v1242_v55, 0 }
 0x35c   : > { %2377 = vmatpush3.bf16.msra.mxu1 %v1085_v56  ;;  %2378 = vmatprep.mubr.msk.bf16.mxu1 %vm2700_vm4, %v2699_v37 }
 0x35d   : > { %2388 = vmatprep.subr.bf16.mxu1 %v2699_v37 }
 0x35e   : > { %v1240_v58 = vpop.permute.xlu1 %1239 }
 0x35f   : > { %2385 = vmatmul.mubr.msk.bf16.vlgmr.msra.gmra.mrb[0].mxu0 %vm1019_vm5, %v1128_v57 }
 0x360   : > { %2395 = vmatpush3.bf16.xpose.msra.mxu0 %v1247_v59  ;;  %2396 = vmatprep.mubr.msk.bf16.mxu0 %vm2700_vm4, %v2699_v37 }
 0x361   : > { %2406 = vmatprep.subr.bf16.mxu0 %v2699_v37 }
 0x362   : > { %v1353_v60 = vpop.permute.xlu1 %1352 }
 0x363   : > { %v1358_v61 = vsel %vm1019_vm5, %v1353_v60, 0 }
 0x366   : > { %v1351_v62 = vpop.permute.xlu1 %1350 }
 0x367   : > { %2397 = vmatmul.mubr.msk.bf16.vlgmr.msra.gmra.mrb[4].mxu0 %vm1019_vm5, %v1240_v58 }
 0x368   : > { %2407 = vmatpush3.bf16.xpose.msra.mxu0 %v1358_v61  ;;  %2408 = vmatprep.mubr.msk.bf16.mxu0 %vm2700_vm4, %v2699_v37 }
 0x369   : > { %2418 = vmatprep.subr.bf16.mxu0 %v2699_v37 }
 0x36f   : > { %2409 = vmatmul.mubr.msk.bf16.vlgmr.msra.gmra.mrb[8].mxu0 %vm1019_vm5, %v1351_v62 }
 0x370   : > { %2426 = vmatprep.mubr.msk.bf16.mxu0 %vm2700_vm4, %v2699_v37 }
 0x42e   : > { %v1060_v63 = vpop.f32.mrb[4].mxu1 }
 0x42f   : > { %v1066_v0 = vmul.f32 0.25, %v1060_v63  ;;  %v2374_v1 = vpop.f32.mrb[5].mxu1 }
 0x430   : > { %v1063_v2 = vpop.f32.mrb[6].mxu1 }
 0x431   : > { %v2375_v3 = vpop.f32.mrb[7].mxu1  ;;  %v1068_v4 = vsel %vm1067_vm7, %v1066_v0, -inf }
 0x432   : > { %1069 = vmax.xlane.f32.xlu1 %v1068_v4  ;;  %v1171_v5 = vpop.f32.mrb[0].mxu0 }
 0x433   : > { %v1177_v6 = vmul.f32 0.25, %v1171_v5  ;;  %v2386_v7 = vpop.f32.mrb[1].mxu0 }
 0x434   : > { %v1174_v8 = vpop.f32.mrb[2].mxu0  ;;  %v2539_v7 = vld [vmem:[%s2930_s21] sm:$0xff]  }
 0x435   : > { %v2387_v10 = vpop.f32.mrb[3].mxu0  ;;  %v1178_v11 = vsel %vm1067_vm7, %v1177_v6, -inf  ;;  %2419 = vmatpush3.bf16.msra.mxu0 %v2539_v7  ;;  %v2558_v7 = vld [vmem:[%s2954_s18 + $0x8] sm:$0xff]  }
 0x436   : > { %1179 = vmax.xlane.f32.xlu0 %v1178_v11  ;;  %2420 = vmatprep.subr.bf16.mxu0 %v2699_v37 }
 0x43a   : > { %v1283_v12 = vpop.f32.mrb[4].mxu0 }
 0x43b   : > { %v1289_v13 = vmul.f32 0.25, %v1283_v12  ;;  %v2398_v14 = vpop.f32.mrb[5].mxu0 }
 0x43c   : > { %v1286_v15 = vpop.f32.mrb[6].mxu0 }
 0x43d   : > { %v2399_v16 = vpop.f32.mrb[7].mxu0  ;;  %v1290_v17 = vsel %vm1067_vm7, %v1289_v13, -inf }
 0x43e   : > { %1291 = vmax.xlane.f32.xlu1 %v1290_v17  ;;  %v2540_v17 = vld [vmem:[%s2930_s21 + $0x8] sm:$0xff]  }
 0x43f   : > { %2421 = vmatpush3.bf16.msra.mxu0 %v2540_v17  ;;  %v2567_v17 = vld [vmem:[%s2954_s18 + $0x70] sm:$0xff]  }
 0x440   : > { %2422 = vmatprep.subr.bf16.mxu0 %v2699_v37 }
 0x442   : > { %v1394_v18 = vpop.f32.mrb[8].mxu0 }
 0x443   : > { %v1400_v19 = vmul.f32 0.25, %v1394_v18  ;;  %v2410_v21 = vpop.f32.mrb[9].mxu0  ;;  %v2541_v18 = vld [vmem:[%s2930_s21 + $0x10] sm:$0xff]  }
 0x444   : > { %v1397_v22 = vpop.f32.mrb[10].mxu0  ;;  %2423 = vmatpush3.bf16.msra.mxu0 %v2541_v18  ;;  %v2568_v18 = vld [vmem:[%s2954_s18 + $0x30] sm:$0xff]  }
 0x445   : > { %v2411_v23 = vpop.f32.mrb[11].mxu0  ;;  %v1401_v24 = vsel %vm1067_vm7, %v1400_v19, -inf  ;;  %2424 = vmatprep.subr.bf16.mxu0 %v2699_v37 }
 0x446   : > { %1402 = vmax.xlane.f32.xlu0 %v1401_v24 }
 0x4bf   : > { %v1070_v25 = vpop.xlane.xlu1 %1069 }
 0x4c0   : > { %v1071_v26 = vsub.f32 %v1066_v0, %v1070_v25 }
 0x4c2   : > { %v1072_v27 = vmul.f32 1.442695, %v1071_v26 }
 0x4c3   : > { %v1180_v28 = vpop.xlane.xlu0 %1179 }
 0x4c4   : > { %2573 = vpow2.f32 %v1072_v27  ;;  %v1181_v29 = vsub.f32 %v1177_v6, %v1180_v28 }
 0x4c6   : > { %v1182_v30 = vmul.f32 1.442695, %v1181_v29 }
 0x4c8   : > { %2575 = vpow2.f32 %v1182_v30 }
 0x4cb   : > { %v1292_v43 = vpop.xlane.xlu1 %1291 }
 0x4cc   : > { %v1293_v44 = vsub.f32 %v1289_v13, %v1292_v43 }
 0x4ce   : > { %v2574_v31 = vpop.eup %2573  ;;  %v1294_v45 = vmul.f32 1.442695, %v1293_v44 }
 0x4cf   : > { %v1074_v32 = vsel %vm1067_vm7, %v2574_v31, 0.0 }
 0x4d0   : > { %1075 = vadd.xlane.f32.xlu1 %v1074_v32 }
 0x4d2   : > { %v2576_v33 = vpop.eup %2575 }
 0x4d3   : > { %v1403_v34 = vpop.xlane.xlu0 %1402  ;;  %v1184_v35 = vsel %vm1067_vm7, %v2576_v33, 0.0 }
 0x4d4   : > { %v1404_v39 = vsub.f32 %v1400_v19, %v1403_v34  ;;  %1185 = vadd.xlane.f32.xlu0 %v1184_v35  ;;  %v2271_v34 = vld [vmem:[%s3307_s2] ss:$0 sm:$0xff] }
 0x4d6   : > { %v1405_v40 = vmul.f32 1.442695, %v1404_v39 }
 0x4d8   : > { %2577 = vpow2.f32 %v1405_v40 }
 0x4d9   : > { %2579 = vpow2.f32 %v1294_v45 }
 0x4e1   : > { %1191 = vrot.lane.b32.xlu1 %v3017_v53, %s2701_s3 }
 0x4e2   : > { %v2578_v41 = vpop.eup %2577 }
 0x4e3   : > { %v1407_v42 = vsel %vm1067_vm7, %v2578_v41, 0.0  ;;  %v2580_v46 = vpop.eup %2579 }
 0x4e4   : > { %1408 = vadd.xlane.f32.xlu0 %v1407_v42  ;;  %v1296_v48 = vsel %vm1067_vm7, %v2580_v46, 0.0 }
 0x4fa   : > { %1302 = vrot.lane.b32.xlu0 %v3017_v53, %s2705_s24 }
 0x505   : > { %1297 = vadd.xlane.f32.xlu1 %v1296_v48 }
 0x516   : > { %1413 = vrot.lane.b32.xlu1 %v3017_v53, %s2707_s23 }
 0x55d   : > { %v1076_v49 = vpop.xlane.xlu1 %1075 }
 0x55e   : > { %2581 = vrcp.f32 %v1076_v49 }
 0x561   : > { %v1186_v50 = vpop.xlane.xlu0 %1185  ;;  %v1192_v54 = vpop.permute.xlu1 %1191 }
 0x562   : > { %2583 = vrcp.f32 %v1186_v50  ;;  %v1197_v57 = vsel %vm1083_vm6, %v1192_v54, 0  ;;  %v2546_v54 = vld [vmem:[%s2943_s5 + $0x10] ss:$8 sps:$4 sm:$0xff]  }
 0x568   : > { %v2582_v51 = vpop.eup %2581 }
 0x569   : > { %v1078_v52 = vmul.f32 %v2582_v51, %v2574_v31  ;;  %v2545_v51 = vld [vmem:[%s2943_s5 + $0x4] ss:$8 sps:$4 sm:$0xff]  }
 0x56b   : > { %v1079_v55 = vpack.c.bf16 %v1078_v52, %v1078_v52  ;;  %v2548_v52 = vld [vmem:[%s2943_s5 + $0x14] ss:$8 sps:$4 sm:$0xff]  }
 0x56c   : > { %v2584_v56 = vpop.eup %2583 }
 0x56d   : > { %2379 = vmatmul.mubr.msk.bf16.vlgmr.msra.gmra.mrb[8].mxu1 %vm1067_vm7, %v1079_v55  ;;  %v1188_v58 = vmul.f32 %v2584_v56, %v2576_v33  ;;  %v2551_v55 = vld [vmem:[%s2943_s5 + $0x24] ss:$8 sps:$4 sm:$0xff]   ;;  %v2549_v56 = vld [vmem:[%s2943_s5 + $0x20] ss:$8 sps:$4 sm:$0xff]  }
 0x56e   : > { %2389 = vmatpush3.bf16.msra.mxu1 %v1197_v57  ;;  %2390 = vmatprep.mubr.msk.bf16.mxu1 %vm2700_vm4, %v2699_v37  ;;  %v2552_v57 = vld [vmem:[%s2943_s5 + $0x30] ss:$8 sps:$4 sm:$0xff]  }
 0x56f   : > { %2400 = vmatprep.subr.bf16.mxu1 %v2699_v37  ;;  %v1189_v59 = vpack.c.bf16 %v1188_v58, %v1188_v58  ;;  %v2554_v58 = vld [vmem:[%s2943_s5 + $0x34] ss:$8 sps:$4 sm:$0xff]  }
 0x571   : > { %v1409_v53 = vpop.xlane.xlu0 %1408 }
 0x575   : > { %v1303_v60 = vpop.permute.xlu0 %1302  ;;  %2391 = vmatmul.mubr.msk.bf16.vlgmr.msra.gmra.mrb[12].mxu1 %vm1067_vm7, %v1189_v59 }
 0x576   : > { %v1308_v61 = vsel %vm1083_vm6, %v1303_v60, 0  ;;  %2402 = vmatprep.mubr.msk.bf16.mxu1 %vm2700_vm4, %v2699_v37 }
 0x577   : > { %2401 = vmatpush3.bf16.msra.mxu1 %v1308_v61 }
 0x578   : > { %2412 = vmatprep.subr.bf16.mxu1 %v2699_v37 }
 0x592   : > { %v1298_v62 = vpop.xlane.xlu1 %1297 }
 0x593   : > { %2585 = vrcp.f32 %v1298_v62  ;;  %v2277_v62 = vld [vmem:[%s3308_s4] ss:$0 sm:$0xff] }
 0x594   : > { %2587 = vrcp.f32 %v1409_v53 }
 0x596   : > { %v1414_v1 = vpop.permute.xlu1 %1413 }
 0x597   : > { %v1419_v4 = vsel %vm1083_vm6, %v1414_v1, 0 }
 0x59d   : > { %v2586_v63 = vpop.eup %2585 }
 0x59e   : > { %v1300_v0 = vmul.f32 %v2586_v63, %v2580_v46  ;;  %v2588_v3 = vpop.eup %2587 }
 0x59f   : > { %v1411_v5 = vmul.f32 %v2588_v3, %v2578_v41 }
 0x5a0   : > { %v1301_v2 = vpack.c.bf16 %v1300_v0, %v1300_v0  ;;  %v2278_v0 = vld [vmem:[%s3309_s22] ss:$0 sm:$0xff] }
 0x5a1   : > { %v1412_v6 = vpack.c.bf16 %v1411_v5, %v1411_v5  ;;  %v2556_v5 = vld [vmem:[%s2954_s18] sm:$0xff]  }
 0x5a2   : > { %2403 = vmatmul.mubr.msk.bf16.vlgmr.msra.gmra.mrb[16].mxu1 %vm1067_vm7, %v1301_v2 }
 0x5a3   : > { %2413 = vmatpush3.bf16.msra.mxu1 %v1419_v4  ;;  %2414 = vmatprep.mubr.msk.bf16.mxu1 %vm2700_vm4, %v2699_v37  ;;  %v2555_v4 = vld [vmem:[%s2954_s18 + $0x40] sm:$0xff]  }
 0x5a4   : > { %1655 = vmatprep.subr.bf16.mxu1 %v2545_v51 }
 0x5aa   : > { %2415 = vmatmul.mubr.msk.bf16.vlgmr.msra.gmra.mrb[20].mxu1 %vm1067_vm7, %v1412_v6  ;;  %v2557_v6 = vld [vmem:[%s2954_s18 + $0x48] sm:$0xff]  }
 0x5ab   : > { %1687 = vmatprep.mubr.bf16.mxu1 %v2698_v20  ;;  %v2542_v20 = vld [vmem:[%s2930_s21 + $0x18] sm:$0xff]  }
 0x5ac   : > { %2425 = vmatpush3.bf16.msra.mxu0 %v2542_v20  ;;  %v2569_v20 = vld [vmem:[%s2954_s18 + $0x78] sm:$0xff]  }
 0x5ad   : > { %2343 = vmatprep.subr.bf16.mxu0 %v2555_v4 }
 0x640   : > { %v1121_v8 = vpop.f32.mrb[8].mxu1 }
 0x641   : > { %v2380_v10 = vpop.f32.mrb[9].mxu1 }
 0x642   : > { %v1124_v11 = vpop.f32.mrb[10].mxu1  ;;  %v2560_v10 = vld [vmem:[%s2954_s18 + $0x10] sm:$0xff]  }
 0x643   : > { %v2381_v12 = vpop.f32.mrb[11].mxu1  ;;  %v2561_v11 = vld [vmem:[%s2954_s18 + $0x58] sm:$0xff]  }
 0x644   : > { %v2562_v12 = vld [vmem:[%s2954_s18 + $0x18] sm:$0xff]  }
 0x648   : > { %v1233_v13 = vpop.f32.mrb[12].mxu1 }
 0x649   : > { %1462 = vrot.lane.b32.xlu1 %v1233_v13, %s2706_s0  ;;  %v2392_v14 = vpop.f32.mrb[13].mxu1  ;;  %v2563_v13 = vld [vmem:[%s2954_s18 + $0x60] sm:$0xff]  }
 0x64a   : > { %v1236_v15 = vpop.f32.mrb[14].mxu1  ;;  %v2564_v14 = vld [vmem:[%s2954_s18 + $0x20] sm:$0xff]  }
 0x64b   : > { %v2393_v16 = vpop.f32.mrb[15].mxu1  ;;  %v2565_v15 = vld [vmem:[%s2954_s18 + $0x68] sm:$0xff]  }
 0x64c   : > { %v2566_v16 = vld [vmem:[%s2954_s18 + $0x28] sm:$0xff]  }
 0x675   : > { %v1344_v19 = vpop.f32.mrb[16].mxu1 }
 0x676   : > { %1466 = vrot.lane.b32.xlu0 %v1344_v19, %s2704_s7  ;;  %v2404_v21 = vpop.f32.mrb[17].mxu1  ;;  %v2570_v19 = vld [vmem:[%s2954_s18 + $0x38] sm:$0xff]  }
 0x677   : > { %v1347_v22 = vpop.f32.mrb[18].mxu1  ;;  %v1600_v21 = vld [vmem:[%s2948_s28] sm:$0x3] }
 0x678   : > { %v2405_v23 = vpop.f32.mrb[19].mxu1  ;;  %v1605_v22 = vrot.slane %v1600_v21, %v922_v38 }
 0x679   : > { %v1609_v23 = vrot.slane %v1600_v21, %v926_v47 }
 0x67d   : > { %v1455_v24 = vpop.f32.mrb[20].mxu1 }
 0x67e   : > { %1470 = vrot.lane.b32.xlu1 %v1455_v24, %s2703_s6  ;;  %v2416_v25 = vpop.f32.mrb[21].mxu1 }
 0x67f   : > { %v1458_v26 = vpop.f32.mrb[22].mxu1 }
 0x680   : > { %v2417_v27 = vpop.f32.mrb[23].mxu1 }
 0x6bb   : > { %v1463_v28 = vpop.permute.xlu1 %1462 }
 0x6bc   : > { %v1473_v37 = vsel %vm1019_vm5, %v1121_v8, %v1463_v28  ;;  %v2559_v8 = vld [vmem:[%s2954_s18 + $0x50] sm:$0xff]  }
 0x6e8   : > { %v1467_v29 = vpop.permute.xlu0 %1466 }
 0x6e9   : > { %v1475_v30 = vsel %vm1474_vm8, %v1473_v37, %v1467_v29 }
 0x6f0   : > { %v1471_v31 = vpop.permute.xlu1 %1470 }
 0x6f1   : > { %v1477_v32 = vsel %vm1476_vm9, %v1475_v30, %v1471_v31 }
 0x6f2   : > { %v1478_v33 = vpack.c.bf16 %v1477_v32, %v1477_v32 }
 0x6f4   : > { %2427 = vmatmul.mubr.msk.bf16.vlgmr.msra.gmra.mrb[12].mxu0 %vm880_vm3, %v1478_v33 }
 0x6f5   : > { %2344 = vmatpush3.bf16.msra.mxu0 %v2556_v5 }
 0x6f6   : > { %2345 = vmatprep.subr.bf16.mxu0 %v2557_v6 }
 0x6f9   : > { %2346 = vmatpush3.bf16.msra.mxu0 %v2558_v7 }
 0x6fa   : > { %2347 = vmatprep.subr.bf16.mxu0 %v2559_v8  ;;  %v2306_v8 = vld [vmem:[%s3313_s30] ss:$0 sm:$0xff] (!%p2305_p1) }
 0x6fd   : > { %2348 = vmatpush3.bf16.msra.mxu0 %v2560_v10 }
 0x6fe   : > { %2349 = vmatprep.subr.bf16.mxu0 %v2561_v11  ;;  %v2307_v11 = vld [vmem:[%s3314_s20] ss:$0 sm:$0xff] (!%p2305_p1) }
 0x701   : > { %2350 = vmatpush3.bf16.msra.mxu0 %v2562_v12 }
 0x702   : > { %2351 = vmatprep.subr.bf16.mxu0 %v2563_v13 }
 0x705   : > { %2352 = vmatpush3.bf16.msra.mxu0 %v2564_v14 }
 0x706   : > { %2353 = vmatprep.subr.bf16.mxu0 %v2565_v15 }
 0x709   : > { %2354 = vmatpush3.bf16.msra.mxu0 %v2566_v16 }
 0x70a   : > { %2355 = vmatprep.subr.bf16.mxu0 %v2567_v17 }
 0x70d   : > { %2356 = vmatpush3.bf16.msra.mxu0 %v2568_v18 }
 0x70e   : > { %2357 = vmatprep.subr.bf16.mxu0 %v2569_v20 }
 0x711   : > { %2358 = vmatpush3.bf16.msra.mxu0 %v2570_v19 }
 0x7c7   : > { %v1555_v35 = vpop.f32.mrb[12].mxu0 }
 0x7c8   : > { %v1556_v39 = vadd.f32 %v2271_v34, %v1555_v35  ;;  %v2428_v40 = vpop.f32.mrb[13].mxu0 }
 0x7c9   : > { %v1558_v41 = vpop.f32.mrb[14].mxu0 }
 0x7ca   : > { %v3089_v42 = vadd.f32 %v1556_v39, %v2968_v9  ;;  %v2429_v43 = vpop.f32.mrb[15].mxu0  ;;  %v2543_v9 = vld [vmem:[%s2943_s5] ss:$8 sps:$4 sm:$0xff]   ;;  %s3315_s5 = sld [smem:[#allocation32_spill]] (!%p2305_p1) }
 0x7cb   : > { %1656 = vmatpush1.bf16.msra.mxu1 %v2543_v9  ;;  %v2288_v9 = vld [vmem:[%s851_s29] ss:$0 sm:$0xff] }
 0x7cc   : > { %v1564_v44 = vsel %vm880_vm3, %v3089_v42, 0.0  ;;  %1657 = vmatprep.subr.bf16.mxu1 %v2548_v52 }
 0x7cd   : > { %1565 = vadd.xlane.f32.xlu0 %v1564_v44 }
 0x7cf   : > { %1658 = vmatpush1.bf16.msra.mxu1 %v2546_v54 }
 0x7d0   : > { %1659 = vmatprep.subr.bf16.mxu1 %v2551_v55  ;;  %v2308_v15 = vld [vmem:[%s3315_s5] ss:$0 sm:$0xff] (!%p2305_p1) }
 0x7d3   : > { %1660 = vmatpush1.bf16.msra.mxu1 %v2549_v56 }
 0x7d4   : > { %1661 = vmatprep.subr.bf16.mxu1 %v2554_v58 }
 0x7d7   : > { %1662 = vmatpush1.bf16.msra.mxu1 %v2552_v57 }
 0x85a   : > { %v1566_v45 = vpop.xlane.xlu0 %1565 }
 0x85b   : > { %v1567_v46 = vmul.f32 0.015625, %v1566_v45 }
 0x85d   : > { %v1568_v48 = vsub.f32 %v3089_v42, %v1567_v46 }
 0x85f   : > { %v1569_v49 = vmul.f32 %v1568_v48, %v1568_v48 }
 0x861   : > { %v1570_v50 = vsel %vm880_vm3, %v1569_v49, 0.0 }
 0x862   : > { %1571 = vadd.xlane.f32.xlu1 %v1570_v50 }
 0x8ef   : > { %v1572_v53 = vpop.xlane.xlu1 %1571 }
 0x8f0   : > { %v1573_v59 = vmul.f32 0.015625, %v1572_v53 }
 0x8f2   : > { %v1574_v60 = vadd.f32 1e-06, %v1573_v59 }
 0x8f4   : > { %2589 = vrsqrt.f32 %v1574_v60 }
 0x8fe   : > { %v2590_v61 = vpop.eup %2589 }
 0x8ff   : > { %v1576_v63 = vmul.f32 %v2590_v61, %v1568_v48 }
 0x901   : > { %v1583_v1 = vmul.f32 %v2277_v62, %v1576_v63 }
 0x903   : > { %v1590_v2 = vadd.f32 %v2278_v0, %v1583_v1  ;;  %v2595_v0 = vld [vmem:[%s3312_s19] sm:$0xff] (!%p2305_p1)   ;;  %v2596_v1 = vld [vmem:[%s3312_s19 + $0x8] sm:$0xff] (!%p2305_p1)  }
 0x905   : > { %v1591_v3 = vpack.c.bf16 %v1590_v2, %v1590_v2  ;;  %v2597_v2 = vld [vmem:[%s3312_s19 + $0x10] sm:$0xff] (!%p2305_p1)  }
 0x907   : > { %2287 = vmatmul.mubr.msk.bf16.vlgmr.msra.gmra.mrb[24].mxu1 %vm880_vm3, %v1591_v3  ;;  %v2598_v3 = vld [vmem:[%s3312_s19 + $0x18] sm:$0xff] (!%p2305_p1)  }
 0x9da   : > { %v1689_v24 = vpop.f32.mrb[24].mxu1 }
 0x9db   : > { %v1690_v25 = vadd.f32 %v1689_v24, %v1605_v22  ;;  %v1691_v26 = vpop.f32.mrb[25].mxu1 }
 0x9dc   : > { %v1692_v27 = vadd.f32 %v1691_v26, %v1609_v23  ;;  %v1693_v28 = vpop.f32.mrb[26].mxu1 }
 0x9dd   : > { %v1698_v29 = vmul.f32 0.044715, %v1690_v25  ;;  %v1694_v37 = vpop.f32.mrb[27].mxu1  ;;  %v1696_v47 = vmul.f32 0.5, %v1690_v25 }
 0x9de   : > { %v1699_v30 = vmul.f32 0.044715, %v1692_v27  ;;  %v1697_v44 = vmul.f32 0.5, %v1692_v27 }
 0x9df   : > { %v1700_v31 = vmul.f32 %v1698_v29, %v1690_v25 }
 0x9e0   : > { %v1701_v32 = vmul.f32 %v1699_v30, %v1692_v27 }
 0x9e1   : > { %v1702_v33 = vmul.f32 %v1700_v31, %v1690_v25 }
 0x9e2   : > { %v1703_v34 = vmul.f32 %v1701_v32, %v1692_v27 }
 0x9e3   : > { %v1704_v35 = vadd.f32 %v1702_v33, %v1690_v25 }
 0x9e4   : > { %v1705_v39 = vadd.f32 %v1703_v34, %v1692_v27 }
 0x9e5   : > { %v1706_v40 = vmul.f32 0.7978846, %v1704_v35 }
 0x9e6   : > { %v1707_v41 = vmul.f32 0.7978846, %v1705_v39 }
 0x9e7   : > { %2591 = vtanh.f32 %v1706_v40 }
 0x9e8   : > { %2593 = vtanh.f32 %v1707_v41 }
 0x9f1   : > { %v2592_v36 = vpop.eup %2591 }
 0x9f2   : > { %v2594_v38 = vpop.eup %2593  ;;  %v1710_v43 = vadd.f32 1.0, %v2592_v36 }
 0x9f3   : > { %v1711_v45 = vadd.f32 1.0, %v2594_v38 }
 0x9f4   : > { %v1712_v46 = vmul.f32 %v1710_v43, %v1696_v47 }
 0x9f5   : > { %v1713_v48 = vmul.f32 %v1711_v45, %v1697_v44 }
 0x9f6   : > { %v1714_v50 = vpack.c.bf16 %v1712_v46, %v1712_v46 }
 0x9f7   : > { %v1715_v49 = vpack.c.bf16 %v1713_v48, %v1713_v48 }
 0x9f9   : > { %1883 = vmatprep.mubr.bf16.mxu0 %v1715_v49 }
 0x9fa   : > { %1884 = vmatmul.mubr.bf16.vlgmr.msra.gmra.mrb[16].mxu0 %v1714_v50 }
 0xacd   : > { %v2359_v51 = vpop.f32.mrb[16].mxu0 }
 0xace   : > { %v2360_v52 = vpop.f32.mrb[17].mxu0 }
 0xacf   : > { %v2361_v54 = vadd.f32 %v2360_v52, %v2359_v51  ;;  %v2362_v55 = vpop.f32.mrb[18].mxu0  ;;  %1896 = sbr.rel (%p2305_p1) target bundleno = 3303 (0xce7), region = 108 }
 0xad0   : > { %v2363_v56 = vpop.f32.mrb[19].mxu0 }
 0xad1   : > { %v1886_v57 = vadd.f32 %v2361_v54, %v2288_v9 }
 0xad3   : > { %v1891_v58 = vadd.f32 %v1886_v57, %v3089_v42  ;;  %v2708_v42 = vmov (!%p2305_p1), 0.0  }
 0xad4   : > { %2430 = vmatprep.subr.bf16.mxu0 (!%p2305_p1), %v2708_v42  ;;  %2438 = vmatprep.mubr.msk.bf16.mxu0 (!%p2305_p1), %vm2709_vm10, %v2708_v42 }
 0xad5   : > { %1892 = vst.msk [vmem:[#allocation2] sm:$0xff] %vm880_vm3, %v1891_v58  ;;  %v1899_v53 = vsel (!%p2305_p1), %vm880_vm3, %v1891_v58, 0.0  ;;  %2431 = vmatpush3.bf16.msra.mxu0 (!%p2305_p1), %v2595_v0 }
 0xad6   : > { %1900 = vadd.xlane.f32.xlu0 %v1899_v53  ;;  %2432 = vmatprep.subr.bf16.mxu0 %v2708_v42 }
 0xad9   : > { %2433 = vmatpush3.bf16.msra.mxu0 %v2596_v1 }
 0xada   : > { %2434 = vmatprep.subr.bf16.mxu0 %v2708_v42 }
 0xadd   : > { %2435 = vmatpush3.bf16.msra.mxu0 %v2597_v2 }
 0xade   : > { %2436 = vmatprep.subr.bf16.mxu0 %v2708_v42 }
 0xae1   : > { %2437 = vmatpush3.bf16.msra.mxu0 %v2598_v3 }
 0xb63   : > { %v1901_v59 = vpop.xlane.xlu0 %1900 }
 0xb64   : > { %v1902_v60 = vmul.f32 0.015625, %v1901_v59 }
 0xb66   : > { %v1903_v61 = vsub.f32 %v1891_v58, %v1902_v60 }
 0xb68   : > { %v1904_v62 = vmul.f32 %v1903_v61, %v1903_v61 }
 0xb6a   : > { %v1905_v63 = vsel %vm880_vm3, %v1904_v62, 0.0 }
 0xb6b   : > { %1906 = vadd.xlane.f32.xlu0 %v1905_v63 }
 0xbf8   : > { %v1907_v4 = vpop.xlane.xlu0 %1906 }
 0xbf9   : > { %v1908_v5 = vmul.f32 0.015625, %v1907_v4 }
 0xbfb   : > { %v1909_v6 = vadd.f32 1e-06, %v1908_v5 }
 0xbfd   : > { %2599 = vrsqrt.f32 %v1909_v6 }
 0xc07   : > { %v2600_v7 = vpop.eup %2599 }
 0xc08   : > { %v1911_v10 = vmul.f32 %v2600_v7, %v1903_v61 }
 0xc0a   : > { %v1918_v12 = vmul.f32 %v2306_v8, %v1911_v10 }
 0xc0c   : > { %v1925_v13 = vadd.f32 %v2307_v11, %v1918_v12 }
 0xc0e   : > { %v1926_v14 = vpack.c.bf16 %v1925_v13, %v1925_v13 }
 0xc10   : > { %2439 = vmatmul.mubr.msk.bf16.vlgmr.msra.gmra.mrb[0].mxu0 %vm880_vm3, %v1926_v14 }
 0xce3   : > { %v2003_v16 = vpop.f32.mrb[0].mxu0 }
 0xce4   : > { %v2004_v17 = vadd.f32 %v2308_v15, %v2003_v16  ;;  %v2440_v18 = vpop.f32.mrb[1].mxu0 }
 0xce5   : > { %v2006_v20 = vpop.f32.mrb[2].mxu0 }
 0xce6   : > { %2009 = vst.msk [vmem:[%s797_s27] sm:$0xff] %vm1476_vm9, %v2004_v17  ;;  %v2441_v19 = vpop.f32.mrb[3].mxu0 }
 0xce7 PF: > { %s3316_s22 = sld [smem:[#allocation10_spill]]  ;;  %s3317_s28 = sld [smem:[#allocation7_spill]] }
 0xce8   : > { %s3319_s29 = sld [smem:[#allocation33_spill]]  ;;  %s2024_s26 = sshll.u32 %s797_s27, 4  ;;  %s2025_s26 = int_to_ptr.vmem [resolvable:$true] %s2024_s26 }
 0xce9   : > { %s2601_s24 = scalar_lea.vmem %s2025_s26, 128  ;;  %s2710_s0 = smov [#allocation3]  }
 0xcea   : > { %p2602_p2 = scmp.ne.s32.totalorder %s2025_s26, %s2601_s24  ;;  %s2605_s23 = sshll.u32 %s2710_s0, 4  ;;  %s2606_s23 = int_to_ptr.vmem [resolvable:$false] %s2605_s23 }
 0xceb   : > { %s2607_s21 = scalar_lea.vmem %s2606_s23, 256  ;;  %p2608_p6 = scmp.lt.s32.totalorder %s2025_s26, %s2606_s23 }
 0xcec   : > { %p2603_p4 = pnand %p2602_p2, %p2865_p3  ;;  %p2609_p7 = scmp.lt.s32.totalorder %s2607_s21, %s2601_s24 }
 0xced   : > { %s2315_s16 = sshll.u32 %s3316_s22, 7  ;;  %s3320_s6 = sand.u32 1, %s3317_s28  }
 0xcee   : > { %s3174_s3 = scalar_lea.hbm %s3319_s29, %s2315_s16  ;;  %s2011_s7 = scalar_lea.sflag [#allocation4], %s3320_s6 }
 0xcef   : > { %p2604_p5 = pneg %p2603_p4  ;;  %p2610_p8 = por %p2609_p7, %p2608_p6 }
 0xcf1   : > { %p2611_p10 = pnand %p2610_p8, %p2604_p5 }
 0xcf3   : > { %2614 = shalt.err (!%p2611_p10)
}
 0xcf4   : > { %s2615_s25 = scalar_lea.hbm %s3174_s3, 128  ;;  %s2619_s2 = scalar_lea.hbm %s3319_s29, 256 }
 0xcf5   : > { %p2616_p11 = scmp.ne.s32.totalorder %s3174_s3, %s2615_s25  ;;  %p2620_p0 = scmp.lt.u32.totalorder %s3174_s3, %s3319_s29 }
 0xcf6   : > { %p2621_p1 = scmp.lt.u32.totalorder %s2619_s2, %s2615_s25  ;;  %p2623_p4 = scmp.lt.u32.totalorder %s2615_s25, %s3174_s3 }
 0xcf7   : > { %p2617_p12 = pnand %p2616_p11, %p2865_p3 }
 0xcf8   : > { %p2622_p2 = por %p2621_p1, %p2620_p0 }
 0xcf9   : > { %p2618_p13 = pneg %p2617_p12 }
 0xcfa   : > { %p2624_p5 = por %p2623_p4, %p2622_p2 }
 0xcfc   : > { %p2625_p6 = pnand %p2624_p5, %p2618_p13 }
 0xcfe   : > { %2628 = shalt.err (!%p2625_p6)
}
 0xcff   : > { %2442 = dma.vmem_to_hbm [thread:$0]  (%p2865_p3), %s2025_s26, 128, %s3174_s3, %s2011_s7  }
 0xd00 PF: > { %s3321_s4 = sld [smem:[#allocation13_spill]]  ;;  %s3322_s15 = sld [smem:[#allocation6_spill]] }
 0xd06   : > { %p2448_p7 = scmp.ge.s32.totalorder %s3321_s4, 2  ;;  %s2036_s22 = sand.u32 1, %s3322_s15  }
 0xd07   : > { %s2037_s28 = scalar_lea.sflag [#allocation4], %s2036_s22 }
 0xd08   : > { %p2445_p8 = pnand %p2448_p7, %p2875_p9 }
 0xd0a   : > { %2662 = dma.done.wait (!%p2445_p8), %s2037_s28, 128  }
 0xd0b   : > { %2664 = vsyncadd (!%p2445_p8), %s2037_s28, 4294967168  ;;  %s33_s26 = sadd.s32 1, %s3321_s4   ;;  %s3324_s1 = sld [smem:[#allocation7_spill]] }
 0xd0c   : > { %p30_p10 = scmp.ge.s32.totalorder %s33_s26, 6   ;;  %s3325_s22 = sld [smem:[#allocation8_spill]] }
 0xd0d   : > { %s3326_s23 = sld [smem:[#allocation18_spill]]  ;;  %s3327_s24 = sld [smem:[#allocation11_spill]] }
 0xd0e   : > { %s3328_s2 = sld [smem:[#allocation12_spill]]  ;;  %s3329_s25 = sld [smem:[#allocation14_spill]] }
 0xd0f   : > { %s3330_s3 = sld [smem:[#allocation16_spill]]  ;;  %32 = sbr.rel (!%p30_p10) target bundleno = 21 (0x15), region = 182 }
 0xd16   :  { %2042 = vsyncpa [#allocation4], 1 }
 0xd17   :  { %2044 = vsyncpa [#allocation4 + $0x1], 1 }

</bundles_post_ra>
